<compile_context>
chip_gen: v7x
topology: tpu7x:2x2x1
jax: 0.10.0
libtpu: 0.0.40
codegen_flags: <defaults>
</compile_context>

<pallas_src>
import functools

import jax
import jax.numpy as jnp
from jax.experimental import pallas as pl
from jax.experimental.pallas import tpu as pltpu

EPS = 1e-5  # nn.LayerNorm default eps
_INV_SQRT2 = 0.7071067811865476


# ---------------------------------------------------------------------------
# One-time setup: ortho rfft2 / irfft2 as real basis matrices.
#   spectrum_real = x_flat @ Gr      spectrum_imag = x_flat @ Gi
#   x_out_flat    = Zr @ Hr + Zi @ Hi
# Built by pushing impulses through jnp.fft, so the convention matches
# torch.fft.rfft2 / irfft2 (norm='ortho') exactly (both are R-linear maps).
# ---------------------------------------------------------------------------
def build_rfft2_basis(H, W):
    Wf = W // 2 + 1
    HW, HWf = H * W, H * Wf
    eye_sp = jnp.eye(HW, dtype=jnp.float32).reshape(HW, H, W)
    F = jnp.fft.rfft2(eye_sp, axes=(1, 2), norm="ortho")            # (HW, H, Wf)
    Gr = jnp.real(F).reshape(HW, HWf).astype(jnp.float32)
    Gi = jnp.imag(F).reshape(HW, HWf).astype(jnp.float32)
    eye_fr = jnp.eye(HWf, dtype=jnp.complex64).reshape(HWf, H, Wf)
    Hr = jnp.fft.irfft2(eye_fr, s=(H, W), axes=(1, 2),
                        norm="ortho").reshape(HWf, HW).astype(jnp.float32)
    Hi = jnp.fft.irfft2(1j * eye_fr, s=(H, W), axes=(1, 2),
                        norm="ortho").reshape(HWf, HW).astype(jnp.float32)
    return Gr, Gi, Hr, Hi


def _pick_bt(B, C):
    """Items per grid step: fill ~256 MXU rows, but keep >= 2 grid steps."""
    target = max(1, 256 // max(C, 1))
    best = 1
    for d in range(1, min(B, target) + 1):
        if B % d == 0 and (B // d) >= 2:
            best = d
    return best


# ---------------------------------------------------------------------------
# Fused kernel: Bt batch items per grid step, data tile is (Bt*C, H*W).
# ---------------------------------------------------------------------------
def _spectral_block_kernel(x_ref, gcat_ref, gb_ref, w_ref, hcat_ref,
                           ln2_ref, w1_ref, w2_ref, bias_ref, o_ref,
                           *, bt, C, F, Hd):
    x = x_ref[...]                                                 # (M, HW) f32

    # ---- LayerNorm 1 (affine folded into gcat / gb) ------------------------
    mu = jnp.mean(x, axis=-1, keepdims=True)
    xc = x - mu
    var = jnp.mean(xc * xc, axis=-1, keepdims=True)                # biased var
    xhat = xc * jax.lax.rsqrt(var + EPS)

    # ---- rfft2 (ortho) as ONE fused bf16 matmul on the MXU -----------------
    # y = [yr | yi] with the frequency axis zero-padded to F lanes.
    y = jnp.dot(xhat.astype(jnp.bfloat16), gcat_ref[...],
                preferred_element_type=jnp.float32) + gb_ref[...]  # (M, 2F) f32

    # ---- learned per-channel complex filter (f32, VPU) ---------------------
    w = w_ref[...]                                                 # (M, 2F)
    yr, yi = y[:, :F], y[:, F:]
    wr, wi = w[:, :F], w[:, F:]
    zr = yr * wr - yi * wi
    zi = yr * wi + yi * wr
    z = jnp.concatenate([zr, zi], axis=-1)                         # (M, 2F)

    # ---- irfft2 (ortho) as ONE fused bf16 matmul ----------------------------
    xs = jnp.dot(z.astype(jnp.bfloat16), hcat_ref[...],
                 preferred_element_type=jnp.float32)               # (M, HW) f32

    # ---- LayerNorm 2 --------------------------------------------------------
    mu2 = jnp.mean(xs, axis=-1, keepdims=True)
    xc2 = xs - mu2
    var2 = jnp.mean(xc2 * xc2, axis=-1, keepdims=True)
    ln2 = ln2_ref[...]
    xn2 = xc2 * jax.lax.rsqrt(var2 + EPS) * ln2[0:1, :] + ln2[1:2, :]

    # ---- MLP (fc1 -> exact GELU -> fc2) per item, transposed layout ---------
    # Per-item loop keeps the live set to one (Hd, HW) h at a time, and the
    # residual re-reads x from VMEM instead of keeping it live in vregs.
    w1 = w1_ref[...]                                               # (Hd, C) bf16
    w2 = w2_ref[...]                                               # (C, Hd) bf16
    b1 = bias_ref[0:Hd, :]                                         # (Hd, 1) f32
    b2 = bias_ref[Hd:, :]                                          # (C, 1)  f32
    xn2_b16 = xn2.astype(jnp.bfloat16)
    for b in range(bt):
        lo, hi = b * C, (b + 1) * C
        h = jnp.dot(w1, xn2_b16[lo:hi, :],
                    preferred_element_type=jnp.float32) + b1       # (Hd, HW)
        h = 0.5 * h * (1.0 + jax.lax.erf(h * _INV_SQRT2))          # erf GELU
        yb = jnp.dot(w2, h.astype(jnp.bfloat16),
                     preferred_element_type=jnp.float32) + b2      # (C, HW)
        # dropout layers are identity (eval mode); residual re-read from VMEM
        o_ref[lo:hi, :] = yb + x_ref[lo:hi, :]


def spectral_block_forward(x, params, bt=None):
    B, C, H, W = x.shape
    HW = H * W
    Wf = W // 2 + 1
    HWf = H * Wf
    F = ((HWf + 127) // 128) * 128          # pad freq axis to a lane tile (144->256)
    Hd = params["fc1_w"].shape[0]

    if bt is None:
        bt = _pick_bt(B, C)
    assert B % bt == 0
    M = bt * C
    grid = (B // bt,)

    # ---- fold LN1 affine into the rfft basis, fuse & pad the bases ---------
    Gr, Gi, Hr, Hi = params["Gr"], params["Gi"], params["Hr"], params["Hi"]
    g1c = params["ln1_g"].reshape(HW, 1)
    b1r = params["ln1_b"].reshape(1, HW)

    def pad_cols(a):                                  # (r, HWf) -> (r, F)
        return jnp.pad(a, ((0, 0), (0, F - HWf)))

    def pad_rows(a):                                  # (HWf, c) -> (F, c)
        return jnp.pad(a, ((0, F - HWf), (0, 0)))

    gcat = jnp.concatenate([pad_cols(g1c * Gr), pad_cols(g1c * Gi)],
                           axis=1).astype(jnp.bfloat16)            # (HW, 2F)
    gbias = jnp.concatenate([pad_cols(b1r @ Gr), pad_cols(b1r @ Gi)],
                            axis=1).astype(jnp.float32)            # (1, 2F)
    hcat = jnp.concatenate([pad_rows(Hr), pad_rows(Hi)],
                           axis=0).astype(jnp.bfloat16)            # (2F, HW)

    # complex filter, packed [wr | wi], padded, tiled over the per-step batch
    wr = pad_cols(params["spec_wr"].reshape(C, HWf))
    wi = pad_cols(params["spec_wi"].reshape(C, HWf))
    wcat = jnp.tile(jnp.concatenate([wr, wi], axis=1),
                    (bt, 1)).astype(jnp.float32)                   # (M, 2F)

    ln2_pack = jnp.stack([params["ln2_g"].reshape(HW),
                          params["ln2_b"].reshape(HW)], axis=0)    # (2, HW)
    bias_pack = jnp.concatenate([params["fc1_b"].reshape(Hd, 1),
                                 params["fc2_b"].reshape(C, 1)],
                                axis=0).astype(jnp.float32)        # (Hd+C, 1)
    w1 = params["fc1_w"].astype(jnp.bfloat16)                      # (Hd, C)
    w2 = params["fc2_w"].astype(jnp.bfloat16)                      # (C, Hd)

    x2 = x.reshape(B * C, HW).astype(jnp.float32)

    row_spec = pl.BlockSpec((M, HW), lambda b: (b, 0))

    def const(shape):
        return pl.BlockSpec(shape, lambda b: (0,) * len(shape))

    kernel = functools.partial(_spectral_block_kernel, bt=bt, C=C, F=F, Hd=Hd)

    out = pl.pallas_call(
        kernel,
        out_shape=jax.ShapeDtypeStruct((B * C, HW), jnp.float32),
        grid=grid,
        in_specs=[row_spec,                        # x (Bt items per step)
                  const((HW, 2 * F)),              # fused rfft basis (LN1 folded)
                  const((1, 2 * F)),               # folded LN1 bias row
                  const((M, 2 * F)),               # complex filter [wr|wi]
                  const((2 * F, HW)),              # fused irfft basis
                  const((2, HW)),                  # LN2 gamma / beta
                  const((Hd, C)),                  # fc1 weight (bf16)
                  const((C, Hd)),                  # fc2 weight (bf16)
                  const((Hd + C, 1))],             # fc1/fc2 bias packed
        out_specs=row_spec,
        compiler_params=pltpu.CompilerParams(
            dimension_semantics=("parallel",),     # splits grid across TCs on v7x
            vmem_limit_bytes=32 * 1024 * 1024),
    )(x2, gcat, gbias, wcat, hcat, ln2_pack, w1, w2, bias_pack)

    return out.reshape(B, C, H, W)


# ---------------------------------------------------------------------------
# Pure-JAX reference (mirrors the PyTorch module, eval mode) for a self-check.
# ---------------------------------------------------------------------------
def _reference_forward(x, params):
    B, C, H, W = x.shape

    def ln(v, g, b):
        mu = jnp.mean(v, axis=(2, 3), keepdims=True)
        var = jnp.mean((v - mu) ** 2, axis=(2, 3), keepdims=True)
        return (v - mu) / jnp.sqrt(var + EPS) * g + b

    xn1 = ln(x, params["ln1_g"], params["ln1_b"])
    Y = jnp.fft.rfft2(xn1, axes=(2, 3), norm="ortho")
    Wc = params["spec_wr"] + 1j * params["spec_wi"]
    xs = jnp.fft.irfft2(Y * Wc, s=(H, W), axes=(2, 3), norm="ortho")
    xn2 = ln(xs, params["ln2_g"], params["ln2_b"])
    t = jnp.transpose(xn2, (0, 2, 3, 1))                       # NHWC
    h = jax.nn.gelu(t @ params["fc1_w"].T + params["fc1_b"], approximate=False)
    y = h @ params["fc2_w"].T + params["fc2_b"]
    return jnp.transpose(y, (0, 3, 1, 2)) + x


if __name__ == "__main__":
    # dim must hit one of the SpectralFFT branches {64,128,256,512}: dim=64.
    # B=8 so the kernel runs with Bt=4 items/step (M=256 MXU rows), grid=(2,).
    B, C, H, W = 8, 64, 16, 16
    mlp_ratio = 2.0
    hidden = int(C * mlp_ratio)          # 128
    Wf = W // 2 + 1                      # 9

    key = jax.random.PRNGKey(0)
    ks = jax.random.split(key, 10)
    x = jax.random.normal(ks[0], (B, C, H, W), jnp.float32)
    cw = 0.02 * jax.random.normal(ks[1], (C, H, Wf, 2), jnp.float32)  # complex_weight

    Gr, Gi, Hr, Hi = build_rfft2_basis(H, W)   # one-time init

    params = dict(
        ln1_g=1.0 + 0.1 * jax.random.normal(ks[2], (H, W), jnp.float32),
        ln1_b=0.1 * jax.random.normal(ks[3], (H, W), jnp.float32),
        ln2_g=1.0 + 0.1 * jax.random.normal(ks[4], (H, W), jnp.float32),
        ln2_b=0.1 * jax.random.normal(ks[5], (H, W), jnp.float32),
        spec_wr=cw[..., 0],
        spec_wi=cw[..., 1],
        fc1_w=0.05 * jax.random.normal(ks[6], (hidden, C), jnp.float32),  # fc1.weight
        fc1_b=0.05 * jax.random.normal(ks[7], (hidden,), jnp.float32),
        fc2_w=0.05 * jax.random.normal(ks[8], (C, hidden), jnp.float32),  # fc2.weight
        fc2_b=0.05 * jax.random.normal(ks[9], (C,), jnp.float32),
        Gr=Gr, Gi=Gi, Hr=Hr, Hi=Hi,
    )

    out = jax.jit(spectral_block_forward)(x, params)
    jax.block_until_ready(out)
    assert out.shape == (B, C, H, W) and out.dtype == jnp.float32

    ref = _reference_forward(x, params)
    max_err = float(jnp.max(jnp.abs(out - ref)))
    # bf16 MXU operands (f32 accumulation) -> tolerance relaxed vs pure-f32.
    assert max_err < 3e-2, f"mismatch vs reference: {max_err}"

    print("KERNEL_OK")
</pallas_src>

<mosaic_0001>
module attributes {stable_mosaic.version = 11 : i64} {
  func.func @_spectral_block_kernel(%arg0: i32, %arg1: memref<256x256xf32, #tpu.memory_space<vmem>>, %arg2: memref<256x512xbf16, #tpu.memory_space<vmem>>, %arg3: memref<1x512xf32, #tpu.memory_space<vmem>>, %arg4: memref<256x512xf32, #tpu.memory_space<vmem>>, %arg5: memref<512x256xbf16, #tpu.memory_space<vmem>>, %arg6: memref<2x256xf32, #tpu.memory_space<vmem>>, %arg7: memref<128x64xbf16, #tpu.memory_space<vmem>>, %arg8: memref<64x128xbf16, #tpu.memory_space<vmem>>, %arg9: memref<192x1xf32, #tpu.memory_space<vmem>>, %arg10: memref<256x256xf32, #tpu.memory_space<vmem>>) attributes {dimension_semantics = [#tpu.dimension_semantics<parallel>], iteration_bounds = array<i64: 2>, scalar_prefetch = 0 : i64, scratch_operands = 0 : i64, tpu.core_type = #tpu.core_type<tc>, window_params = [{transform_indices = @transform_0, window_bounds = array<i64: 256, 256>}, {pipeline_mode = #tpu.pipeline_mode<synchronous>, transform_indices = @transform_1, window_bounds = array<i64: 256, 512>}, {pipeline_mode = #tpu.pipeline_mode<synchronous>, transform_indices = @transform_2, window_bounds = array<i64: 1, 512>}, {pipeline_mode = #tpu.pipeline_mode<synchronous>, transform_indices = @transform_3, window_bounds = array<i64: 256, 512>}, {pipeline_mode = #tpu.pipeline_mode<synchronous>, transform_indices = @transform_4, window_bounds = array<i64: 512, 256>}, {pipeline_mode = #tpu.pipeline_mode<synchronous>, transform_indices = @transform_5, window_bounds = array<i64: 2, 256>}, {pipeline_mode = #tpu.pipeline_mode<synchronous>, transform_indices = @transform_6, window_bounds = array<i64: 128, 64>}, {pipeline_mode = #tpu.pipeline_mode<synchronous>, transform_indices = @transform_7, window_bounds = array<i64: 64, 128>}, {pipeline_mode = #tpu.pipeline_mode<synchronous>, transform_indices = @transform_8, window_bounds = array<i64: 192, 1>}, {transform_indices = @transform_9, window_bounds = array<i64: 256, 256>}]} {
    %c0 = arith.constant 0 : index
    %c0_0 = arith.constant 0 : index
    %0 = vector.load %arg1[%c0, %c0_0] : memref<256x256xf32, #tpu.memory_space<vmem>>, vector<256x256xf32>
    %cst = arith.constant dense<0.000000e+00> : vector<256xf32>
    %1 = vector.multi_reduction <add>, %0, %cst [1] : vector<256x256xf32> to vector<256xf32>
    %2 = vector.shape_cast %1 : vector<256xf32> to vector<256x1xf32>
    %cst_1 = arith.constant 2.560000e+02 : f32
    %3 = vector.broadcast %cst_1 : f32 to vector<256x1xf32>
    %4 = arith.divf %2, %3 : vector<256x1xf32>
    %5 = vector.broadcast %4 : vector<256x1xf32> to vector<256x256xf32>
    %6 = arith.subf %0, %5 : vector<256x256xf32>
    %7 = arith.mulf %6, %6 : vector<256x256xf32>
    %cst_2 = arith.constant dense<0.000000e+00> : vector<256xf32>
    %8 = vector.multi_reduction <add>, %7, %cst_2 [1] : vector<256x256xf32> to vector<256xf32>
    %9 = vector.shape_cast %8 : vector<256xf32> to vector<256x1xf32>
    %cst_3 = arith.constant 2.560000e+02 : f32
    %10 = vector.broadcast %cst_3 : f32 to vector<256x1xf32>
    %11 = arith.divf %9, %10 : vector<256x1xf32>
    %cst_4 = arith.constant 9.99999974E-6 : f32
    %12 = vector.broadcast %cst_4 : f32 to vector<256x1xf32>
    %13 = arith.addf %11, %12 : vector<256x1xf32>
    %14 = math.rsqrt %13 : vector<256x1xf32>
    %15 = vector.broadcast %14 : vector<256x1xf32> to vector<256x256xf32>
    %16 = arith.mulf %6, %15 : vector<256x256xf32>
    %17 = arith.truncf %16 : vector<256x256xf32> to vector<256x256xbf16>
    %c0_5 = arith.constant 0 : index
    %c0_6 = arith.constant 0 : index
    %18 = vector.load %arg2[%c0_5, %c0_6] : memref<256x512xbf16, #tpu.memory_space<vmem>>, vector<256x512xbf16>
    %cst_7 = arith.constant dense<0.000000e+00> : vector<256x512xf32>
    %19 = tpu.matmul %17, %18, %cst_7 {dimension_numbers = #tpu.dot_dimension_numbers<[1], [0], [0], [1], [0, 0, 1, 1], [], []>} : vector<256x256xbf16>, vector<256x512xbf16>, vector<256x512xf32> -> vector<256x512xf32>
    %c0_8 = arith.constant 0 : index
    %c0_9 = arith.constant 0 : index
    %20 = vector.load %arg3[%c0_8, %c0_9] : memref<1x512xf32, #tpu.memory_space<vmem>>, vector<1x512xf32>
    %21 = vector.broadcast %20 : vector<1x512xf32> to vector<256x512xf32>
    %22 = arith.addf %19, %21 : vector<256x512xf32>
    %c0_10 = arith.constant 0 : index
    %c0_11 = arith.constant 0 : index
    %23 = vector.load %arg4[%c0_10, %c0_11] : memref<256x512xf32, #tpu.memory_space<vmem>>, vector<256x512xf32>
    %24 = vector.extract_strided_slice %22 {offsets = [0, 0], sizes = [256, 256], strides = [1, 1]} : vector<256x512xf32> to vector<256x256xf32>
    %25 = vector.extract_strided_slice %22 {offsets = [0, 256], sizes = [256, 256], strides = [1, 1]} : vector<256x512xf32> to vector<256x256xf32>
    %26 = vector.extract_strided_slice %23 {offsets = [0, 0], sizes = [256, 256], strides = [1, 1]} : vector<256x512xf32> to vector<256x256xf32>
    %27 = vector.extract_strided_slice %23 {offsets = [0, 256], sizes = [256, 256], strides = [1, 1]} : vector<256x512xf32> to vector<256x256xf32>
    %28 = arith.mulf %24, %26 : vector<256x256xf32>
    %29 = arith.mulf %25, %27 : vector<256x256xf32>
    %30 = arith.subf %28, %29 : vector<256x256xf32>
    %31 = arith.mulf %24, %27 : vector<256x256xf32>
    %32 = arith.mulf %25, %26 : vector<256x256xf32>
    %33 = arith.addf %31, %32 : vector<256x256xf32>
    %34 = tpu.concatenate %30, %33 in 1 : vector<256x256xf32>, vector<256x256xf32> -> vector<256x512xf32>
    %35 = arith.truncf %34 : vector<256x512xf32> to vector<256x512xbf16>
    %c0_12 = arith.constant 0 : index
    %c0_13 = arith.constant 0 : index
    %36 = vector.load %arg5[%c0_12, %c0_13] : memref<512x256xbf16, #tpu.memory_space<vmem>>, vector<512x256xbf16>
    %cst_14 = arith.constant dense<0.000000e+00> : vector<256x256xf32>
    %37 = tpu.matmul %35, %36, %cst_14 {dimension_numbers = #tpu.dot_dimension_numbers<[1], [0], [0], [1], [0, 0, 1, 1], [], []>} : vector<256x512xbf16>, vector<512x256xbf16>, vector<256x256xf32> -> vector<256x256xf32>
    %cst_15 = arith.constant dense<0.000000e+00> : vector<256xf32>
    %38 = vector.multi_reduction <add>, %37, %cst_15 [1] : vector<256x256xf32> to vector<256xf32>
    %39 = vector.shape_cast %38 : vector<256xf32> to vector<256x1xf32>
    %cst_16 = arith.constant 2.560000e+02 : f32
    %40 = vector.broadcast %cst_16 : f32 to vector<256x1xf32>
    %41 = arith.divf %39, %40 : vector<256x1xf32>
    %42 = vector.broadcast %41 : vector<256x1xf32> to vector<256x256xf32>
    %43 = arith.subf %37, %42 : vector<256x256xf32>
    %44 = arith.mulf %43, %43 : vector<256x256xf32>
    %cst_17 = arith.constant dense<0.000000e+00> : vector<256xf32>
    %45 = vector.multi_reduction <add>, %44, %cst_17 [1] : vector<256x256xf32> to vector<256xf32>
    %46 = vector.shape_cast %45 : vector<256xf32> to vector<256x1xf32>
    %cst_18 = arith.constant 2.560000e+02 : f32
    %47 = vector.broadcast %cst_18 : f32 to vector<256x1xf32>
    %48 = arith.divf %46, %47 : vector<256x1xf32>
    %c0_19 = arith.constant 0 : index
    %c0_20 = arith.constant 0 : index
    %49 = vector.load %arg6[%c0_19, %c0_20] : memref<2x256xf32, #tpu.memory_space<vmem>>, vector<2x256xf32>
    %cst_21 = arith.constant 9.99999974E-6 : f32
    %50 = vector.broadcast %cst_21 : f32 to vector<256x1xf32>
    %51 = arith.addf %48, %50 : vector<256x1xf32>
    %52 = math.rsqrt %51 : vector<256x1xf32>
    %53 = vector.broadcast %52 : vector<256x1xf32> to vector<256x256xf32>
    %54 = arith.mulf %43, %53 : vector<256x256xf32>
    %55 = vector.extract_strided_slice %49 {offsets = [0, 0], sizes = [1, 256], strides = [1, 1]} : vector<2x256xf32> to vector<1x256xf32>
    %56 = vector.broadcast %55 : vector<1x256xf32> to vector<256x256xf32>
    %57 = arith.mulf %54, %56 : vector<256x256xf32>
    %58 = vector.extract_strided_slice %49 {offsets = [1, 0], sizes = [1, 256], strides = [1, 1]} : vector<2x256xf32> to vector<1x256xf32>
    %59 = vector.broadcast %58 : vector<1x256xf32> to vector<256x256xf32>
    %60 = arith.addf %57, %59 : vector<256x256xf32>
    %c0_22 = arith.constant 0 : index
    %c0_23 = arith.constant 0 : index
    %61 = vector.load %arg7[%c0_22, %c0_23] : memref<128x64xbf16, #tpu.memory_space<vmem>>, vector<128x64xbf16>
    %c0_24 = arith.constant 0 : index
    %c0_25 = arith.constant 0 : index
    %62 = vector.load %arg8[%c0_24, %c0_25] : memref<64x128xbf16, #tpu.memory_space<vmem>>, vector<64x128xbf16>
    %c0_26 = arith.constant 0 : index
    %c0_27 = arith.constant 0 : index
    %63 = vector.load %arg9[%c0_26, %c0_27] : memref<192x1xf32, #tpu.memory_space<vmem>>, vector<128x1xf32>
    %c128 = arith.constant 128 : index
    %c0_28 = arith.constant 0 : index
    %64 = vector.load %arg9[%c128, %c0_28] : memref<192x1xf32, #tpu.memory_space<vmem>>, vector<64x1xf32>
    %65 = arith.truncf %60 : vector<256x256xf32> to vector<256x256xbf16>
    %66 = vector.extract_strided_slice %65 {offsets = [0, 0], sizes = [64, 256], strides = [1, 1]} : vector<256x256xbf16> to vector<64x256xbf16>
    %cst_29 = arith.constant dense<0.000000e+00> : vector<128x256xf32>
    %67 = tpu.matmul %61, %66, %cst_29 {dimension_numbers = #tpu.dot_dimension_numbers<[1], [0], [0], [1], [0, 0, 1, 1], [], []>} : vector<128x64xbf16>, vector<64x256xbf16>, vector<128x256xf32> -> vector<128x256xf32>
    %68 = vector.broadcast %63 : vector<128x1xf32> to vector<128x256xf32>
    %69 = arith.addf %67, %68 : vector<128x256xf32>
    %cst_30 = arith.constant 5.000000e-01 : f32
    %70 = vector.broadcast %cst_30 : f32 to vector<128x256xf32>
    %71 = arith.mulf %70, %69 : vector<128x256xf32>
    %cst_31 = arith.constant 0.707106769 : f32
    %72 = vector.broadcast %cst_31 : f32 to vector<128x256xf32>
    %73 = arith.mulf %69, %72 : vector<128x256xf32>
    %74 = math.erf %73 : vector<128x256xf32>
    %cst_32 = arith.constant 1.000000e+00 : f32
    %75 = vector.broadcast %cst_32 : f32 to vector<128x256xf32>
    %76 = arith.addf %75, %74 : vector<128x256xf32>
    %77 = arith.mulf %71, %76 : vector<128x256xf32>
    %78 = arith.truncf %77 : vector<128x256xf32> to vector<128x256xbf16>
    %cst_33 = arith.constant dense<0.000000e+00> : vector<64x256xf32>
    %79 = tpu.matmul %62, %78, %cst_33 {dimension_numbers = #tpu.dot_dimension_numbers<[1], [0], [0], [1], [0, 0, 1, 1], [], []>} : vector<64x128xbf16>, vector<128x256xbf16>, vector<64x256xf32> -> vector<64x256xf32>
    %80 = vector.broadcast %64 : vector<64x1xf32> to vector<64x256xf32>
    %81 = arith.addf %79, %80 : vector<64x256xf32>
    %c0_34 = arith.constant 0 : index
    %c0_35 = arith.constant 0 : index
    %82 = vector.load %arg1[%c0_34, %c0_35] : memref<256x256xf32, #tpu.memory_space<vmem>>, vector<64x256xf32>
    %83 = arith.addf %81, %82 : vector<64x256xf32>
    %c0_36 = arith.constant 0 : index
    %c0_37 = arith.constant 0 : index
    %84 = vector.load %arg10[%c0_36, %c0_37] : memref<256x256xf32, #tpu.memory_space<vmem>>, vector<64x256xf32>
    tpu.vector_store %arg10[%c0_36, %c0_37], %83 {strides = array<i32>} : memref<256x256xf32, #tpu.memory_space<vmem>>, vector<64x256xf32>,
    %85 = vector.extract_strided_slice %65 {offsets = [64, 0], sizes = [64, 256], strides = [1, 1]} : vector<256x256xbf16> to vector<64x256xbf16>
    %cst_38 = arith.constant dense<0.000000e+00> : vector<128x256xf32>
    %86 = tpu.matmul %61, %85, %cst_38 {dimension_numbers = #tpu.dot_dimension_numbers<[1], [0], [0], [1], [0, 0, 1, 1], [], []>} : vector<128x64xbf16>, vector<64x256xbf16>, vector<128x256xf32> -> vector<128x256xf32>
    %87 = vector.broadcast %63 : vector<128x1xf32> to vector<128x256xf32>
    %88 = arith.addf %86, %87 : vector<128x256xf32>
    %cst_39 = arith.constant 5.000000e-01 : f32
    %89 = vector.broadcast %cst_39 : f32 to vector<128x256xf32>
    %90 = arith.mulf %89, %88 : vector<128x256xf32>
    %cst_40 = arith.constant 0.707106769 : f32
    %91 = vector.broadcast %cst_40 : f32 to vector<128x256xf32>
    %92 = arith.mulf %88, %91 : vector<128x256xf32>
    %93 = math.erf %92 : vector<128x256xf32>
    %cst_41 = arith.constant 1.000000e+00 : f32
    %94 = vector.broadcast %cst_41 : f32 to vector<128x256xf32>
    %95 = arith.addf %94, %93 : vector<128x256xf32>
    %96 = arith.mulf %90, %95 : vector<128x256xf32>
    %97 = arith.truncf %96 : vector<128x256xf32> to vector<128x256xbf16>
    %cst_42 = arith.constant dense<0.000000e+00> : vector<64x256xf32>
    %98 = tpu.matmul %62, %97, %cst_42 {dimension_numbers = #tpu.dot_dimension_numbers<[1], [0], [0], [1], [0, 0, 1, 1], [], []>} : vector<64x128xbf16>, vector<128x256xbf16>, vector<64x256xf32> -> vector<64x256xf32>
    %99 = vector.broadcast %64 : vector<64x1xf32> to vector<64x256xf32>
    %100 = arith.addf %98, %99 : vector<64x256xf32>
    %c64 = arith.constant 64 : index
    %c0_43 = arith.constant 0 : index
    %101 = vector.load %arg1[%c64, %c0_43] : memref<256x256xf32, #tpu.memory_space<vmem>>, vector<64x256xf32>
    %102 = arith.addf %100, %101 : vector<64x256xf32>
    %c64_44 = arith.constant 64 : index
    %c0_45 = arith.constant 0 : index
    %103 = vector.load %arg10[%c64_44, %c0_45] : memref<256x256xf32, #tpu.memory_space<vmem>>, vector<64x256xf32>
    tpu.vector_store %arg10[%c64_44, %c0_45], %102 {strides = array<i32>} : memref<256x256xf32, #tpu.memory_space<vmem>>, vector<64x256xf32>,
    %104 = vector.extract_strided_slice %65 {offsets = [128, 0], sizes = [64, 256], strides = [1, 1]} : vector<256x256xbf16> to vector<64x256xbf16>
    %cst_46 = arith.constant dense<0.000000e+00> : vector<128x256xf32>
    %105 = tpu.matmul %61, %104, %cst_46 {dimension_numbers = #tpu.dot_dimension_numbers<[1], [0], [0], [1], [0, 0, 1, 1], [], []>} : vector<128x64xbf16>, vector<64x256xbf16>, vector<128x256xf32> -> vector<128x256xf32>
    %106 = vector.broadcast %63 : vector<128x1xf32> to vector<128x256xf32>
    %107 = arith.addf %105, %106 : vector<128x256xf32>
    %cst_47 = arith.constant 5.000000e-01 : f32
    %108 = vector.broadcast %cst_47 : f32 to vector<128x256xf32>
    %109 = arith.mulf %108, %107 : vector<128x256xf32>
    %cst_48 = arith.constant 0.707106769 : f32
    %110 = vector.broadcast %cst_48 : f32 to vector<128x256xf32>
    %111 = arith.mulf %107, %110 : vector<128x256xf32>
    %112 = math.erf %111 : vector<128x256xf32>
    %cst_49 = arith.constant 1.000000e+00 : f32
    %113 = vector.broadcast %cst_49 : f32 to vector<128x256xf32>
    %114 = arith.addf %113, %112 : vector<128x256xf32>
    %115 = arith.mulf %109, %114 : vector<128x256xf32>
    %116 = arith.truncf %115 : vector<128x256xf32> to vector<128x256xbf16>
    %cst_50 = arith.constant dense<0.000000e+00> : vector<64x256xf32>
    %117 = tpu.matmul %62, %116, %cst_50 {dimension_numbers = #tpu.dot_dimension_numbers<[1], [0], [0], [1], [0, 0, 1, 1], [], []>} : vector<64x128xbf16>, vector<128x256xbf16>, vector<64x256xf32> -> vector<64x256xf32>
    %118 = vector.broadcast %64 : vector<64x1xf32> to vector<64x256xf32>
    %119 = arith.addf %117, %118 : vector<64x256xf32>
    %c128_51 = arith.constant 128 : index
    %c0_52 = arith.constant 0 : index
    %120 = vector.load %arg1[%c128_51, %c0_52] : memref<256x256xf32, #tpu.memory_space<vmem>>, vector<64x256xf32>
    %121 = arith.addf %119, %120 : vector<64x256xf32>
    %c128_53 = arith.constant 128 : index
    %c0_54 = arith.constant 0 : index
    %122 = vector.load %arg10[%c128_53, %c0_54] : memref<256x256xf32, #tpu.memory_space<vmem>>, vector<64x256xf32>
    tpu.vector_store %arg10[%c128_53, %c0_54], %121 {strides = array<i32>} : memref<256x256xf32, #tpu.memory_space<vmem>>, vector<64x256xf32>,
    %123 = vector.extract_strided_slice %65 {offsets = [192, 0], sizes = [64, 256], strides = [1, 1]} : vector<256x256xbf16> to vector<64x256xbf16>
    %cst_55 = arith.constant dense<0.000000e+00> : vector<128x256xf32>
    %124 = tpu.matmul %61, %123, %cst_55 {dimension_numbers = #tpu.dot_dimension_numbers<[1], [0], [0], [1], [0, 0, 1, 1], [], []>} : vector<128x64xbf16>, vector<64x256xbf16>, vector<128x256xf32> -> vector<128x256xf32>
    %125 = vector.broadcast %63 : vector<128x1xf32> to vector<128x256xf32>
    %126 = arith.addf %124, %125 : vector<128x256xf32>
    %cst_56 = arith.constant 5.000000e-01 : f32
    %127 = vector.broadcast %cst_56 : f32 to vector<128x256xf32>
    %128 = arith.mulf %127, %126 : vector<128x256xf32>
    %cst_57 = arith.constant 0.707106769 : f32
    %129 = vector.broadcast %cst_57 : f32 to vector<128x256xf32>
    %130 = arith.mulf %126, %129 : vector<128x256xf32>
    %131 = math.erf %130 : vector<128x256xf32>
    %cst_58 = arith.constant 1.000000e+00 : f32
    %132 = vector.broadcast %cst_58 : f32 to vector<128x256xf32>
    %133 = arith.addf %132, %131 : vector<128x256xf32>
    %134 = arith.mulf %128, %133 : vector<128x256xf32>
    %135 = arith.truncf %134 : vector<128x256xf32> to vector<128x256xbf16>
    %cst_59 = arith.constant dense<0.000000e+00> : vector<64x256xf32>
    %136 = tpu.matmul %62, %135, %cst_59 {dimension_numbers = #tpu.dot_dimension_numbers<[1], [0], [0], [1], [0, 0, 1, 1], [], []>} : vector<64x128xbf16>, vector<128x256xbf16>, vector<64x256xf32> -> vector<64x256xf32>
    %137 = vector.broadcast %64 : vector<64x1xf32> to vector<64x256xf32>
    %138 = arith.addf %136, %137 : vector<64x256xf32>
    %c192 = arith.constant 192 : index
    %c0_60 = arith.constant 0 : index
    %139 = vector.load %arg1[%c192, %c0_60] : memref<256x256xf32, #tpu.memory_space<vmem>>, vector<64x256xf32>
    %140 = arith.addf %138, %139 : vector<64x256xf32>
    %c192_61 = arith.constant 192 : index
    %c0_62 = arith.constant 0 : index
    %141 = vector.load %arg10[%c192_61, %c0_62] : memref<256x256xf32, #tpu.memory_space<vmem>>, vector<64x256xf32>
    tpu.vector_store %arg10[%c192_61, %c0_62], %140 {strides = array<i32>} : memref<256x256xf32, #tpu.memory_space<vmem>>, vector<64x256xf32>,
    return
  }
  func.func @transform_0(%arg0: i32) -> (i32, i32) {
    %c0_i32 = arith.constant 0 : i32
    %c0_i32_0 = arith.constant 0 : i32
    return %arg0, %c0_i32 : i32, i32
  }
  func.func @transform_1(%arg0: i32) -> (i32, i32) {
    %c0_i32 = arith.constant 0 : i32
    %c0_i32_0 = arith.constant 0 : i32
    %c0_i32_1 = arith.constant 0 : i32
    return %c0_i32, %c0_i32_0 : i32, i32
  }
  func.func @transform_2(%arg0: i32) -> (i32, i32) {
    %c0_i32 = arith.constant 0 : i32
    %c0_i32_0 = arith.constant 0 : i32
    %c0_i32_1 = arith.constant 0 : i32
    return %c0_i32, %c0_i32_0 : i32, i32
  }
  func.func @transform_3(%arg0: i32) -> (i32, i32) {
    %c0_i32 = arith.constant 0 : i32
    %c0_i32_0 = arith.constant 0 : i32
    %c0_i32_1 = arith.constant 0 : i32
    return %c0_i32, %c0_i32_0 : i32, i32
  }
  func.func @transform_4(%arg0: i32) -> (i32, i32) {
    %c0_i32 = arith.constant 0 : i32
    %c0_i32_0 = arith.constant 0 : i32
    %c0_i32_1 = arith.constant 0 : i32
    return %c0_i32, %c0_i32_0 : i32, i32
  }
  func.func @transform_5(%arg0: i32) -> (i32, i32) {
    %c0_i32 = arith.constant 0 : i32
    %c0_i32_0 = arith.constant 0 : i32
    %c0_i32_1 = arith.constant 0 : i32
    return %c0_i32, %c0_i32_0 : i32, i32
  }
  func.func @transform_6(%arg0: i32) -> (i32, i32) {
    %c0_i32 = arith.constant 0 : i32
    %c0_i32_0 = arith.constant 0 : i32
    %c0_i32_1 = arith.constant 0 : i32
    return %c0_i32, %c0_i32_0 : i32, i32
  }
  func.func @transform_7(%arg0: i32) -> (i32, i32) {
    %c0_i32 = arith.constant 0 : i32
    %c0_i32_0 = arith.constant 0 : i32
    %c0_i32_1 = arith.constant 0 : i32
    return %c0_i32, %c0_i32_0 : i32, i32
  }
  func.func @transform_8(%arg0: i32) -> (i32, i32) {
    %c0_i32 = arith.constant 0 : i32
    %c0_i32_0 = arith.constant 0 : i32
    %c0_i32_1 = arith.constant 0 : i32
    return %c0_i32, %c0_i32_0 : i32, i32
  }
  func.func @transform_9(%arg0: i32) -> (i32, i32) {
    %c0_i32 = arith.constant 0 : i32
    %c0_i32_0 = arith.constant 0 : i32
    return %arg0, %c0_i32 : i32, i32
  }
}

</mosaic_0001>

<bundles_post_ra>
// kernel: mul.9
= control target key start
LH: loop header
LB: loop body
LE: loop exit
PB: predicated region body
PF: predicated region fallthrough
CT: control target
= control target key end

     0   :  { %s7_s6 = smov 3  ;;  %s21_s9 = smov 3  ;;  %vm4_vm0 = vcmask 130048   ;;  %vm11_vm1 = vcmask 1048448   ;;  %vm18_vm2 = vcmask 917248   ;;  %vm25_vm3 = vcmask 786048   ;;  %s119_s0 = inlined_call_operand.vmem [shape: f32[16,16], index: 0, kind: input, shape index: {}]   ;;  %s120_s1 = inlined_call_operand.vmem [shape: f32[256], index: 1, kind: output, shape index: {}]  }
   0x1   :  { %v61_v0 = vld [vmem:[%s119_s0 + $0x7] ss:$8 sm:%s7_s6]   ;;  %s75_s10 = smov 112   ;;  %v63_v1 = vld [vmem:[%s119_s0 + $0x5] ss:$8 sm:%s21_s9]   ;;  %s14_s13 = smov 3 }
   0x2   :  { %9 = vrot.lane.b32.xlu0 %v61_v0, %s75_s10  ;;  %s76_s14 = smov 80   ;;  %v62_v2 = vld [vmem:[%s119_s0 + $0x6] ss:$8 sm:%s14_s13]   ;;  %s28_s17 = smov 3  ;;  %vm32_vm4 = vcmask 654848   ;;  %vm39_vm5 = vcmask 523648  }
   0x3   :  { %23 = vrot.lane.b32.xlu1 %v63_v1, %s76_s14  ;;  %v64_v3 = vld [vmem:[%s119_s0 + $0x4] ss:$8 sm:%s28_s17]   ;;  %s35_s20 = smov 3  ;;  %s42_s21 = smov 3  ;;  %vm46_vm6 = vcmask 392448   ;;  %vm53_vm7 = vcmask 261248  }
   0x4   :  { %s77_s22 = smov 96   ;;  %s78_s23 = smov 64   ;;  %v65_v4 = vld [vmem:[%s119_s0 + $0x3] ss:$8 sm:%s35_s20]   ;;  %v66_v5 = vld [vmem:[%s119_s0 + $0x2] ss:$8 sm:%s42_s21]  }
   0x5   :  { %s2_s26 = smov 3  ;;  %s49_s29 = smov 3 }
   0x6   :  { %16 = vrot.lane.b32.xlu0 %v62_v2, %s77_s22  ;;  %v3_v6 = vld [vmem:[%s119_s0] ss:$8 sm:%s2_s26]   ;;  %s79_s3 = smov 48   ;;  %s80_s4 = smov 32  }
   0x7   :  { %30 = vrot.lane.b32.xlu1 %v64_v3, %s78_s23  ;;  %5 = vst.msk [vmem:[#allocation0] sm:$0x3] %vm4_vm0, %v3_v6   ;;  %v67_v7 = vld [vmem:[%s119_s0 + $0x1] ss:$8 sm:%s49_s29]   ;;  %s81_s0 = smov 16  }
   0xa   :  { %37 = vrot.lane.b32.xlu0 %v65_v4, %s79_s3 }
   0xb   :  { %44 = vrot.lane.b32.xlu1 %v66_v5, %s80_s4 }
   0xe   :  { %51 = vrot.lane.b32.xlu0 %v67_v7, %s81_s0 }
  0x74   :  { %v10_v8 = vpop.permute.xlu0 %9  }
  0x75   :  { %12 = vst.msk [vmem:[#allocation0] sm:$0x3] %vm11_vm1, %v10_v8   ;;  %v24_v9 = vpop.permute.xlu1 %23  }
  0x78   :  { %v17_v10 = vpop.permute.xlu0 %16  }
  0x79   :  { %19 = vst.msk [vmem:[#allocation0] sm:$0x3] %vm18_vm2, %v17_v10   ;;  %v31_v11 = vpop.permute.xlu1 %30  }
  0x7a   :  { %26 = vst.msk [vmem:[#allocation0] sm:$0x3] %vm25_vm3, %v24_v9  }
  0x7b   :  { %33 = vst.msk [vmem:[#allocation0] sm:$0x3] %vm32_vm4, %v31_v11  }
  0x7c   :  { %v38_v12 = vpop.permute.xlu0 %37  }
  0x7d   :  { %40 = vst.msk [vmem:[#allocation0] sm:$0x3] %vm39_vm5, %v38_v12   ;;  %v45_v13 = vpop.permute.xlu1 %44  }
  0x7e   :  { %47 = vst.msk [vmem:[#allocation0] sm:$0x3] %vm46_vm6, %v45_v13  }
  0x80   :  { %v52_v14 = vpop.permute.xlu0 %51  }
  0x81   :  { %54 = vst.msk [vmem:[#allocation0] sm:$0x3] %vm53_vm7, %v52_v14  }
  0x88   :  { %v58_v15 = vld [vmem:[#allocation0] sm:$0x3] }
  0x89   :  { %60 = vst [vmem:[%s120_s1] sm:$0x3] %v58_v15 }

// kernel: spectral_block_forward.1
= control target key start
LH: loop header
LB: loop body
LE: loop exit
PB: predicated region body
PF: predicated region fallthrough
CT: control target
= control target key end

     0   :  { %s6679_s30 = smov 0   ;;  %s10797_s0 = inlined_call_operand.vmem [shape: f32[512,256], index: 0, kind: input, shape index: {}]   ;;  %s10798_s1 = inlined_call_operand.vmem [shape: bf16[256,512], index: 1, kind: input, shape index: {}]   ;;  %s10799_s2 = inlined_call_operand.vmem [shape: f32[1,512], index: 2, kind: input, shape index: {}]   ;;  %s10800_s3 = inlined_call_operand.vmem [shape: f32[256,512], index: 3, kind: input, shape index: {}]   ;;  %s10801_s4 = inlined_call_operand.vmem [shape: bf16[512,256], index: 4, kind: input, shape index: {}]   ;;  %s10802_s5 = inlined_call_operand.vmem [shape: f32[2,256], index: 5, kind: input, shape index: {}]   ;;  %s10803_s6 = inlined_call_operand.vmem [shape: bf16[128,64], index: 6, kind: input, shape index: {}]   ;;  %s10804_s7 = inlined_call_operand.vmem [shape: bf16[64,128], index: 7, kind: input, shape index: {}]   ;;  %s10805_s8 = inlined_call_operand.vmem [shape: f32[192,1], index: 8, kind: input, shape index: {}]   ;;  %s10806_s9 = inlined_call_operand.vmem [shape: f32[512,256], index: 9, kind: output, shape index: {}]  }
   0x1 LB: > { %s5754_s10 = sadd.s32 4294967295, %s6626_s30   ;;  %p5758_p0 = scmp.ge.s32.totalorder %s6626_s30, 1  ;;  %s6626_s30 = sphi %s6679_s30, %s19_s30  }
   0x2   : > { %p289_p1 = scmp.lt.s32.totalorder %s6626_s30, 3 }
   0x4   : > { %p290_p2 = pnand %p5758_p0, %p289_p1 }
   0x6   : > { %293 = sbr.rel (%p290_p2) target bundleno = 2591 (0xa1f), region = 56 }
   0xd   : > { %s5759_s11 = sshll.u32 %s5754_s10, 5  ;;  %vm3967_vm0 = vcmask 523264  }
   0xe   : > { %p328_p3 = scmp.lt.s32.totalorder %s5759_s11, 63 }
  0x10   : > { %s11414_s11 = smov (!%p328_p3, %s5759_s11), 63 }
  0x11   : > { %s5939_s12 = sshll.u32 %s11414_s11, 4 }
  0x12   : > { %s6695_s15 = scalar_lea.vmem %s10797_s0, %s5939_s12  ;;  %s10109_s27 = scalar_lea.vmem %s10806_s9, %s5939_s12 }
  0x13   : > { %v6698_v0 = vld [vmem:[%s6695_s15] sm:$0xff]  ;;  %v6701_v1 = vld [vmem:[%s6695_s15 + $0x8] sm:$0xff]  ;;  %v6704_v2 = vld [vmem:[%s6695_s15 + $0x10] sm:$0xff] }
  0x14   : > { %v406_v3 = vadd.f32 %v6701_v1, %v6698_v0  ;;  %v6709_v4 = vld [vmem:[%s6695_s15 + $0x18] sm:$0xff]  ;;  %v6712_v5 = vld [vmem:[%s6695_s15 + $0x20] sm:$0xff]  ;;  %v6715_v6 = vld [vmem:[%s6695_s15 + $0x28] sm:$0xff] }
  0x15   : > { %v412_v7 = vadd.f32 %v6715_v6, %v6712_v5  ;;  %v6720_v8 = vld [vmem:[%s6695_s15 + $0x30] sm:$0xff]  ;;  %v6723_v9 = vld [vmem:[%s6695_s15 + $0x38] sm:$0xff]  ;;  %v409_v10 = vadd.f32 %v6709_v4, %v6704_v2  ;;  %v6730_v12 = vld [vmem:[%s6695_s15 + $0x40] sm:$0xff] }
  0x16   : > { %407 = vadd.xlane.f32.xlu0 %v406_v3  ;;  %v415_v11 = vadd.f32 %v6723_v9, %v6720_v8  ;;  %v6733_v13 = vld [vmem:[%s6695_s15 + $0x48] sm:$0xff]  ;;  %v6736_v14 = vld [vmem:[%s6695_s15 + $0x50] sm:$0xff]  ;;  %v6739_v15 = vld [vmem:[%s6695_s15 + $0x58] sm:$0xff] }
  0x17   : > { %413 = vadd.xlane.f32.xlu1 %v412_v7  ;;  %v418_v16 = vadd.f32 %v6733_v13, %v6730_v12  ;;  %v421_v17 = vadd.f32 %v6739_v15, %v6736_v14  ;;  %v6746_v18 = vld [vmem:[%s6695_s15 + $0x60] sm:$0xff]  ;;  %v6749_v19 = vld [vmem:[%s6695_s15 + $0x68] sm:$0xff]  ;;  %v6752_v20 = vld [vmem:[%s6695_s15 + $0x70] sm:$0xff] }
  0x18   : > { %v6755_v21 = vld [vmem:[%s6695_s15 + $0x78] sm:$0xff]  ;;  %v424_v22 = vadd.f32 %v6749_v19, %v6746_v18  ;;  %v6762_v24 = vld [vmem:[%s6695_s15 + $0x80] sm:$0xff]  ;;  %v6765_v25 = vld [vmem:[%s6695_s15 + $0x88] sm:$0xff] }
  0x19   : > { %v427_v23 = vadd.f32 %v6755_v21, %v6752_v20  ;;  %v6768_v26 = vld [vmem:[%s6695_s15 + $0x90] sm:$0xff]  ;;  %v6771_v27 = vld [vmem:[%s6695_s15 + $0x98] sm:$0xff]  ;;  %v6774_v28 = vld [vmem:[%s6695_s15 + $0xa0] sm:$0xff]  ;;  %v430_v30 = vadd.f32 %v6765_v25, %v6762_v24 }
  0x1a   : > { %410 = vadd.xlane.f32.xlu0 %v409_v10  ;;  %v6777_v29 = vld [vmem:[%s6695_s15 + $0xa8] sm:$0xff]  ;;  %v6782_v31 = vld [vmem:[%s6695_s15 + $0xb0] sm:$0xff]  ;;  %v6785_v32 = vld [vmem:[%s6695_s15 + $0xb8] sm:$0xff]  ;;  %v433_v33 = vadd.f32 %v6771_v27, %v6768_v26 }
  0x1b   : > { %416 = vadd.xlane.f32.xlu1 %v415_v11  ;;  %v6790_v34 = vld [vmem:[%s6695_s15 + $0xc0] sm:$0xff]  ;;  %v6793_v35 = vld [vmem:[%s6695_s15 + $0xc8] sm:$0xff]  ;;  %v436_v36 = vadd.f32 %v6777_v29, %v6774_v28  ;;  %v6798_v37 = vld [vmem:[%s6695_s15 + $0xd0] sm:$0xff]  ;;  %v439_v39 = vadd.f32 %v6785_v32, %v6782_v31 }
  0x1c   : > { %v6801_v38 = vld [vmem:[%s6695_s15 + $0xd8] sm:$0xff]  ;;  %v6806_v40 = vld [vmem:[%s6695_s15 + $0xe0] sm:$0xff]  ;;  %v6809_v41 = vld [vmem:[%s6695_s15 + $0xe8] sm:$0xff]  ;;  %v442_v42 = vadd.f32 %v6793_v35, %v6790_v34 }
  0x1d   : > { %v445_v43 = vadd.f32 %v6801_v38, %v6798_v37  ;;  %v6816_v44 = vld [vmem:[%s6695_s15 + $0xf0] sm:$0xff]  ;;  %v6819_v45 = vld [vmem:[%s6695_s15 + $0xf8] sm:$0xff]  ;;  %v6822_v46 = vld [vmem:[%s6695_s15 + $0x100] sm:$0xff]  ;;  %v448_v48 = vadd.f32 %v6809_v41, %v6806_v40 }
  0x1e   : > { %419 = vadd.xlane.f32.xlu0 %v418_v16  ;;  %v6825_v47 = vld [vmem:[%s6695_s15 + $0x108] sm:$0xff]  ;;  %v6830_v49 = vld [vmem:[%s6695_s15 + $0x110] sm:$0xff]  ;;  %v6833_v50 = vld [vmem:[%s6695_s15 + $0x118] sm:$0xff]  ;;  %v451_v51 = vadd.f32 %v6819_v45, %v6816_v44 }
  0x1f   : > { %422 = vadd.xlane.f32.xlu1 %v421_v17  ;;  %v6838_v52 = vld [vmem:[%s6695_s15 + $0x120] sm:$0xff]  ;;  %v6841_v53 = vld [vmem:[%s6695_s15 + $0x128] sm:$0xff]  ;;  %v454_v54 = vadd.f32 %v6825_v47, %v6822_v46  ;;  %v457_v55 = vadd.f32 %v6833_v50, %v6830_v49  ;;  %v6848_v56 = vld [vmem:[%s6695_s15 + $0x130] sm:$0xff] }
  0x20   : > { %v6851_v57 = vld [vmem:[%s6695_s15 + $0x138] sm:$0xff]  ;;  %v6854_v58 = vld [vmem:[%s6695_s15 + $0x140] sm:$0xff]  ;;  %v6857_v59 = vld [vmem:[%s6695_s15 + $0x148] sm:$0xff]  ;;  %v460_v60 = vadd.f32 %v6841_v53, %v6838_v52 }
  0x21   : > { %v463_v61 = vadd.f32 %v6851_v57, %v6848_v56  ;;  %v6864_v62 = vld [vmem:[%s6695_s15 + $0x150] sm:$0xff]  ;;  %v6867_v63 = vld [vmem:[%s6695_s15 + $0x158] sm:$0xff]  ;;  %v466_v3 = vadd.f32 %v6857_v59, %v6854_v58 }
  0x22   : > { %425 = vadd.xlane.f32.xlu0 %v424_v22  ;;  %v469_v7 = vadd.f32 %v6867_v63, %v6864_v62  ;;  %v6016_v10 = vld [vmem:[%s10798_s1 + $0x4] ss:$16 sps:$4 sm:$0xff]   ;;  %v6018_v11 = vld [vmem:[%s10798_s1 + $0xc] ss:$16 sps:$4 sm:$0xff]   ;;  %v6020_v16 = vld [vmem:[%s10798_s1] ss:$16 sps:$4 sm:$0xff]  }
  0x23   : > { %428 = vadd.xlane.f32.xlu1 %v427_v23  ;;  %v6021_v17 = vld [vmem:[%s10798_s1 + $0x8] ss:$16 sps:$4 sm:$0xff]   ;;  %v6022_v22 = vld [vmem:[%s10798_s1 + $0x24] ss:$16 sps:$4 sm:$0xff]   ;;  %v6024_v23 = vld [vmem:[%s10798_s1 + $0x2c] ss:$16 sps:$4 sm:$0xff]   ;;  %1357 = vmatprep.subr.bf16.mxu0 %v6016_v10 }
  0x24   : > { %1550 = vmatprep.subr.bf16.mxu1 %v6018_v11  ;;  %1358 = vmatpush1.bf16.msra.mxu0 %v6020_v16  ;;  %v6046_v10 = vld [vmem:[%s10798_s1 + $0xa4] ss:$16 sps:$4 sm:$0xff]   ;;  %v6048_v11 = vld [vmem:[%s10798_s1 + $0xac] ss:$16 sps:$4 sm:$0xff]   ;;  %v6050_v16 = vld [vmem:[%s10798_s1 + $0xa0] ss:$16 sps:$4 sm:$0xff]  }
  0x25   : > { %1551 = vmatpush1.bf16.msra.mxu1 %v6021_v17  ;;  %1359 = vmatprep.subr.bf16.mxu0 %v6022_v22  ;;  %v6051_v17 = vld [vmem:[%s10798_s1 + $0xa8] ss:$16 sps:$4 sm:$0xff]   ;;  %v6052_v22 = vld [vmem:[%s10798_s1 + $0xc4] ss:$16 sps:$4 sm:$0xff]  }
  0x26   : > { %431 = vadd.xlane.f32.xlu0 %v430_v30  ;;  %v6026_v30 = vld [vmem:[%s10798_s1 + $0x20] ss:$16 sps:$4 sm:$0xff]   ;;  %1552 = vmatprep.subr.bf16.mxu1 %v6024_v23  ;;  %v6054_v23 = vld [vmem:[%s10798_s1 + $0xcc] ss:$16 sps:$4 sm:$0xff]  }
  0x27   : > { %434 = vadd.xlane.f32.xlu1 %v433_v33  ;;  %v6027_v33 = vld [vmem:[%s10798_s1 + $0x28] ss:$16 sps:$4 sm:$0xff]  }
  0x28   : > { %1360 = vmatpush1.bf16.msra.mxu0 %v6026_v30  ;;  %v6056_v30 = vld [vmem:[%s10798_s1 + $0xc0] ss:$16 sps:$4 sm:$0xff]  }
  0x29   : > { %1553 = vmatpush1.bf16.msra.mxu1 %v6027_v33  ;;  %v6057_v33 = vld [vmem:[%s10798_s1 + $0xc8] ss:$16 sps:$4 sm:$0xff]  }
  0x2a   : > { %437 = vadd.xlane.f32.xlu0 %v436_v36  ;;  %v6028_v36 = vld [vmem:[%s10798_s1 + $0x44] ss:$16 sps:$4 sm:$0xff]  }
  0x2b   : > { %440 = vadd.xlane.f32.xlu1 %v439_v39  ;;  %v6030_v39 = vld [vmem:[%s10798_s1 + $0x4c] ss:$16 sps:$4 sm:$0xff]   ;;  %1361 = vmatprep.subr.bf16.mxu0 %v6028_v36  ;;  %v6058_v36 = vld [vmem:[%s10798_s1 + $0xe4] ss:$16 sps:$4 sm:$0xff]  }
  0x2c   : > { %1554 = vmatprep.subr.bf16.mxu1 %v6030_v39  ;;  %v6060_v39 = vld [vmem:[%s10798_s1 + $0xec] ss:$16 sps:$4 sm:$0xff]  }
  0x2e   : > { %443 = vadd.xlane.f32.xlu0 %v442_v42  ;;  %v6032_v42 = vld [vmem:[%s10798_s1 + $0x40] ss:$16 sps:$4 sm:$0xff]  }
  0x2f   : > { %446 = vadd.xlane.f32.xlu1 %v445_v43  ;;  %v6033_v43 = vld [vmem:[%s10798_s1 + $0x48] ss:$16 sps:$4 sm:$0xff]   ;;  %1362 = vmatpush1.bf16.msra.mxu0 %v6032_v42  ;;  %v6062_v42 = vld [vmem:[%s10798_s1 + $0xe0] ss:$16 sps:$4 sm:$0xff]  }
  0x30   : > { %1555 = vmatpush1.bf16.msra.mxu1 %v6033_v43  ;;  %v6063_v43 = vld [vmem:[%s10798_s1 + $0xe8] ss:$16 sps:$4 sm:$0xff]  }
  0x32   : > { %449 = vadd.xlane.f32.xlu0 %v448_v48  ;;  %v6034_v48 = vld [vmem:[%s10798_s1 + $0x64] ss:$16 sps:$4 sm:$0xff]  }
  0x33   : > { %452 = vadd.xlane.f32.xlu1 %v451_v51  ;;  %v6036_v51 = vld [vmem:[%s10798_s1 + $0x6c] ss:$16 sps:$4 sm:$0xff]   ;;  %1363 = vmatprep.subr.bf16.mxu0 %v6034_v48  ;;  %v6064_v48 = vld [vmem:[%s10798_s1 + $0x104] ss:$16 sps:$4 sm:$0xff]  }
  0x34   : > { %1556 = vmatprep.subr.bf16.mxu1 %v6036_v51  ;;  %v6066_v51 = vld [vmem:[%s10798_s1 + $0x10c] ss:$16 sps:$4 sm:$0xff]  }
  0x36   : > { %455 = vadd.xlane.f32.xlu0 %v454_v54  ;;  %v6038_v54 = vld [vmem:[%s10798_s1 + $0x60] ss:$16 sps:$4 sm:$0xff]  }
  0x37   : > { %458 = vadd.xlane.f32.xlu1 %v457_v55  ;;  %v6039_v55 = vld [vmem:[%s10798_s1 + $0x68] ss:$16 sps:$4 sm:$0xff]   ;;  %1364 = vmatpush1.bf16.msra.mxu0 %v6038_v54  ;;  %v6068_v54 = vld [vmem:[%s10798_s1 + $0x100] ss:$16 sps:$4 sm:$0xff]  }
  0x38   : > { %1557 = vmatpush1.bf16.msra.mxu1 %v6039_v55  ;;  %v6069_v55 = vld [vmem:[%s10798_s1 + $0x108] ss:$16 sps:$4 sm:$0xff]  }
  0x3a   : > { %461 = vadd.xlane.f32.xlu0 %v460_v60  ;;  %v6040_v60 = vld [vmem:[%s10798_s1 + $0x84] ss:$16 sps:$4 sm:$0xff]  }
  0x3b   : > { %464 = vadd.xlane.f32.xlu1 %v463_v61  ;;  %v6042_v61 = vld [vmem:[%s10798_s1 + $0x8c] ss:$16 sps:$4 sm:$0xff]   ;;  %1365 = vmatprep.subr.bf16.mxu0 %v6040_v60  ;;  %v6070_v60 = vld [vmem:[%s10798_s1 + $0x124] ss:$16 sps:$4 sm:$0xff]  }
  0x3c   : > { %1558 = vmatprep.subr.bf16.mxu1 %v6042_v61  ;;  %v6072_v61 = vld [vmem:[%s10798_s1 + $0x12c] ss:$16 sps:$4 sm:$0xff]  }
  0x3e   : > { %467 = vadd.xlane.f32.xlu0 %v466_v3  ;;  %v6044_v3 = vld [vmem:[%s10798_s1 + $0x80] ss:$16 sps:$4 sm:$0xff]  }
  0x3f   : > { %470 = vadd.xlane.f32.xlu1 %v469_v7  ;;  %v6045_v7 = vld [vmem:[%s10798_s1 + $0x88] ss:$16 sps:$4 sm:$0xff]   ;;  %1366 = vmatpush1.bf16.msra.mxu0 %v6044_v3  ;;  %v6074_v3 = vld [vmem:[%s10798_s1 + $0x120] ss:$16 sps:$4 sm:$0xff]  }
  0x40   : > { %1559 = vmatpush1.bf16.msra.mxu1 %v6045_v7  ;;  %1367 = vmatprep.subr.bf16.mxu0 %v6046_v10  ;;  %v6075_v7 = vld [vmem:[%s10798_s1 + $0x128] ss:$16 sps:$4 sm:$0xff]  }
  0x41   : > { %1560 = vmatprep.subr.bf16.mxu1 %v6048_v11 }
  0x43   : > { %1368 = vmatpush1.bf16.msra.mxu0 %v6050_v16 }
  0x44   : > { %1561 = vmatpush1.bf16.msra.mxu1 %v6051_v17  ;;  %1369 = vmatprep.subr.bf16.mxu0 %v6052_v22 }
  0x45   : > { %1562 = vmatprep.subr.bf16.mxu1 %v6054_v23 }
  0x47   : > { %1370 = vmatpush1.bf16.msra.mxu0 %v6056_v30 }
  0x48   : > { %1563 = vmatpush1.bf16.msra.mxu1 %v6057_v33  ;;  %1371 = vmatprep.subr.bf16.mxu0 %v6058_v36 }
  0x49   : > { %1564 = vmatprep.subr.bf16.mxu1 %v6060_v39 }
  0x4b   : > { %1372 = vmatpush1.bf16.msra.mxu0 %v6062_v42 }
  0x4c   : > { %1565 = vmatpush1.bf16.msra.mxu1 %v6063_v43  ;;  %1373 = vmatprep.subr.bf16.mxu0 %v6064_v48 }
  0x4d   : > { %1566 = vmatprep.subr.bf16.mxu1 %v6066_v51 }
  0x4f   : > { %1374 = vmatpush1.bf16.msra.mxu0 %v6068_v54 }
  0x50   : > { %1567 = vmatpush1.bf16.msra.mxu1 %v6069_v55  ;;  %1375 = vmatprep.subr.bf16.mxu0 %v6070_v60 }
  0x51   : > { %1568 = vmatprep.subr.bf16.mxu1 %v6072_v61 }
  0x53   : > { %1376 = vmatpush1.bf16.msra.mxu0 %v6074_v3 }
  0x54   : > { %1569 = vmatpush1.bf16.msra.mxu1 %v6075_v7 }
  0xa3   : > { %v408_v10 = vpop.xlane.xlu0 %407 }
  0xa4   : > { %v503_v11 = vmul.f32 0.00390625, %v408_v10  ;;  %v414_v16 = vpop.xlane.xlu1 %413 }
  0xa5   : > { %v505_v17 = vmul.f32 0.00390625, %v414_v16  ;;  %v7041_v16 = vld [vmem:[%s6695_s15 + $0x178] sm:$0xff] }
  0xa6   : > { %v6994_v22 = vsub.f32 %v6698_v0, %v503_v11  ;;  %v6997_v23 = vsub.f32 %v6701_v1, %v503_v11  ;;  %v7010_v0 = vld [vmem:[%s6695_s15 + $0x160] sm:$0xff]  ;;  %v7013_v1 = vld [vmem:[%s6695_s15 + $0x168] sm:$0xff]  ;;  %v7038_v11 = vld [vmem:[%s6695_s15 + $0x170] sm:$0xff] }
  0xa7   : > { %v411_v30 = vpop.xlane.xlu0 %410  ;;  %v7000_v33 = vsub.f32 %v6712_v5, %v505_v17  ;;  %v7003_v36 = vsub.f32 %v6715_v6, %v505_v17  ;;  %v472_v60 = vadd.f32 %v7013_v1, %v7010_v0 }
  0xa8   : > { %v504_v39 = vmul.f32 0.00390625, %v411_v30  ;;  %v599_v42 = vmul.f32 %v6994_v22, %v6994_v22  ;;  %v600_v43 = vmul.f32 %v6997_v23, %v6997_v23  ;;  %v417_v48 = vpop.xlane.xlu1 %416 }
  0xa9   : > { %11005 = vst [vmem:[#allocation2_spill] sm:$0xff] %v7000_v33  ;;  %11006 = vst [vmem:[#allocation3_spill] sm:$0xff] %v7003_v36  ;;  %v506_v51 = vmul.f32 0.00390625, %v417_v48  ;;  %v603_v3 = vmul.f32 %v7000_v33, %v7000_v33  ;;  %v604_v7 = vmul.f32 %v7003_v36, %v7003_v36 }
  0xaa   : > { %v7016_v5 = vsub.f32 %v6704_v2, %v504_v39  ;;  %v7019_v6 = vsub.f32 %v6709_v4, %v504_v39  ;;  %v663_v54 = vadd.f32 %v600_v43, %v599_v42 }
  0xab   : > { %v7022_v55 = vsub.f32 %v6720_v8, %v506_v51  ;;  %v420_v61 = vpop.xlane.xlu0 %419  ;;  %v7031_v2 = vsub.f32 %v6723_v9, %v506_v51  ;;  %v669_v39 = vadd.f32 %v604_v7, %v603_v3  ;;  %v475_v9 = vadd.f32 %v7041_v16, %v7038_v11  ;;  %v7057_v3 = vld [vmem:[%s6695_s15 + $0x188] sm:$0xff] }
  0xac   : > { %11007 = vst [vmem:[#allocation4_spill] sm:$0xff] %v7016_v5  ;;  %664 = vadd.xlane.f32.xlu0 %v663_v54  ;;  %v601_v4 = vmul.f32 %v7016_v5, %v7016_v5  ;;  %v602_v8 = vmul.f32 %v7019_v6, %v7019_v6  ;;  %v507_v10 = vmul.f32 0.00390625, %v420_v61  ;;  %v423_v17 = vpop.xlane.xlu1 %422  ;;  %v7054_v61 = vld [vmem:[%s6695_s15 + $0x180] sm:$0xff] }
  0xad   : > { %11008 = vst [vmem:[#allocation5_spill] sm:$0xff] %v7022_v55  ;;  %11009 = vst [vmem:[#allocation6_spill] sm:$0xff] %v7031_v2  ;;  %v508_v42 = vmul.f32 0.00390625, %v423_v17  ;;  %v605_v43 = vmul.f32 %v7022_v55, %v7022_v55  ;;  %v606_v7 = vmul.f32 %v7031_v2, %v7031_v2  ;;  %v7073_v55 = vld [vmem:[%s6695_s15 + $0x198] sm:$0xff] }
  0xae   : > { %v666_v30 = vadd.f32 %v602_v8, %v601_v4  ;;  %v7048_v51 = vsub.f32 %v6730_v12, %v507_v10  ;;  %v7051_v54 = vsub.f32 %v6733_v13, %v507_v10  ;;  %v478_v12 = vadd.f32 %v7057_v3, %v7054_v61 }
  0xaf   : > { %v426_v48 = vpop.xlane.xlu0 %425  ;;  %v7062_v8 = vsub.f32 %v6736_v14, %v508_v42  ;;  %v672_v10 = vadd.f32 %v606_v7, %v605_v43  ;;  %v7086_v43 = vld [vmem:[%s6695_s15 + $0x1a0] sm:$0xff] }
  0xb0   : > { %473 = vadd.xlane.f32.xlu0 %v472_v60  ;;  %667 = vadd.xlane.f32.xlu1 %v666_v30  ;;  %11010 = vst [vmem:[#allocation7_spill] sm:$0xff] %v7048_v51  ;;  %11011 = vst [vmem:[#allocation8_spill] sm:$0xff] %v7051_v54  ;;  %v429_v4 = vpop.xlane.xlu1 %428  ;;  %v7065_v60 = vsub.f32 %v6739_v15, %v508_v42  ;;  %v509_v17 = vmul.f32 0.00390625, %v426_v48  ;;  %v7070_v30 = vld [vmem:[%s6695_s15 + $0x190] sm:$0xff]  ;;  %v607_v14 = vmul.f32 %v7048_v51, %v7048_v51 }
  0xb1   : > { %11012 = vst [vmem:[#allocation9_spill] sm:$0xff] %v7062_v8  ;;  %v608_v15 = vmul.f32 %v7051_v54, %v7051_v54  ;;  %v481_v33 = vadd.f32 %v7073_v55, %v7070_v30  ;;  %v510_v2 = vmul.f32 0.00390625, %v429_v4  ;;  %v7097_v54 = vld [vmem:[%s6695_s15 + $0x1a8] sm:$0xff] }
  0xb2   : > { %11013 = vst [vmem:[#allocation10_spill] sm:$0xff] %v7065_v60  ;;  %v7091_v7 = vsub.f32 %v6746_v18, %v509_v17  ;;  %v7094_v51 = vsub.f32 %v6749_v19, %v509_v17  ;;  %v6080_v18 = vld [vmem:[%s10798_s1 + $0x140] ss:$16 sps:$4 sm:$0xff]   ;;  %v6081_v19 = vld [vmem:[%s10798_s1 + $0x148] ss:$16 sps:$4 sm:$0xff]  }
  0xb3   : > { %v432_v13 = vpop.xlane.xlu0 %431  ;;  %v675_v4 = vadd.f32 %v608_v15, %v607_v14  ;;  %v7115_v17 = vsub.f32 %v6755_v21, %v510_v2  ;;  %v484_v14 = vadd.f32 %v7097_v54, %v7086_v43  ;;  %v7120_v15 = vld [vmem:[%s6695_s15 + $0x1b0] sm:$0xff] }
  0xb4   : > { %670 = vadd.xlane.f32.xlu0 %v669_v39  ;;  %476 = vadd.xlane.f32.xlu1 %v475_v9  ;;  %v435_v42 = vpop.xlane.xlu1 %434  ;;  %v609_v39 = vmul.f32 %v7062_v8, %v7062_v8  ;;  %v610_v9 = vmul.f32 %v7065_v60, %v7065_v60  ;;  %11014 = vst [vmem:[#allocation11_spill] sm:$0xff] %v7091_v7  ;;  %11015 = vst [vmem:[#allocation12_spill] sm:$0xff] %v7094_v51  ;;  %v6076_v8 = vld [vmem:[%s10798_s1 + $0x144] ss:$16 sps:$4 sm:$0xff]   ;;  %v6078_v60 = vld [vmem:[%s10798_s1 + $0x14c] ss:$16 sps:$4 sm:$0xff]  }
  0xb5   : > { %1377 = vmatprep.subr.bf16.mxu0 %v6076_v8  ;;  %1570 = vmatprep.subr.bf16.mxu1 %v6078_v60  ;;  %11017 = vst [vmem:[#allocation14_spill] sm:$0xff] %v7115_v17  ;;  %v511_v5 = vmul.f32 0.00390625, %v432_v13  ;;  %v7123_v8 = vld [vmem:[%s6695_s15 + $0x1b8] sm:$0xff]  ;;  %v612_v21 = vmul.f32 %v7094_v51, %v7094_v51  ;;  %v6086_v13 = vld [vmem:[%s10798_s1 + $0x160] ss:$16 sps:$4 sm:$0xff]   ;;  %v7157_v51 = vld [vmem:[%s6695_s15 + $0x1c8] sm:$0xff] }
  0xb6   : > { %1378 = vmatpush1.bf16.msra.mxu0 %v6080_v18  ;;  %1571 = vmatpush1.bf16.msra.mxu1 %v6081_v19  ;;  %v678_v36 = vadd.f32 %v610_v9, %v609_v39  ;;  %v6087_v39 = vld [vmem:[%s10798_s1 + $0x168] ss:$16 sps:$4 sm:$0xff]   ;;  %v487_v9 = vadd.f32 %v7123_v8, %v7120_v15  ;;  %v614_v19 = vmul.f32 %v7115_v17, %v7115_v17  ;;  %v6088_v17 = vld [vmem:[%s10798_s1 + $0x184] ss:$16 sps:$4 sm:$0xff]  }
  0xb7   : > { %v7088_v48 = vpop.xlane.xlu0 %437  ;;  %11021 = vst [vmem:[#allocation18_spill] sm:$0xff] %v7157_v51 }
  0xb8   : > { %479 = vadd.xlane.f32.xlu0 %v478_v12  ;;  %673 = vadd.xlane.f32.xlu1 %v672_v10  ;;  %v441_v12 = vpop.xlane.xlu1 %440  ;;  %v7112_v10 = vsub.f32 %v6752_v20, %v510_v2  ;;  %v611_v20 = vmul.f32 %v7091_v7, %v7091_v7  ;;  %v6082_v2 = vld [vmem:[%s10798_s1 + $0x164] ss:$16 sps:$4 sm:$0xff]  }
  0xb9   : > { %1379 = vmatprep.subr.bf16.mxu0 %v6082_v2  ;;  %v7148_v7 = vld [vmem:[%s6695_s15 + $0x1c0] sm:$0xff]  ;;  %v7151_v2 = vsub.f32 %v6762_v24, %v511_v5 }
  0xba   : > { %11016 = vst [vmem:[#allocation13_spill] sm:$0xff] %v7112_v10  ;;  %v613_v18 = vmul.f32 %v7112_v10, %v7112_v10  ;;  %11018 = vst [vmem:[#allocation15_spill] sm:$0xff] %v7148_v7  ;;  %1380 = vmatpush1.bf16.msra.mxu0 %v6086_v13  ;;  %v6092_v24 = vld [vmem:[%s10798_s1 + $0x180] ss:$16 sps:$4 sm:$0xff]  }
  0xbb   : > { %v444_v60 = vpop.xlane.xlu0 %443  ;;  %11019 = vst [vmem:[#allocation16_spill] sm:$0xff] %v7151_v2  ;;  %1381 = vmatprep.subr.bf16.mxu0 %v6088_v17  ;;  %v513_v17 = vmul.f32 0.00390625, %v7088_v48 }
  0xbc   : > { %482 = vadd.xlane.f32.xlu1 %v481_v33  ;;  %676 = vadd.xlane.f32.xlu0 %v675_v4  ;;  %v6084_v33 = vld [vmem:[%s10798_s1 + $0x16c] ss:$16 sps:$4 sm:$0xff]   ;;  %v512_v4 = vmul.f32 0.00390625, %v435_v42  ;;  %v681_v42 = vadd.f32 %v612_v21, %v611_v20  ;;  %v447_v10 = vpop.xlane.xlu1 %446  ;;  %v490_v20 = vadd.f32 %v7157_v51, %v7148_v7  ;;  %v7180_v21 = vld [vmem:[%s6695_s15 + $0x1d0] sm:$0xff]  ;;  %v7215_v51 = vld [vmem:[%s6695_s15 + $0x1e0] sm:$0xff] }
  0xbd   : > { %1572 = vmatprep.subr.bf16.mxu1 %v6084_v33  ;;  %v7154_v33 = vsub.f32 %v6765_v25, %v511_v5  ;;  %v6093_v25 = vld [vmem:[%s10798_s1 + $0x188] ss:$16 sps:$4 sm:$0xff]  }
  0xbe   : > { %1573 = vmatpush1.bf16.msra.mxu1 %v6087_v39  ;;  %v7172_v5 = vsub.f32 %v6768_v26, %v512_v4  ;;  %1382 = vmatpush1.bf16.msra.mxu0 %v6092_v24  ;;  %v684_v39 = vadd.f32 %v614_v19, %v613_v18  ;;  %v615_v26 = vmul.f32 %v7151_v2, %v7151_v2  ;;  %v514_v18 = vmul.f32 0.00390625, %v441_v12  ;;  %v6098_v19 = vld [vmem:[%s10798_s1 + $0x1a0] ss:$16 sps:$4 sm:$0xff]   ;;  %v7218_v7 = vld [vmem:[%s6695_s15 + $0x1e8] sm:$0xff] }
  0xbf   : > { %11020 = vst [vmem:[#allocation17_spill] sm:$0xff] %v7154_v33  ;;  %v450_v13 = vpop.xlane.xlu0 %449 }
  0xc0   : > { %679 = vadd.xlane.f32.xlu1 %v678_v36  ;;  %485 = vadd.xlane.f32.xlu0 %v484_v14  ;;  %v6090_v36 = vld [vmem:[%s10798_s1 + $0x18c] ss:$16 sps:$4 sm:$0xff]   ;;  %11022 = vst [vmem:[#allocation19_spill] sm:$0xff] %v7172_v5  ;;  %v7175_v14 = vsub.f32 %v6771_v27, %v512_v4  ;;  %v616_v27 = vmul.f32 %v7154_v33, %v7154_v33  ;;  %v6094_v4 = vld [vmem:[%s10798_s1 + $0x1a4] ss:$16 sps:$4 sm:$0xff]   ;;  %v453_v48 = vpop.xlane.xlu1 %452 }
  0xc1   : > { %1574 = vmatprep.subr.bf16.mxu1 %v6090_v36  ;;  %v7184_v36 = vld [vmem:[%s6695_s15 + $0x1d8] sm:$0xff]  ;;  %1383 = vmatprep.subr.bf16.mxu0 %v6094_v4  ;;  %v617_v2 = vmul.f32 %v7172_v5, %v7172_v5  ;;  %v7209_v4 = vsub.f32 %v6774_v28, %v513_v17  ;;  %v6100_v5 = vld [vmem:[%s10798_s1 + $0x1c4] ss:$16 sps:$4 sm:$0xff]  }
  0xc2   : > { %11023 = vst [vmem:[#allocation20_spill] sm:$0xff] %v7175_v14  ;;  %1575 = vmatpush1.bf16.msra.mxu1 %v6093_v25  ;;  %v493_v24 = vadd.f32 %v7184_v36, %v7180_v21  ;;  %v515_v25 = vmul.f32 0.00390625, %v444_v60  ;;  %v618_v12 = vmul.f32 %v7175_v14, %v7175_v14  ;;  %v687_v33 = vadd.f32 %v616_v27, %v615_v26  ;;  %v6102_v28 = vld [vmem:[%s10798_s1 + $0x1cc] ss:$16 sps:$4 sm:$0xff]   ;;  %v6105_v26 = vld [vmem:[%s10798_s1 + $0x1c8] ss:$16 sps:$4 sm:$0xff]  }
  0xc3   : > { %11024 = vst [vmem:[#allocation21_spill] sm:$0xff] %v7209_v4  ;;  %v456_v60 = vpop.xlane.xlu0 %455  ;;  %1384 = vmatpush1.bf16.msra.mxu0 %v6098_v19 }
  0xc4   : > { %488 = vadd.xlane.f32.xlu1 %v487_v9  ;;  %682 = vadd.xlane.f32.xlu0 %v681_v42  ;;  %v6096_v9 = vld [vmem:[%s10798_s1 + $0x1ac] ss:$16 sps:$4 sm:$0xff]   ;;  %v6099_v42 = vld [vmem:[%s10798_s1 + $0x1a8] ss:$16 sps:$4 sm:$0xff]   ;;  %v7239_v27 = vsub.f32 %v6790_v34, %v515_v25  ;;  %v7242_v19 = vsub.f32 %v6793_v35, %v515_v25  ;;  %v459_v14 = vpop.xlane.xlu1 %458  ;;  %v518_v25 = vmul.f32 0.00390625, %v453_v48 }
  0xc5   : > { %1576 = vmatprep.subr.bf16.mxu1 %v6096_v9  ;;  %v7212_v9 = vsub.f32 %v6777_v29, %v513_v17  ;;  %v7227_v29 = vsub.f32 %v6782_v31, %v514_v18  ;;  %v6104_v17 = vld [vmem:[%s10798_s1 + $0x1c0] ss:$16 sps:$4 sm:$0xff]   ;;  %v496_v31 = vadd.f32 %v7218_v7, %v7215_v51  ;;  %1385 = vmatprep.subr.bf16.mxu0 %v6100_v5  ;;  %v7254_v35 = vld [vmem:[%s6695_s15 + $0x1f8] sm:$0xff]  ;;  %v6106_v5 = vld [vmem:[%s10798_s1 + $0x1e4] ss:$16 sps:$4 sm:$0xff]  }
  0xc6   : > { %1577 = vmatpush1.bf16.msra.mxu1 %v6099_v42  ;;  %11027 = vst [vmem:[#allocation24_spill] sm:$0xff] %v7239_v27  ;;  %v619_v42 = vmul.f32 %v7209_v4, %v7209_v4 }
  0xc7   : > { %11025 = vst [vmem:[#allocation22_spill] sm:$0xff] %v7227_v29  ;;  %1578 = vmatprep.subr.bf16.mxu1 %v6102_v28  ;;  %v620_v34 = vmul.f32 %v7212_v9, %v7212_v9  ;;  %1386 = vmatpush1.bf16.msra.mxu0 %v6104_v17  ;;  %v6111_v28 = vld [vmem:[%s10798_s1 + $0x1e8] ss:$16 sps:$4 sm:$0xff]   ;;  %v462_v17 = vpop.xlane.xlu0 %461 }
  0xc8   : > { %685 = vadd.xlane.f32.xlu1 %v684_v39  ;;  %491 = vadd.xlane.f32.xlu0 %v490_v20  ;;  %v7230_v20 = vsub.f32 %v6785_v32, %v514_v18  ;;  %v516_v39 = vmul.f32 0.00390625, %v447_v10  ;;  %v517_v32 = vmul.f32 0.00390625, %v450_v13  ;;  %v690_v10 = vadd.f32 %v618_v12, %v617_v2  ;;  %v7247_v18 = vld [vmem:[%s6695_s15 + $0x1f0] sm:$0xff]  ;;  %v6108_v2 = vld [vmem:[%s10798_s1 + $0x1ec] ss:$16 sps:$4 sm:$0xff]  }
  0xc9   : > { %v6110_v12 = vld [vmem:[%s10798_s1 + $0x1e0] ss:$16 sps:$4 sm:$0xff]   ;;  %1387 = vmatprep.subr.bf16.mxu0 %v6106_v5  ;;  %v693_v4 = vadd.f32 %v620_v34, %v619_v42 }
  0xca   : > { %11026 = vst [vmem:[#allocation23_spill] sm:$0xff] %v7230_v20  ;;  %1579 = vmatpush1.bf16.msra.mxu1 %v6105_v26  ;;  %v7266_v13 = vsub.f32 %v6801_v38, %v516_v39  ;;  %v622_v48 = vmul.f32 %v7230_v20, %v7230_v20  ;;  %v623_v38 = vmul.f32 %v7239_v27, %v7239_v27 }
  0xcb   : > { %1580 = vmatprep.subr.bf16.mxu1 %v6108_v2  ;;  %v7286_v26 = vsub.f32 %v6809_v41, %v517_v32  ;;  %v7291_v20 = vsub.f32 %v6816_v44, %v518_v25  ;;  %1388 = vmatpush1.bf16.msra.mxu0 %v6110_v12  ;;  %v7294_v27 = vsub.f32 %v6819_v45, %v518_v25  ;;  %v520_v2 = vmul.f32 0.00390625, %v459_v14  ;;  %v465_v41 = vpop.xlane.xlu1 %464  ;;  %v468_v34 = vpop.xlane.xlu0 %467 }
  0xcc   : > { %494 = vadd.xlane.f32.xlu1 %v493_v24  ;;  %688 = vadd.xlane.f32.xlu0 %v687_v33  ;;  %v7263_v33 = vsub.f32 %v6798_v37, %v516_v39  ;;  %v621_v24 = vmul.f32 %v7227_v29, %v7227_v29  ;;  %v7279_v37 = vsub.f32 %v6806_v40, %v517_v32  ;;  %v519_v40 = vmul.f32 0.00390625, %v456_v60 }
  0xcd   : > { %v624_v39 = vmul.f32 %v7242_v19, %v7242_v19  ;;  %v499_v29 = vadd.f32 %v7254_v35, %v7247_v18  ;;  %v626_v42 = vmul.f32 %v7266_v13, %v7266_v13  ;;  %v628_v14 = vmul.f32 %v7286_v26, %v7286_v26 }
  0xce   : > { %1581 = vmatpush1.bf16.msra.mxu1 %v6111_v28  ;;  %v696_v5 = vadd.f32 %v622_v48, %v621_v24  ;;  %v627_v44 = vmul.f32 %v7279_v37, %v7279_v37  ;;  %v7303_v60 = vsub.f32 %v6822_v46, %v519_v40  ;;  %v7306_v45 = vsub.f32 %v6825_v47, %v519_v40 }
  0xcf   : > { %v699_v32 = vadd.f32 %v624_v39, %v623_v38  ;;  %v629_v25 = vmul.f32 %v7291_v20, %v7291_v20  ;;  %v7313_v24 = vsub.f32 %v6830_v49, %v520_v2  ;;  %v7316_v48 = vsub.f32 %v6833_v50, %v520_v2  ;;  %v471_v39 = vpop.xlane.xlu1 %470 }
  0xd0   : > { %691 = vadd.xlane.f32.xlu1 %v690_v10  ;;  %497 = vadd.xlane.f32.xlu0 %v496_v31  ;;  %v625_v31 = vmul.f32 %v7263_v33, %v7263_v33  ;;  %v521_v10 = vmul.f32 0.00390625, %v462_v17  ;;  %v630_v46 = vmul.f32 %v7294_v27, %v7294_v27  ;;  %v705_v28 = vadd.f32 %v628_v14, %v627_v44 }
  0xd1   : > { %v523_v38 = vmul.f32 0.00390625, %v468_v34  ;;  %v631_v49 = vmul.f32 %v7303_v60, %v7303_v60  ;;  %v632_v50 = vmul.f32 %v7306_v45, %v7306_v45  ;;  %v634_v40 = vmul.f32 %v7316_v48, %v7316_v48 }
  0xd2   : > { %v7321_v47 = vsub.f32 %v6838_v52, %v521_v10  ;;  %v702_v12 = vadd.f32 %v626_v42, %v625_v31  ;;  %v708_v52 = vadd.f32 %v630_v46, %v629_v25  ;;  %v524_v2 = vmul.f32 0.00390625, %v471_v39 }
  0xd4   : > { %500 = vadd.xlane.f32.xlu1 %v499_v29  ;;  %694 = vadd.xlane.f32.xlu0 %v693_v4  ;;  %v522_v4 = vmul.f32 0.00390625, %v465_v41  ;;  %v7324_v29 = vsub.f32 %v6841_v53, %v521_v10  ;;  %v633_v53 = vmul.f32 %v7313_v24, %v7313_v24  ;;  %v635_v31 = vmul.f32 %v7321_v47, %v7321_v47 }
  0xd5   : > { %v711_v10 = vadd.f32 %v632_v50, %v631_v49 }
  0xd6   : > { %v7331_v17 = vsub.f32 %v6848_v56, %v522_v4  ;;  %v636_v41 = vmul.f32 %v7324_v29, %v7324_v29  ;;  %v7345_v56 = vsub.f32 %v6854_v58, %v523_v38  ;;  %v714_v42 = vadd.f32 %v634_v40, %v633_v53 }
  0xd7   : > { %v7358_v58 = vsub.f32 %v6867_v63, %v524_v2 }
  0xd8   : > { %697 = vadd.xlane.f32.xlu1 %v696_v5  ;;  %700 = vadd.xlane.f32.xlu0 %v699_v32  ;;  %v7338_v5 = vsub.f32 %v6851_v57, %v522_v4  ;;  %v7348_v32 = vsub.f32 %v6857_v59, %v523_v38  ;;  %v7351_v57 = vsub.f32 %v6864_v62, %v524_v2 }
  0xd9   : > { %v717_v44 = vadd.f32 %v636_v41, %v635_v31  ;;  %v637_v14 = vmul.f32 %v7331_v17, %v7331_v17  ;;  %v639_v59 = vmul.f32 %v7345_v56, %v7345_v56 }
  0xda   : > { %v638_v34 = vmul.f32 %v7338_v5, %v7338_v5  ;;  %v640_v25 = vmul.f32 %v7348_v32, %v7348_v32  ;;  %v641_v46 = vmul.f32 %v7351_v57, %v7351_v57 }
  0xdc   : > { %703 = vadd.xlane.f32.xlu1 %v702_v12  ;;  %706 = vadd.xlane.f32.xlu0 %v705_v28  ;;  %v720_v62 = vadd.f32 %v638_v34, %v637_v14  ;;  %v723_v4 = vadd.f32 %v640_v25, %v639_v59  ;;  %v642_v12 = vmul.f32 %v7358_v58, %v7358_v58 }
  0xde   : > { %v726_v63 = vadd.f32 %v642_v12, %v641_v46 }
  0xe0   : > { %709 = vadd.xlane.f32.xlu1 %v708_v52  ;;  %712 = vadd.xlane.f32.xlu0 %v711_v10 }
  0xe4   : > { %715 = vadd.xlane.f32.xlu1 %v714_v42  ;;  %718 = vadd.xlane.f32.xlu0 %v717_v44 }
  0xe8   : > { %721 = vadd.xlane.f32.xlu1 %v720_v62  ;;  %724 = vadd.xlane.f32.xlu0 %v723_v4 }
  0xec   : > { %727 = vadd.xlane.f32.xlu1 %v726_v63 }
 0x139   : > { %v665_v28 = vpop.xlane.xlu0 %664 }
 0x13a   : > { %v759_v38 = vmul.f32 0.00390625, %v665_v28 }
 0x13c   : > { %v791_v49 = vadd.f32 1e-05, %v759_v38 }
 0x13d   : > { %v668_v50 = vpop.xlane.xlu1 %667  ;;  %v474_v39 = vpop.xlane.xlu0 %473 }
 0x13e   : > { %v760_v52 = vmul.f32 0.00390625, %v668_v50  ;;  %v525_v53 = vmul.f32 0.00390625, %v474_v39  ;;  %6220 = vrsqrt.f32 %v791_v49 }
 0x140   : > { %v792_v40 = vadd.f32 1e-05, %v760_v52  ;;  %v7369_v2 = vsub.f32 %v7010_v0, %v525_v53  ;;  %v7372_v31 = vsub.f32 %v7013_v1, %v525_v53 }
 0x141   : > { %v477_v41 = vpop.xlane.xlu1 %476  ;;  %v671_v10 = vpop.xlane.xlu0 %670 }
 0x142   : > { %6222 = vrsqrt.f32 %v792_v40  ;;  %v526_v42 = vmul.f32 0.00390625, %v477_v41  ;;  %v761_v44 = vmul.f32 0.00390625, %v671_v10  ;;  %v643_v14 = vmul.f32 %v7369_v2, %v7369_v2 }
 0x143   : > { %v644_v34 = vmul.f32 %v7372_v31, %v7372_v31 }
 0x144   : > { %v7379_v59 = vsub.f32 %v7038_v11, %v526_v42  ;;  %v7382_v0 = vsub.f32 %v7041_v16, %v526_v42  ;;  %v793_v25 = vadd.f32 1e-05, %v761_v44 }
 0x145   : > { %v674_v1 = vpop.xlane.xlu1 %673  ;;  %v480_v62 = vpop.xlane.xlu0 %479  ;;  %v729_v4 = vadd.f32 %v644_v34, %v643_v14 }
 0x146   : > { %v762_v46 = vmul.f32 0.00390625, %v674_v1  ;;  %v527_v12 = vmul.f32 0.00390625, %v480_v62  ;;  %v645_v63 = vmul.f32 %v7379_v59, %v7379_v59  ;;  %6224 = vrsqrt.f32 %v793_v25 }
 0x147   : > { %730 = vadd.xlane.f32.xlu0 %v729_v4  ;;  %v646_v28 = vmul.f32 %v7382_v0, %v7382_v0 }
 0x148   : > { %v794_v38 = vadd.f32 1e-05, %v762_v46  ;;  %v7389_v11 = vsub.f32 %v7054_v61, %v527_v12  ;;  %v7392_v16 = vsub.f32 %v7057_v3, %v527_v12  ;;  %v6221_v49 = vpop.eup %6220  ;;  %v11028_v46 = vld [vmem:[#allocation4_spill] sm:$0xff] }
 0x149   : > { %v483_v50 = vpop.xlane.xlu1 %482  ;;  %v677_v39 = vpop.xlane.xlu0 %676  ;;  %v732_v52 = vadd.f32 %v646_v28, %v645_v63  ;;  %v856_v14 = vmul.f32 %v6221_v49, %v6997_v23  ;;  %v855_v4 = vmul.f32 %v6221_v49, %v6994_v22 }
 0x14a   : > { %6226 = vrsqrt.f32 %v794_v38  ;;  %v528_v53 = vmul.f32 0.00390625, %v483_v50  ;;  %v763_v40 = vmul.f32 0.00390625, %v677_v39  ;;  %v647_v41 = vmul.f32 %v7389_v11, %v7389_v11 }
 0x14b   : > { %733 = vadd.xlane.f32.xlu1 %v732_v52  ;;  %v648_v10 = vmul.f32 %v7392_v16, %v7392_v16 }
 0x14c   : > { %v6223_v42 = vpop.eup %6222  ;;  %v7399_v61 = vsub.f32 %v7070_v30, %v528_v53  ;;  %v7402_v3 = vsub.f32 %v7073_v55, %v528_v53  ;;  %v795_v44 = vadd.f32 1e-05, %v763_v40 }
 0x14d   : > { %v680_v34 = vpop.xlane.xlu1 %679  ;;  %v486_v25 = vpop.xlane.xlu0 %485  ;;  %v735_v1 = vadd.f32 %v648_v10, %v647_v41  ;;  %v858_v62 = vmul.f32 %v6223_v42, %v7019_v6  ;;  %v857_v12 = vmul.f32 %v6223_v42, %v11028_v46  ;;  %v11030_v46 = vld [vmem:[#allocation6_spill] sm:$0xff] }
 0x14e   : > { %v764_v63 = vmul.f32 0.00390625, %v680_v34  ;;  %v529_v28 = vmul.f32 0.00390625, %v486_v25  ;;  %v649_v30 = vmul.f32 %v7399_v61, %v7399_v61  ;;  %6228 = vrsqrt.f32 %v795_v44  ;;  %v11029_v34 = vld [vmem:[#allocation3_spill] sm:$0xff] }
 0x14f   : > { %736 = vadd.xlane.f32.xlu0 %v735_v1  ;;  %v920_v55 = vpack.c.bf16 %v858_v62, %v856_v14  ;;  %v650_v23 = vmul.f32 %v7402_v3, %v7402_v3  ;;  %v919_v38 = vpack.c.bf16 %v857_v12, %v855_v4 }
 0x150   : > { %v796_v50 = vadd.f32 1e-05, %v764_v63  ;;  %v7413_v39 = vsub.f32 %v7086_v43, %v529_v28  ;;  %v7416_v22 = vsub.f32 %v7097_v54, %v529_v28  ;;  %v6225_v6 = vpop.eup %6224  ;;  %v11031_v63 = vld [vmem:[#allocation2_spill] sm:$0xff] }
 0x151   : > { %v489_v49 = vpop.xlane.xlu1 %488  ;;  %1389 = vmatprep.mubr.bf16.mxu0 %v920_v55  ;;  %1582 = vmatprep.mubr.bf16.mxu1 %v920_v55  ;;  %v683_v52 = vpop.xlane.xlu0 %682  ;;  %v738_v53 = vadd.f32 %v650_v23, %v649_v30  ;;  %v860_v25 = vmul.f32 %v6225_v6, %v11029_v34  ;;  %v859_v28 = vmul.f32 %v6225_v6, %v11031_v63  ;;  %v11032_v30 = vld [vmem:[#allocation5_spill] sm:$0xff] }
 0x152   : > { %6230 = vrsqrt.f32 %v796_v50  ;;  %v530_v40 = vmul.f32 0.00390625, %v489_v49  ;;  %v765_v41 = vmul.f32 0.00390625, %v683_v52  ;;  %1390 = vmatmul.mubr.bf16.vlgmr.msra.gmra.mrb[0].mxu0 %v919_v38  ;;  %1583 = vmatmul.mubr.bf16.vlgmr.msra.gmra.mrb[0].mxu1 %v919_v38  ;;  %v651_v10 = vmul.f32 %v7413_v39, %v7413_v39 }
 0x153   : > { %739 = vadd.xlane.f32.xlu1 %v738_v53  ;;  %v652_v43 = vmul.f32 %v7416_v22, %v7416_v22  ;;  %v11033_v53 = vld [vmem:[#allocation15_spill] sm:$0xff] }
 0x154   : > { %v6227_v54 = vpop.eup %6226  ;;  %v7423_v42 = vsub.f32 %v7120_v15, %v530_v40  ;;  %v7426_v44 = vsub.f32 %v7123_v8, %v530_v40  ;;  %v797_v14 = vadd.f32 1e-05, %v765_v41  ;;  %v11034_v41 = vld [vmem:[#allocation18_spill] sm:$0xff] }
 0x155   : > { %v686_v1 = vpop.xlane.xlu1 %685  ;;  %v492_v62 = vpop.xlane.xlu0 %491  ;;  %v741_v4 = vadd.f32 %v652_v43, %v651_v10  ;;  %v862_v12 = vmul.f32 %v6227_v54, %v11030_v46  ;;  %v861_v55 = vmul.f32 %v6227_v54, %v11032_v30 }
 0x156   : > { %v766_v23 = vmul.f32 0.00390625, %v686_v1  ;;  %v531_v38 = vmul.f32 0.00390625, %v492_v62  ;;  %v653_v15 = vmul.f32 %v7423_v42, %v7423_v42  ;;  %6232 = vrsqrt.f32 %v797_v14 }
 0x157   : > { %742 = vadd.xlane.f32.xlu0 %v741_v4  ;;  %v922_v8 = vpack.c.bf16 %v862_v12, %v860_v25  ;;  %v654_v50 = vmul.f32 %v7426_v44, %v7426_v44  ;;  %v921_v49 = vpack.c.bf16 %v861_v55, %v859_v28  ;;  %v11035_v28 = vld [vmem:[#allocation8_spill] sm:$0xff] }
 0x158   : > { %v798_v52 = vadd.f32 1e-05, %v766_v23  ;;  %v7437_v40 = vsub.f32 %v11033_v53, %v531_v38  ;;  %v7440_v6 = vsub.f32 %v11034_v41, %v531_v38  ;;  %v6229_v10 = vpop.eup %6228 }
 0x159   : > { %v495_v43 = vpop.xlane.xlu1 %494  ;;  %1399 = vmatprep.mubr.bf16.mxu0 %v922_v8  ;;  %1592 = vmatprep.mubr.bf16.mxu1 %v922_v8  ;;  %v689_v54 = vpop.xlane.xlu0 %688  ;;  %v744_v34 = vadd.f32 %v654_v50, %v653_v15  ;;  %v864_v30 = vmul.f32 %v6229_v10, %v11035_v28  ;;  %v11036_v15 = vld [vmem:[#allocation10_spill] sm:$0xff]  ;;  %v11037_v50 = vld [vmem:[#allocation7_spill] sm:$0xff] }
 0x15a   : > { %6234 = vrsqrt.f32 %v798_v52  ;;  %v532_v14 = vmul.f32 0.00390625, %v495_v43  ;;  %v767_v25 = vmul.f32 0.00390625, %v689_v54  ;;  %1400 = vmatmul.mubr.bf16.gmra.mrb[4].mxu0 %v921_v49  ;;  %1593 = vmatmul.mubr.bf16.gmra.mrb[4].mxu1 %v921_v49  ;;  %v655_v1 = vmul.f32 %v7437_v40, %v7437_v40  ;;  %v11038_v52 = vld [vmem:[#allocation9_spill] sm:$0xff] }
 0x15b   : > { %745 = vadd.xlane.f32.xlu1 %v744_v34  ;;  %v656_v62 = vmul.f32 %v7440_v6, %v7440_v6  ;;  %v863_v49 = vmul.f32 %v6229_v10, %v11037_v50 }
 0x15c   : > { %v6231_v4 = vpop.eup %6230  ;;  %v7447_v46 = vsub.f32 %v7180_v21, %v532_v14  ;;  %v7450_v12 = vsub.f32 %v7184_v36, %v532_v14  ;;  %v799_v63 = vadd.f32 1e-05, %v767_v25 }
 0x15d   : > { %v692_v55 = vpop.xlane.xlu1 %691  ;;  %v498_v23 = vpop.xlane.xlu0 %497  ;;  %v747_v38 = vadd.f32 %v656_v62, %v655_v1  ;;  %v866_v8 = vmul.f32 %v6231_v4, %v11036_v15  ;;  %v865_v53 = vmul.f32 %v6231_v4, %v11038_v52 }
 0x15e   : > { %v768_v41 = vmul.f32 0.00390625, %v692_v55  ;;  %v533_v43 = vmul.f32 0.00390625, %v498_v23  ;;  %v657_v21 = vmul.f32 %v7447_v46, %v7447_v46  ;;  %6236 = vrsqrt.f32 %v799_v63 }
 0x15f   : > { %748 = vadd.xlane.f32.xlu0 %v747_v38  ;;  %v924_v36 = vpack.c.bf16 %v866_v8, %v864_v30  ;;  %v658_v54 = vmul.f32 %v7450_v12, %v7450_v12  ;;  %v923_v34 = vpack.c.bf16 %v865_v53, %v863_v49  ;;  %v11039_v8 = vld [vmem:[#allocation12_spill] sm:$0xff] }
 0x160   : > { %v800_v14 = vadd.f32 1e-05, %v768_v41  ;;  %v7461_v25 = vsub.f32 %v7215_v51, %v533_v43  ;;  %v7464_v10 = vsub.f32 %v7218_v7, %v533_v43  ;;  %v6233_v1 = vpop.eup %6232  ;;  %v11040_v41 = vld [vmem:[#allocation14_spill] sm:$0xff] }
 0x161   : > { %v501_v62 = vpop.xlane.xlu1 %500  ;;  %1409 = vmatprep.mubr.bf16.mxu0 %v924_v36  ;;  %1602 = vmatprep.mubr.bf16.mxu1 %v924_v36  ;;  %v695_v4 = vpop.xlane.xlu0 %694  ;;  %v750_v28 = vadd.f32 %v658_v54, %v657_v21  ;;  %v868_v50 = vmul.f32 %v6233_v1, %v11039_v8  ;;  %v11041_v21 = vld [vmem:[#allocation11_spill] sm:$0xff]  ;;  %v11042_v54 = vld [vmem:[#allocation13_spill] sm:$0xff] }
 0x162   : > { %6238 = vrsqrt.f32 %v800_v14  ;;  %v534_v63 = vmul.f32 0.00390625, %v501_v62  ;;  %v769_v30 = vmul.f32 0.00390625, %v695_v4  ;;  %1410 = vmatmul.mubr.bf16.gmra.mrb[8].mxu0 %v923_v34  ;;  %1603 = vmatmul.mubr.bf16.gmra.mrb[8].mxu1 %v923_v34  ;;  %v659_v55 = vmul.f32 %v7461_v25, %v7461_v25 }
 0x163   : > { %751 = vadd.xlane.f32.xlu1 %v750_v28  ;;  %v660_v51 = vmul.f32 %v7464_v10, %v7464_v10  ;;  %v867_v36 = vmul.f32 %v6233_v1, %v11041_v21  ;;  %v11044_v21 = vld [vmem:[#allocation20_spill] sm:$0xff] }
 0x164   : > { %v6235_v7 = vpop.eup %6234  ;;  %v7471_v23 = vsub.f32 %v7247_v18, %v534_v63  ;;  %v7474_v38 = vsub.f32 %v7254_v35, %v534_v63  ;;  %v801_v15 = vadd.f32 1e-05, %v769_v30 }
 0x165   : > { %v698_v49 = vpop.xlane.xlu1 %697  ;;  %v701_v52 = vpop.xlane.xlu0 %700  ;;  %v753_v53 = vadd.f32 %v660_v51, %v659_v55  ;;  %v870_v43 = vmul.f32 %v6235_v7, %v11040_v41  ;;  %v869_v34 = vmul.f32 %v6235_v7, %v11042_v54  ;;  %v11045_v54 = vld [vmem:[#allocation16_spill] sm:$0xff] }
 0x166   : > { %v770_v14 = vmul.f32 0.00390625, %v698_v49  ;;  %v771_v62 = vmul.f32 0.00390625, %v701_v52  ;;  %v661_v18 = vmul.f32 %v7471_v23, %v7471_v23  ;;  %v662_v4 = vmul.f32 %v7474_v38, %v7474_v38 }
 0x167   : > { %754 = vadd.xlane.f32.xlu0 %v753_v53  ;;  %v926_v35 = vpack.c.bf16 %v870_v43, %v868_v50  ;;  %v925_v28 = vpack.c.bf16 %v869_v34, %v867_v36  ;;  %6240 = vrsqrt.f32 %v801_v15  ;;  %v11043_v53 = vld [vmem:[#allocation17_spill] sm:$0xff] }
 0x168   : > { %v802_v63 = vadd.f32 1e-05, %v770_v14  ;;  %v803_v30 = vadd.f32 1e-05, %v771_v62  ;;  %v6237_v55 = vpop.eup %6236  ;;  %v756_v7 = vadd.f32 %v662_v4, %v661_v18  ;;  %v11046_v14 = vld [vmem:[#allocation19_spill] sm:$0xff] }
 0x169   : > { %v704_v51 = vpop.xlane.xlu1 %703  ;;  %1419 = vmatprep.mubr.bf16.mxu0 %v926_v35  ;;  %1612 = vmatprep.mubr.bf16.mxu1 %v926_v35  ;;  %v707_v1 = vpop.xlane.xlu0 %706  ;;  %v872_v41 = vmul.f32 %v6237_v55, %v11043_v53  ;;  %v871_v34 = vmul.f32 %v6237_v55, %v11045_v54  ;;  %v6114_v55 = vld [vmem:[%s10801_s4 + $0x4] ss:$8 sps:$4 sm:$0xff]  }
 0x16a   : > { %6242 = vrsqrt.f32 %v802_v63  ;;  %v772_v8 = vmul.f32 0.00390625, %v704_v51  ;;  %v773_v49 = vmul.f32 0.00390625, %v707_v1  ;;  %1420 = vmatmul.mubr.bf16.gmra.mrb[12].mxu0 %v925_v28  ;;  %1613 = vmatmul.mubr.bf16.gmra.mrb[12].mxu1 %v925_v28 }
 0x16b   : > { %757 = vadd.xlane.f32.xlu1 %v756_v7  ;;  %6244 = vrsqrt.f32 %v803_v30  ;;  %2703 = vmatprep.subr.bf16.mxu0 %v6114_v55 }
 0x16c   : > { %v6239_v50 = vpop.eup %6238  ;;  %v804_v52 = vadd.f32 1e-05, %v772_v8  ;;  %v805_v15 = vadd.f32 1e-05, %v773_v49  ;;  %v6112_v8 = vld [vmem:[%s10801_s4] ss:$8 sps:$4 sm:$0xff]  }
 0x16d   : > { %v710_v43 = vpop.xlane.xlu1 %709  ;;  %v874_v36 = vmul.f32 %v6239_v50, %v11044_v21  ;;  %v873_v62 = vmul.f32 %v6239_v50, %v11046_v14  ;;  %v713_v35 = vpop.xlane.xlu0 %712  ;;  %2704 = vmatpush1.bf16.msra.mxu0 %v6112_v8 }
 0x16e   : > { %6246 = vrsqrt.f32 %v804_v52  ;;  %v774_v18 = vmul.f32 0.00390625, %v710_v43  ;;  %v775_v1 = vmul.f32 0.00390625, %v713_v35  ;;  %v11048_v43 = vld [vmem:[#allocation21_spill] sm:$0xff] }
 0x16f   : > { %v928_v4 = vpack.c.bf16 %v874_v36, %v872_v41  ;;  %v927_v63 = vpack.c.bf16 %v873_v62, %v871_v34  ;;  %6248 = vrsqrt.f32 %v805_v15  ;;  %v11047_v41 = vld [vmem:[#allocation23_spill] sm:$0xff]  ;;  %v11049_v36 = vld [vmem:[#allocation22_spill] sm:$0xff]  ;;  %v6117_v62 = vld [vmem:[%s10801_s4 + $0x14] ss:$8 sps:$4 sm:$0xff]  }
 0x170   : > { %v806_v28 = vadd.f32 1e-05, %v774_v18  ;;  %v807_v14 = vadd.f32 1e-05, %v775_v1  ;;  %2705 = vmatprep.subr.bf16.mxu0 %v6117_v62  ;;  %v6121_v62 = vld [vmem:[%s10801_s4 + $0x30] ss:$8 sps:$4 sm:$0xff]  }
 0x171   : > { %v716_v51 = vpop.xlane.xlu1 %715  ;;  %1429 = vmatprep.mubr.bf16.mxu0 %v928_v4  ;;  %1622 = vmatprep.mubr.bf16.mxu1 %v928_v4  ;;  %v6241_v30 = vpop.eup %6240 }
 0x172   : > { %6250 = vrsqrt.f32 %v806_v28  ;;  %v776_v7 = vmul.f32 0.00390625, %v716_v51  ;;  %1430 = vmatmul.mubr.bf16.gmra.mrb[16].mxu0 %v927_v63  ;;  %1623 = vmatmul.mubr.bf16.gmra.mrb[16].mxu1 %v927_v63  ;;  %v876_v53 = vmul.f32 %v6241_v30, %v7212_v9  ;;  %v875_v21 = vmul.f32 %v6241_v30, %v11048_v43  ;;  %v719_v18 = vpop.xlane.xlu0 %718  ;;  %v6115_v9 = vld [vmem:[%s10801_s4 + $0x10] ss:$8 sps:$4 sm:$0xff]  }
 0x173   : > { %v777_v1 = vmul.f32 0.00390625, %v719_v18  ;;  %2706 = vmatpush1.bf16.msra.mxu0 %v6115_v9  ;;  %v11050_v43 = vld [vmem:[#allocation24_spill] sm:$0xff]  ;;  %v6126_v18 = vld [vmem:[%s10801_s4 + $0x44] ss:$8 sps:$4 sm:$0xff]  }
 0x174   : > { %v6243_v49 = vpop.eup %6242  ;;  %v808_v50 = vadd.f32 1e-05, %v776_v7  ;;  %v6120_v7 = vld [vmem:[%s10801_s4 + $0x24] ss:$8 sps:$4 sm:$0xff]  }
 0x175   : > { %v722_v52 = vpop.xlane.xlu1 %721  ;;  %v878_v15 = vmul.f32 %v6243_v49, %v11047_v41  ;;  %v877_v54 = vmul.f32 %v6243_v49, %v11049_v36  ;;  %v6245_v34 = vpop.eup %6244  ;;  %v6118_v49 = vld [vmem:[%s10801_s4 + $0x20] ss:$8 sps:$4 sm:$0xff]   ;;  %2707 = vmatprep.subr.bf16.mxu0 %v6120_v7  ;;  %v6123_v41 = vld [vmem:[%s10801_s4 + $0x34] ss:$8 sps:$4 sm:$0xff]  }
 0x176   : > { %6252 = vrsqrt.f32 %v808_v50  ;;  %v778_v28 = vmul.f32 0.00390625, %v722_v52  ;;  %v880_v51 = vmul.f32 %v6245_v34, %v7242_v19  ;;  %v725_v36 = vpop.xlane.xlu0 %724 }
 0x177   : > { %v930_v35 = vpack.c.bf16 %v878_v15, %v876_v53  ;;  %v929_v4 = vpack.c.bf16 %v877_v54, %v875_v21  ;;  %6254 = vrsqrt.f32 %v807_v14  ;;  %v809_v15 = vadd.f32 1e-05, %v777_v1  ;;  %2708 = vmatpush1.bf16.msra.mxu0 %v6118_v49 }
 0x178   : > { %v6247_v63 = vpop.eup %6246  ;;  %v810_v52 = vadd.f32 1e-05, %v778_v28  ;;  %v879_v21 = vmul.f32 %v6245_v34, %v11050_v43  ;;  %2709 = vmatprep.subr.bf16.mxu0 %v6123_v41  ;;  %v779_v34 = vmul.f32 0.00390625, %v725_v36 }
 0x179   : > { %1439 = vmatprep.mubr.bf16.mxu0 %v930_v35  ;;  %1632 = vmatprep.mubr.bf16.mxu1 %v930_v35  ;;  %v882_v30 = vmul.f32 %v6247_v63, %v7266_v13  ;;  %v6249_v55 = vpop.eup %6248  ;;  %v881_v19 = vmul.f32 %v6247_v63, %v7263_v33  ;;  %v728_v13 = vpop.xlane.xlu1 %727  ;;  %v6124_v63 = vld [vmem:[%s10801_s4 + $0x40] ss:$8 sps:$4 sm:$0xff]  }
 0x17a   : > { %1440 = vmatmul.mubr.bf16.gmra.mrb[20].mxu0 %v929_v4  ;;  %1633 = vmatmul.mubr.bf16.gmra.mrb[20].mxu1 %v929_v4  ;;  %v884_v54 = vmul.f32 %v6249_v55, %v7286_v26  ;;  %6256 = vrsqrt.f32 %v810_v52  ;;  %v780_v14 = vmul.f32 0.00390625, %v728_v13  ;;  %v883_v1 = vmul.f32 %v6249_v55, %v7279_v37  ;;  %v6130_v55 = vld [vmem:[%s10801_s4 + $0x60] ss:$8 sps:$4 sm:$0xff]  }
 0x17b   : > { %v932_v8 = vpack.c.bf16 %v882_v30, %v880_v51  ;;  %v931_v33 = vpack.c.bf16 %v881_v19, %v879_v21  ;;  %6258 = vrsqrt.f32 %v809_v15  ;;  %2710 = vmatpush1.bf16.msra.mxu0 %v6121_v62  ;;  %v6129_v51 = vld [vmem:[%s10801_s4 + $0x54] ss:$8 sps:$4 sm:$0xff]   ;;  %v811_v30 = vadd.f32 1e-05, %v779_v34  ;;  %v6136_v21 = vld [vmem:[%s10801_s4 + $0x80] ss:$8 sps:$4 sm:$0xff]  }
 0x17c   : > { %v6251_v50 = vpop.eup %6250  ;;  %v812_v4 = vadd.f32 1e-05, %v780_v14  ;;  %2711 = vmatprep.subr.bf16.mxu0 %v6126_v18  ;;  %v6135_v19 = vld [vmem:[%s10801_s4 + $0x74] ss:$8 sps:$4 sm:$0xff]  }
 0x17d   : > { %1449 = vmatprep.mubr.bf16.mxu0 %v932_v8  ;;  %1642 = vmatprep.mubr.bf16.mxu1 %v932_v8  ;;  %v886_v53 = vmul.f32 %v6251_v50, %v7294_v27  ;;  %v885_v9 = vmul.f32 %v6251_v50, %v7291_v20  ;;  %v6127_v20 = vld [vmem:[%s10801_s4 + $0x50] ss:$8 sps:$4 sm:$0xff]   ;;  %v6147_v18 = vld [vmem:[%s10801_s4 + $0xb4] ss:$8 sps:$4 sm:$0xff]  }
 0x17e   : > { %6260 = vrsqrt.f32 %v812_v4  ;;  %v6148_v4 = vld [vmem:[%s10801_s4 + $0xc0] ss:$8 sps:$4 sm:$0xff]  }
 0x17f   : > { %v934_v27 = vpack.c.bf16 %v886_v53, %v884_v54  ;;  %v933_v8 = vpack.c.bf16 %v885_v9, %v883_v1  ;;  %2712 = vmatpush1.bf16.msra.mxu0 %v6124_v63  ;;  %6262 = vrsqrt.f32 %v811_v30  ;;  %v6141_v54 = vld [vmem:[%s10801_s4 + $0x94] ss:$8 sps:$4 sm:$0xff]   ;;  %v6151_v9 = vld [vmem:[%s10801_s4 + $0xd0] ss:$8 sps:$4 sm:$0xff]   ;;  %v6156_v63 = vld [vmem:[%s10801_s4 + $0xe4] ss:$8 sps:$4 sm:$0xff]  }
 0x180   : > { %v6253_v35 = vpop.eup %6252  ;;  %2713 = vmatprep.subr.bf16.mxu0 %v6129_v51  ;;  %v6159_v51 = vld [vmem:[%s10801_s4 + $0xf4] ss:$8 sps:$4 sm:$0xff]   ;;  %v6157_v30 = vld [vmem:[%s10801_s4 + $0xf0] ss:$8 sps:$4 sm:$0xff]  }
 0x181   : > { %v6255_v26 = vpop.eup %6254  ;;  %v890_v28 = vmul.f32 %v6253_v35, %v7316_v48  ;;  %v6132_v48 = vld [vmem:[%s10801_s4 + $0x64] ss:$8 sps:$4 sm:$0xff]  }
 0x182   : > { %1450 = vmatmul.mubr.bf16.gmra.mrb[24].mxu0 %v931_v33  ;;  %1643 = vmatmul.mubr.bf16.gmra.mrb[24].mxu1 %v931_v33  ;;  %v888_v7 = vmul.f32 %v6255_v26, %v7306_v45  ;;  %v889_v45 = vmul.f32 %v6253_v35, %v7313_v24  ;;  %v887_v13 = vmul.f32 %v6255_v26, %v7303_v60  ;;  %v6133_v24 = vld [vmem:[%s10801_s4 + $0x70] ss:$8 sps:$4 sm:$0xff]  }
 0x183   : > { %1459 = vmatprep.mubr.bf16.mxu0 %v934_v27  ;;  %1652 = vmatprep.mubr.bf16.mxu1 %v934_v27  ;;  %v6145_v26 = vld [vmem:[%s10801_s4 + $0xb0] ss:$8 sps:$4 sm:$0xff]  }
 0x184   : > { %v936_v49 = vpack.c.bf16 %v890_v28, %v888_v7  ;;  %v6257_v50 = vpop.eup %6256  ;;  %2714 = vmatpush1.bf16.msra.mxu0 %v6127_v20  ;;  %v935_v41 = vpack.c.bf16 %v889_v45, %v887_v13  ;;  %v6154_v28 = vld [vmem:[%s10801_s4 + $0xe0] ss:$8 sps:$4 sm:$0xff]  }
 0x185   : > { %v6259_v37 = vpop.eup %6258  ;;  %v894_v52 = vmul.f32 %v6257_v50, %v7338_v5  ;;  %2715 = vmatprep.subr.bf16.mxu0 %v6132_v48  ;;  %v6138_v5 = vld [vmem:[%s10801_s4 + $0x84] ss:$8 sps:$4 sm:$0xff]  }
 0x186   : > { %v892_v53 = vmul.f32 %v6259_v37, %v7324_v29  ;;  %v893_v29 = vmul.f32 %v6257_v50, %v7331_v17  ;;  %v891_v14 = vmul.f32 %v6259_v37, %v7321_v47  ;;  %v6139_v17 = vld [vmem:[%s10801_s4 + $0x90] ss:$8 sps:$4 sm:$0xff]  }
 0x188   : > { %2716 = vmatpush1.bf16.msra.mxu0 %v6130_v55  ;;  %v938_v15 = vpack.c.bf16 %v894_v52, %v892_v53  ;;  %v6261_v43 = vpop.eup %6260  ;;  %v937_v62 = vpack.c.bf16 %v893_v29, %v891_v14 }
 0x189   : > { %2717 = vmatprep.subr.bf16.mxu0 %v6135_v19  ;;  %v6263_v60 = vpop.eup %6262  ;;  %v898_v36 = vmul.f32 %v6261_v43, %v7358_v58  ;;  %v6144_v58 = vld [vmem:[%s10801_s4 + $0xa4] ss:$8 sps:$4 sm:$0xff]   ;;  %v897_v47 = vmul.f32 %v6261_v43, %v7351_v57 }
 0x18a   : > { %1460 = vmatmul.mubr.bf16.gmra.mrb[28].mxu0 %v933_v8  ;;  %1653 = vmatmul.mubr.bf16.gmra.mrb[28].mxu1 %v933_v8  ;;  %v896_v33 = vmul.f32 %v6263_v60, %v7348_v32  ;;  %v6142_v32 = vld [vmem:[%s10801_s4 + $0xa0] ss:$8 sps:$4 sm:$0xff]   ;;  %v895_v35 = vmul.f32 %v6263_v60, %v7345_v56  ;;  %v6150_v57 = vld [vmem:[%s10801_s4 + $0xc4] ss:$8 sps:$4 sm:$0xff]   ;;  %v6153_v56 = vld [vmem:[%s10801_s4 + $0xd4] ss:$8 sps:$4 sm:$0xff]  }
 0x18b   : > { %1469 = vmatprep.mubr.bf16.mxu0 %v936_v49  ;;  %1662 = vmatprep.mubr.bf16.mxu1 %v936_v49 }
 0x18c   : > { %2718 = vmatpush1.bf16.msra.mxu0 %v6133_v24  ;;  %v940_v27 = vpack.c.bf16 %v898_v36, %v896_v33  ;;  %v939_v34 = vpack.c.bf16 %v897_v47, %v895_v35 }
 0x18d   : > { %2719 = vmatprep.subr.bf16.mxu0 %v6138_v5 }
 0x190   : > { %2720 = vmatpush1.bf16.msra.mxu0 %v6136_v21 }
 0x191   : > { %2721 = vmatprep.subr.bf16.mxu0 %v6141_v54 }
 0x192   : > { %1470 = vmatmul.mubr.bf16.gmra.mrb[32].mxu0 %v935_v41  ;;  %1663 = vmatmul.mubr.bf16.gmra.mrb[32].mxu1 %v935_v41 }
 0x193   : > { %1479 = vmatprep.mubr.bf16.mxu0 %v938_v15  ;;  %1672 = vmatprep.mubr.bf16.mxu1 %v938_v15 }
 0x194   : > { %2722 = vmatpush1.bf16.msra.mxu0 %v6139_v17 }
 0x195   : > { %2723 = vmatprep.subr.bf16.mxu0 %v6144_v58 }
 0x198   : > { %2724 = vmatpush1.bf16.msra.mxu0 %v6142_v32 }
 0x199   : > { %2725 = vmatprep.subr.bf16.mxu0 %v6147_v18 }
 0x19a   : > { %1480 = vmatmul.mubr.bf16.gmra.mrb[36].mxu0 %v937_v62  ;;  %1673 = vmatmul.mubr.bf16.gmra.mrb[36].mxu1 %v937_v62 }
 0x19b   : > { %1489 = vmatprep.mubr.bf16.mxu0 %v940_v27  ;;  %1682 = vmatprep.mubr.bf16.mxu1 %v940_v27 }
 0x19c   : > { %2726 = vmatpush1.bf16.msra.mxu0 %v6145_v26 }
 0x19d   : > { %2727 = vmatprep.subr.bf16.mxu0 %v6150_v57 }
 0x1a0   : > { %2728 = vmatpush1.bf16.msra.mxu0 %v6148_v4 }
 0x1a1   : > { %2729 = vmatprep.subr.bf16.mxu0 %v6153_v56 }
 0x1a2   : > { %1490 = vmatmul.mubr.bf16.gmra.mrb[40].mxu0 %v939_v34  ;;  %1683 = vmatmul.mubr.bf16.gmra.mrb[40].mxu1 %v939_v34 }
 0x1a4   : > { %2730 = vmatpush1.bf16.msra.mxu0 %v6151_v9 }
 0x1a5   : > { %2731 = vmatprep.subr.bf16.mxu0 %v6156_v63 }
 0x1a8   : > { %2732 = vmatpush1.bf16.msra.mxu0 %v6154_v28 }
 0x1a9   : > { %2733 = vmatprep.subr.bf16.mxu0 %v6159_v51 }
 0x1ac   : > { %2734 = vmatpush1.bf16.msra.mxu0 %v6157_v30 }
 0x1d4   : > { %v731_v1 = vpop.xlane.xlu0 %730 }
 0x1d5   : > { %v781_v7 = vmul.f32 0.00390625, %v731_v1 }
 0x1d7   : > { %v813_v8 = vadd.f32 1e-05, %v781_v7 }
 0x1d8   : > { %v734_v20 = vpop.xlane.xlu1 %733 }
 0x1d9   : > { %v782_v49 = vmul.f32 0.00390625, %v734_v20  ;;  %6264 = vrsqrt.f32 %v813_v8 }
 0x1db   : > { %v814_v48 = vadd.f32 1e-05, %v782_v49 }
 0x1dc   : > { %v737_v50 = vpop.xlane.xlu0 %736 }
 0x1dd   : > { %6266 = vrsqrt.f32 %v814_v48  ;;  %v783_v37 = vmul.f32 0.00390625, %v737_v50 }
 0x1df   : > { %v815_v45 = vadd.f32 1e-05, %v783_v37 }
 0x1e0   : > { %v740_v55 = vpop.xlane.xlu1 %739 }
 0x1e1   : > { %v784_v52 = vmul.f32 0.00390625, %v740_v55  ;;  %6268 = vrsqrt.f32 %v815_v45 }
 0x1e3   : > { %v816_v19 = vadd.f32 1e-05, %v784_v52  ;;  %v6265_v53 = vpop.eup %6264 }
 0x1e4   : > { %v743_v13 = vpop.xlane.xlu0 %742  ;;  %v900_v43 = vmul.f32 %v6265_v53, %v7372_v31  ;;  %v899_v29 = vmul.f32 %v6265_v53, %v7369_v2 }
 0x1e5   : > { %6270 = vrsqrt.f32 %v816_v19  ;;  %v785_v41 = vmul.f32 0.00390625, %v743_v13  ;;  %v1017_v19 = vlaneseq }
 0x1e7   : > { %v6267_v24 = vpop.eup %6266  ;;  %v817_v15 = vadd.f32 1e-05, %v785_v41  ;;  %v7631_v13 = vshrl.u32 %v1017_v19, 7  ;;  %v1752_v19 = vld [vmem:[%s10800_s3 + $0x48] sm:$0xff] }
 0x1e8   : > { %v746_v5 = vpop.xlane.xlu1 %745  ;;  %v902_v60 = vmul.f32 %v6267_v24, %v7382_v0  ;;  %v901_v21 = vmul.f32 %v6267_v24, %v7379_v59 }
 0x1e9   : > { %v786_v36 = vmul.f32 0.00390625, %v746_v5  ;;  %6272 = vrsqrt.f32 %v817_v15  ;;  %11051 = vst [vmem:[#allocation4_spill] sm:$0xff] %v7631_v13  ;;  %v10830_v53 = vsub.s32 3, %v7631_v13 }
 0x1ea   : > { %v942_v54 = vpack.c.bf16 %v902_v60, %v900_v43  ;;  %v941_v14 = vpack.c.bf16 %v901_v21, %v899_v29  ;;  %v1743_v60 = vld [vmem:[%s10800_s3] sm:$0xff]  ;;  %v1745_v29 = vld [vmem:[%s10800_s3 + $0x10] sm:$0xff] }
 0x1eb   : > { %v818_v33 = vadd.f32 1e-05, %v786_v36  ;;  %v6269_v17 = vpop.eup %6268 }
 0x1ec   : > { %1499 = vmatprep.mubr.bf16.mxu0 %v942_v54  ;;  %1692 = vmatprep.mubr.bf16.mxu1 %v942_v54  ;;  %v749_v62 = vpop.xlane.xlu0 %748  ;;  %v904_v2 = vmul.f32 %v6269_v17, %v7392_v16  ;;  %v903_v47 = vmul.f32 %v6269_v17, %v7389_v11 }
 0x1ed   : > { %6274 = vrsqrt.f32 %v818_v33  ;;  %v787_v27 = vmul.f32 0.00390625, %v749_v62  ;;  %1500 = vmatmul.mubr.bf16.gmra.mrb[44].mxu0 %v941_v14  ;;  %1693 = vmatmul.mubr.bf16.gmra.mrb[44].mxu1 %v941_v14  ;;  %v1744_v33 = vld [vmem:[%s10800_s3 + $0x8] sm:$0xff]  ;;  %v1746_v62 = vld [vmem:[%s10800_s3 + $0x18] sm:$0xff] }
 0x1ef   : > { %v6271_v31 = vpop.eup %6270  ;;  %v819_v58 = vadd.f32 1e-05, %v787_v27 }
 0x1f0   : > { %v752_v0 = vpop.xlane.xlu1 %751  ;;  %v906_v59 = vmul.f32 %v6271_v31, %v7402_v3  ;;  %v905_v32 = vmul.f32 %v6271_v31, %v7399_v61 }
 0x1f1   : > { %v788_v18 = vmul.f32 0.00390625, %v752_v0  ;;  %6276 = vrsqrt.f32 %v819_v58 }
 0x1f2   : > { %v944_v35 = vpack.c.bf16 %v906_v59, %v904_v2  ;;  %v943_v34 = vpack.c.bf16 %v905_v32, %v903_v47 }
 0x1f3   : > { %v820_v26 = vadd.f32 1e-05, %v788_v18  ;;  %v6273_v4 = vpop.eup %6272 }
 0x1f4   : > { %1509 = vmatprep.mubr.bf16.mxu0 %v944_v35  ;;  %1702 = vmatprep.mubr.bf16.mxu1 %v944_v35  ;;  %v755_v57 = vpop.xlane.xlu0 %754  ;;  %v908_v11 = vmul.f32 %v6273_v4, %v7416_v22  ;;  %v907_v63 = vmul.f32 %v6273_v4, %v7413_v39 }
 0x1f5   : > { %6278 = vrsqrt.f32 %v820_v26  ;;  %v789_v56 = vmul.f32 0.00390625, %v755_v57  ;;  %1510 = vmatmul.mubr.bf16.gmra.mrb[48].mxu0 %v943_v34  ;;  %1703 = vmatmul.mubr.bf16.gmra.mrb[48].mxu1 %v943_v34 }
 0x1f7   : > { %v6275_v16 = vpop.eup %6274  ;;  %v821_v9 = vadd.f32 1e-05, %v789_v56  ;;  %v1747_v56 = vld [vmem:[%s10800_s3 + $0x20] sm:$0xff] }
 0x1f8   : > { %v758_v3 = vpop.xlane.xlu1 %757  ;;  %v910_v61 = vmul.f32 %v6275_v16, %v7426_v44  ;;  %v909_v28 = vmul.f32 %v6275_v16, %v7423_v42  ;;  %v1749_v16 = vld [vmem:[%s10800_s3 + $0x30] sm:$0xff] }
 0x1f9   : > { %v790_v51 = vmul.f32 0.00390625, %v758_v3  ;;  %6280 = vrsqrt.f32 %v821_v9 }
 0x1fa   : > { %v946_v30 = vpack.c.bf16 %v910_v61, %v908_v11  ;;  %v945_v1 = vpack.c.bf16 %v909_v28, %v907_v63  ;;  %v1748_v63 = vld [vmem:[%s10800_s3 + $0x28] sm:$0xff]  ;;  %v1750_v28 = vld [vmem:[%s10800_s3 + $0x38] sm:$0xff] }
 0x1fb   : > { %v822_v7 = vadd.f32 1e-05, %v790_v51  ;;  %v6277_v8 = vpop.eup %6276 }
 0x1fc   : > { %1519 = vmatprep.mubr.bf16.mxu0 %v946_v30  ;;  %1712 = vmatprep.mubr.bf16.mxu1 %v946_v30  ;;  %v912_v22 = vmul.f32 %v6277_v8, %v7440_v6  ;;  %v911_v39 = vmul.f32 %v6277_v8, %v7437_v40 }
 0x1fd   : > { %6282 = vrsqrt.f32 %v822_v7  ;;  %1520 = vmatmul.mubr.bf16.gmra.mrb[52].mxu0 %v945_v1  ;;  %1713 = vmatmul.mubr.bf16.gmra.mrb[52].mxu1 %v945_v1 }
 0x1ff   : > { %v6279_v20 = vpop.eup %6278 }
 0x200   : > { %v914_v44 = vmul.f32 %v6279_v20, %v7450_v12  ;;  %v913_v42 = vmul.f32 %v6279_v20, %v7447_v46  ;;  %v6162_v46 = vld [vmem:[%s10801_s4 + $0x104] ss:$8 sps:$4 sm:$0xff]  }
 0x201   : > { %2896 = vmatprep.subr.bf16.mxu0 %v6162_v46 }
 0x202   : > { %v948_v49 = vpack.c.bf16 %v914_v44, %v912_v22  ;;  %v947_v48 = vpack.c.bf16 %v913_v42, %v911_v39 }
 0x203   : > { %v6281_v50 = vpop.eup %6280 }
 0x204   : > { %1529 = vmatprep.mubr.bf16.mxu0 %v948_v49  ;;  %1722 = vmatprep.mubr.bf16.mxu1 %v948_v49  ;;  %v916_v45 = vmul.f32 %v6281_v50, %v7464_v10  ;;  %v915_v6 = vmul.f32 %v6281_v50, %v7461_v25  ;;  %v7634_v10 = vsub.s32 0, %v7631_v13  ;;  %v10831_v25 = vsub.s32 2, %v7631_v13 }
 0x205   : > { %1530 = vmatmul.mubr.bf16.gmra.mrb[56].mxu0 %v947_v48  ;;  %1723 = vmatmul.mubr.bf16.gmra.mrb[56].mxu1 %v947_v48 }
 0x206   : > { %11052 = vst [vmem:[#allocation3_spill] sm:$0xff] %v7634_v10 }
 0x207   : > { %v6283_v37 = vpop.eup %6282 }
 0x208   : > { %v918_v55 = vmul.f32 %v6283_v37, %v7474_v38  ;;  %v917_v12 = vmul.f32 %v6283_v37, %v7471_v23  ;;  %v1015_v23 = vld [vmem:[%s10799_s2] sm:$0xf]  ;;  %v7641_v38 = vsub.s32 1, %v7631_v13 }
 0x209   : > { %v7645_v41 = vrot.slane %v1015_v23, %v7634_v10  ;;  %v7649_v24 = vrot.slane %v1015_v23, %v10831_v25  ;;  %v7656_v5 = vrot.slane %v1015_v23, %v10830_v53  ;;  %v1751_v37 = vld [vmem:[%s10800_s3 + $0x40] sm:$0xff] }
 0x20a   : > { %v950_v52 = vpack.c.bf16 %v918_v55, %v916_v45  ;;  %v949_v40 = vpack.c.bf16 %v917_v12, %v915_v6  ;;  %11053 = vst [vmem:[#allocation6_spill] sm:$0xff] %v7641_v38  ;;  %v7652_v15 = vrot.slane %v1015_v23, %v7641_v38  ;;  %v1753_v45 = vld [vmem:[%s10800_s3 + $0x50] sm:$0xff]  ;;  %v1754_v23 = vld [vmem:[%s10800_s3 + $0x58] sm:$0xff]  ;;  %v1791_v25 = vld [vmem:[%s10800_s3 + $0x180] sm:$0xff] }
 0x20c   : > { %1539 = vmatprep.mubr.bf16.mxu0 %v950_v52  ;;  %1732 = vmatprep.mubr.bf16.mxu1 %v950_v52  ;;  %11054 = vst [vmem:[#allocation2_spill] sm:$0xff] %v7652_v15 }
 0x20d   : > { %1540 = vmatmul.mubr.bf16.gmra.mrb[60].mxu0 %v949_v40  ;;  %1733 = vmatmul.mubr.bf16.gmra.mrb[60].mxu1 %v949_v40 }
 0x225   : > { %v1391_v43 = vpop.f32.mrb[0].mxu0  ;;  %v1584_v21 = vpop.f32.mrb[0].mxu1 }
 0x226   : > { %v1392_v36 = vadd.f32 %v1391_v43, %v7645_v41  ;;  %v1585_v54 = vadd.f32 %v1584_v21, %v7649_v24  ;;  %v1393_v14 = vpop.f32.mrb[1].mxu0  ;;  %v1586_v17 = vpop.f32.mrb[1].mxu1 }
 0x227   : > { %v1394_v27 = vadd.f32 %v1393_v14, %v7652_v15  ;;  %v1587_v31 = vadd.f32 %v1586_v17, %v7656_v5  ;;  %v1395_v58 = vpop.f32.mrb[2].mxu0  ;;  %v1588_v0 = vpop.f32.mrb[2].mxu1 }
 0x228   : > { %v1871_v2 = vmul.f32 %v1743_v60, %v1392_v36  ;;  %v2063_v59 = vmul.f32 %v1745_v29, %v1392_v36  ;;  %v1935_v47 = vmul.f32 %v1745_v29, %v1585_v54  ;;  %v2127_v32 = vmul.f32 %v1743_v60, %v1585_v54  ;;  %v1397_v18 = vpop.f32.mrb[3].mxu0  ;;  %v1590_v35 = vpop.f32.mrb[3].mxu1 }
 0x229   : > { %v7674_v34 = vmul.f32 %v1744_v33, %v1394_v27  ;;  %v2064_v26 = vmul.f32 %v1746_v62, %v1394_v27  ;;  %v7676_v57 = vmul.f32 %v1746_v62, %v1587_v31  ;;  %v2128_v4 = vmul.f32 %v1744_v33, %v1587_v31 }
 0x22a   : > { %v1999_v9 = vsub.f32 %v1871_v2, %v1935_v47  ;;  %v7684_v3 = vadd.f32 %v2127_v32, %v2063_v59  ;;  %v1396_v11 = vadd.f32 %v1395_v58, %v7645_v41  ;;  %v1589_v61 = vadd.f32 %v1588_v0, %v7649_v24  ;;  %v1755_v32 = vld [vmem:[%s10800_s3 + $0x60] sm:$0xff] }
 0x22b   : > { %v2000_v51 = vsub.f32 %v7674_v34, %v7676_v57  ;;  %v7696_v30 = vadd.f32 %v2128_v4, %v2064_v26  ;;  %v1398_v1 = vadd.f32 %v1397_v18, %v7652_v15  ;;  %v1591_v7 = vadd.f32 %v1590_v35, %v7656_v5  ;;  %v1757_v18 = vld [vmem:[%s10800_s3 + $0x70] sm:$0xff] }
 0x22c   : > { %11055 = vst [vmem:[#allocation5_spill] sm:$0xff] %v7684_v3  ;;  %v1873_v8 = vmul.f32 %v1747_v56, %v1396_v11  ;;  %v2065_v20 = vmul.f32 %v1749_v16, %v1396_v11  ;;  %v1937_v22 = vmul.f32 %v1749_v16, %v1589_v61  ;;  %v2129_v44 = vmul.f32 %v1747_v56, %v1589_v61  ;;  %v1756_v16 = vld [vmem:[%s10800_s3 + $0x68] sm:$0xff] }
 0x22d   : > { %v1874_v39 = vmul.f32 %v1748_v63, %v1398_v1  ;;  %v2066_v42 = vmul.f32 %v1750_v28, %v1398_v1  ;;  %v1938_v49 = vmul.f32 %v1750_v28, %v1591_v7  ;;  %v2130_v48 = vmul.f32 %v1748_v63, %v1591_v7  ;;  %v1401_v50 = vpop.f32.mrb[4].mxu0  ;;  %v1594_v55 = vpop.f32.mrb[4].mxu1 }
 0x22e   : > { %v2001_v6 = vsub.f32 %v1873_v8, %v1937_v22  ;;  %v7706_v12 = vadd.f32 %v2129_v44, %v2065_v20  ;;  %v1402_v52 = vadd.f32 %v1401_v50, %v7645_v41  ;;  %v1595_v40 = vadd.f32 %v1594_v55, %v7649_v24  ;;  %v1403_v46 = vpop.f32.mrb[5].mxu0  ;;  %v1596_v43 = vpop.f32.mrb[5].mxu1  ;;  %v1761_v50 = vld [vmem:[%s10800_s3 + $0x90] sm:$0xff] }
 0x22f   : > { %v2002_v60 = vsub.f32 %v1874_v39, %v1938_v49  ;;  %v7716_v29 = vadd.f32 %v2130_v48, %v2066_v42  ;;  %v1404_v21 = vadd.f32 %v1403_v46, %v7652_v15  ;;  %v1597_v36 = vadd.f32 %v1596_v43, %v7656_v5  ;;  %v1405_v54 = vpop.f32.mrb[6].mxu0  ;;  %v1598_v14 = vpop.f32.mrb[6].mxu1  ;;  %v1759_v48 = vld [vmem:[%s10800_s3 + $0x80] sm:$0xff]  ;;  %v1760_v46 = vld [vmem:[%s10800_s3 + $0x88] sm:$0xff] }
 0x230   : > { %11056 = vst [vmem:[#allocation15_spill] sm:$0xff] %v7706_v12  ;;  %v2255_v33 = vpack.c.bf16 %v2001_v6, %v1999_v9  ;;  %v7722_v17 = vmul.f32 %v1751_v37, %v1402_v52  ;;  %v2067_v27 = vmul.f32 %v1753_v45, %v1402_v52  ;;  %v1407_v31 = vpop.f32.mrb[7].mxu0  ;;  %v1600_v58 = vpop.f32.mrb[7].mxu1  ;;  %v7724_v0 = vmul.f32 %v1753_v45, %v1595_v40  ;;  %v1758_v9 = vld [vmem:[%s10800_s3 + $0x78] sm:$0xff]  ;;  %v6160_v43 = vld [vmem:[%s10801_s4 + $0x100] ss:$8 sps:$4 sm:$0xff]  }
 0x231   : > { %v2131_v2 = vmul.f32 %v1751_v37, %v1595_v40  ;;  %v7726_v59 = vmul.f32 %v1752_v19, %v1404_v21  ;;  %v2068_v47 = vmul.f32 %v1754_v23, %v1404_v21  ;;  %v7734_v35 = vmul.f32 %v1754_v23, %v1597_v36 }
 0x232   : > { %v2132_v26 = vmul.f32 %v1752_v19, %v1597_v36  ;;  %v1406_v4 = vadd.f32 %v1405_v54, %v7645_v41  ;;  %v1599_v56 = vadd.f32 %v1598_v14, %v7649_v24  ;;  %v2003_v11 = vsub.f32 %v7722_v17, %v7724_v0  ;;  %v1762_v19 = vld [vmem:[%s10800_s3 + $0x98] sm:$0xff]  ;;  %v1771_v0 = vld [vmem:[%s10800_s3 + $0xe0] sm:$0xff] }
 0x233   : > { %v7746_v61 = vadd.f32 %v2131_v2, %v2067_v27  ;;  %v1408_v63 = vadd.f32 %v1407_v31, %v7652_v15  ;;  %v1601_v28 = vadd.f32 %v1600_v58, %v7656_v5  ;;  %v2004_v1 = vsub.f32 %v7726_v59, %v7734_v35  ;;  %v6165_v54 = vld [vmem:[%s10801_s4 + $0x114] ss:$8 sps:$4 sm:$0xff]  }
 0x234   : > { %v7752_v7 = vadd.f32 %v2132_v26, %v2068_v47  ;;  %v7754_v8 = vmul.f32 %v1755_v32, %v1406_v4  ;;  %v2069_v20 = vmul.f32 %v1757_v18, %v1406_v4  ;;  %v7756_v22 = vmul.f32 %v1757_v18, %v1599_v56  ;;  %v1763_v26 = vld [vmem:[%s10800_s3 + $0xa0] sm:$0xff]  ;;  %v1765_v4 = vld [vmem:[%s10800_s3 + $0xb0] sm:$0xff] }
 0x235   : > { %v2133_v44 = vmul.f32 %v1755_v32, %v1599_v56  ;;  %v1878_v39 = vmul.f32 %v1756_v16, %v1408_v63  ;;  %v2070_v42 = vmul.f32 %v1758_v9, %v1408_v63  ;;  %v1411_v49 = vpop.f32.mrb[8].mxu0  ;;  %v1604_v37 = vpop.f32.mrb[8].mxu1  ;;  %v1942_v45 = vmul.f32 %v1758_v9, %v1601_v28  ;;  %v1764_v63 = vld [vmem:[%s10800_s3 + $0xa8] sm:$0xff] }
 0x236   : > { %v2134_v55 = vmul.f32 %v1756_v16, %v1601_v28  ;;  %v2256_v6 = vpack.c.bf16 %v2002_v60, %v2000_v51  ;;  %v1412_v52 = vadd.f32 %v1411_v49, %v7645_v41  ;;  %v1413_v40 = vpop.f32.mrb[9].mxu0  ;;  %v1606_v23 = vpop.f32.mrb[9].mxu1  ;;  %v2005_v34 = vsub.f32 %v7754_v8, %v7756_v22  ;;  %v1766_v28 = vld [vmem:[%s10800_s3 + $0xb8] sm:$0xff] }
 0x237   : > { %v7779_v57 = vadd.f32 %v2133_v44, %v2069_v20  ;;  %v1605_v51 = vadd.f32 %v1604_v37, %v7649_v24  ;;  %v1414_v60 = vadd.f32 %v1413_v40, %v7652_v15  ;;  %v1415_v21 = vpop.f32.mrb[10].mxu0  ;;  %v1608_v36 = vpop.f32.mrb[10].mxu1  ;;  %v2006_v14 = vsub.f32 %v1878_v39, %v1942_v45  ;;  %v6163_v8 = vld [vmem:[%s10801_s4 + $0x110] ss:$8 sps:$4 sm:$0xff]  }
 0x238   : > { %v7786_v27 = vadd.f32 %v2134_v55, %v2070_v42  ;;  %2735 = vmatprep.mubr.bf16.mxu0 %v2256_v6  ;;  %v7788_v31 = vmul.f32 %v1759_v48, %v1412_v52  ;;  %v2071_v58 = vmul.f32 %v1761_v50, %v1412_v52  ;;  %v1417_v2 = vpop.f32.mrb[11].mxu0  ;;  %v1610_v59 = vpop.f32.mrb[11].mxu1  ;;  %v1607_v56 = vadd.f32 %v1606_v23, %v7656_v5  ;;  %v6168_v42 = vld [vmem:[%s10801_s4 + $0x124] ss:$8 sps:$4 sm:$0xff]  }
 0x239   : > { %2736 = vmatmul.mubr.bf16.vlgmr.msra.gmra.mrb[64].mxu0 %v2255_v33  ;;  %v7790_v47 = vmul.f32 %v1761_v50, %v1605_v51  ;;  %v2135_v32 = vmul.f32 %v1759_v48, %v1605_v51  ;;  %v7792_v18 = vmul.f32 %v1760_v46, %v1414_v60  ;;  %v2072_v35 = vmul.f32 %v1762_v19, %v1414_v60 }
 0x23a   : > { %v1416_v16 = vadd.f32 %v1415_v21, %v7645_v41  ;;  %v1609_v33 = vadd.f32 %v1608_v36, %v7649_v24  ;;  %v1418_v9 = vadd.f32 %v1417_v2, %v7652_v15  ;;  %2897 = vmatpush1.bf16.msra.mxu0 %v6160_v43  ;;  %v1611_v44 = vadd.f32 %v1610_v59, %v7656_v5 }
 0x23b   : > { %v2007_v20 = vsub.f32 %v7788_v31, %v7790_v47  ;;  %v7815_v22 = vadd.f32 %v2135_v32, %v2071_v58  ;;  %v2260_v39 = vpack.c.bf16 %v2006_v14, %v2004_v1  ;;  %2898 = vmatprep.subr.bf16.mxu0 %v6165_v54  ;;  %v1944_v49 = vmul.f32 %v1762_v19, %v1607_v56  ;;  %v1769_v19 = vld [vmem:[%s10800_s3 + $0xd0] sm:$0xff]  ;;  %v6166_v54 = vld [vmem:[%s10801_s4 + $0x120] ss:$8 sps:$4 sm:$0xff]  }
 0x23c   : > { %v2136_v48 = vmul.f32 %v1760_v46, %v1607_v56  ;;  %v7821_v50 = vmul.f32 %v1763_v26, %v1416_v16  ;;  %v2073_v37 = vmul.f32 %v1765_v4, %v1416_v16  ;;  %v7823_v45 = vmul.f32 %v1765_v4, %v1609_v33  ;;  %v1767_v46 = vld [vmem:[%s10800_s3 + $0xc0] sm:$0xff]  ;;  %v1768_v32 = vld [vmem:[%s10800_s3 + $0xc8] sm:$0xff] }
 0x23d   : > { %11057 = vst [vmem:[#allocation18_spill] sm:$0xff] %v7815_v22  ;;  %v2137_v55 = vmul.f32 %v1763_v26, %v1609_v33  ;;  %v1882_v6 = vmul.f32 %v1764_v63, %v1418_v9  ;;  %v2074_v52 = vmul.f32 %v1766_v28, %v1418_v9  ;;  %2745 = vmatprep.mubr.bf16.mxu0 %v2260_v39  ;;  %v1421_v40 = vpop.f32.mrb[12].mxu0  ;;  %v1614_v23 = vpop.f32.mrb[12].mxu1 }
 0x23e   : > { %v2008_v1 = vsub.f32 %v7792_v18, %v1944_v49  ;;  %v7826_v43 = vadd.f32 %v2136_v48, %v2072_v35  ;;  %v1946_v51 = vmul.f32 %v1766_v28, %v1611_v44  ;;  %v2138_v60 = vmul.f32 %v1764_v63, %v1611_v44  ;;  %v1423_v21 = vpop.f32.mrb[13].mxu0  ;;  %v1616_v36 = vpop.f32.mrb[13].mxu1  ;;  %2899 = vmatpush1.bf16.msra.mxu0 %v6163_v8  ;;  %v1770_v18 = vld [vmem:[%s10800_s3 + $0xd8] sm:$0xff] }
 0x23f   : > { %v2009_v14 = vsub.f32 %v7821_v50, %v7823_v45  ;;  %v7839_v58 = vadd.f32 %v2137_v55, %v2073_v37  ;;  %v2259_v2 = vpack.c.bf16 %v2005_v34, %v2003_v11  ;;  %v1422_v59 = vadd.f32 %v1421_v40, %v7645_v41  ;;  %v1425_v35 = vpop.f32.mrb[14].mxu0  ;;  %v1618_v26 = vpop.f32.mrb[14].mxu1  ;;  %2900 = vmatprep.subr.bf16.mxu0 %v6168_v42  ;;  %v1773_v11 = vld [vmem:[%s10800_s3 + $0xf0] sm:$0xff]  ;;  %v1772_v55 = vld [vmem:[%s10800_s3 + $0xe8] sm:$0xff] }
 0x240   : > { %v2010_v4 = vsub.f32 %v1882_v6, %v1946_v51  ;;  %v7851_v56 = vadd.f32 %v2138_v60, %v2074_v52  ;;  %v1615_v16 = vadd.f32 %v1614_v23, %v7649_v24  ;;  %v1424_v17 = vadd.f32 %v1423_v21, %v7652_v15  ;;  %v1427_v34 = vpop.f32.mrb[15].mxu0  ;;  %v1620_v33 = vpop.f32.mrb[15].mxu1  ;;  %v1774_v6 = vld [vmem:[%s10800_s3 + $0xf8] sm:$0xff] }
 0x241   : > { %2746 = vmatmul.mubr.bf16.gmra.mrb[68].mxu0 %v2259_v2  ;;  %v7861_v9 = vmul.f32 %v1767_v46, %v1422_v59  ;;  %v2075_v63 = vmul.f32 %v1769_v19, %v1422_v59  ;;  %v1617_v28 = vadd.f32 %v1616_v36, %v7656_v5  ;;  %v1426_v8 = vadd.f32 %v1425_v35, %v7645_v41  ;;  %v1777_v2 = vld [vmem:[%s10800_s3 + $0x110] sm:$0xff] }
 0x242   : > { %v7865_v44 = vmul.f32 %v1769_v19, %v1615_v16  ;;  %v2139_v39 = vmul.f32 %v1767_v46, %v1615_v16  ;;  %v7867_v42 = vmul.f32 %v1768_v32, %v1424_v17  ;;  %v2076_v49 = vmul.f32 %v1770_v18, %v1424_v17  ;;  %2901 = vmatpush1.bf16.msra.mxu0 %v6166_v54  ;;  %v1775_v54 = vld [vmem:[%s10800_s3 + $0x100] sm:$0xff] }
 0x243   : > { %v7869_v48 = vmul.f32 %v1770_v18, %v1617_v28  ;;  %v2140_v50 = vmul.f32 %v1768_v32, %v1617_v28  ;;  %v7871_v37 = vmul.f32 %v1771_v0, %v1426_v8  ;;  %v2077_v45 = vmul.f32 %v1773_v11, %v1426_v8  ;;  %v1778_v28 = vld [vmem:[%s10800_s3 + $0x118] sm:$0xff] }
 0x244   : > { %v2011_v52 = vsub.f32 %v7861_v9, %v7865_v44  ;;  %v7881_v40 = vadd.f32 %v2139_v39, %v2075_v63  ;;  %v1619_v23 = vadd.f32 %v1618_v26, %v7649_v24  ;;  %v1428_v51 = vadd.f32 %v1427_v34, %v7652_v15  ;;  %v1776_v63 = vld [vmem:[%s10800_s3 + $0x108] sm:$0xff]  ;;  %v1787_v44 = vld [vmem:[%s10800_s3 + $0x160] sm:$0xff] }
 0x245   : > { %v2012_v60 = vsub.f32 %v7867_v42, %v7869_v48  ;;  %v7887_v46 = vadd.f32 %v2140_v50, %v2076_v49  ;;  %v1621_v19 = vadd.f32 %v1620_v33, %v7656_v5  ;;  %v2264_v21 = vpack.c.bf16 %v2010_v4, %v2008_v1  ;;  %v1431_v36 = vpop.f32.mrb[16].mxu0  ;;  %v1624_v59 = vpop.f32.mrb[16].mxu1  ;;  %v6169_v1 = vld [vmem:[%s10801_s4 + $0x130] ss:$8 sps:$4 sm:$0xff]   ;;  %v6171_v4 = vld [vmem:[%s10801_s4 + $0x134] ss:$8 sps:$4 sm:$0xff]  }
 0x246   : > { %11058 = vst [vmem:[#allocation8_spill] sm:$0xff] %v7881_v40  ;;  %v7896_v32 = vmul.f32 %v1773_v11, %v1619_v23  ;;  %v2141_v18 = vmul.f32 %v1771_v0, %v1619_v23  ;;  %v1886_v35 = vmul.f32 %v1772_v55, %v1428_v51  ;;  %v2078_v26 = vmul.f32 %v1774_v6, %v1428_v51  ;;  %v1433_v16 = vpop.f32.mrb[17].mxu0  ;;  %v1626_v17 = vpop.f32.mrb[17].mxu1 }
 0x247   : > { %11059 = vst [vmem:[#allocation10_spill] sm:$0xff] %v7887_v46  ;;  %v1950_v34 = vmul.f32 %v1774_v6, %v1621_v19  ;;  %v2142_v33 = vmul.f32 %v1772_v55, %v1621_v19  ;;  %2755 = vmatprep.mubr.bf16.mxu0 %v2264_v21  ;;  %v2263_v11 = vpack.c.bf16 %v2009_v14, %v2007_v20  ;;  %v1435_v8 = vpop.f32.mrb[18].mxu0  ;;  %v1628_v39 = vpop.f32.mrb[18].mxu1  ;;  %v1779_v19 = vld [vmem:[%s10800_s3 + $0x120] sm:$0xff]  ;;  %v1781_v21 = vld [vmem:[%s10800_s3 + $0x130] sm:$0xff] }
 0x248   : > { %v1432_v0 = vadd.f32 %v1431_v36, %v7645_v41  ;;  %v2013_v42 = vsub.f32 %v7871_v37, %v7896_v32  ;;  %v7916_v49 = vadd.f32 %v2141_v18, %v2077_v45  ;;  %v1625_v31 = vadd.f32 %v1624_v59, %v7649_v24  ;;  %v1437_v20 = vpop.f32.mrb[19].mxu0  ;;  %v1630_v14 = vpop.f32.mrb[19].mxu1  ;;  %2902 = vmatprep.subr.bf16.mxu0 %v6171_v4  ;;  %v6174_v36 = vld [vmem:[%s10801_s4 + $0x144] ss:$8 sps:$4 sm:$0xff]  }
 0x249   : > { %v1434_v47 = vadd.f32 %v1433_v16, %v7652_v15  ;;  %v2014_v48 = vsub.f32 %v1886_v35, %v1950_v34  ;;  %v7920_v50 = vadd.f32 %v2142_v33, %v2078_v26  ;;  %2756 = vmatmul.mubr.bf16.gmra.mrb[72].mxu0 %v2263_v11  ;;  %v1629_v59 = vadd.f32 %v1628_v39, %v7649_v24  ;;  %v1780_v18 = vld [vmem:[%s10800_s3 + $0x128] sm:$0xff]  ;;  %v1782_v35 = vld [vmem:[%s10800_s3 + $0x138] sm:$0xff] }
 0x24a   : > { %11060 = vst [vmem:[#allocation7_spill] sm:$0xff] %v7916_v49  ;;  %v7922_v55 = vmul.f32 %v1775_v54, %v1432_v0  ;;  %v2079_v6 = vmul.f32 %v1777_v2, %v1432_v0  ;;  %v7924_v23 = vmul.f32 %v1777_v2, %v1625_v31  ;;  %v2143_v51 = vmul.f32 %v1775_v54, %v1625_v31  ;;  %v6172_v26 = vld [vmem:[%s10801_s4 + $0x140] ss:$8 sps:$4 sm:$0xff]  }
 0x24b   : > { %11061 = vst [vmem:[#allocation9_spill] sm:$0xff] %v7920_v50  ;;  %v7926_v37 = vmul.f32 %v1776_v63, %v1434_v47  ;;  %v2080_v45 = vmul.f32 %v1778_v28, %v1434_v47  ;;  %2903 = vmatpush1.bf16.msra.mxu0 %v6169_v1  ;;  %v1627_v2 = vadd.f32 %v1626_v17, %v7656_v5 }
 0x24c   : > { %v1436_v54 = vadd.f32 %v1435_v8, %v7645_v41  ;;  %v1438_v32 = vadd.f32 %v1437_v20, %v7652_v15  ;;  %v2015_v16 = vsub.f32 %v7922_v55, %v7924_v23  ;;  %v7952_v17 = vadd.f32 %v2143_v51, %v2079_v6  ;;  %2904 = vmatprep.subr.bf16.mxu0 %v6174_v36 }
 0x24d   : > { %v1631_v1 = vadd.f32 %v1630_v14, %v7656_v5  ;;  %v2268_v4 = vpack.c.bf16 %v2014_v48, %v2012_v60  ;;  %v7955_v34 = vmul.f32 %v1778_v28, %v1627_v2  ;;  %v2144_v33 = vmul.f32 %v1776_v63, %v1627_v2  ;;  %v1441_v8 = vpop.f32.mrb[20].mxu0  ;;  %v1634_v39 = vpop.f32.mrb[20].mxu1  ;;  %v6177_v60 = vld [vmem:[%s10801_s4 + $0x154] ss:$8 sps:$4 sm:$0xff]  }
 0x24e   : > { %11062 = vst [vmem:[#allocation12_spill] sm:$0xff] %v7952_v17  ;;  %v7957_v11 = vmul.f32 %v1779_v19, %v1436_v54  ;;  %v2081_v0 = vmul.f32 %v1781_v21, %v1436_v54  ;;  %v7959_v31 = vmul.f32 %v1781_v21, %v1629_v59  ;;  %v2145_v47 = vmul.f32 %v1779_v19, %v1629_v59  ;;  %v1443_v6 = vpop.f32.mrb[21].mxu0  ;;  %v1636_v51 = vpop.f32.mrb[21].mxu1  ;;  %v1783_v19 = vld [vmem:[%s10800_s3 + $0x140] sm:$0xff]  ;;  %v1785_v21 = vld [vmem:[%s10800_s3 + $0x150] sm:$0xff] }
 0x24f   : > { %v1890_v20 = vmul.f32 %v1780_v18, %v1438_v32  ;;  %v2082_v53 = vmul.f32 %v1782_v35, %v1438_v32  ;;  %2765 = vmatprep.mubr.bf16.mxu0 %v2268_v4  ;;  %v2016_v63 = vsub.f32 %v7926_v37, %v7955_v34  ;;  %v7966_v28 = vadd.f32 %v2144_v33, %v2080_v45  ;;  %v1445_v36 = vpop.f32.mrb[22].mxu0  ;;  %v1638_v2 = vpop.f32.mrb[22].mxu1  ;;  %v6175_v54 = vld [vmem:[%s10801_s4 + $0x150] ss:$8 sps:$4 sm:$0xff]  }
 0x250   : > { %v1954_v14 = vmul.f32 %v1782_v35, %v1631_v1  ;;  %v2146_v48 = vmul.f32 %v1780_v18, %v1631_v1  ;;  %2905 = vmatpush1.bf16.msra.mxu0 %v6172_v26  ;;  %v2017_v37 = vsub.f32 %v7957_v11, %v7959_v31  ;;  %v7979_v45 = vadd.f32 %v2145_v47, %v2081_v0  ;;  %v1784_v18 = vld [vmem:[%s10800_s3 + $0x148] sm:$0xff]  ;;  %v1786_v35 = vld [vmem:[%s10800_s3 + $0x158] sm:$0xff]  ;;  %v1447_v26 = vpop.f32.mrb[23].mxu0  ;;  %v1640_v1 = vpop.f32.mrb[23].mxu1 }
 0x251   : > { %11063 = vst [vmem:[#allocation14_spill] sm:$0xff] %v7966_v28  ;;  %v2267_v59 = vpack.c.bf16 %v2013_v42, %v2011_v52  ;;  %v1442_v32 = vadd.f32 %v1441_v8, %v7645_v41  ;;  %2906 = vmatprep.subr.bf16.mxu0 %v6177_v60  ;;  %v1635_v33 = vadd.f32 %v1634_v39, %v7649_v24  ;;  %v1789_v52 = vld [vmem:[%s10800_s3 + $0x170] sm:$0xff] }
 0x252   : > { %11064 = vst [vmem:[#allocation11_spill] sm:$0xff] %v7979_v45  ;;  %v2018_v4 = vsub.f32 %v1890_v20, %v1954_v14  ;;  %v7991_v34 = vadd.f32 %v2146_v48, %v2082_v53  ;;  %v1444_v9 = vadd.f32 %v1443_v6, %v7652_v15  ;;  %v1637_v0 = vadd.f32 %v1636_v51, %v7656_v5  ;;  %v1788_v20 = vld [vmem:[%s10800_s3 + $0x168] sm:$0xff]  ;;  %v1790_v51 = vld [vmem:[%s10800_s3 + $0x178] sm:$0xff] }
 0x253   : > { %2766 = vmatmul.mubr.bf16.gmra.mrb[76].mxu0 %v2267_v59  ;;  %v8001_v42 = vmul.f32 %v1783_v19, %v1442_v32  ;;  %v2083_v11 = vmul.f32 %v1785_v21, %v1442_v32  ;;  %v1446_v53 = vadd.f32 %v1445_v36, %v7645_v41  ;;  %v8005_v8 = vmul.f32 %v1785_v21, %v1635_v33  ;;  %v6180_v21 = vld [vmem:[%s10801_s4 + $0x164] ss:$8 sps:$4 sm:$0xff]  }
 0x254   : > { %11065 = vst [vmem:[#allocation13_spill] sm:$0xff] %v7991_v34  ;;  %v2147_v39 = vmul.f32 %v1783_v19, %v1635_v33  ;;  %v8007_v31 = vmul.f32 %v1784_v18, %v1444_v9  ;;  %v2084_v47 = vmul.f32 %v1786_v35, %v1444_v9  ;;  %2907 = vmatpush1.bf16.msra.mxu0 %v6175_v54  ;;  %v6178_v19 = vld [vmem:[%s10801_s4 + $0x160] ss:$8 sps:$4 sm:$0xff]  }
 0x255   : > { %v8012_v6 = vmul.f32 %v1786_v35, %v1637_v0  ;;  %v2148_v60 = vmul.f32 %v1784_v18, %v1637_v0  ;;  %v8014_v14 = vmul.f32 %v1787_v44, %v1446_v53  ;;  %v2085_v48 = vmul.f32 %v1789_v52, %v1446_v53  ;;  %v1451_v18 = vpop.f32.mrb[24].mxu0  ;;  %v1644_v35 = vpop.f32.mrb[24].mxu1  ;;  %2908 = vmatprep.subr.bf16.mxu0 %v6180_v21  ;;  %v1794_v21 = vld [vmem:[%s10800_s3 + $0x198] sm:$0xff] }
 0x256   : > { %v8027_v54 = vadd.f32 %v2147_v39, %v2083_v11  ;;  %v1639_v59 = vadd.f32 %v1638_v2, %v7649_v24  ;;  %v1448_v32 = vadd.f32 %v1447_v26, %v7652_v15  ;;  %v1641_v0 = vadd.f32 %v1640_v1, %v7656_v5  ;;  %v1793_v2 = vld [vmem:[%s10800_s3 + $0x190] sm:$0xff]  ;;  %v1453_v11 = vpop.f32.mrb[25].mxu0  ;;  %v1646_v26 = vpop.f32.mrb[25].mxu1 }
 0x257   : > { %v2020_v33 = vsub.f32 %v8007_v31, %v8012_v6  ;;  %v8033_v9 = vadd.f32 %v2148_v60, %v2084_v47  ;;  %v2272_v53 = vpack.c.bf16 %v2018_v4, %v2016_v63  ;;  %v1455_v6 = vpop.f32.mrb[26].mxu0  ;;  %v1648_v60 = vpop.f32.mrb[26].mxu1  ;;  %v6181_v63 = vld [vmem:[%s10801_s4 + $0x170] ss:$8 sps:$4 sm:$0xff]   ;;  %v6183_v1 = vld [vmem:[%s10801_s4 + $0x174] ss:$8 sps:$4 sm:$0xff]   ;;  %v1645_v55 = vadd.f32 %v1644_v35, %v7649_v24 }
 0x258   : > { %11066 = vst [vmem:[#allocation17_spill] sm:$0xff] %v8027_v54  ;;  %v8042_v39 = vmul.f32 %v1789_v52, %v1639_v59  ;;  %v2149_v62 = vmul.f32 %v1787_v44, %v1639_v59  ;;  %v1894_v31 = vmul.f32 %v1788_v20, %v1448_v32  ;;  %v2086_v47 = vmul.f32 %v1790_v51, %v1448_v32  ;;  %v1457_v59 = vpop.f32.mrb[27].mxu0  ;;  %v1650_v32 = vpop.f32.mrb[27].mxu1  ;;  %v1825_v54 = vld [vmem:[%s10800_s3 + $0x290] sm:$0xff] }
 0x259   : > { %11067 = vst [vmem:[#allocation20_spill] sm:$0xff] %v8033_v9  ;;  %2909 = vmatpush1.bf16.msra.mxu0 %v6178_v19  ;;  %v1958_v4 = vmul.f32 %v1790_v51, %v1641_v0  ;;  %v2150_v36 = vmul.f32 %v1788_v20, %v1641_v0  ;;  %2775 = vmatprep.mubr.bf16.mxu0 %v2272_v53  ;;  %v1792_v19 = vld [vmem:[%s10800_s3 + $0x188] sm:$0xff] }
 0x25a   : > { %v2271_v44 = vpack.c.bf16 %v2017_v37, %v2015_v16  ;;  %v1452_v52 = vadd.f32 %v1451_v18, %v7645_v41  ;;  %v2021_v20 = vsub.f32 %v8014_v14, %v8042_v39  ;;  %v8062_v51 = vadd.f32 %v2149_v62, %v2085_v48  ;;  %2910 = vmatprep.subr.bf16.mxu0 %v6183_v1  ;;  %v1795_v62 = vld [vmem:[%s10800_s3 + $0x1a0] sm:$0xff]  ;;  %v1797_v48 = vld [vmem:[%s10800_s3 + $0x1b0] sm:$0xff]  ;;  %v1798_v39 = vld [vmem:[%s10800_s3 + $0x1b8] sm:$0xff] }
 0x25b   : > { %v1454_v23 = vadd.f32 %v1453_v11, %v7652_v15  ;;  %v2022_v16 = vsub.f32 %v1894_v31, %v1958_v4  ;;  %v8066_v37 = vadd.f32 %v2150_v36, %v2086_v47  ;;  %v8070_v53 = vmul.f32 %v1793_v2, %v1645_v55  ;;  %v1796_v36 = vld [vmem:[%s10800_s3 + $0x1a8] sm:$0xff] }
 0x25c   : > { %11068 = vst [vmem:[#allocation16_spill] sm:$0xff] %v8062_v51  ;;  %2776 = vmatmul.mubr.bf16.gmra.mrb[80].mxu0 %v2271_v44  ;;  %v8068_v18 = vmul.f32 %v1791_v25, %v1452_v52  ;;  %v2087_v0 = vmul.f32 %v1793_v2, %v1452_v52  ;;  %v2151_v38 = vmul.f32 %v1791_v25, %v1645_v55  ;;  %v6184_v31 = vld [vmem:[%s10801_s4 + $0x180] ss:$8 sps:$4 sm:$0xff]   ;;  %v6186_v47 = vld [vmem:[%s10801_s4 + $0x184] ss:$8 sps:$4 sm:$0xff]  }
 0x25d   : > { %11069 = vst [vmem:[#allocation19_spill] sm:$0xff] %v8066_v37  ;;  %v8072_v10 = vmul.f32 %v1792_v19, %v1454_v23  ;;  %v2088_v14 = vmul.f32 %v1794_v21, %v1454_v23  ;;  %2911 = vmatpush1.bf16.msra.mxu0 %v6181_v63  ;;  %v1647_v35 = vadd.f32 %v1646_v26, %v7656_v5  ;;  %v1461_v1 = vpop.f32.mrb[28].mxu0  ;;  %v1654_v4 = vpop.f32.mrb[28].mxu1 }
 0x25e   : > { %v1456_v25 = vadd.f32 %v1455_v6, %v7645_v41  ;;  %v1649_v2 = vadd.f32 %v1648_v60, %v7649_v24  ;;  %v1458_v11 = vadd.f32 %v1457_v59, %v7652_v15  ;;  %v8098_v6 = vadd.f32 %v2151_v38, %v2087_v0  ;;  %v1463_v23 = vpop.f32.mrb[29].mxu0  ;;  %v1656_v13 = vpop.f32.mrb[29].mxu1  ;;  %2912 = vmatprep.subr.bf16.mxu0 %v6186_v47 }
 0x25f   : > { %v1651_v60 = vadd.f32 %v1650_v32, %v7656_v5  ;;  %v2276_v63 = vpack.c.bf16 %v2022_v16, %v2020_v33  ;;  %v8101_v44 = vmul.f32 %v1794_v21, %v1647_v35  ;;  %v2152_v52 = vmul.f32 %v1792_v19, %v1647_v35  ;;  %v1799_v33 = vld [vmem:[%s10800_s3 + $0x1c0] sm:$0xff]  ;;  %v1801_v19 = vld [vmem:[%s10800_s3 + $0x1d0] sm:$0xff]  ;;  %v1465_v21 = vpop.f32.mrb[30].mxu0  ;;  %v1658_v32 = vpop.f32.mrb[30].mxu1 }
 0x260   : > { %11070 = vst [vmem:[#allocation23_spill] sm:$0xff] %v8098_v6  ;;  %v8103_v59 = vmul.f32 %v1795_v62, %v1456_v25  ;;  %v2089_v55 = vmul.f32 %v1797_v48, %v1456_v25  ;;  %v8105_v3 = vmul.f32 %v1797_v48, %v1649_v2  ;;  %v2153_v12 = vmul.f32 %v1795_v62, %v1649_v2  ;;  %v1467_v35 = vpop.f32.mrb[31].mxu0  ;;  %v1660_v25 = vpop.f32.mrb[31].mxu1  ;;  %v6187_v2 = vld [vmem:[%s10801_s4 + $0x190] ss:$8 sps:$4 sm:$0xff]  }
 0x261   : > { %v1898_v26 = vmul.f32 %v1796_v36, %v1458_v11  ;;  %v2090_v38 = vmul.f32 %v1798_v39, %v1458_v11  ;;  %2785 = vmatprep.mubr.bf16.mxu0 %v2276_v63  ;;  %v2024_v16 = vsub.f32 %v8072_v10, %v8101_v44  ;;  %v8115_v0 = vadd.f32 %v2152_v52, %v2088_v14  ;;  %v6189_v11 = vld [vmem:[%s10801_s4 + $0x194] ss:$8 sps:$4 sm:$0xff]  }
 0x262   : > { %v1962_v48 = vmul.f32 %v1798_v39, %v1651_v60  ;;  %v2154_v62 = vmul.f32 %v1796_v36, %v1651_v60  ;;  %2913 = vmatpush1.bf16.msra.mxu0 %v6184_v31  ;;  %v2025_v47 = vsub.f32 %v8103_v59, %v8105_v3  ;;  %v8125_v63 = vadd.f32 %v2153_v12, %v2089_v55  ;;  %v1800_v39 = vld [vmem:[%s10800_s3 + $0x1c8] sm:$0xff]  ;;  %v1802_v31 = vld [vmem:[%s10800_s3 + $0x1d8] sm:$0xff] }
 0x263   : > { %11071 = vst [vmem:[#allocation21_spill] sm:$0xff] %v8115_v0  ;;  %v11073_v10 = vsub.f32 %v8001_v42, %v8005_v8  ;;  %v1462_v36 = vadd.f32 %v1461_v1, %v7645_v41  ;;  %v1655_v3 = vadd.f32 %v1654_v4, %v7649_v24  ;;  %v1464_v12 = vadd.f32 %v1463_v23, %v7652_v15  ;;  %v1803_v42 = vld [vmem:[%s10800_s3 + $0x1e0] sm:$0xff]  ;;  %v1805_v8 = vld [vmem:[%s10800_s3 + $0x1f0] sm:$0xff] }
 0x264   : > { %11072 = vst [vmem:[#allocation22_spill] sm:$0xff] %v8125_v63  ;;  %v2026_v60 = vsub.f32 %v1898_v26, %v1962_v48  ;;  %v8137_v44 = vadd.f32 %v2154_v62, %v2090_v38  ;;  %2914 = vmatprep.subr.bf16.mxu0 %v6189_v11  ;;  %v1657_v26 = vadd.f32 %v1656_v13, %v7656_v5  ;;  %v6190_v38 = vld [vmem:[%s10801_s4 + $0x1a0] ss:$8 sps:$4 sm:$0xff]   ;;  %v6192_v48 = vld [vmem:[%s10801_s4 + $0x1a4] ss:$8 sps:$4 sm:$0xff]  }
 0x265   : > { %v2275_v14 = vpack.c.bf16 %v2021_v20, %v11073_v10  ;;  %v8147_v20 = vmul.f32 %v1799_v33, %v1462_v36  ;;  %v2091_v1 = vmul.f32 %v1801_v19, %v1462_v36  ;;  %v1466_v52 = vadd.f32 %v1465_v21, %v7645_v41  ;;  %v1806_v21 = vld [vmem:[%s10800_s3 + $0x1f8] sm:$0xff]  ;;  %v1664_v10 = vpop.f32.mrb[32].mxu1 }
 0x266   : > { %11074 = vst [vmem:[#allocation24_spill] sm:$0xff] %v8137_v44  ;;  %v8151_v4 = vmul.f32 %v1801_v19, %v1655_v3  ;;  %v2155_v59 = vmul.f32 %v1799_v33, %v1655_v3  ;;  %v8153_v55 = vmul.f32 %v1800_v39, %v1464_v12  ;;  %v2092_v23 = vmul.f32 %v1802_v31, %v1464_v12  ;;  %v1804_v33 = vld [vmem:[%s10800_s3 + $0x1e8] sm:$0xff]  ;;  %v1666_v12 = vpop.f32.mrb[33].mxu1 }
 0x267   : > { %2786 = vmatmul.mubr.bf16.gmra.mrb[84].mxu0 %v2275_v14  ;;  %v8161_v62 = vmul.f32 %v1802_v31, %v1657_v26  ;;  %v2156_v13 = vmul.f32 %v1800_v39, %v1657_v26  ;;  %v8163_v11 = vmul.f32 %v1803_v42, %v1466_v52  ;;  %v2093_v19 = vmul.f32 %v1805_v8, %v1466_v52 }
 0x268   : > { %2915 = vmatpush1.bf16.msra.mxu0 %v6187_v2  ;;  %v1471_v2 = vpop.f32.mrb[32].mxu0  ;;  %v8173_v36 = vadd.f32 %v2155_v59, %v2091_v1  ;;  %v1659_v39 = vadd.f32 %v1658_v32, %v7649_v24  ;;  %v1468_v31 = vadd.f32 %v1467_v35, %v7652_v15  ;;  %v1661_v63 = vadd.f32 %v1660_v25, %v7656_v5  ;;  %v1807_v1 = vld [vmem:[%s10800_s3 + $0x200] sm:$0xff]  ;;  %v1809_v32 = vld [vmem:[%s10800_s3 + $0x210] sm:$0xff]  ;;  %v1668_v59 = vpop.f32.mrb[34].mxu1 }
 0x269   : > { %v1473_v3 = vpop.f32.mrb[33].mxu0  ;;  %2916 = vmatprep.subr.bf16.mxu0 %v6192_v48  ;;  %v2028_v26 = vsub.f32 %v8153_v55, %v8161_v62  ;;  %v8179_v52 = vadd.f32 %v2156_v13, %v2092_v23  ;;  %v2280_v6 = vpack.c.bf16 %v2026_v60, %v2024_v16  ;;  %v1670_v62 = vpop.f32.mrb[35].mxu1  ;;  %v6193_v16 = vld [vmem:[%s10801_s4 + $0x1b0] ss:$8 sps:$4 sm:$0xff]   ;;  %v6195_v25 = vld [vmem:[%s10801_s4 + $0x1b4] ss:$8 sps:$4 sm:$0xff]  }
 0x26a   : > { %11075 = vst [vmem:[#allocation25_spill] sm:$0xff] %v8173_v36  ;;  %v1475_v35 = vpop.f32.mrb[34].mxu0  ;;  %v8188_v14 = vmul.f32 %v1805_v8, %v1659_v39  ;;  %v2157_v48 = vmul.f32 %v1803_v42, %v1659_v39  ;;  %v1902_v36 = vmul.f32 %v1804_v33, %v1468_v31  ;;  %v2094_v55 = vmul.f32 %v1806_v21, %v1468_v31  ;;  %v1810_v31 = vld [vmem:[%s10800_s3 + $0x218] sm:$0xff] }
 0x26b   : > { %11076 = vst [vmem:[#allocation26_spill] sm:$0xff] %v8179_v52  ;;  %v1477_v23 = vpop.f32.mrb[35].mxu0  ;;  %v1966_v60 = vmul.f32 %v1806_v21, %v1661_v63  ;;  %v2158_v13 = vmul.f32 %v1804_v33, %v1661_v63  ;;  %2795 = vmatprep.mubr.bf16.mxu0 %v2280_v6  ;;  %v11077_v8 = vsub.f32 %v8068_v18, %v8070_v53 }
 0x26c   : > { %2917 = vmatpush1.bf16.msra.mxu0 %v6190_v38  ;;  %v1472_v39 = vadd.f32 %v1471_v2, %v7645_v41  ;;  %v1808_v38 = vld [vmem:[%s10800_s3 + $0x208] sm:$0xff]  ;;  %v2029_v52 = vsub.f32 %v8163_v11, %v8188_v14  ;;  %v8208_v21 = vadd.f32 %v2157_v48, %v2093_v19  ;;  %v1665_v6 = vadd.f32 %v1664_v10, %v7649_v24  ;;  %v1811_v2 = vld [vmem:[%s10800_s3 + $0x220] sm:$0xff]  ;;  %v1813_v14 = vld [vmem:[%s10800_s3 + $0x230] sm:$0xff] }
 0x26d   : > { %v2279_v42 = vpack.c.bf16 %v2025_v47, %v11077_v8  ;;  %v1474_v18 = vadd.f32 %v1473_v3, %v7652_v15  ;;  %2918 = vmatprep.subr.bf16.mxu0 %v6195_v25  ;;  %v2030_v53 = vsub.f32 %v1902_v36, %v1966_v60  ;;  %v8212_v47 = vadd.f32 %v2158_v13, %v2094_v55  ;;  %v1812_v36 = vld [vmem:[%s10800_s3 + $0x228] sm:$0xff]  ;;  %v1814_v3 = vld [vmem:[%s10800_s3 + $0x238] sm:$0xff]  ;;  %v1481_v25 = vpop.f32.mrb[36].mxu0  ;;  %v1674_v60 = vpop.f32.mrb[36].mxu1 }
 0x26e   : > { %11078 = vst [vmem:[#allocation27_spill] sm:$0xff] %v8208_v21  ;;  %v8214_v63 = vmul.f32 %v1807_v1, %v1472_v39  ;;  %v2095_v33 = vmul.f32 %v1809_v32, %v1472_v39  ;;  %v8219_v8 = vmul.f32 %v1809_v32, %v1665_v6  ;;  %v2159_v11 = vmul.f32 %v1807_v1, %v1665_v6  ;;  %v6196_v13 = vld [vmem:[%s10801_s4 + $0x1c0] ss:$8 sps:$4 sm:$0xff]   ;;  %v1483_v39 = vpop.f32.mrb[37].mxu0  ;;  %v6201_v6 = vld [vmem:[%s10801_s4 + $0x1d4] ss:$8 sps:$4 sm:$0xff]  }
 0x26f   : > { %11079 = vst [vmem:[#allocation28_spill] sm:$0xff] %v8212_v47  ;;  %2796 = vmatmul.mubr.bf16.gmra.mrb[88].mxu0 %v2279_v42  ;;  %v8221_v19 = vmul.f32 %v1808_v38, %v1474_v18  ;;  %v2096_v10 = vmul.f32 %v1810_v31, %v1474_v18  ;;  %v1667_v32 = vadd.f32 %v1666_v12, %v7656_v5  ;;  %v6198_v42 = vld [vmem:[%s10801_s4 + $0x1c4] ss:$8 sps:$4 sm:$0xff]   ;;  %v1485_v0 = vpop.f32.mrb[38].mxu0 }
 0x270   : > { %2919 = vmatpush1.bf16.msra.mxu0 %v6193_v16  ;;  %v1476_v1 = vadd.f32 %v1475_v35, %v7645_v41  ;;  %v1669_v48 = vadd.f32 %v1668_v59, %v7649_v24  ;;  %v1478_v55 = vadd.f32 %v1477_v23, %v7652_v15  ;;  %v8244_v12 = vadd.f32 %v2159_v11, %v2095_v33  ;;  %v1676_v23 = vpop.f32.mrb[37].mxu1 }
 0x271   : > { %v1671_v35 = vadd.f32 %v1670_v62, %v7656_v5  ;;  %v2284_v59 = vpack.c.bf16 %v2030_v53, %v2028_v26  ;;  %v8250_v18 = vmul.f32 %v1810_v31, %v1667_v32  ;;  %v2160_v21 = vmul.f32 %v1808_v38, %v1667_v32  ;;  %v1678_v51 = vpop.f32.mrb[38].mxu1  ;;  %2920 = vmatprep.subr.bf16.mxu0 %v6198_v42  ;;  %v1487_v53 = vpop.f32.mrb[39].mxu0 }
 0x272   : > { %11080 = vst [vmem:[#allocation29_spill] sm:$0xff] %v8244_v12  ;;  %v8252_v47 = vmul.f32 %v1811_v2, %v1476_v1  ;;  %v2097_v44 = vmul.f32 %v1813_v14, %v1476_v1  ;;  %v8254_v33 = vmul.f32 %v1813_v14, %v1669_v48  ;;  %v2161_v11 = vmul.f32 %v1811_v2, %v1669_v48  ;;  %v1680_v16 = vpop.f32.mrb[39].mxu1  ;;  %v1815_v1 = vld [vmem:[%s10800_s3 + $0x240] sm:$0xff]  ;;  %v1817_v2 = vld [vmem:[%s10800_s3 + $0x250] sm:$0xff]  ;;  %v1816_v48 = vld [vmem:[%s10800_s3 + $0x248] sm:$0xff] }
 0x273   : > { %v1906_v62 = vmul.f32 %v1812_v36, %v1478_v55  ;;  %v2098_v26 = vmul.f32 %v1814_v3, %v1478_v55  ;;  %2805 = vmatprep.mubr.bf16.mxu0 %v2284_v59  ;;  %v2032_v12 = vsub.f32 %v8221_v19, %v8250_v18  ;;  %v8258_v31 = vadd.f32 %v2160_v21, %v2096_v10  ;;  %v6199_v14 = vld [vmem:[%s10801_s4 + $0x1d0] ss:$8 sps:$4 sm:$0xff]  }
 0x274   : > { %v1970_v38 = vmul.f32 %v1814_v3, %v1671_v35  ;;  %v2162_v32 = vmul.f32 %v1812_v36, %v1671_v35  ;;  %2921 = vmatpush1.bf16.msra.mxu0 %v6196_v13  ;;  %v2033_v19 = vsub.f32 %v8252_v47, %v8254_v33  ;;  %v8271_v21 = vadd.f32 %v2161_v11, %v2097_v44  ;;  %v1818_v55 = vld [vmem:[%s10800_s3 + $0x258] sm:$0xff] }
 0x275   : > { %11081 = vst [vmem:[#allocation30_spill] sm:$0xff] %v8258_v31  ;;  %v11083_v10 = vsub.f32 %v8147_v20, %v8151_v4  ;;  %v1482_v3 = vadd.f32 %v1481_v25, %v7645_v41  ;;  %2922 = vmatprep.subr.bf16.mxu0 %v6201_v6  ;;  %v1675_v44 = vadd.f32 %v1674_v60, %v7649_v24  ;;  %v1819_v20 = vld [vmem:[%s10800_s3 + $0x260] sm:$0xff]  ;;  %v1821_v4 = vld [vmem:[%s10800_s3 + $0x270] sm:$0xff]  ;;  %v1491_v11 = vpop.f32.mrb[40].mxu0 }
 0x276   : > { %11082 = vst [vmem:[#allocation31_spill] sm:$0xff] %v8271_v21  ;;  %v2034_v13 = vsub.f32 %v1906_v62, %v1970_v38  ;;  %v8283_v42 = vadd.f32 %v2162_v32, %v2098_v26  ;;  %v1484_v47 = vadd.f32 %v1483_v39, %v7652_v15  ;;  %v1677_v35 = vadd.f32 %v1676_v23, %v7656_v5  ;;  %v6204_v60 = vld [vmem:[%s10801_s4 + $0x1e4] ss:$8 sps:$4 sm:$0xff]   ;;  %v1684_v62 = vpop.f32.mrb[40].mxu1  ;;  %v6202_v26 = vld [vmem:[%s10801_s4 + $0x1e0] ss:$8 sps:$4 sm:$0xff]  }
 0x277   : > { %v2283_v36 = vpack.c.bf16 %v2029_v52, %v11083_v10  ;;  %v8293_v52 = vmul.f32 %v1815_v1, %v1482_v3  ;;  %v2099_v25 = vmul.f32 %v1817_v2, %v1482_v3  ;;  %v1486_v59 = vadd.f32 %v1485_v0, %v7645_v41  ;;  %v1493_v10 = vpop.f32.mrb[41].mxu0  ;;  %v1823_v31 = vld [vmem:[%s10800_s3 + $0x280] sm:$0xff] }
 0x278   : > { %11084 = vst [vmem:[#allocation32_spill] sm:$0xff] %v8283_v42  ;;  %v8300_v39 = vmul.f32 %v1817_v2, %v1675_v44  ;;  %v2163_v6 = vmul.f32 %v1815_v1, %v1675_v44  ;;  %v8302_v18 = vmul.f32 %v1816_v48, %v1484_v47  ;;  %v2100_v33 = vmul.f32 %v1818_v55, %v1484_v47  ;;  %v1820_v1 = vld [vmem:[%s10800_s3 + $0x268] sm:$0xff]  ;;  %v1822_v2 = vld [vmem:[%s10800_s3 + $0x278] sm:$0xff]  ;;  %v1495_v44 = vpop.f32.mrb[42].mxu0 }
 0x279   : > { %2806 = vmatmul.mubr.bf16.gmra.mrb[92].mxu0 %v2283_v36  ;;  %v8307_v23 = vmul.f32 %v1818_v55, %v1677_v35  ;;  %v2164_v0 = vmul.f32 %v1816_v48, %v1677_v35  ;;  %v8309_v38 = vmul.f32 %v1819_v20, %v1486_v59  ;;  %v2101_v32 = vmul.f32 %v1821_v4, %v1486_v59  ;;  %v6207_v35 = vld [vmem:[%s10801_s4 + $0x1f4] ss:$8 sps:$4 sm:$0xff]  }
 0x27a   : > { %2923 = vmatpush1.bf16.msra.mxu0 %v6199_v14  ;;  %v1686_v14 = vpop.f32.mrb[41].mxu1  ;;  %v8319_v3 = vadd.f32 %v2163_v6, %v2099_v25  ;;  %v1679_v48 = vadd.f32 %v1678_v51, %v7649_v24  ;;  %v1488_v55 = vadd.f32 %v1487_v53, %v7652_v15  ;;  %v2288_v36 = vpack.c.bf16 %v2034_v13, %v2032_v12  ;;  %v1497_v25 = vpop.f32.mrb[43].mxu0 }
 0x27b   : > { %2924 = vmatprep.subr.bf16.mxu0 %v6204_v60  ;;  %v1688_v47 = vpop.f32.mrb[42].mxu1  ;;  %v2036_v59 = vsub.f32 %v8302_v18, %v8307_v23  ;;  %v8328_v21 = vadd.f32 %v2164_v0, %v2100_v33  ;;  %v1681_v60 = vadd.f32 %v1680_v16, %v7656_v5  ;;  %v6205_v16 = vld [vmem:[%s10801_s4 + $0x1f0] ss:$8 sps:$4 sm:$0xff]   ;;  %v1492_v18 = vadd.f32 %v1491_v11, %v7645_v41  ;;  %v1824_v33 = vld [vmem:[%s10800_s3 + $0x288] sm:$0xff] }
 0x27c   : > { %11085 = vst [vmem:[#allocation33_spill] sm:$0xff] %v8319_v3  ;;  %v1690_v6 = vpop.f32.mrb[43].mxu1  ;;  %v1973_v3 = vmul.f32 %v1821_v4, %v1679_v48  ;;  %v2165_v51 = vmul.f32 %v1819_v20, %v1679_v48  ;;  %v1910_v42 = vmul.f32 %v1820_v1, %v1488_v55  ;;  %v2102_v53 = vmul.f32 %v1822_v2, %v1488_v55 }
 0x27d   : > { %11086 = vst [vmem:[#allocation34_spill] sm:$0xff] %v8328_v21  ;;  %v1974_v12 = vmul.f32 %v1822_v2, %v1681_v60  ;;  %v2166_v13 = vmul.f32 %v1820_v1, %v1681_v60  ;;  %2815 = vmatprep.mubr.bf16.mxu0 %v2288_v36  ;;  %v11087_v20 = vsub.f32 %v8214_v63, %v8219_v8 }
 0x27e   : > { %2925 = vmatpush1.bf16.msra.mxu0 %v6202_v26  ;;  %v1826_v26 = vld [vmem:[%s10800_s3 + $0x298] sm:$0xff]  ;;  %v2037_v23 = vsub.f32 %v8309_v38, %v1973_v3  ;;  %v8351_v0 = vadd.f32 %v2165_v51, %v2101_v32  ;;  %v1685_v1 = vadd.f32 %v1684_v62, %v7649_v24  ;;  %v1494_v2 = vadd.f32 %v1493_v10, %v7652_v15  ;;  %v1827_v38 = vld [vmem:[%s10800_s3 + $0x2a0] sm:$0xff]  ;;  %v1829_v62 = vld [vmem:[%s10800_s3 + $0x2b0] sm:$0xff] }
 0x27f   : > { %v2287_v4 = vpack.c.bf16 %v2033_v19, %v11087_v20  ;;  %2926 = vmatprep.subr.bf16.mxu0 %v6207_v35  ;;  %v2038_v63 = vsub.f32 %v1910_v42, %v1974_v12  ;;  %v8355_v8 = vadd.f32 %v2166_v13, %v2102_v53  ;;  %v1911_v19 = vmul.f32 %v1823_v31, %v1492_v18  ;;  %v1830_v3 = vld [vmem:[%s10800_s3 + $0x2b8] sm:$0xff] }
 0x280   : > { %11088 = vst [vmem:[#allocation35_spill] sm:$0xff] %v8351_v0  ;;  %v2103_v11 = vmul.f32 %v1825_v54, %v1492_v18  ;;  %v1975_v36 = vmul.f32 %v1825_v54, %v1685_v1  ;;  %v2167_v48 = vmul.f32 %v1823_v31, %v1685_v1  ;;  %v1912_v55 = vmul.f32 %v1824_v33, %v1494_v2  ;;  %v1828_v31 = vld [vmem:[%s10800_s3 + $0x2a8] sm:$0xff] }
 0x281   : > { %11089 = vst [vmem:[#allocation36_spill] sm:$0xff] %v8355_v8  ;;  %2816 = vmatmul.mubr.bf16.gmra.mrb[96].mxu0 %v2287_v4  ;;  %v2104_v60 = vmul.f32 %v1826_v26, %v1494_v2  ;;  %v1687_v42 = vadd.f32 %v1686_v14, %v7656_v5  ;;  %v1496_v32 = vadd.f32 %v1495_v44, %v7645_v41 }
 0x282   : > { %2927 = vmatpush1.bf16.msra.mxu0 %v6205_v16  ;;  %v1689_v10 = vadd.f32 %v1688_v47, %v7649_v24  ;;  %v1498_v54 = vadd.f32 %v1497_v25, %v7652_v15  ;;  %v2039_v35 = vsub.f32 %v1911_v19, %v1975_v36  ;;  %v8373_v51 = vadd.f32 %v2167_v48, %v2103_v11 }
 0x283   : > { %v1691_v53 = vadd.f32 %v1690_v6, %v7656_v5  ;;  %v2292_v14 = vpack.c.bf16 %v2038_v63, %v2036_v59  ;;  %v1976_v16 = vmul.f32 %v1826_v26, %v1687_v42  ;;  %v2168_v44 = vmul.f32 %v1824_v33, %v1687_v42 }
 0x284   : > { %11090 = vst [vmem:[#allocation37_spill] sm:$0xff] %v8373_v51  ;;  %v1913_v12 = vmul.f32 %v1827_v38, %v1496_v32  ;;  %v2105_v47 = vmul.f32 %v1829_v62, %v1496_v32  ;;  %v1977_v13 = vmul.f32 %v1829_v62, %v1689_v10  ;;  %v2169_v25 = vmul.f32 %v1827_v38, %v1689_v10  ;;  %v11110_v62 = vld [vmem:[#allocation2_spill] sm:$0xff] }
 0x285   : > { %v1914_v20 = vmul.f32 %v1828_v31, %v1498_v54  ;;  %v2106_v4 = vmul.f32 %v1830_v3, %v1498_v54  ;;  %2825 = vmatprep.mubr.bf16.mxu0 %v2292_v14  ;;  %v2040_v18 = vsub.f32 %v1912_v55, %v1976_v16  ;;  %v8376_v1 = vadd.f32 %v2168_v44, %v2104_v60 }
 0x286   : > { %v1978_v2 = vmul.f32 %v1830_v3, %v1691_v53  ;;  %v2170_v15 = vmul.f32 %v1828_v31, %v1691_v53  ;;  %v2041_v19 = vsub.f32 %v1913_v12, %v1977_v13  ;;  %v8378_v11 = vadd.f32 %v2169_v25, %v2105_v47  ;;  %v1832_v47 = vld [vmem:[%s10800_s3 + $0x2c8] sm:$0xff] }
 0x287   : > { %11091 = vst [vmem:[#allocation38_spill] sm:$0xff] %v8376_v1  ;;  %v11093_v59 = vsub.f32 %v8293_v52, %v8300_v39 }
 0x288   : > { %11092 = vst [vmem:[#allocation39_spill] sm:$0xff] %v8378_v11  ;;  %v2042_v26 = vsub.f32 %v1914_v20, %v1978_v2  ;;  %v8385_v63 = vadd.f32 %v2170_v15, %v2106_v4  ;;  %v2295_v55 = vpack.c.bf16 %v2041_v19, %v2039_v35  ;;  %v1831_v2 = vld [vmem:[%s10800_s3 + $0x2c0] sm:$0xff] }
 0x289   : > { %v2291_v6 = vpack.c.bf16 %v2037_v23, %v11093_v59  ;;  %v1839_v4 = vld [vmem:[%s10800_s3 + $0x300] sm:$0xff] }
 0x28a   : > { %11094 = vst [vmem:[#allocation40_spill] sm:$0xff] %v8385_v63  ;;  %v2296_v23 = vpack.c.bf16 %v2042_v26, %v2040_v18 }
 0x28b   : > { %2826 = vmatmul.mubr.bf16.gmra.mrb[100].mxu0 %v2291_v6  ;;  %v1833_v6 = vld [vmem:[%s10800_s3 + $0x2d0] sm:$0xff] }
 0x28c   : > { %2835 = vmatprep.mubr.bf16.mxu0 %v2296_v23 }
 0x293   : > { %2836 = vmatmul.mubr.bf16.gmra.mrb[104].mxu0 %v2295_v55  ;;  %v1834_v55 = vld [vmem:[%s10800_s3 + $0x2d8] sm:$0xff] }
 0x2c0   : > { %v1501_v20 = vpop.f32.mrb[44].mxu0  ;;  %v1694_v26 = vpop.f32.mrb[44].mxu1 }
 0x2c1   : > { %v1502_v16 = vadd.f32 %v1501_v20, %v7645_v41  ;;  %v1695_v54 = vadd.f32 %v1694_v26, %v7649_v24  ;;  %v1503_v42 = vpop.f32.mrb[45].mxu0  ;;  %v1696_v23 = vpop.f32.mrb[45].mxu1 }
 0x2c2   : > { %v1504_v38 = vadd.f32 %v1503_v42, %v11110_v62  ;;  %v1697_v15 = vadd.f32 %v1696_v23, %v7656_v5  ;;  %v1505_v39 = vpop.f32.mrb[46].mxu0  ;;  %v1698_v52 = vpop.f32.mrb[46].mxu1  ;;  %v1835_v42 = vld [vmem:[%s10800_s3 + $0x2e0] sm:$0xff]  ;;  %v1837_v23 = vld [vmem:[%s10800_s3 + $0x2f0] sm:$0xff] }
 0x2c3   : > { %v8443_v60 = vmul.f32 %v1831_v2, %v1502_v16  ;;  %v2107_v20 = vmul.f32 %v1833_v6, %v1502_v16  ;;  %v8445_v26 = vmul.f32 %v1833_v6, %v1695_v54  ;;  %v2171_v48 = vmul.f32 %v1831_v2, %v1695_v54  ;;  %v1507_v36 = vpop.f32.mrb[47].mxu0  ;;  %v1700_v33 = vpop.f32.mrb[47].mxu1 }
 0x2c4   : > { %v8447_v51 = vmul.f32 %v1832_v47, %v1504_v38  ;;  %v2108_v11 = vmul.f32 %v1834_v55, %v1504_v38  ;;  %v8449_v1 = vmul.f32 %v1834_v55, %v1697_v15  ;;  %v2172_v63 = vmul.f32 %v1832_v47, %v1697_v15  ;;  %v1836_v15 = vld [vmem:[%s10800_s3 + $0x2e8] sm:$0xff]  ;;  %v1838_v47 = vld [vmem:[%s10800_s3 + $0x2f8] sm:$0xff] }
 0x2c5   : > { %v8459_v54 = vadd.f32 %v2171_v48, %v2107_v20  ;;  %v1506_v2 = vadd.f32 %v1505_v39, %v7645_v41  ;;  %v1699_v38 = vadd.f32 %v1698_v52, %v7649_v24  ;;  %v1508_v48 = vadd.f32 %v1507_v36, %v11110_v62 }
 0x2c6   : > { %v8471_v55 = vadd.f32 %v2172_v63, %v2108_v11  ;;  %v1701_v20 = vadd.f32 %v1700_v33, %v7656_v5  ;;  %v1841_v11 = vld [vmem:[%s10800_s3 + $0x310] sm:$0xff] }
 0x2c7   : > { %v1917_v39 = vmul.f32 %v1835_v42, %v1506_v2  ;;  %v2109_v16 = vmul.f32 %v1837_v23, %v1506_v2  ;;  %v1981_v52 = vmul.f32 %v1837_v23, %v1699_v38  ;;  %v2173_v35 = vmul.f32 %v1835_v42, %v1699_v38  ;;  %v1840_v38 = vld [vmem:[%s10800_s3 + $0x308] sm:$0xff] }
 0x2c8   : > { %v1918_v0 = vmul.f32 %v1836_v15, %v1508_v48  ;;  %v2110_v21 = vmul.f32 %v1838_v47, %v1508_v48  ;;  %v1982_v8 = vmul.f32 %v1838_v47, %v1701_v20  ;;  %v2174_v19 = vmul.f32 %v1836_v15, %v1701_v20  ;;  %v1511_v59 = vpop.f32.mrb[48].mxu0  ;;  %v1704_v63 = vpop.f32.mrb[48].mxu1  ;;  %v1842_v15 = vld [vmem:[%s10800_s3 + $0x318] sm:$0xff] }
 0x2c9   : > { %v2045_v36 = vsub.f32 %v1917_v39, %v1981_v52  ;;  %v8481_v33 = vadd.f32 %v2173_v35, %v2109_v16  ;;  %v1512_v23 = vadd.f32 %v1511_v59, %v7645_v41  ;;  %v1705_v42 = vadd.f32 %v1704_v63, %v7649_v24  ;;  %v1513_v2 = vpop.f32.mrb[49].mxu0  ;;  %v1706_v47 = vpop.f32.mrb[49].mxu1 }
 0x2ca   : > { %v2046_v48 = vsub.f32 %v1918_v0, %v1982_v8  ;;  %v8491_v20 = vadd.f32 %v2174_v19, %v2110_v21  ;;  %v1514_v35 = vadd.f32 %v1513_v2, %v11110_v62  ;;  %v1707_v16 = vadd.f32 %v1706_v47, %v7656_v5  ;;  %v1515_v59 = vpop.f32.mrb[50].mxu0  ;;  %v1708_v39 = vpop.f32.mrb[50].mxu1  ;;  %v1843_v8 = vld [vmem:[%s10800_s3 + $0x320] sm:$0xff]  ;;  %v1845_v19 = vld [vmem:[%s10800_s3 + $0x330] sm:$0xff]  ;;  %v1844_v2 = vld [vmem:[%s10800_s3 + $0x328] sm:$0xff] }
 0x2cb   : > { %v8495_v52 = vmul.f32 %v1839_v4, %v1512_v23  ;;  %v2111_v63 = vmul.f32 %v1841_v11, %v1512_v23  ;;  %v8497_v6 = vmul.f32 %v1841_v11, %v1705_v42  ;;  %v2175_v18 = vmul.f32 %v1839_v4, %v1705_v42  ;;  %v1517_v13 = vpop.f32.mrb[51].mxu0  ;;  %v1710_v25 = vpop.f32.mrb[51].mxu1 }
 0x2cc   : > { %v8499_v44 = vmul.f32 %v1840_v38, %v1514_v35  ;;  %v2112_v12 = vmul.f32 %v1842_v15, %v1514_v35  ;;  %v8501_v0 = vmul.f32 %v1842_v15, %v1707_v16  ;;  %v2176_v21 = vmul.f32 %v1840_v38, %v1707_v16  ;;  %v1846_v38 = vld [vmem:[%s10800_s3 + $0x338] sm:$0xff] }
 0x2cd   : > { %v8511_v4 = vadd.f32 %v2175_v18, %v2111_v63  ;;  %v1516_v23 = vadd.f32 %v1515_v59, %v7645_v41  ;;  %v1709_v42 = vadd.f32 %v1708_v39, %v7649_v24  ;;  %v1518_v18 = vadd.f32 %v1517_v13, %v11110_v62 }
 0x2ce   : > { %v2048_v15 = vsub.f32 %v8499_v44, %v8501_v0  ;;  %v8523_v47 = vadd.f32 %v2176_v21, %v2112_v12  ;;  %v1711_v35 = vadd.f32 %v1710_v25, %v7656_v5  ;;  %v11111_v44 = vsub.f32 %v8447_v51, %v8449_v1  ;;  %v1847_v0 = vld [vmem:[%s10800_s3 + $0x340] sm:$0xff]  ;;  %v1849_v21 = vld [vmem:[%s10800_s3 + $0x350] sm:$0xff] }
 0x2cf   : > { %v1921_v16 = vmul.f32 %v1843_v8, %v1516_v23  ;;  %v2113_v59 = vmul.f32 %v1845_v19, %v1516_v23  ;;  %v1985_v39 = vmul.f32 %v1845_v19, %v1709_v42  ;;  %v2177_v63 = vmul.f32 %v1843_v8, %v1709_v42 }
 0x2d0   : > { %v1922_v11 = vmul.f32 %v1844_v2, %v1518_v18  ;;  %v2114_v53 = vmul.f32 %v1846_v38, %v1518_v18  ;;  %v1986_v14 = vmul.f32 %v1846_v38, %v1711_v35  ;;  %v2178_v31 = vmul.f32 %v1844_v2, %v1711_v35  ;;  %v1521_v3 = vpop.f32.mrb[52].mxu0  ;;  %v1714_v32 = vpop.f32.mrb[52].mxu1 }
 0x2d1   : > { %v2049_v10 = vsub.f32 %v1921_v16, %v1985_v39  ;;  %v8527_v9 = vadd.f32 %v2177_v63, %v2113_v59  ;;  %v2300_v12 = vpack.c.bf16 %v2046_v48, %v11111_v44  ;;  %v11112_v13 = vsub.f32 %v8443_v60, %v8445_v26  ;;  %v1523_v8 = vpop.f32.mrb[53].mxu0  ;;  %v1716_v19 = vpop.f32.mrb[53].mxu1  ;;  %v1848_v60 = vld [vmem:[%s10800_s3 + $0x348] sm:$0xff]  ;;  %v1850_v26 = vld [vmem:[%s10800_s3 + $0x358] sm:$0xff] }
 0x2d2   : > { %v2050_v23 = vsub.f32 %v1922_v11, %v1986_v14  ;;  %v8541_v42 = vadd.f32 %v2178_v31, %v2114_v53  ;;  %v1522_v51 = vadd.f32 %v1521_v3, %v7645_v41  ;;  %v1715_v1 = vadd.f32 %v1714_v32, %v7649_v24  ;;  %v1718_v48 = vpop.f32.mrb[54].mxu1  ;;  %v1851_v32 = vld [vmem:[%s10800_s3 + $0x360] sm:$0xff]  ;;  %v1853_v3 = vld [vmem:[%s10800_s3 + $0x370] sm:$0xff] }
 0x2d3   : > { %v2299_v25 = vpack.c.bf16 %v2045_v36, %v11112_v13  ;;  %v1525_v36 = vpop.f32.mrb[54].mxu0  ;;  %2845 = vmatprep.mubr.bf16.mxu0 %v2300_v12  ;;  %v1524_v2 = vadd.f32 %v1523_v8, %v11110_v62  ;;  %v1717_v31 = vadd.f32 %v1716_v19, %v7656_v5  ;;  %v1719_v14 = vadd.f32 %v1718_v48, %v7649_v24  ;;  %v1720_v38 = vpop.f32.mrb[55].mxu1 }
 0x2d4   : > { %v1526_v53 = vadd.f32 %v1525_v36, %v7645_v41  ;;  %v1527_v11 = vpop.f32.mrb[55].mxu0  ;;  %v8561_v18 = vmul.f32 %v1847_v0, %v1522_v51  ;;  %v2115_v35 = vmul.f32 %v1849_v21, %v1522_v51  ;;  %v8563_v16 = vmul.f32 %v1849_v21, %v1715_v1 }
 0x2d5   : > { %2846 = vmatmul.mubr.bf16.gmra.mrb[108].mxu0 %v2299_v25  ;;  %v2179_v59 = vmul.f32 %v1847_v0, %v1715_v1  ;;  %v8565_v39 = vmul.f32 %v1848_v60, %v1524_v2  ;;  %v2116_v63 = vmul.f32 %v1850_v26, %v1524_v2  ;;  %v8567_v44 = vmul.f32 %v1850_v26, %v1717_v31  ;;  %v1854_v26 = vld [vmem:[%s10800_s3 + $0x378] sm:$0xff] }
 0x2d6   : > { %v2180_v12 = vmul.f32 %v1848_v60, %v1717_v31  ;;  %v8573_v19 = vmul.f32 %v1851_v32, %v1526_v53  ;;  %v2117_v25 = vmul.f32 %v1853_v3, %v1526_v53  ;;  %v8579_v0 = vmul.f32 %v1853_v3, %v1719_v14  ;;  %v1852_v60 = vld [vmem:[%s10800_s3 + $0x368] sm:$0xff] }
 0x2d7   : > { %v8571_v8 = vadd.f32 %v2179_v59, %v2115_v35  ;;  %v2181_v1 = vmul.f32 %v1851_v32, %v1719_v14  ;;  %v1528_v36 = vadd.f32 %v1527_v11, %v11110_v62  ;;  %v1721_v48 = vadd.f32 %v1720_v38, %v7656_v5  ;;  %v1855_v32 = vld [vmem:[%s10800_s3 + $0x380] sm:$0xff]  ;;  %v1857_v14 = vld [vmem:[%s10800_s3 + $0x390] sm:$0xff] }
 0x2d8   : > { %v8577_v21 = vadd.f32 %v2180_v12, %v2116_v63  ;;  %v2304_v2 = vpack.c.bf16 %v2050_v23, %v2048_v15  ;;  %v11113_v31 = vsub.f32 %v8495_v52, %v8497_v6  ;;  %v1531_v3 = vpop.f32.mrb[56].mxu0  ;;  %v1724_v35 = vpop.f32.mrb[56].mxu1  ;;  %v2053_v11 = vsub.f32 %v8573_v19, %v8579_v0  ;;  %v1858_v0 = vld [vmem:[%s10800_s3 + $0x398] sm:$0xff] }
 0x2d9   : > { %v8600_v59 = vadd.f32 %v2181_v1, %v2117_v25  ;;  %v1532_v15 = vadd.f32 %v1531_v3, %v7645_v41  ;;  %v1725_v6 = vadd.f32 %v1724_v35, %v7649_v24  ;;  %v1726_v52 = vpop.f32.mrb[57].mxu1  ;;  %v1926_v23 = vmul.f32 %v1852_v60, %v1528_v36  ;;  %v1856_v25 = vld [vmem:[%s10800_s3 + $0x388] sm:$0xff]  ;;  %v1859_v3 = vld [vmem:[%s10800_s3 + $0x3a0] sm:$0xff] }
 0x2da   : > { %v2303_v53 = vpack.c.bf16 %v2049_v10, %v11113_v31  ;;  %v1533_v10 = vpop.f32.mrb[57].mxu0  ;;  %v2118_v38 = vmul.f32 %v1854_v26, %v1528_v36  ;;  %v1990_v63 = vmul.f32 %v1854_v26, %v1721_v48  ;;  %v2182_v12 = vmul.f32 %v1852_v60, %v1721_v48  ;;  %2855 = vmatprep.mubr.bf16.mxu0 %v2304_v2  ;;  %v1728_v13 = vpop.f32.mrb[58].mxu1 }
 0x2db   : > { %v1535_v31 = vpop.f32.mrb[58].mxu0  ;;  %v8604_v51 = vmul.f32 %v1855_v32, %v1532_v15  ;;  %v2119_v37 = vmul.f32 %v1857_v14, %v1532_v15  ;;  %v8606_v17 = vmul.f32 %v1857_v14, %v1725_v6  ;;  %v2183_v19 = vmul.f32 %v1855_v32, %v1725_v6  ;;  %v1730_v26 = vpop.f32.mrb[59].mxu1  ;;  %v1861_v32 = vld [vmem:[%s10800_s3 + $0x3b0] sm:$0xff] }
 0x2dc   : > { %v1537_v1 = vpop.f32.mrb[59].mxu0  ;;  %v2054_v60 = vsub.f32 %v1926_v23, %v1990_v63  ;;  %v8614_v36 = vadd.f32 %v2182_v12, %v2118_v38  ;;  %v1534_v48 = vadd.f32 %v1533_v10, %v11110_v62  ;;  %v1727_v2 = vadd.f32 %v1726_v52, %v7656_v5 }
 0x2dd   : > { %2856 = vmatmul.mubr.bf16.gmra.mrb[112].mxu0 %v2303_v53  ;;  %v8626_v35 = vadd.f32 %v2183_v19, %v2119_v37  ;;  %v1536_v15 = vadd.f32 %v1535_v31, %v7645_v41  ;;  %v1729_v53 = vadd.f32 %v1728_v13, %v7649_v24  ;;  %v1860_v37 = vld [vmem:[%s10800_s3 + $0x3a8] sm:$0xff]  ;;  %v1862_v31 = vld [vmem:[%s10800_s3 + $0x3b8] sm:$0xff]  ;;  %v11115_v14 = vsub.f32 %v8561_v18, %v8563_v16 }
 0x2de   : > { %v8630_v6 = vmul.f32 %v1856_v25, %v1534_v48  ;;  %v2120_v10 = vmul.f32 %v1858_v0, %v1534_v48  ;;  %v8632_v52 = vmul.f32 %v1858_v0, %v1727_v2  ;;  %v2184_v23 = vmul.f32 %v1856_v25, %v1727_v2 }
 0x2df   : > { %v8634_v38 = vmul.f32 %v1859_v3, %v1536_v15  ;;  %v2121_v63 = vmul.f32 %v1861_v32, %v1536_v15  ;;  %v1993_v12 = vmul.f32 %v1861_v32, %v1729_v53  ;;  %v2185_v45 = vmul.f32 %v1859_v3, %v1729_v53 }
 0x2e0   : > { %v2056_v13 = vsub.f32 %v8630_v6, %v8632_v52  ;;  %v8644_v19 = vadd.f32 %v2184_v23, %v2120_v10  ;;  %v1538_v25 = vadd.f32 %v1537_v1, %v11110_v62  ;;  %v1731_v0 = vadd.f32 %v1730_v26, %v7656_v5  ;;  %v1541_v48 = vpop.f32.mrb[60].mxu0  ;;  %v1734_v2 = vpop.f32.mrb[60].mxu1 }
 0x2e1   : > { %v2057_v3 = vsub.f32 %v8634_v38, %v1993_v12  ;;  %v8649_v32 = vadd.f32 %v2185_v45, %v2121_v63  ;;  %v11114_v15 = vsub.f32 %v8565_v39, %v8567_v44  ;;  %v2307_v6 = vpack.c.bf16 %v2053_v11, %v11115_v14  ;;  %v1543_v10 = vpop.f32.mrb[61].mxu0  ;;  %v1736_v52 = vpop.f32.mrb[61].mxu1  ;;  %v1863_v38 = vld [vmem:[%s10800_s3 + $0x3c0] sm:$0xff]  ;;  %v1865_v45 = vld [vmem:[%s10800_s3 + $0x3d0] sm:$0xff]  ;;  %v1866_v14 = vld [vmem:[%s10800_s3 + $0x3d8] sm:$0xff] }
 0x2e2   : > { %v1930_v23 = vmul.f32 %v1860_v37, %v1538_v25  ;;  %v2122_v1 = vmul.f32 %v1862_v31, %v1538_v25  ;;  %v1994_v28 = vmul.f32 %v1862_v31, %v1731_v0  ;;  %v2186_v26 = vmul.f32 %v1860_v37, %v1731_v0  ;;  %v1545_v39 = vpop.f32.mrb[62].mxu0  ;;  %v1738_v44 = vpop.f32.mrb[62].mxu1 }
 0x2e3   : > { %v2308_v53 = vpack.c.bf16 %v2054_v60, %v11114_v15  ;;  %v1542_v18 = vadd.f32 %v1541_v48, %v7645_v41  ;;  %v1735_v16 = vadd.f32 %v1734_v2, %v7649_v24  ;;  %v1544_v11 = vadd.f32 %v1543_v10, %v11110_v62  ;;  %v1864_v60 = vld [vmem:[%s10800_s3 + $0x3c8] sm:$0xff]  ;;  %v1547_v12 = vpop.f32.mrb[63].mxu0  ;;  %v1740_v37 = vpop.f32.mrb[63].mxu1  ;;  %v1867_v48 = vld [vmem:[%s10800_s3 + $0x3e0] sm:$0xff]  ;;  %v1869_v2 = vld [vmem:[%s10800_s3 + $0x3f0] sm:$0xff] }
 0x2e4   : > { %v1737_v63 = vadd.f32 %v1736_v52, %v7656_v5  ;;  %v2058_v31 = vsub.f32 %v1930_v23, %v1994_v28  ;;  %v8673_v25 = vadd.f32 %v2186_v26, %v2122_v1  ;;  %v1546_v0 = vadd.f32 %v1545_v39, %v7645_v41 }
 0x2e5   : > { %2865 = vmatprep.mubr.bf16.mxu0 %v2308_v53  ;;  %v1739_v15 = vadd.f32 %v1738_v44, %v7649_v24  ;;  %v1931_v53 = vmul.f32 %v1863_v38, %v1542_v18  ;;  %v2123_v10 = vmul.f32 %v1865_v45, %v1542_v18  ;;  %v1995_v52 = vmul.f32 %v1865_v45, %v1735_v16  ;;  %v1868_v24 = vld [vmem:[%s10800_s3 + $0x3e8] sm:$0xff] }
 0x2e6   : > { %2866 = vmatmul.mubr.bf16.gmra.mrb[116].mxu0 %v2307_v6  ;;  %v2187_v34 = vmul.f32 %v1863_v38, %v1735_v16  ;;  %v1932_v28 = vmul.f32 %v1864_v60, %v1544_v11  ;;  %v2124_v23 = vmul.f32 %v1866_v14, %v1544_v11  ;;  %v1996_v1 = vmul.f32 %v1866_v14, %v1737_v63  ;;  %v1870_v38 = vld [vmem:[%s10800_s3 + $0x3f8] sm:$0xff] }
 0x2e7   : > { %v2188_v6 = vmul.f32 %v1864_v60, %v1737_v63  ;;  %v2059_v26 = vsub.f32 %v1931_v53, %v1995_v52  ;;  %v1933_v39 = vmul.f32 %v1867_v48, %v1546_v0  ;;  %v2125_v40 = vmul.f32 %v1869_v2, %v1546_v0  ;;  %v11144_v53 = vld [vmem:[#allocation24_spill] sm:$0xff] }
 0x2e8   : > { %v8683_v41 = vadd.f32 %v2187_v34, %v2123_v10  ;;  %v2060_v49 = vsub.f32 %v1932_v28, %v1996_v1  ;;  %v1997_v50 = vmul.f32 %v1869_v2, %v1739_v15  ;;  %v2189_v22 = vmul.f32 %v1867_v48, %v1739_v15  ;;  %v11145_v10 = vld [vmem:[#allocation21_spill] sm:$0xff]  ;;  %v11147_v28 = vld [vmem:[#allocation22_spill] sm:$0xff] }
 0x2e9   : > { %v8685_v46 = vadd.f32 %v2188_v6, %v2124_v23  ;;  %v1548_v45 = vadd.f32 %v1547_v12, %v11110_v62  ;;  %v1741_v34 = vadd.f32 %v1740_v37, %v7656_v5  ;;  %v2312_v44 = vpack.c.bf16 %v2058_v31, %v2056_v13  ;;  %v11129_v13 = vld [vmem:[#allocation7_spill] sm:$0xff]  ;;  %v11139_v12 = vld [vmem:[#allocation20_spill] sm:$0xff]  ;;  %v11142_v31 = vld [vmem:[#allocation17_spill] sm:$0xff] }
 0x2ea   : > { %v11116_v18 = vsub.f32 %v8604_v51, %v8606_v17  ;;  %v2061_v11 = vsub.f32 %v1933_v39, %v1997_v50  ;;  %v2253_v60 = vadd.f32 %v2189_v22, %v2125_v40  ;;  %v2302_v14 = vpack.c.bf16 %v8491_v20, %v8471_v55  ;;  %v11119_v51 = vld [vmem:[#allocation5_spill] sm:$0xff]  ;;  %v11141_v37 = vld [vmem:[#allocation16_spill] sm:$0xff]  ;;  %v11148_v23 = vld [vmem:[#allocation23_spill] sm:$0xff] }
 0x2eb   : > { %v2301_v63 = vpack.c.bf16 %v8481_v33, %v8459_v54  ;;  %v1934_v0 = vmul.f32 %v1868_v24, %v1548_v45  ;;  %v2126_v48 = vmul.f32 %v1870_v38, %v1548_v45  ;;  %v1998_v2 = vmul.f32 %v1870_v38, %v1741_v34  ;;  %2875 = vmatprep.mubr.bf16.mxu0 %v2312_v44  ;;  %v11150_v6 = vld [vmem:[#allocation28_spill] sm:$0xff]  ;;  %v11153_v39 = vld [vmem:[#allocation27_spill] sm:$0xff] }
 0x2ec   : > { %v2311_v16 = vpack.c.bf16 %v2057_v3, %v11116_v18  ;;  %v2190_v15 = vmul.f32 %v1868_v24, %v1741_v34  ;;  %v2315_v5 = vpack.c.bf16 %v2061_v11, %v2059_v26  ;;  %v2306_v62 = vpack.c.bf16 %v8541_v42, %v8523_v47  ;;  %v11133_v3 = vld [vmem:[#allocation14_spill] sm:$0xff]  ;;  %v11154_v24 = vld [vmem:[#allocation25_spill] sm:$0xff]  ;;  %v11156_v45 = vld [vmem:[#allocation32_spill] sm:$0xff] }
 0x2ed   : > { %v2305_v50 = vpack.c.bf16 %v8527_v9, %v8511_v4  ;;  %v2310_v22 = vpack.c.bf16 %v8614_v36, %v8577_v21  ;;  %v2062_v40 = vsub.f32 %v1934_v0, %v1998_v2  ;;  %v2309_v54 = vpack.c.bf16 %v8600_v59, %v8571_v8  ;;  %v11118_v4 = vld [vmem:[#allocation15_spill] sm:$0xff]  ;;  %v11127_v36 = vld [vmem:[#allocation10_spill] sm:$0xff] }
 0x2ee   : > { %2876 = vmatmul.mubr.bf16.gmra.mrb[120].mxu0 %v2311_v16  ;;  %v2254_v17 = vadd.f32 %v2190_v15, %v2126_v48  ;;  %v2314_v55 = vpack.c.bf16 %v8673_v25, %v8644_v19  ;;  %v2313_v33 = vpack.c.bf16 %v8649_v32, %v8626_v35  ;;  %v2317_v20 = vpack.c.bf16 %v2253_v60, %v8683_v41  ;;  %v11130_v19 = vld [vmem:[#allocation8_spill] sm:$0xff]  ;;  %v11151_v26 = vld [vmem:[#allocation26_spill] sm:$0xff]  ;;  %v11159_v18 = vld [vmem:[#allocation31_spill] sm:$0xff] }
 0x2ef   : > { %v2316_v47 = vpack.c.bf16 %v2062_v40, %v2060_v49  ;;  %v11117_v9 = vpack.c.bf16 %v7716_v29, %v7696_v30  ;;  %v11120_v8 = vpack.c.bf16 %v11118_v4, %v11119_v51  ;;  %v11121_v21 = vpack.c.bf16 %v7786_v27, %v7752_v7  ;;  %v11124_v49 = vld [vmem:[#allocation18_spill] sm:$0xff]  ;;  %v11126_v29 = vld [vmem:[#allocation9_spill] sm:$0xff]  ;;  %v11136_v32 = vld [vmem:[#allocation12_spill] sm:$0xff] }
 0x2f0   : > { %v2318_v42 = vpack.c.bf16 %v2254_v17, %v8685_v46  ;;  %v11122_v59 = vpack.c.bf16 %v7779_v57, %v7746_v61  ;;  %v11123_v46 = vpack.c.bf16 %v7851_v56, %v7826_v43  ;;  %v11125_v30 = vpack.c.bf16 %v7839_v58, %v11124_v49  ;;  %v11132_v27 = vld [vmem:[#allocation13_spill] sm:$0xff]  ;;  %v11135_v57 = vld [vmem:[#allocation11_spill] sm:$0xff]  ;;  %v11157_v34 = vld [vmem:[#allocation30_spill] sm:$0xff] }
 0x2f1   : > { %2885 = vmatprep.mubr.bf16.mxu0 %v2316_v47  ;;  %v11128_v35 = vpack.c.bf16 %v11126_v29, %v11127_v36  ;;  %v11131_v7 = vpack.c.bf16 %v11129_v13, %v11130_v19  ;;  %v11134_v61 = vpack.c.bf16 %v11132_v27, %v11133_v3  ;;  %v11137_v43 = vpack.c.bf16 %v11135_v57, %v11136_v32  ;;  %v11138_v56 = vld [vmem:[#allocation19_spill] sm:$0xff]  ;;  %v11160_v16 = vld [vmem:[#allocation29_spill] sm:$0xff]  ;;  %v11162_v60 = vld [vmem:[#allocation36_spill] sm:$0xff] }
 0x2f2   : > { %v11140_v58 = vpack.c.bf16 %v11138_v56, %v11139_v12  ;;  %v11143_v25 = vpack.c.bf16 %v11141_v37, %v11142_v31  ;;  %v11146_v52 = vpack.c.bf16 %v11144_v53, %v11145_v10  ;;  %v11149_v1 = vpack.c.bf16 %v11147_v28, %v11148_v23  ;;  %v11163_v0 = vld [vmem:[#allocation34_spill] sm:$0xff]  ;;  %v11165_v2 = vld [vmem:[#allocation35_spill] sm:$0xff]  ;;  %v11166_v15 = vld [vmem:[#allocation33_spill] sm:$0xff] }
 0x2f3   : > { %v11152_v41 = vpack.c.bf16 %v11150_v6, %v11151_v26  ;;  %v11155_v38 = vpack.c.bf16 %v11153_v39, %v11154_v24  ;;  %v11158_v44 = vpack.c.bf16 %v11156_v45, %v11157_v34  ;;  %v11161_v11 = vpack.c.bf16 %v11159_v18, %v11160_v16  ;;  %v11168_v40 = vld [vmem:[#allocation40_spill] sm:$0xff]  ;;  %v11169_v17 = vld [vmem:[#allocation38_spill] sm:$0xff]  ;;  %v11172_v4 = vld [vmem:[#allocation37_spill] sm:$0xff] }
 0x2f4   : > { %v11164_v48 = vpack.c.bf16 %v11162_v60, %v11163_v0  ;;  %v11170_v47 = vpack.c.bf16 %v11168_v40, %v11169_v17 }
 0x2f6   : > { %2886 = vmatmul.mubr.bf16.gmra.mrb[124].mxu0 %v2315_v5  ;;  %v11167_v5 = vpack.c.bf16 %v11165_v2, %v11166_v15 }
 0x2f7   : > { %2928 = vmatprep.mubr.bf16.mxu0 %v11117_v9  ;;  %v11171_v9 = vld [vmem:[#allocation39_spill] sm:$0xff] }
 0x2f8   : > { %v11173_v51 = vpack.c.bf16 %v11171_v9, %v11172_v4 }
 0x2fe   : > { %2929 = vmatmul.mubr.bf16.vlgmr.msra.gmra.mrb[64].mxu0 %v11120_v8 }
 0x2ff   : > { %2938 = vmatprep.mubr.bf16.mxu0 %v11121_v21 }
 0x306   : > { %2939 = vmatmul.mubr.bf16.gmra.mrb[68].mxu0 %v11122_v59 }
 0x307   : > { %2948 = vmatprep.mubr.bf16.mxu0 %v11123_v46 }
 0x30e   : > { %2949 = vmatmul.mubr.bf16.gmra.mrb[72].mxu0 %v11125_v30 }
 0x30f   : > { %2958 = vmatprep.mubr.bf16.mxu0 %v11128_v35 }
 0x316   : > { %2959 = vmatmul.mubr.bf16.gmra.mrb[76].mxu0 %v11131_v7 }
 0x317   : > { %2968 = vmatprep.mubr.bf16.mxu0 %v11134_v61 }
 0x31e   : > { %2969 = vmatmul.mubr.bf16.gmra.mrb[80].mxu0 %v11137_v43 }
 0x31f   : > { %2978 = vmatprep.mubr.bf16.mxu0 %v11140_v58 }
 0x326   : > { %2979 = vmatmul.mubr.bf16.gmra.mrb[84].mxu0 %v11143_v25 }
 0x327   : > { %2988 = vmatprep.mubr.bf16.mxu0 %v11146_v52 }
 0x32e   : > { %2989 = vmatmul.mubr.bf16.gmra.mrb[88].mxu0 %v11149_v1 }
 0x32f   : > { %2998 = vmatprep.mubr.bf16.mxu0 %v11152_v41 }
 0x336   : > { %2999 = vmatmul.mubr.bf16.gmra.mrb[92].mxu0 %v11155_v38 }
 0x337   : > { %3008 = vmatprep.mubr.bf16.mxu0 %v11158_v44 }
 0x33e   : > { %3009 = vmatmul.mubr.bf16.gmra.mrb[96].mxu0 %v11161_v11 }
 0x33f   : > { %3018 = vmatprep.mubr.bf16.mxu0 %v11164_v48  ;;  %v10875_v48 = vmov 0  }
 0x340   : > { %6015 = vset.pattern.permute.xlu1 %v10875_v48  ;;  %6014 = vset.pattern.permute.xlu0 %v10875_v48 }
 0x341   : > { %4024 = vmatprep.mubr.bf16.mxu1 %v10875_v48 }
 0x346   : > { %3019 = vmatmul.mubr.bf16.gmra.mrb[100].mxu0 %v11167_v5 }
 0x347   : > { %3028 = vmatprep.mubr.bf16.mxu0 %v11170_v47 }
 0x34e   : > { %3029 = vmatmul.mubr.bf16.gmra.mrb[104].mxu0 %v11173_v51 }
 0x34f   : > { %3038 = vmatprep.mubr.bf16.mxu0 %v2302_v14 }
 0x356   : > { %3039 = vmatmul.mubr.bf16.gmra.mrb[108].mxu0 %v2301_v63 }
 0x357   : > { %3048 = vmatprep.mubr.bf16.mxu0 %v2306_v62 }
 0x35e   : > { %3049 = vmatmul.mubr.bf16.gmra.mrb[112].mxu0 %v2305_v50 }
 0x35f   : > { %3058 = vmatprep.mubr.bf16.mxu0 %v2310_v22 }
 0x366   : > { %3059 = vmatmul.mubr.bf16.gmra.mrb[116].mxu0 %v2309_v54 }
 0x367   : > { %3068 = vmatprep.mubr.bf16.mxu0 %v2314_v55 }
 0x36e   : > { %3069 = vmatmul.mubr.bf16.gmra.mrb[120].mxu0 %v2313_v33 }
 0x36f   : > { %3078 = vmatprep.mubr.bf16.mxu0 %v2318_v42 }
 0x376   : > { %3079 = vmatmul.mubr.bf16.gmra.mrb[124].mxu0 %v2317_v20 }
 0x377   : > { %5197 = vmatprep.mubr.bf16.mxu0 %v10875_v48 }
 0x3d1   : > { %v8782_v8 = vpop.f32.mrb[64].mxu0 }
 0x3d2   : > { %v8784_v21 = vpop.f32.mrb[65].mxu0 }
 0x3d3   : > { %v8786_v59 = vpop.f32.mrb[66].mxu0  ;;  %v3089_v46 = vadd.f32 %v8784_v21, %v8782_v8 }
 0x3d4   : > { %v8790_v49 = vpop.f32.mrb[67].mxu0 }
 0x3d5   : > { %3090 = vadd.xlane.f32.xlu0 %v3089_v46  ;;  %v3092_v14 = vadd.f32 %v8790_v49, %v8786_v59 }
 0x3d7   : > { %3093 = vadd.xlane.f32.xlu1 %v3092_v14 }
 0x3d9   : > { %v8794_v63 = vpop.f32.mrb[68].mxu0 }
 0x3da   : > { %v8796_v62 = vpop.f32.mrb[69].mxu0 }
 0x3db   : > { %v8798_v50 = vpop.f32.mrb[70].mxu0  ;;  %v3095_v22 = vadd.f32 %v8796_v62, %v8794_v63 }
 0x3dc   : > { %v8802_v54 = vpop.f32.mrb[71].mxu0 }
 0x3dd   : > { %3096 = vadd.xlane.f32.xlu0 %v3095_v22  ;;  %v3098_v55 = vadd.f32 %v8802_v54, %v8798_v50 }
 0x3df   : > { %3099 = vadd.xlane.f32.xlu1 %v3098_v55 }
 0x3e1   : > { %v8806_v33 = vpop.f32.mrb[72].mxu0 }
 0x3e2   : > { %v8808_v20 = vpop.f32.mrb[73].mxu0 }
 0x3e3   : > { %v8810_v42 = vpop.f32.mrb[74].mxu0  ;;  %v3101_v30 = vadd.f32 %v8808_v20, %v8806_v33 }
 0x3e4   : > { %v8814_v29 = vpop.f32.mrb[75].mxu0 }
 0x3e5   : > { %3102 = vadd.xlane.f32.xlu0 %v3101_v30  ;;  %v3104_v36 = vadd.f32 %v8814_v29, %v8810_v42 }
 0x3e7   : > { %3105 = vadd.xlane.f32.xlu1 %v3104_v36 }
 0x3e9   : > { %v8818_v35 = vpop.f32.mrb[76].mxu0 }
 0x3ea   : > { %v8820_v13 = vpop.f32.mrb[77].mxu0 }
 0x3eb   : > { %v8822_v19 = vpop.f32.mrb[78].mxu0  ;;  %v3107_v7 = vadd.f32 %v8820_v13, %v8818_v35 }
 0x3ec   : > { %v8826_v27 = vpop.f32.mrb[79].mxu0 }
 0x3ed   : > { %3108 = vadd.xlane.f32.xlu0 %v3107_v7  ;;  %v3110_v3 = vadd.f32 %v8826_v27, %v8822_v19 }
 0x3ef   : > { %3111 = vadd.xlane.f32.xlu1 %v3110_v3 }
 0x3f1   : > { %v8830_v61 = vpop.f32.mrb[80].mxu0 }
 0x3f2   : > { %v8832_v57 = vpop.f32.mrb[81].mxu0 }
 0x3f3   : > { %v8834_v32 = vpop.f32.mrb[82].mxu0  ;;  %v8838_v43 = vadd.f32 %v8832_v57, %v8830_v61 }
 0x3f4   : > { %v8840_v56 = vpop.f32.mrb[83].mxu0 }
 0x3f5   : > { %v8844_v12 = vadd.f32 %v8840_v56, %v8834_v32 }
 0x3f9   : > { %v8846_v58 = vpop.f32.mrb[84].mxu0 }
 0x3fa   : > { %v8848_v37 = vpop.f32.mrb[85].mxu0 }
 0x3fb   : > { %v8850_v31 = vpop.f32.mrb[86].mxu0  ;;  %v8854_v25 = vadd.f32 %v8848_v37, %v8846_v58 }
 0x3fc   : > { %v8856_v53 = vpop.f32.mrb[87].mxu0 }
 0x3fd   : > { %v8860_v10 = vadd.f32 %v8856_v53, %v8850_v31 }
 0x401   : > { %v8862_v52 = vpop.f32.mrb[88].mxu0 }
 0x402   : > { %v8864_v28 = vpop.f32.mrb[89].mxu0 }
 0x403   : > { %v8866_v23 = vpop.f32.mrb[90].mxu0  ;;  %v8870_v1 = vadd.f32 %v8864_v28, %v8862_v52 }
 0x404   : > { %v8872_v6 = vpop.f32.mrb[91].mxu0 }
 0x405   : > { %v8876_v26 = vadd.f32 %v8872_v6, %v8866_v23 }
 0x409   : > { %v8878_v41 = vpop.f32.mrb[92].mxu0 }
 0x40a   : > { %v8880_v39 = vpop.f32.mrb[93].mxu0 }
 0x40b   : > { %v8882_v24 = vpop.f32.mrb[94].mxu0  ;;  %v8886_v38 = vadd.f32 %v8880_v39, %v8878_v41 }
 0x40c   : > { %v8888_v45 = vpop.f32.mrb[95].mxu0 }
 0x40d   : > { %v8892_v34 = vadd.f32 %v8888_v45, %v8882_v24 }
 0x411   : > { %v8894_v44 = vpop.f32.mrb[96].mxu0 }
 0x412   : > { %11174 = vst [vmem:[#allocation2_spill] sm:$0xff] %v8894_v44  ;;  %v8896_v18 = vpop.f32.mrb[97].mxu0 }
 0x413   : > { %11175 = vst [vmem:[#allocation15_spill] sm:$0xff] %v8896_v18  ;;  %v8900_v16 = vadd.f32 %v8896_v18, %v8894_v44  ;;  %v8902_v11 = vpop.f32.mrb[98].mxu0 }
 0x414   : > { %11176 = vst [vmem:[#allocation5_spill] sm:$0xff] %v8902_v11  ;;  %v8904_v60 = vpop.f32.mrb[99].mxu0 }
 0x415   : > { %11177 = vst [vmem:[#allocation18_spill] sm:$0xff] %v8904_v60  ;;  %v8908_v0 = vadd.f32 %v8904_v60, %v8902_v11 }
 0x419   : > { %v8914_v2 = vpop.f32.mrb[100].mxu0 }
 0x41a   : > { %11178 = vst [vmem:[#allocation9_spill] sm:$0xff] %v8914_v2  ;;  %v8916_v15 = vpop.f32.mrb[101].mxu0 }
 0x41b   : > { %11179 = vst [vmem:[#allocation10_spill] sm:$0xff] %v8916_v15  ;;  %v8920_v5 = vadd.f32 %v8916_v15, %v8914_v2  ;;  %v8922_v40 = vpop.f32.mrb[102].mxu0 }
 0x41c   : > { %11180 = vst [vmem:[#allocation7_spill] sm:$0xff] %v8922_v40  ;;  %v8924_v17 = vpop.f32.mrb[103].mxu0 }
 0x41d   : > { %11181 = vst [vmem:[#allocation8_spill] sm:$0xff] %v8924_v17  ;;  %v8928_v47 = vadd.f32 %v8924_v17, %v8922_v40 }
 0x421   : > { %v8930_v9 = vpop.f32.mrb[104].mxu0 }
 0x422   : > { %11182 = vst [vmem:[#allocation13_spill] sm:$0xff] %v8930_v9  ;;  %v8932_v4 = vpop.f32.mrb[105].mxu0 }
 0x423   : > { %11183 = vst [vmem:[#allocation14_spill] sm:$0xff] %v8932_v4  ;;  %v8936_v51 = vadd.f32 %v8932_v4, %v8930_v9  ;;  %v8938_v46 = vpop.f32.mrb[106].mxu0 }
 0x424   : > { %11184 = vst [vmem:[#allocation11_spill] sm:$0xff] %v8938_v46  ;;  %v8940_v14 = vpop.f32.mrb[107].mxu0 }
 0x425   : > { %11185 = vst [vmem:[#allocation12_spill] sm:$0xff] %v8940_v14  ;;  %v8944_v22 = vadd.f32 %v8940_v14, %v8938_v46 }
 0x429   : > { %v8946_v55 = vpop.f32.mrb[108].mxu0 }
 0x42a   : > { %11186 = vst [vmem:[#allocation19_spill] sm:$0xff] %v8946_v55  ;;  %v8948_v30 = vpop.f32.mrb[109].mxu0 }
 0x42b   : > { %11187 = vst [vmem:[#allocation20_spill] sm:$0xff] %v8948_v30  ;;  %v8952_v36 = vadd.f32 %v8948_v30, %v8946_v55  ;;  %v8954_v7 = vpop.f32.mrb[110].mxu0 }
 0x42c   : > { %11188 = vst [vmem:[#allocation16_spill] sm:$0xff] %v8954_v7  ;;  %v8956_v3 = vpop.f32.mrb[111].mxu0 }
 0x42d   : > { %11189 = vst [vmem:[#allocation17_spill] sm:$0xff] %v8956_v3  ;;  %v8960_v48 = vadd.f32 %v8956_v3, %v8954_v7 }
 0x431   : > { %v8962_v4 = vpop.f32.mrb[112].mxu0 }
 0x432   : > { %11190 = vst [vmem:[#allocation24_spill] sm:$0xff] %v8962_v4  ;;  %v8964_v14 = vpop.f32.mrb[113].mxu0 }
 0x433   : > { %11191 = vst [vmem:[#allocation21_spill] sm:$0xff] %v8964_v14  ;;  %v8968_v46 = vadd.f32 %v8964_v14, %v8962_v4  ;;  %v8970_v9 = vpop.f32.mrb[114].mxu0 }
 0x434   : > { %11192 = vst [vmem:[#allocation22_spill] sm:$0xff] %v8970_v9  ;;  %v8972_v30 = vpop.f32.mrb[115].mxu0 }
 0x435   : > { %11193 = vst [vmem:[#allocation23_spill] sm:$0xff] %v8972_v30  ;;  %v8976_v55 = vadd.f32 %v8972_v30, %v8970_v9 }
 0x439   : > { %v8978_v17 = vpop.f32.mrb[116].mxu0 }
 0x43a   : > { %11194 = vst [vmem:[#allocation28_spill] sm:$0xff] %v8978_v17  ;;  %v8980_v3 = vpop.f32.mrb[117].mxu0 }
 0x43b   : > { %11195 = vst [vmem:[#allocation26_spill] sm:$0xff] %v8980_v3  ;;  %v8984_v7 = vadd.f32 %v8980_v3, %v8978_v17  ;;  %v8986_v40 = vpop.f32.mrb[118].mxu0 }
 0x43c   : > { %11196 = vst [vmem:[#allocation27_spill] sm:$0xff] %v8986_v40  ;;  %v8988_v14 = vpop.f32.mrb[119].mxu0 }
 0x43d   : > { %11197 = vst [vmem:[#allocation25_spill] sm:$0xff] %v8988_v14  ;;  %v8992_v4 = vadd.f32 %v8988_v14, %v8986_v40 }
 0x441   : > { %v8994_v15 = vpop.f32.mrb[120].mxu0 }
 0x442   : > { %11198 = vst [vmem:[#allocation32_spill] sm:$0xff] %v8994_v15  ;;  %v8996_v30 = vpop.f32.mrb[121].mxu0 }
 0x443   : > { %11199 = vst [vmem:[#allocation30_spill] sm:$0xff] %v8996_v30  ;;  %v9000_v9 = vadd.f32 %v8996_v30, %v8994_v15  ;;  %v9002_v2 = vpop.f32.mrb[122].mxu0 }
 0x444   : > { %11201 = vst [vmem:[#allocation29_spill] sm:$0xff] %v9002_v2  ;;  %v9004_v3 = vpop.f32.mrb[123].mxu0 }
 0x445   : > { %11200 = vst [vmem:[#allocation31_spill] sm:$0xff] %v9000_v9  ;;  %11202 = vst [vmem:[#allocation36_spill] sm:$0xff] %v9004_v3  ;;  %v9008_v17 = vadd.f32 %v9004_v3, %v9002_v2 }
 0x447   : > { %11203 = vst [vmem:[#allocation34_spill] sm:$0xff] %v9008_v17 }
 0x449   : > { %v9010_v60 = vpop.f32.mrb[124].mxu0 }
 0x44a   : > { %11204 = vst [vmem:[#allocation35_spill] sm:$0xff] %v9010_v60  ;;  %v9012_v14 = vpop.f32.mrb[125].mxu0 }
 0x44b   : > { %11205 = vst [vmem:[#allocation33_spill] sm:$0xff] %v9012_v14  ;;  %v9016_v40 = vadd.f32 %v9012_v14, %v9010_v60  ;;  %v9018_v11 = vpop.f32.mrb[126].mxu0 }
 0x44c   : > { %11207 = vst [vmem:[#allocation38_spill] sm:$0xff] %v9018_v11  ;;  %v9020_v30 = vpop.f32.mrb[127].mxu0 }
 0x44d   : > { %11206 = vst [vmem:[#allocation40_spill] sm:$0xff] %v9016_v40  ;;  %11208 = vst [vmem:[#allocation39_spill] sm:$0xff] %v9020_v30  ;;  %v9024_v15 = vadd.f32 %v9020_v30, %v9018_v11 }
 0x44f   : > { %11209 = vst [vmem:[#allocation37_spill] sm:$0xff] %v9024_v15 }
 0x462   : > { %v3091_v18 = vpop.xlane.xlu0 %3090 }
 0x463   : > { %v3185_v44 = vmul.f32 0.00390625, %v3091_v18 }
 0x464   : > { %v3094_v3 = vpop.xlane.xlu1 %3093 }
 0x465   : > { %v9027_v2 = vsub.f32 %v8782_v8, %v3185_v44  ;;  %v9030_v17 = vsub.f32 %v8784_v21, %v3185_v44  ;;  %v3186_v9 = vmul.f32 0.00390625, %v3094_v3 }
 0x467   : > { %v9033_v14 = vsub.f32 %v8786_v59, %v3186_v9  ;;  %v9036_v60 = vsub.f32 %v8790_v49, %v3186_v9  ;;  %v3281_v30 = vmul.f32 %v9027_v2, %v9027_v2  ;;  %v3282_v18 = vmul.f32 %v9030_v17, %v9030_v17 }
 0x469   : > { %v3345_v11 = vadd.f32 %v3282_v18, %v3281_v30  ;;  %v3283_v8 = vmul.f32 %v9033_v14, %v9033_v14  ;;  %v3284_v21 = vmul.f32 %v9036_v60, %v9036_v60 }
 0x46a   : > { %v3097_v44 = vpop.xlane.xlu0 %3096 }
 0x46b   : > { %v3187_v3 = vmul.f32 0.00390625, %v3097_v44  ;;  %3346 = vadd.xlane.f32.xlu0 %v3345_v11  ;;  %v3348_v59 = vadd.f32 %v3284_v21, %v3283_v8 }
 0x46c   : > { %v3100_v15 = vpop.xlane.xlu1 %3099 }
 0x46d   : > { %v9047_v49 = vsub.f32 %v8794_v63, %v3187_v3  ;;  %v9050_v9 = vsub.f32 %v8796_v62, %v3187_v3  ;;  %v3188_v40 = vmul.f32 0.00390625, %v3100_v15  ;;  %3349 = vadd.xlane.f32.xlu1 %v3348_v59 }
 0x46f   : > { %v9053_v30 = vsub.f32 %v8798_v50, %v3188_v40  ;;  %v9056_v18 = vsub.f32 %v8802_v54, %v3188_v40  ;;  %v3285_v44 = vmul.f32 %v9047_v49, %v9047_v49  ;;  %v3286_v11 = vmul.f32 %v9050_v9, %v9050_v9 }
 0x471   : > { %v3351_v8 = vadd.f32 %v3286_v11, %v3285_v44  ;;  %v3287_v63 = vmul.f32 %v9053_v30, %v9053_v30  ;;  %v3288_v62 = vmul.f32 %v9056_v18, %v9056_v18 }
 0x472   : > { %v3103_v15 = vpop.xlane.xlu0 %3102 }
 0x473   : > { %v3189_v21 = vmul.f32 0.00390625, %v3103_v15  ;;  %3352 = vadd.xlane.f32.xlu0 %v3351_v8  ;;  %v3354_v50 = vadd.f32 %v3288_v62, %v3287_v63 }
 0x474   : > { %v3106_v3 = vpop.xlane.xlu1 %3105 }
 0x475   : > { %v9067_v54 = vsub.f32 %v8806_v33, %v3189_v21  ;;  %v9070_v40 = vsub.f32 %v8808_v20, %v3189_v21  ;;  %v3190_v59 = vmul.f32 0.00390625, %v3106_v3  ;;  %3355 = vadd.xlane.f32.xlu1 %v3354_v50 }
 0x477   : > { %v9073_v44 = vsub.f32 %v8810_v42, %v3190_v59  ;;  %v9076_v11 = vsub.f32 %v8814_v29, %v3190_v59  ;;  %v3289_v15 = vmul.f32 %v9067_v54, %v9067_v54  ;;  %v3290_v8 = vmul.f32 %v9070_v40, %v9070_v40 }
 0x479   : > { %v3357_v63 = vadd.f32 %v3290_v8, %v3289_v15  ;;  %v3291_v33 = vmul.f32 %v9073_v44, %v9073_v44  ;;  %v3292_v20 = vmul.f32 %v9076_v11, %v9076_v11 }
 0x47a   : > { %v3109_v62 = vpop.xlane.xlu0 %3108 }
 0x47b   : > { %v3191_v21 = vmul.f32 0.00390625, %v3109_v62  ;;  %3358 = vadd.xlane.f32.xlu0 %v3357_v63  ;;  %v3360_v42 = vadd.f32 %v3292_v20, %v3291_v33 }
 0x47c   : > { %v3112_v50 = vpop.xlane.xlu1 %3111 }
 0x47d   : > { %v9087_v29 = vsub.f32 %v8818_v35, %v3191_v21  ;;  %v9090_v3 = vsub.f32 %v8820_v13, %v3191_v21  ;;  %v3192_v59 = vmul.f32 0.00390625, %v3112_v50  ;;  %3361 = vadd.xlane.f32.xlu1 %v3360_v42  ;;  %v3797_v21 = vld [vmem:[%s10805_s8 + $0x30] sm:$0xff]  ;;  %v3798_v42 = vld [vmem:[%s10805_s8 + $0x38] sm:$0xff]  ;;  %v3799_v50 = vld [vmem:[%s10805_s8 + $0x40] sm:$0xff] }
 0x47f   : > { %v9093_v15 = vsub.f32 %v8822_v19, %v3192_v59  ;;  %v9096_v8 = vsub.f32 %v8826_v27, %v3192_v59  ;;  %v3293_v62 = vmul.f32 %v9087_v29, %v9087_v29  ;;  %v3294_v63 = vmul.f32 %v9090_v3, %v9090_v3  ;;  %v3792_v19 = vld [vmem:[%s10805_s8 + $0x8] sm:$0xff]  ;;  %v3791_v27 = vld [vmem:[%s10805_s8] sm:$0xff]  ;;  %v3801_v59 = vld [vmem:[%s10805_s8 + $0x50] sm:$0xff] }
 0x481   : > { %v3363_v33 = vadd.f32 %v3294_v63, %v3293_v62  ;;  %v3295_v35 = vmul.f32 %v9093_v15, %v9093_v15  ;;  %v3296_v13 = vmul.f32 %v9096_v8, %v9096_v8  ;;  %v3803_v62 = vld [vmem:[%s10805_s8 + $0x60] sm:$0xff]  ;;  %v3805_v63 = vld [vmem:[%s10805_s8 + $0x70] sm:$0xff] }
 0x483   : > { %3364 = vadd.xlane.f32.xlu0 %v3363_v33  ;;  %v3366_v20 = vadd.f32 %v3296_v13, %v3295_v35 }
 0x485   : > { %3367 = vadd.xlane.f32.xlu1 %v3366_v20 }
 0x487   : > { %3114 = vadd.xlane.f32.xlu0 %v8838_v43  ;;  %v3793_v43 = vld [vmem:[%s10805_s8 + $0x10] sm:$0xff] }
 0x489   : > { %3117 = vadd.xlane.f32.xlu1 %v8844_v12  ;;  %v3800_v12 = vld [vmem:[%s10805_s8 + $0x48] sm:$0xff] }
 0x48b   : > { %3120 = vadd.xlane.f32.xlu0 %v8854_v25  ;;  %v3794_v25 = vld [vmem:[%s10805_s8 + $0x18] sm:$0xff] }
 0x48d   : > { %3123 = vadd.xlane.f32.xlu1 %v8860_v10  ;;  %v3802_v10 = vld [vmem:[%s10805_s8 + $0x58] sm:$0xff] }
 0x48f   : > { %3126 = vadd.xlane.f32.xlu0 %v8870_v1  ;;  %v3795_v1 = vld [vmem:[%s10805_s8 + $0x20] sm:$0xff] }
 0x491   : > { %3129 = vadd.xlane.f32.xlu1 %v8876_v26  ;;  %v3804_v26 = vld [vmem:[%s10805_s8 + $0x68] sm:$0xff] }
 0x493   : > { %3132 = vadd.xlane.f32.xlu0 %v8886_v38  ;;  %v3796_v38 = vld [vmem:[%s10805_s8 + $0x28] sm:$0xff] }
 0x495   : > { %3135 = vadd.xlane.f32.xlu1 %v8892_v34  ;;  %v3806_v34 = vld [vmem:[%s10805_s8 + $0x78] sm:$0xff] }
 0x4a6   : > { %3854 = vperm.xlu1 %6015, %v3792_v19  }
 0x4a9   : > { %3849 = vperm.xlu0 %6014, %v3791_v27  }
 0x4aa   : > { %3859 = vperm.xlu1 %6015, %v3793_v43   ;;  %v3473_v43 = vld [vmem:[%s10802_s5] sm:$0xf] }
 0x4ad   : > { %3894 = vperm.xlu0 %6014, %v3800_v12  }
 0x4ae   : > { %3864 = vperm.xlu1 %6015, %v3794_v25  }
 0x4b1   : > { %3904 = vperm.xlu0 %6014, %v3802_v10  }
 0x4b2   : > { %3869 = vperm.xlu1 %6015, %v3795_v1   ;;  %v11210_v1 = vld [vmem:[#allocation4_spill] sm:$0xff] }
 0x4b5   : > { %3914 = vperm.xlu0 %6014, %v3804_v26   ;;  %v11211_v26 = vsub.s32 2, %v11210_v1 }
 0x4b6   : > { %3874 = vperm.xlu1 %6015, %v3796_v38  }
 0x4b7   : > { %v3610_v38 = vrot.slane %v3473_v43, %v11211_v26 }
 0x4b9   : > { %3924 = vperm.xlu0 %6014, %v3806_v34   ;;  %v11212_v34 = vld [vmem:[#allocation3_spill] sm:$0xff] }
 0x4ba   : > { %3879 = vperm.xlu1 %6015, %v3797_v21   ;;  %v3606_v21 = vrot.slane %v3473_v43, %v11212_v34 }
 0x4be   : > { %3884 = vperm.xlu1 %6015, %v3798_v42  }
 0x4c2   : > { %3889 = vperm.xlu1 %6015, %v3799_v50  }
 0x4c6   : > { %3899 = vperm.xlu1 %6015, %v3801_v59  }
 0x4ca   : > { %3909 = vperm.xlu1 %6015, %v3803_v62   ;;  %v11213_v62 = vsub.s32 3, %v11210_v1 }
 0x4ce   : > { %3919 = vperm.xlu1 %6015, %v3805_v63   ;;  %v3692_v63 = vrot.slane %v3473_v43, %v11213_v62 }
 0x4f8   : > { %v3347_v33 = vpop.xlane.xlu0 %3346 }
 0x4f9   : > { %v3441_v35 = vmul.f32 0.00390625, %v3347_v33  ;;  %v11214_v33 = vld [vmem:[#allocation6_spill] sm:$0xff] }
 0x4fa   : > { %v3350_v13 = vpop.xlane.xlu1 %3349  ;;  %v9180_v1 = vrot.slane %v3692_v63, %v11214_v33 }
 0x4fb   : > { %v3474_v20 = vadd.f32 1e-05, %v3441_v35  ;;  %v3442_v19 = vmul.f32 0.00390625, %v3350_v13  ;;  %v3688_v35 = vrot.slane %v3473_v43, %v11214_v33  ;;  %v9172_v13 = vrot.slane %v3610_v38, %v11212_v34 }
 0x4fd   : > { %6284 = vrsqrt.f32 %v3474_v20  ;;  %v3475_v27 = vadd.f32 1e-05, %v3442_v19  ;;  %v9175_v20 = vrot.slane %v3606_v21, %v11212_v34  ;;  %v9183_v43 = vrot.slane %v3688_v35, %v11214_v33 }
 0x4ff   : > { %6286 = vrsqrt.f32 %v3475_v27 }
 0x500   : > { %v3353_v12 = vpop.xlane.xlu0 %3352 }
 0x501   : > { %v3443_v25 = vmul.f32 0.00390625, %v3353_v12 }
 0x502   : > { %v3356_v10 = vpop.xlane.xlu1 %3355 }
 0x503   : > { %v3476_v42 = vadd.f32 1e-05, %v3443_v25  ;;  %v3444_v50 = vmul.f32 0.00390625, %v3356_v10 }
 0x505   : > { %6288 = vrsqrt.f32 %v3476_v42  ;;  %v3477_v59 = vadd.f32 1e-05, %v3444_v50 }
 0x507   : > { %v6285_v19 = vpop.eup %6284  ;;  %6290 = vrsqrt.f32 %v3477_v59 }
 0x508   : > { %v3538_v27 = vmul.f32 %v6285_v19, %v9027_v2  ;;  %v3359_v12 = vpop.xlane.xlu0 %3358  ;;  %v3539_v25 = vmul.f32 %v6285_v19, %v9030_v17 }
 0x509   : > { %v6287_v10 = vpop.eup %6286  ;;  %v3445_v26 = vmul.f32 0.00390625, %v3359_v12 }
 0x50a   : > { %v3540_v38 = vmul.f32 %v6287_v10, %v9033_v14  ;;  %v3362_v42 = vpop.xlane.xlu1 %3361  ;;  %v3541_v34 = vmul.f32 %v6287_v10, %v9036_v60  ;;  %v3622_v21 = vmul.f32 %v9172_v13, %v3539_v25  ;;  %v3621_v2 = vmul.f32 %v9175_v20, %v3538_v27 }
 0x50b   : > { %v3478_v50 = vadd.f32 1e-05, %v3445_v26  ;;  %v3446_v59 = vmul.f32 0.00390625, %v3362_v42 }
 0x50c   : > { %v3624_v17 = vmul.f32 %v9172_v13, %v3541_v34  ;;  %v3623_v62 = vmul.f32 %v9175_v20, %v3540_v38  ;;  %v3704_v33 = vadd.f32 %v9180_v1, %v3622_v21  ;;  %v3703_v14 = vadd.f32 %v9183_v43, %v3621_v2 }
 0x50d   : > { %6292 = vrsqrt.f32 %v3478_v50  ;;  %v3479_v63 = vadd.f32 1e-05, %v3446_v59 }
 0x50e   : > { %v3706_v35 = vadd.f32 %v9180_v1, %v3624_v17  ;;  %v3705_v60 = vadd.f32 %v9183_v43, %v3623_v62 }
 0x50f   : > { %v6289_v19 = vpop.eup %6288  ;;  %6294 = vrsqrt.f32 %v3479_v63 }
 0x510   : > { %v3542_v27 = vmul.f32 %v6289_v19, %v9047_v49  ;;  %v3365_v12 = vpop.xlane.xlu0 %3364  ;;  %v3816_v25 = vpack.c.bf16 %v3706_v35, %v3704_v33  ;;  %v3815_v10 = vpack.c.bf16 %v3705_v60, %v3703_v14  ;;  %v3543_v26 = vmul.f32 %v6289_v19, %v9050_v9 }
 0x511   : > { %v6291_v38 = vpop.eup %6290  ;;  %v3447_v42 = vmul.f32 0.00390625, %v3365_v12 }
 0x512   : > { %v3544_v34 = vmul.f32 %v6291_v38, %v9053_v30  ;;  %3992 = vmatprep.subr.bf16.mxu1 %v3816_v25  ;;  %v3368_v21 = vpop.xlane.xlu1 %3367  ;;  %v3545_v50 = vmul.f32 %v6291_v38, %v9056_v18  ;;  %v3626_v2 = vmul.f32 %v9172_v13, %v3543_v26  ;;  %v3625_v59 = vmul.f32 %v9175_v20, %v3542_v27 }
 0x513   : > { %v3480_v17 = vadd.f32 1e-05, %v3447_v42  ;;  %v3448_v62 = vmul.f32 0.00390625, %v3368_v21  ;;  %3993 = vmatpush1.bf16.msra.mxu1 %v3815_v10 }
 0x514   : > { %v3115_v49 = vpop.xlane.xlu0 %3114  ;;  %v3628_v63 = vmul.f32 %v9172_v13, %v3545_v50  ;;  %v3627_v9 = vmul.f32 %v9175_v20, %v3544_v34  ;;  %v3708_v14 = vadd.f32 %v9180_v1, %v3626_v2  ;;  %v3707_v60 = vadd.f32 %v9183_v43, %v3625_v59 }
 0x515   : > { %6296 = vrsqrt.f32 %v3480_v17  ;;  %v3481_v33 = vadd.f32 1e-05, %v3448_v62  ;;  %v3193_v35 = vmul.f32 0.00390625, %v3115_v49 }
 0x516   : > { %v3118_v30 = vpop.xlane.xlu1 %3117  ;;  %v3710_v18 = vadd.f32 %v9180_v1, %v3628_v63  ;;  %v3709_v19 = vadd.f32 %v9183_v43, %v3627_v9 }
 0x517   : > { %v6293_v27 = vpop.eup %6292  ;;  %6298 = vrsqrt.f32 %v3481_v33  ;;  %v9208_v12 = vsub.f32 %v8830_v61, %v3193_v35  ;;  %v9211_v25 = vsub.f32 %v8832_v57, %v3193_v35  ;;  %v3194_v10 = vmul.f32 0.00390625, %v3118_v30 }
 0x518   : > { %v3546_v26 = vmul.f32 %v6293_v27, %v9067_v54  ;;  %v3121_v38 = vpop.xlane.xlu0 %3120  ;;  %v3818_v42 = vpack.c.bf16 %v3710_v18, %v3708_v14  ;;  %v3817_v34 = vpack.c.bf16 %v3709_v19, %v3707_v60  ;;  %v3547_v21 = vmul.f32 %v6293_v27, %v9070_v40 }
 0x519   : > { %v6295_v50 = vpop.eup %6294  ;;  %v3297_v2 = vmul.f32 %v9208_v12, %v9208_v12  ;;  %v3298_v59 = vmul.f32 %v9211_v25, %v9211_v25  ;;  %v9220_v61 = vsub.f32 %v8834_v32, %v3194_v10  ;;  %v9223_v57 = vsub.f32 %v8840_v56, %v3194_v10 }
 0x51a   : > { %v3548_v54 = vmul.f32 %v6295_v50, %v9073_v44  ;;  %v3195_v17 = vmul.f32 0.00390625, %v3121_v38  ;;  %3994 = vmatprep.subr.bf16.mxu1 %v3818_v42  ;;  %v3124_v62 = vpop.xlane.xlu1 %3123  ;;  %v3549_v40 = vmul.f32 %v6295_v50, %v9076_v11  ;;  %v3630_v49 = vmul.f32 %v9172_v13, %v3547_v21 }
 0x51b   : > { %v3299_v63 = vmul.f32 %v9220_v61, %v9220_v61  ;;  %v3300_v9 = vmul.f32 %v9223_v57, %v9223_v57  ;;  %v3196_v32 = vmul.f32 0.00390625, %v3124_v62  ;;  %3995 = vmatpush1.bf16.msra.mxu1 %v3817_v34  ;;  %v3369_v33 = vadd.f32 %v3298_v59, %v3297_v2 }
 0x51c   : > { %v9233_v56 = vsub.f32 %v8846_v58, %v3195_v17  ;;  %v9236_v44 = vsub.f32 %v8848_v37, %v3195_v17  ;;  %v3127_v35 = vpop.xlane.xlu0 %3126  ;;  %v3632_v11 = vmul.f32 %v9172_v13, %v3549_v40  ;;  %v3712_v30 = vadd.f32 %v9180_v1, %v3630_v49 }
 0x51d   : > { %v9241_v14 = vsub.f32 %v8850_v31, %v3196_v32  ;;  %v9244_v18 = vsub.f32 %v8856_v53, %v3196_v32  ;;  %v3197_v60 = vmul.f32 0.00390625, %v3127_v35  ;;  %3370 = vadd.xlane.f32.xlu1 %v3369_v33  ;;  %v3372_v19 = vadd.f32 %v3300_v9, %v3299_v63 }
 0x51e   : > { %v3301_v58 = vmul.f32 %v9233_v56, %v9233_v56  ;;  %v3302_v37 = vmul.f32 %v9236_v44, %v9236_v44  ;;  %v3130_v27 = vpop.xlane.xlu1 %3129  ;;  %v3714_v10 = vadd.f32 %v9180_v1, %v3632_v11  ;;  %v3629_v38 = vmul.f32 %v9175_v20, %v3546_v26 }
 0x51f   : > { %v6297_v42 = vpop.eup %6296  ;;  %v3303_v31 = vmul.f32 %v9241_v14, %v9241_v14  ;;  %v3304_v53 = vmul.f32 %v9244_v18, %v9244_v18  ;;  %v9257_v34 = vsub.f32 %v8862_v52, %v3197_v60  ;;  %v9260_v21 = vsub.f32 %v8864_v28, %v3197_v60  ;;  %3373 = vadd.xlane.f32.xlu0 %v3372_v19 }
 0x520   : > { %v3550_v50 = vmul.f32 %v6297_v42, %v9087_v29  ;;  %v3198_v2 = vmul.f32 0.00390625, %v3130_v27  ;;  %v3133_v59 = vpop.xlane.xlu0 %3132  ;;  %v3820_v17 = vpack.c.bf16 %v3714_v10, %v3712_v30  ;;  %v3631_v26 = vmul.f32 %v9175_v20, %v3548_v54 }
 0x521   : > { %v6299_v62 = vpop.eup %6298  ;;  %v3305_v40 = vmul.f32 %v9257_v34, %v9257_v34  ;;  %v3306_v49 = vmul.f32 %v9260_v21, %v9260_v21  ;;  %v3199_v52 = vmul.f32 0.00390625, %v3133_v59  ;;  %v3711_v63 = vadd.f32 %v9183_v43, %v3629_v38 }
 0x522   : > { %v3552_v28 = vmul.f32 %v6299_v62, %v9093_v15  ;;  %v9271_v9 = vsub.f32 %v8866_v23, %v3198_v2  ;;  %v9274_v29 = vsub.f32 %v8872_v6, %v3198_v2  ;;  %3996 = vmatprep.subr.bf16.mxu1 %v3820_v17  ;;  %v3136_v54 = vpop.xlane.xlu1 %3135  ;;  %v3713_v32 = vadd.f32 %v9183_v43, %v3631_v26 }
 0x523   : > { %v9278_v33 = vsub.f32 %v8878_v41, %v3199_v52  ;;  %v9281_v35 = vsub.f32 %v8880_v39, %v3199_v52  ;;  %v3200_v11 = vmul.f32 0.00390625, %v3136_v54  ;;  %v3375_v30 = vadd.f32 %v3302_v37, %v3301_v58 }
 0x524   : > { %v3307_v15 = vmul.f32 %v9271_v9, %v9271_v9  ;;  %v3308_v23 = vmul.f32 %v9274_v29, %v9274_v29  ;;  %v3819_v6 = vpack.c.bf16 %v3713_v32, %v3711_v63  ;;  %v3378_v60 = vadd.f32 %v3304_v53, %v3303_v31  ;;  %v6209_v63 = vld [vmem:[%s10803_s6 + $0x8] sm:$0xff]  }
 0x525   : > { %v3309_v19 = vmul.f32 %v9278_v33, %v9278_v33  ;;  %v3310_v41 = vmul.f32 %v9281_v35, %v9281_v35  ;;  %v9292_v27 = vsub.f32 %v8882_v24, %v3200_v11  ;;  %v9295_v39 = vsub.f32 %v8888_v45, %v3200_v11  ;;  %3376 = vadd.xlane.f32.xlu0 %v3375_v30 }
 0x526   : > { %3997 = vmatpush1.bf16.msra.mxu1 %v3819_v6  ;;  %3379 = vadd.xlane.f32.xlu1 %v3378_v60  ;;  %v3381_v58 = vadd.f32 %v3306_v49, %v3305_v40  ;;  %v3384_v37 = vadd.f32 %v3308_v23, %v3307_v15  ;;  %v3551_v10 = vmul.f32 %v6297_v42, %v9090_v3  ;;  %v6208_v49 = vld [vmem:[%s10803_s6] sm:$0xff]   ;;  %v11215_v52 = vmov 0  }
 0x527   : > { %v3311_v38 = vmul.f32 %v9292_v27, %v9292_v27  ;;  %v3312_v31 = vmul.f32 %v9295_v39, %v9295_v39  ;;  %v3553_v53 = vmul.f32 %v6299_v62, %v9096_v8  ;;  %v3633_v24 = vmul.f32 %v9175_v20, %v3550_v50 }
 0x528   : > { %v3634_v45 = vmul.f32 %v9172_v13, %v3551_v10  ;;  %v3635_v2 = vmul.f32 %v9175_v20, %v3552_v28  ;;  %v3387_v8 = vadd.f32 %v3310_v41, %v3309_v19  ;;  %v9381_v15 = vpop.permute.xlu0 %3849 }
 0x529   : > { %3382 = vadd.xlane.f32.xlu0 %v3381_v58  ;;  %v3636_v59 = vmul.f32 %v9172_v13, %v3553_v53  ;;  %v3715_v3 = vadd.f32 %v9183_v43, %v3633_v24  ;;  %v3390_v17 = vadd.f32 %v3312_v31, %v3311_v38 }
 0x52a   : > { %3385 = vadd.xlane.f32.xlu1 %v3384_v37  ;;  %v3717_v42 = vadd.f32 %v9183_v43, %v3635_v2  ;;  %v3716_v26 = vadd.f32 %v9180_v1, %v3634_v45 }
 0x52b   : > { %v3718_v40 = vadd.f32 %v9180_v1, %v3636_v59 }
 0x52c   : > { %v3821_v62 = vpack.c.bf16 %v3717_v42, %v3715_v3  ;;  %v9385_v6 = vpop.permute.xlu0 %3894 }
 0x52d   : > { %v3822_v50 = vpack.c.bf16 %v3718_v40, %v3716_v26  ;;  %3388 = vadd.xlane.f32.xlu0 %v3387_v8 }
 0x52e   : > { %3391 = vadd.xlane.f32.xlu1 %v3390_v17 }
 0x52f   : > { %3998 = vmatprep.subr.bf16.mxu1 %v3822_v50 }
 0x530   : > { %3999 = vmatpush1.bf16.msra.mxu1 %v3821_v62  ;;  %v9389_v19 = vpop.permute.xlu0 %3904 }
 0x531   : > { %3138 = vadd.xlane.f32.xlu0 %v8900_v16  ;;  %v6210_v16 = vld [vmem:[%s10803_s6 + $0x10] sm:$0xff]  }
 0x532   : > { %3141 = vadd.xlane.f32.xlu1 %v8908_v0  ;;  %v6211_v0 = vld [vmem:[%s10803_s6 + $0x18] sm:$0xff]  }
 0x533   : > { %5901 = vmatmul.mubr.msk.bf16.vlgmr.msra.gmra.mrb[64].mxu1 %vm3967_vm0, %v6208_v49 }
 0x534   : > { %4034 = vmatprep.mubr.bf16.mxu1 %v11215_v52  ;;  %v9393_v58 = vpop.permute.xlu0 %3914 }
 0x535   : > { %3144 = vadd.xlane.f32.xlu0 %v8920_v5  ;;  %v11217_v5 = vld [vmem:[#allocation34_spill] sm:$0xff] }
 0x536   : > { %3147 = vadd.xlane.f32.xlu1 %v8928_v47  ;;  %v11218_v47 = vld [vmem:[#allocation40_spill] sm:$0xff]  ;;  %11224 = vst [vmem:[#allocation34_spill] sm:$0xff] %v9381_v15 }
 0x538   : > { %v9397_v10 = vpop.permute.xlu0 %3924 }
 0x539   : > { %3150 = vadd.xlane.f32.xlu0 %v8936_v51  ;;  %v11219_v51 = vld [vmem:[#allocation37_spill] sm:$0xff] }
 0x53a   : > { %3153 = vadd.xlane.f32.xlu1 %v8944_v22  ;;  %v6214_v22 = vld [vmem:[%s10803_s6 + $0x30] sm:$0xff]   ;;  %11226 = vst [vmem:[#allocation37_spill] sm:$0xff] %v9389_v19 }
 0x53b   : > { %5902 = vmatmul.mubr.msk.bf16.gmra.mrb[68].mxu1 %vm3967_vm0, %v6209_v63 }
 0x53c   : > { %4044 = vmatprep.mubr.bf16.mxu1 %v11215_v52 }
 0x53d   : > { %3156 = vadd.xlane.f32.xlu0 %v8952_v36  ;;  %v9365_v36 = vpop.permute.xlu1 %3854 }
 0x53e   : > { %3159 = vadd.xlane.f32.xlu1 %v8960_v48  ;;  %v11216_v48 = vld [vmem:[#allocation31_spill] sm:$0xff]  ;;  %11220 = vst [vmem:[#allocation4_spill] sm:$0xff] %v9365_v36 }
 0x541   : > { %3162 = vadd.xlane.f32.xlu0 %v8968_v46  ;;  %v6213_v46 = vld [vmem:[%s10803_s6 + $0x28] sm:$0xff]  }
 0x542   : > { %3165 = vadd.xlane.f32.xlu1 %v8976_v55  ;;  %v6215_v55 = vld [vmem:[%s10803_s6 + $0x38] sm:$0xff]  }
 0x543   : > { %5903 = vmatmul.mubr.msk.bf16.gmra.mrb[72].mxu1 %vm3967_vm0, %v6210_v16 }
 0x544   : > { %4054 = vmatprep.mubr.bf16.mxu1 %v11215_v52 }
 0x545   : > { %3168 = vadd.xlane.f32.xlu0 %v8984_v7  ;;  %v9369_v7 = vpop.permute.xlu1 %3859 }
 0x546   : > { %3171 = vadd.xlane.f32.xlu1 %v8992_v4  ;;  %v6212_v4 = vld [vmem:[%s10803_s6 + $0x20] sm:$0xff]   ;;  %11221 = vst [vmem:[#allocation3_spill] sm:$0xff] %v9369_v7 }
 0x549   : > { %3174 = vadd.xlane.f32.xlu0 %v11216_v48  ;;  %v9371_v28 = vpop.permute.xlu1 %3864 }
 0x54a   : > { %3177 = vadd.xlane.f32.xlu1 %v11217_v5  ;;  %11222 = vst [vmem:[#allocation6_spill] sm:$0xff] %v9371_v28 }
 0x54b   : > { %5904 = vmatmul.mubr.msk.bf16.gmra.mrb[76].mxu1 %vm3967_vm0, %v6211_v0 }
 0x54c   : > { %4064 = vmatprep.mubr.bf16.mxu1 %v11215_v52 }
 0x54d   : > { %3180 = vadd.xlane.f32.xlu0 %v11218_v47  ;;  %v9373_v54 = vpop.permute.xlu1 %3869 }
 0x54e   : > { %3183 = vadd.xlane.f32.xlu1 %v11219_v51  ;;  %11223 = vst [vmem:[#allocation31_spill] sm:$0xff] %v9373_v54 }
 0x551   : > { %v9375_v32 = vpop.permute.xlu1 %3874 }
 0x553   : > { %5905 = vmatmul.mubr.msk.bf16.gmra.mrb[80].mxu1 %vm3967_vm0, %v6212_v4 }
 0x554   : > { %4074 = vmatprep.mubr.bf16.mxu1 %v11215_v52 }
 0x555   : > { %v9377_v11 = vpop.permute.xlu1 %3879 }
 0x559   : > { %v9379_v30 = vpop.permute.xlu1 %3884 }
 0x55b   : > { %5906 = vmatmul.mubr.msk.bf16.gmra.mrb[84].mxu1 %vm3967_vm0, %v6213_v46 }
 0x55c   : > { %4084 = vmatprep.mubr.bf16.mxu1 %v11215_v52 }
 0x55d   : > { %v9383_v23 = vpop.permute.xlu1 %3889 }
 0x561   : > { %v9387_v60 = vpop.permute.xlu1 %3899 }
 0x562   : > { %11225 = vst [vmem:[#allocation40_spill] sm:$0xff] %v9387_v60 }
 0x563   : > { %5907 = vmatmul.mubr.msk.bf16.gmra.mrb[88].mxu1 %vm3967_vm0, %v6214_v22 }
 0x564   : > { %4094 = vmatprep.mubr.bf16.mxu1 %v11215_v52 }
 0x565   : > { %v9391_v41 = vpop.permute.xlu1 %3909 }
 0x566   : > { %11227 = vst [vmem:[#allocation41_spill] sm:$0xff] %v9391_v41 }
 0x569   : > { %v9395_v37 = vpop.permute.xlu1 %3919 }
 0x56a   : > { %11228 = vst [vmem:[#allocation42_spill] sm:$0xff] %v9395_v37 }
 0x56b   : > { %5908 = vmatmul.mubr.msk.bf16.gmra.mrb[92].mxu1 %vm3967_vm0, %v6215_v55 }
 0x56c   : > { %4377 = vmatprep.mubr.bf16.mxu1 %v11215_v52 }
 0x5aa   : > { %v3371_v38 = vpop.xlane.xlu1 %3370 }
 0x5ab   : > { %v3449_v31 = vmul.f32 0.00390625, %v3371_v38 }
 0x5ac   : > { %v3374_v53 = vpop.xlane.xlu0 %3373 }
 0x5ad   : > { %v3482_v24 = vadd.f32 1e-05, %v3449_v31  ;;  %v3450_v45 = vmul.f32 0.00390625, %v3374_v53 }
 0x5af   : > { %6300 = vrsqrt.f32 %v3482_v24  ;;  %v3483_v2 = vadd.f32 1e-05, %v3450_v45 }
 0x5b1   : > { %6302 = vrsqrt.f32 %v3483_v2 }
 0x5b2   : > { %v3377_v59 = vpop.xlane.xlu0 %3376 }
 0x5b3   : > { %v3451_v3 = vmul.f32 0.00390625, %v3377_v59  ;;  %v3380_v42 = vpop.xlane.xlu1 %3379 }
 0x5b4   : > { %v3452_v17 = vmul.f32 0.00390625, %v3380_v42 }
 0x5b5   : > { %v3484_v26 = vadd.f32 1e-05, %v3451_v3 }
 0x5b6   : > { %v3485_v40 = vadd.f32 1e-05, %v3452_v17  ;;  %v3383_v8 = vpop.xlane.xlu0 %3382 }
 0x5b7   : > { %6304 = vrsqrt.f32 %v3484_v26  ;;  %v3453_v62 = vmul.f32 0.00390625, %v3383_v8  ;;  %v3386_v50 = vpop.xlane.xlu1 %3385 }
 0x5b8   : > { %6306 = vrsqrt.f32 %v3485_v40  ;;  %v3454_v49 = vmul.f32 0.00390625, %v3386_v50  ;;  %v11229_v40 = vld [vmem:[#allocation2_spill] sm:$0xff] }
 0x5b9   : > { %v6301_v63 = vpop.eup %6300  ;;  %v3486_v16 = vadd.f32 1e-05, %v3453_v62  ;;  %v11230_v62 = vld [vmem:[#allocation15_spill] sm:$0xff] }
 0x5ba   : > { %v3554_v0 = vmul.f32 %v6301_v63, %v9208_v12  ;;  %v3487_v48 = vadd.f32 1e-05, %v3454_v49  ;;  %v3389_v5 = vpop.xlane.xlu0 %3388  ;;  %v3555_v47 = vmul.f32 %v6301_v63, %v9211_v25 }
 0x5bb   : > { %v6303_v51 = vpop.eup %6302  ;;  %6308 = vrsqrt.f32 %v3486_v16  ;;  %v3455_v4 = vmul.f32 0.00390625, %v3389_v5  ;;  %v3392_v46 = vpop.xlane.xlu1 %3391  ;;  %v11232_v5 = vld [vmem:[#allocation18_spill] sm:$0xff] }
 0x5bc   : > { %v3556_v22 = vmul.f32 %v6303_v51, %v9220_v61  ;;  %6310 = vrsqrt.f32 %v3487_v48  ;;  %v3456_v55 = vmul.f32 0.00390625, %v3392_v46  ;;  %v3557_v38 = vmul.f32 %v6303_v51, %v9223_v57 }
 0x5bd   : > { %v3488_v31 = vadd.f32 1e-05, %v3455_v4  ;;  %v3638_v53 = vmul.f32 %v9172_v13, %v3555_v47  ;;  %v3637_v24 = vmul.f32 %v9175_v20, %v3554_v0  ;;  %v11231_v0 = vld [vmem:[#allocation5_spill] sm:$0xff] }
 0x5be   : > { %v3489_v12 = vadd.f32 1e-05, %v3456_v55  ;;  %v3139_v45 = vpop.xlane.xlu0 %3138  ;;  %v3640_v2 = vmul.f32 %v9172_v13, %v3557_v38  ;;  %v3639_v25 = vmul.f32 %v9175_v20, %v3556_v22 }
 0x5bf   : > { %6312 = vrsqrt.f32 %v3488_v31  ;;  %v3201_v59 = vmul.f32 0.00390625, %v3139_v45  ;;  %v3142_v3 = vpop.xlane.xlu1 %3141  ;;  %v9408_v61 = vadd.f32 %v9180_v1, %v3638_v53  ;;  %v9423_v49 = vadd.f32 %v9183_v43, %v3637_v24  ;;  %v11234_v45 = vld [vmem:[#allocation9_spill] sm:$0xff] }
 0x5c0   : > { %6314 = vrsqrt.f32 %v3489_v12  ;;  %v3202_v42 = vmul.f32 0.00390625, %v3142_v3  ;;  %v9411_v57 = vadd.f32 %v9180_v1, %v3640_v2  ;;  %v9414_v17 = vadd.f32 %v9183_v43, %v3639_v25  ;;  %v11236_v25 = vld [vmem:[#allocation10_spill] sm:$0xff] }
 0x5c1   : > { %v6305_v26 = vpop.eup %6304  ;;  %v9417_v8 = vsub.f32 %v11229_v40, %v3201_v59  ;;  %v9420_v50 = vsub.f32 %v11230_v62, %v3201_v59 }
 0x5c2   : > { %v6307_v63 = vpop.eup %6306  ;;  %v9426_v16 = vmul.f32 %v6305_v26, %v9233_v56  ;;  %v9429_v48 = vsub.f32 %v11231_v0, %v3202_v42  ;;  %v9432_v47 = vsub.f32 %v11232_v5, %v3202_v42  ;;  %v3145_v51 = vpop.xlane.xlu0 %3144  ;;  %v3559_v42 = vmul.f32 %v6305_v26, %v9236_v44  ;;  %v11238_v0 = vld [vmem:[#allocation7_spill] sm:$0xff] }
 0x5c3   : > { %v9437_v46 = vmul.f32 %v6307_v63, %v9241_v14  ;;  %v3313_v22 = vmul.f32 %v9417_v8, %v9417_v8  ;;  %v3314_v56 = vmul.f32 %v9420_v50, %v9420_v50  ;;  %v3203_v55 = vmul.f32 0.00390625, %v3145_v51  ;;  %v3148_v38 = vpop.xlane.xlu1 %3147  ;;  %v11240_v51 = vld [vmem:[#allocation8_spill] sm:$0xff] }
 0x5c4   : > { %11233 = vst [vmem:[#allocation2_spill] sm:$0xff] %v9432_v47  ;;  %v3315_v31 = vmul.f32 %v9429_v48, %v9429_v48  ;;  %v3316_v53 = vmul.f32 %v9432_v47, %v9432_v47  ;;  %v3204_v24 = vmul.f32 0.00390625, %v3148_v38 }
 0x5c5   : > { %v9449_v14 = vpop.eup %6308  ;;  %v9452_v2 = vsub.f32 %v11234_v45, %v3203_v55  ;;  %v9455_v59 = vsub.f32 %v11236_v25, %v3203_v55  ;;  %v3393_v3 = vadd.f32 %v3314_v56, %v3313_v22  ;;  %v11242_v25 = vld [vmem:[#allocation13_spill] sm:$0xff] }
 0x5c6   : > { %v9458_v40 = vpop.eup %6310  ;;  %v9462_v62 = vmul.f32 %v9449_v14, %v9257_v34  ;;  %v9465_v5 = vsub.f32 %v11238_v0, %v3204_v24  ;;  %v9468_v38 = vsub.f32 %v11240_v51, %v3204_v24  ;;  %v3151_v45 = vpop.xlane.xlu0 %3150  ;;  %v3396_v12 = vadd.f32 %v3316_v53, %v3315_v31  ;;  %v11244_v51 = vld [vmem:[#allocation14_spill] sm:$0xff] }
 0x5c7   : > { %11235 = vst [vmem:[#allocation15_spill] sm:$0xff] %v9452_v2  ;;  %11237 = vst [vmem:[#allocation5_spill] sm:$0xff] %v9455_v59  ;;  %v9472_v55 = vmul.f32 %v9458_v40, %v9271_v9  ;;  %v3317_v44 = vmul.f32 %v9452_v2, %v9452_v2  ;;  %v3318_v26 = vmul.f32 %v9455_v59, %v9455_v59  ;;  %v3205_v34 = vmul.f32 0.00390625, %v3151_v45  ;;  %v3154_v22 = vpop.xlane.xlu1 %3153 }
 0x5c8   : > { %11239 = vst [vmem:[#allocation18_spill] sm:$0xff] %v9465_v5  ;;  %11241 = vst [vmem:[#allocation9_spill] sm:$0xff] %v9468_v38  ;;  %3394 = vadd.xlane.f32.xlu0 %v3393_v3  ;;  %v3319_v56 = vmul.f32 %v9465_v5, %v9465_v5  ;;  %v3320_v24 = vmul.f32 %v9468_v38, %v9468_v38  ;;  %v3206_v31 = vmul.f32 0.00390625, %v3154_v22  ;;  %3397 = vadd.xlane.f32.xlu1 %v3396_v12  ;;  %v11246_v12 = vld [vmem:[#allocation11_spill] sm:$0xff] }
 0x5c9   : > { %v3561_v9 = vmul.f32 %v6307_v63, %v9244_v18  ;;  %v9483_v53 = vpop.eup %6312  ;;  %v9486_v0 = vsub.f32 %v11242_v25, %v3205_v34  ;;  %v9489_v4 = vsub.f32 %v11244_v51, %v3205_v34  ;;  %v3399_v45 = vadd.f32 %v3318_v26, %v3317_v44  ;;  %v11248_v18 = vld [vmem:[#allocation12_spill] sm:$0xff] }
 0x5ca   : > { %v3642_v3 = vmul.f32 %v9172_v13, %v3559_v42  ;;  %v9492_v59 = vpop.eup %6314  ;;  %v9496_v38 = vmul.f32 %v9483_v53, %v9278_v33  ;;  %v9499_v22 = vsub.f32 %v11246_v12, %v3206_v31  ;;  %v9502_v63 = vsub.f32 %v11248_v18, %v3206_v31  ;;  %v3157_v25 = vpop.xlane.xlu0 %3156  ;;  %v11252_v18 = vld [vmem:[#allocation20_spill] sm:$0xff] }
 0x5cb   : > { %11243 = vst [vmem:[#allocation10_spill] sm:$0xff] %v9486_v0  ;;  %11245 = vst [vmem:[#allocation7_spill] sm:$0xff] %v9489_v4  ;;  %v3402_v5 = vadd.f32 %v3320_v24, %v3319_v56  ;;  %v9506_v34 = vmul.f32 %v9492_v59, %v9292_v27  ;;  %v3321_v42 = vmul.f32 %v9486_v0, %v9486_v0  ;;  %v3207_v33 = vmul.f32 0.00390625, %v3157_v25  ;;  %v3160_v26 = vpop.xlane.xlu1 %3159  ;;  %v11250_v24 = vld [vmem:[#allocation19_spill] sm:$0xff] }
 0x5cc   : > { %11247 = vst [vmem:[#allocation8_spill] sm:$0xff] %v9499_v22  ;;  %11249 = vst [vmem:[#allocation13_spill] sm:$0xff] %v9502_v63  ;;  %v3322_v44 = vmul.f32 %v9489_v4, %v9489_v4  ;;  %3400 = vadd.xlane.f32.xlu0 %v3399_v45  ;;  %v3323_v51 = vmul.f32 %v9499_v22, %v9499_v22  ;;  %v3324_v31 = vmul.f32 %v9502_v63, %v9502_v63  ;;  %v11254_v45 = vld [vmem:[#allocation16_spill] sm:$0xff]  ;;  %v11256_v22 = vld [vmem:[#allocation17_spill] sm:$0xff] }
 0x5cd   : > { %v3208_v56 = vmul.f32 0.00390625, %v3160_v26  ;;  %3403 = vadd.xlane.f32.xlu1 %v3402_v5  ;;  %v3644_v27 = vmul.f32 %v9172_v13, %v3561_v9  ;;  %v9518_v12 = vsub.f32 %v11250_v24, %v3207_v33  ;;  %v9521_v0 = vsub.f32 %v11252_v18, %v3207_v33  ;;  %v11264_v63 = vld [vmem:[#allocation23_spill] sm:$0xff] }
 0x5ce   : > { %v3405_v4 = vadd.f32 %v3322_v44, %v3321_v42  ;;  %v9524_v25 = vadd.f32 %v9180_v1, %v3642_v3  ;;  %v3163_v26 = vpop.xlane.xlu0 %3162  ;;  %v3408_v5 = vadd.f32 %v3324_v31, %v3323_v51  ;;  %v3641_v33 = vmul.f32 %v9175_v20, %v9426_v16 }
 0x5cf   : > { %11251 = vst [vmem:[#allocation14_spill] sm:$0xff] %v9518_v12  ;;  %11253 = vst [vmem:[#allocation11_spill] sm:$0xff] %v9521_v0  ;;  %v9527_v2 = vsub.f32 %v11254_v45, %v3208_v56  ;;  %v9530_v47 = vsub.f32 %v11256_v22, %v3208_v56  ;;  %v9533_v9 = vadd.f32 %v9180_v1, %v3644_v27  ;;  %v3209_v44 = vmul.f32 0.00390625, %v3163_v26  ;;  %v3166_v3 = vpop.xlane.xlu1 %3165  ;;  %v11258_v27 = vld [vmem:[#allocation24_spill] sm:$0xff]  ;;  %v11260_v45 = vld [vmem:[#allocation21_spill] sm:$0xff] }
 0x5d0   : > { %v3325_v24 = vmul.f32 %v9518_v12, %v9518_v12  ;;  %v3326_v42 = vmul.f32 %v9521_v0, %v9521_v0  ;;  %3406 = vadd.xlane.f32.xlu0 %v3405_v4  ;;  %v3210_v31 = vmul.f32 0.00390625, %v3166_v3  ;;  %v3643_v16 = vmul.f32 %v9175_v20, %v9437_v46  ;;  %v11262_v0 = vld [vmem:[#allocation22_spill] sm:$0xff] }
 0x5d1   : > { %11255 = vst [vmem:[#allocation12_spill] sm:$0xff] %v9527_v2  ;;  %11257 = vst [vmem:[#allocation19_spill] sm:$0xff] %v9530_v47  ;;  %v3327_v22 = vmul.f32 %v9527_v2, %v9527_v2  ;;  %v3328_v51 = vmul.f32 %v9530_v47, %v9530_v47  ;;  %3409 = vadd.xlane.f32.xlu1 %v3408_v5  ;;  %v9548_v18 = vsub.f32 %v11258_v27, %v3209_v44 }
 0x5d2   : > { %v9551_v26 = vsub.f32 %v11260_v45, %v3209_v44  ;;  %v3411_v4 = vadd.f32 %v3326_v42, %v3325_v24  ;;  %v9556_v2 = vsub.f32 %v11262_v0, %v3210_v31  ;;  %v9559_v47 = vsub.f32 %v11264_v63, %v3210_v31  ;;  %v3169_v5 = vpop.xlane.xlu0 %3168  ;;  %v11268_v45 = vld [vmem:[#allocation26_spill] sm:$0xff] }
 0x5d3   : > { %11259 = vst [vmem:[#allocation20_spill] sm:$0xff] %v9548_v18  ;;  %v3414_v3 = vadd.f32 %v3328_v51, %v3327_v22  ;;  %v9562_v56 = vadd.f32 %v9183_v43, %v3641_v33  ;;  %v3329_v27 = vmul.f32 %v9548_v18, %v9548_v18  ;;  %v3211_v42 = vmul.f32 0.00390625, %v3169_v5  ;;  %v3172_v44 = vpop.xlane.xlu1 %3171  ;;  %v11266_v51 = vld [vmem:[#allocation28_spill] sm:$0xff]  ;;  %v11272_v18 = vld [vmem:[#allocation25_spill] sm:$0xff] }
 0x5d4   : > { %11261 = vst [vmem:[#allocation16_spill] sm:$0xff] %v9551_v26  ;;  %11263 = vst [vmem:[#allocation17_spill] sm:$0xff] %v9556_v2  ;;  %v3330_v24 = vmul.f32 %v9551_v26, %v9551_v26  ;;  %3412 = vadd.xlane.f32.xlu0 %v3411_v4  ;;  %v9569_v46 = vadd.f32 %v9183_v43, %v3643_v16  ;;  %v3331_v0 = vmul.f32 %v9556_v2, %v9556_v2  ;;  %v11270_v26 = vld [vmem:[#allocation27_spill] sm:$0xff] }
 0x5d5   : > { %11265 = vst [vmem:[#allocation24_spill] sm:$0xff] %v9559_v47  ;;  %v3332_v63 = vmul.f32 %v9559_v47, %v9559_v47  ;;  %v3212_v33 = vmul.f32 0.00390625, %v3172_v44  ;;  %3415 = vadd.xlane.f32.xlu1 %v3414_v3  ;;  %v3563_v22 = vmul.f32 %v9449_v14, %v9260_v21  ;;  %v9578_v31 = vsub.f32 %v11266_v51, %v3211_v42  ;;  %v11276_v51 = vld [vmem:[#allocation30_spill] sm:$0xff] }
 0x5d6   : > { %v9581_v5 = vsub.f32 %v11268_v45, %v3211_v42  ;;  %v3417_v4 = vadd.f32 %v3330_v24, %v3329_v27  ;;  %v3175_v3 = vpop.xlane.xlu0 %3174  ;;  %v3565_v21 = vmul.f32 %v9458_v40, %v9274_v29  ;;  %v11274_v40 = vld [vmem:[#allocation32_spill] sm:$0xff] }
 0x5d7   : > { %11267 = vst [vmem:[#allocation21_spill] sm:$0xff] %v9578_v31  ;;  %v9586_v2 = vsub.f32 %v11270_v26, %v3212_v33  ;;  %v9589_v47 = vsub.f32 %v11272_v18, %v3212_v33  ;;  %v3420_v44 = vadd.f32 %v3332_v63, %v3331_v0  ;;  %v3333_v14 = vmul.f32 %v9578_v31, %v9578_v31  ;;  %v3178_v42 = vpop.xlane.xlu1 %3177 }
 0x5d8   : > { %11269 = vst [vmem:[#allocation22_spill] sm:$0xff] %v9581_v5  ;;  %v3334_v27 = vmul.f32 %v9581_v5, %v9581_v5  ;;  %v3213_v24 = vmul.f32 0.00390625, %v3175_v3  ;;  %3418 = vadd.xlane.f32.xlu0 %v3417_v4  ;;  %v3646_v26 = vmul.f32 %v9172_v13, %v3563_v22  ;;  %v3214_v63 = vmul.f32 0.00390625, %v3178_v42  ;;  %v11278_v22 = vld [vmem:[#allocation29_spill] sm:$0xff]  ;;  %v11280_v5 = vld [vmem:[#allocation36_spill] sm:$0xff] }
 0x5d9   : > { %11271 = vst [vmem:[#allocation23_spill] sm:$0xff] %v9586_v2  ;;  %11273 = vst [vmem:[#allocation28_spill] sm:$0xff] %v9589_v47  ;;  %v3335_v18 = vmul.f32 %v9586_v2, %v9586_v2  ;;  %v3336_v0 = vmul.f32 %v9589_v47, %v9589_v47  ;;  %3421 = vadd.xlane.f32.xlu1 %v3420_v44  ;;  %v3648_v29 = vmul.f32 %v9172_v13, %v3565_v21 }
 0x5da   : > { %v9604_v33 = vsub.f32 %v11274_v40, %v3213_v24  ;;  %v9607_v45 = vsub.f32 %v11276_v51, %v3213_v24  ;;  %v3423_v3 = vadd.f32 %v3334_v27, %v3333_v14  ;;  %v9610_v4 = vadd.f32 %v9180_v1, %v3646_v26  ;;  %v3181_v42 = vpop.xlane.xlu0 %3180 }
 0x5db   : > { %v9613_v16 = vsub.f32 %v11278_v22, %v3214_v63  ;;  %v9616_v2 = vsub.f32 %v11280_v5, %v3214_v63  ;;  %v3426_v44 = vadd.f32 %v3336_v0, %v3335_v18  ;;  %v9619_v21 = vadd.f32 %v9180_v1, %v3648_v29  ;;  %v3184_v24 = vpop.xlane.xlu1 %3183  ;;  %v11282_v29 = vld [vmem:[#allocation35_spill] sm:$0xff]  ;;  %v11284_v22 = vld [vmem:[#allocation33_spill] sm:$0xff] }
 0x5dc   : > { %11275 = vst [vmem:[#allocation26_spill] sm:$0xff] %v9604_v33  ;;  %11277 = vst [vmem:[#allocation27_spill] sm:$0xff] %v9607_v45  ;;  %v3337_v40 = vmul.f32 %v9604_v33, %v9604_v33  ;;  %v3338_v14 = vmul.f32 %v9607_v45, %v9607_v45  ;;  %v3215_v27 = vmul.f32 0.00390625, %v3181_v42  ;;  %3424 = vadd.xlane.f32.xlu0 %v3423_v3  ;;  %v3216_v0 = vmul.f32 0.00390625, %v3184_v24  ;;  %v11286_v45 = vld [vmem:[#allocation38_spill] sm:$0xff]  ;;  %v11288_v33 = vld [vmem:[#allocation39_spill] sm:$0xff] }
 0x5dd   : > { %11279 = vst [vmem:[#allocation25_spill] sm:$0xff] %v9613_v16  ;;  %11281 = vst [vmem:[#allocation32_spill] sm:$0xff] %v9616_v2  ;;  %v3645_v26 = vmul.f32 %v9175_v20, %v9462_v62  ;;  %v3339_v5 = vmul.f32 %v9613_v16, %v9613_v16  ;;  %v3340_v18 = vmul.f32 %v9616_v2, %v9616_v2  ;;  %3427 = vadd.xlane.f32.xlu1 %v3426_v44 }
 0x5de   : > { %v9634_v51 = vsub.f32 %v11282_v29, %v3215_v27  ;;  %v9637_v42 = vsub.f32 %v11284_v22, %v3215_v27  ;;  %v3429_v3 = vadd.f32 %v3338_v14, %v3337_v40  ;;  %v3647_v62 = vmul.f32 %v9175_v20, %v9472_v55 }
 0x5df   : > { %v9642_v16 = vsub.f32 %v11286_v45, %v3216_v0  ;;  %v9645_v2 = vsub.f32 %v11288_v33, %v3216_v0  ;;  %v3432_v44 = vadd.f32 %v3340_v18, %v3339_v5  ;;  %v9648_v24 = vadd.f32 %v9183_v43, %v3645_v26 }
 0x5e0   : > { %11283 = vst [vmem:[#allocation30_spill] sm:$0xff] %v9634_v51  ;;  %11285 = vst [vmem:[#allocation29_spill] sm:$0xff] %v9637_v42  ;;  %v3341_v29 = vmul.f32 %v9634_v51, %v9634_v51  ;;  %v3342_v27 = vmul.f32 %v9637_v42, %v9637_v42  ;;  %3430 = vadd.xlane.f32.xlu0 %v3429_v3  ;;  %v9655_v40 = vadd.f32 %v9183_v43, %v3647_v62 }
 0x5e1   : > { %11287 = vst [vmem:[#allocation36_spill] sm:$0xff] %v9642_v16  ;;  %11289 = vst [vmem:[#allocation35_spill] sm:$0xff] %v9645_v2  ;;  %v3567_v55 = vmul.f32 %v9483_v53, %v9281_v35  ;;  %v3343_v33 = vmul.f32 %v9642_v16, %v9642_v16  ;;  %v3344_v45 = vmul.f32 %v9645_v2, %v9645_v2  ;;  %3433 = vadd.xlane.f32.xlu1 %v3432_v44  ;;  %v3808_v44 = vld [vmem:[%s10805_s8 + $0x88] sm:$0xff] }
 0x5e2   : > { %v3569_v14 = vmul.f32 %v9492_v59, %v9295_v39  ;;  %v3649_v26 = vmul.f32 %v9175_v20, %v9496_v38  ;;  %v3435_v5 = vadd.f32 %v3342_v27, %v3341_v29  ;;  %v3651_v35 = vmul.f32 %v9175_v20, %v9506_v34  ;;  %v3809_v29 = vld [vmem:[%s10805_s8 + $0x90] sm:$0xff]  ;;  %v3807_v27 = vld [vmem:[%s10805_s8 + $0x80] sm:$0xff] }
 0x5e3   : > { %v3650_v0 = vmul.f32 %v9172_v13, %v3567_v55  ;;  %v3438_v53 = vadd.f32 %v3344_v45, %v3343_v33  ;;  %v3811_v55 = vld [vmem:[%s10805_s8 + $0xa0] sm:$0xff]  ;;  %v3810_v33 = vld [vmem:[%s10805_s8 + $0x98] sm:$0xff]  ;;  %v3813_v45 = vld [vmem:[%s10805_s8 + $0xb0] sm:$0xff] }
 0x5e4   : > { %v3652_v22 = vmul.f32 %v9172_v13, %v3569_v14  ;;  %v9674_v3 = vadd.f32 %v9183_v43, %v3649_v26  ;;  %3436 = vadd.xlane.f32.xlu0 %v3435_v5  ;;  %v9680_v59 = vadd.f32 %v9183_v43, %v3651_v35  ;;  %v3812_v14 = vld [vmem:[%s10805_s8 + $0xa8] sm:$0xff]  ;;  %v3814_v26 = vld [vmem:[%s10805_s8 + $0xb8] sm:$0xff] }
 0x5e5   : > { %v9677_v39 = vadd.f32 %v9180_v1, %v3650_v0  ;;  %3439 = vadd.xlane.f32.xlu1 %v3438_v53 }
 0x5e6   : > { %11290 = vst [vmem:[#allocation33_spill] sm:$0xff] %v9674_v3  ;;  %11291 = vst [vmem:[#allocation38_spill] sm:$0xff] %v9680_v59  ;;  %v9683_v38 = vadd.f32 %v9180_v1, %v3652_v22 }
 0x5f6   : > { %4288 = vperm.xlu1 %6015, %v3808_v44  }
 0x5fa   : > { %4293 = vperm.xlu1 %6015, %v3809_v29   ;;  %4283 = vperm.xlu0 %6014, %v3807_v27  }
 0x5fe   : > { %4303 = vperm.xlu1 %6015, %v3811_v55   ;;  %4298 = vperm.xlu0 %6014, %v3810_v33  }
 0x602   : > { %4313 = vperm.xlu1 %6015, %v3813_v45   ;;  %4308 = vperm.xlu0 %6014, %v3812_v14  }
 0x606   : > { %4318 = vperm.xlu0 %6014, %v3814_v26   ;;  %v4026_v5 = vpop.f32.mrb[64].mxu1 }
 0x607   : > { %v4027_v0 = vadd.f32 %v4026_v5, %v9381_v15  ;;  %v4028_v35 = vpop.f32.mrb[65].mxu1 }
 0x608   : > { %v4029_v53 = vadd.f32 %v4028_v35, %v9381_v15  ;;  %v4030_v22 = vpop.f32.mrb[66].mxu1 }
 0x609   : > { %v4137_v44 = vmul.f32 0.70710677, %v4027_v0  ;;  %v4031_v29 = vadd.f32 %v4030_v22, %v9365_v36  ;;  %v4032_v27 = vpop.f32.mrb[67].mxu1  ;;  %v4105_v16 = vmul.f32 0.5, %v4027_v0 }
 0x60a   : > { %v4138_v55 = vmul.f32 0.70710677, %v4029_v53  ;;  %v4033_v33 = vadd.f32 %v4032_v27, %v9365_v36 }
 0x60b   : > { %6316 = verf.f32 %v4137_v44  ;;  %v4139_v45 = vmul.f32 0.70710677, %v4031_v29  ;;  %v4107_v51 = vmul.f32 0.5, %v4031_v29 }
 0x60c   : > { %6318 = verf.f32 %v4138_v55  ;;  %v4140_v14 = vmul.f32 0.70710677, %v4033_v33 }
 0x60d   : > { %6320 = verf.f32 %v4139_v45 }
 0x60e   : > { %6322 = verf.f32 %v4140_v14  ;;  %v4036_v26 = vpop.f32.mrb[68].mxu1 }
 0x60f   : > { %v4037_v5 = vadd.f32 %v4036_v26, %v9369_v7  ;;  %v4038_v34 = vpop.f32.mrb[69].mxu1 }
 0x610   : > { %v4039_v35 = vadd.f32 %v4038_v34, %v9369_v7  ;;  %v4040_v62 = vpop.f32.mrb[70].mxu1 }
 0x611   : > { %v4141_v18 = vmul.f32 0.70710677, %v4037_v5  ;;  %v4041_v22 = vadd.f32 %v4040_v62, %v9371_v28  ;;  %v4042_v63 = vpop.f32.mrb[71].mxu1 }
 0x612   : > { %v4142_v15 = vmul.f32 0.70710677, %v4039_v35  ;;  %v4043_v27 = vadd.f32 %v4042_v63, %v9371_v28  ;;  %v4106_v28 = vmul.f32 0.5, %v4029_v53 }
 0x613   : > { %6324 = verf.f32 %v4141_v18  ;;  %v4143_v44 = vmul.f32 0.70710677, %v4041_v22 }
 0x614   : > { %6326 = verf.f32 %v4142_v15  ;;  %v4144_v55 = vmul.f32 0.70710677, %v4043_v27 }
 0x615   : > { %v6317_v45 = vpop.eup %6316  ;;  %6328 = verf.f32 %v4143_v44  ;;  %v4108_v44 = vmul.f32 0.5, %v4033_v33 }
 0x616   : > { %v6319_v14 = vpop.eup %6318  ;;  %v4201_v36 = vadd.f32 1.0, %v6317_v45  ;;  %6330 = verf.f32 %v4144_v55  ;;  %v4046_v26 = vpop.f32.mrb[72].mxu1 }
 0x617   : > { %v6321_v2 = vpop.eup %6320  ;;  %v4202_v34 = vadd.f32 1.0, %v6319_v14  ;;  %v9722_v7 = vadd.f32 %v4046_v26, %v9373_v54  ;;  %v4048_v62 = vpop.f32.mrb[73].mxu1 }
 0x618   : > { %v6323_v42 = vpop.eup %6322  ;;  %v4203_v63 = vadd.f32 1.0, %v6321_v2  ;;  %v9725_v18 = vadd.f32 %v4048_v62, %v9373_v54  ;;  %v4050_v15 = vpop.f32.mrb[74].mxu1  ;;  %v4233_v31 = vmul.f32 %v4201_v36, %v4105_v16 }
 0x619   : > { %v4204_v47 = vadd.f32 1.0, %v6323_v42  ;;  %v4145_v55 = vmul.f32 0.70710677, %v9722_v7  ;;  %v4052_v45 = vpop.f32.mrb[75].mxu1  ;;  %v4051_v12 = vadd.f32 %v4050_v15, %v9375_v32  ;;  %v4234_v3 = vmul.f32 %v4202_v34, %v4106_v28 }
 0x61a   : > { %v4235_v14 = vmul.f32 %v4203_v63, %v4107_v51  ;;  %v4146_v26 = vmul.f32 0.70710677, %v9725_v18  ;;  %v4053_v2 = vadd.f32 %v4052_v45, %v9375_v32  ;;  %v4109_v34 = vmul.f32 0.5, %v4037_v5 }
 0x61b   : > { %v4236_v0 = vmul.f32 %v4204_v47, %v4108_v44  ;;  %6332 = verf.f32 %v4145_v55  ;;  %v4147_v62 = vmul.f32 0.70710677, %v4051_v12  ;;  %v4110_v55 = vmul.f32 0.5, %v4039_v35 }
 0x61c   : > { %v4265_v29 = vpack.c.bf16 %v4235_v14, %v4233_v31  ;;  %6334 = verf.f32 %v4146_v26  ;;  %v4148_v33 = vmul.f32 0.70710677, %v4053_v2  ;;  %v4111_v31 = vmul.f32 0.5, %v4041_v22 }
 0x61d   : > { %v6325_v53 = vpop.eup %6324  ;;  %v4266_v42 = vpack.c.bf16 %v4236_v0, %v4234_v3  ;;  %6336 = verf.f32 %v4147_v62  ;;  %v4112_v45 = vmul.f32 0.5, %v4043_v27 }
 0x61e   : > { %v6327_v54 = vpop.eup %6326  ;;  %v4205_v59 = vadd.f32 1.0, %v6325_v53  ;;  %v4056_v36 = vpop.f32.mrb[76].mxu1  ;;  %6338 = verf.f32 %v4148_v33 }
 0x61f   : > { %v6329_v16 = vpop.eup %6328  ;;  %v4206_v51 = vadd.f32 1.0, %v6327_v54  ;;  %v9732_v63 = vadd.f32 %v4056_v36, %v9377_v11  ;;  %v4058_v28 = vpop.f32.mrb[77].mxu1  ;;  %4345 = vmatprep.subr.bf16.mxu1 %v4266_v42 }
 0x620   : > { %v6331_v47 = vpop.eup %6330  ;;  %v4207_v15 = vadd.f32 1.0, %v6329_v16  ;;  %v9735_v44 = vadd.f32 %v4058_v28, %v9377_v11  ;;  %v4060_v3 = vpop.f32.mrb[78].mxu1  ;;  %4346 = vmatpush1.bf16.msra.mxu1 %v4265_v29  ;;  %v4237_v0 = vmul.f32 %v4205_v59, %v4109_v34 }
 0x621   : > { %v4208_v14 = vadd.f32 1.0, %v6331_v47  ;;  %v4149_v54 = vmul.f32 0.70710677, %v9732_v63  ;;  %v4062_v26 = vpop.f32.mrb[79].mxu1  ;;  %v4061_v33 = vadd.f32 %v4060_v3, %v9379_v30  ;;  %v4238_v5 = vmul.f32 %v4206_v51, %v4110_v55 }
 0x622   : > { %v4239_v62 = vmul.f32 %v4207_v15, %v4111_v31  ;;  %v4150_v53 = vmul.f32 0.70710677, %v9735_v44  ;;  %v4063_v42 = vadd.f32 %v4062_v26, %v9379_v30  ;;  %v4113_v15 = vmul.f32 0.5, %v9722_v7 }
 0x623   : > { %v4240_v22 = vmul.f32 %v4208_v14, %v4112_v45  ;;  %6340 = verf.f32 %v4149_v54  ;;  %v4151_v29 = vmul.f32 0.70710677, %v4061_v33  ;;  %v4114_v54 = vmul.f32 0.5, %v9725_v18 }
 0x624   : > { %v4267_v36 = vpack.c.bf16 %v4239_v62, %v4237_v0  ;;  %6342 = verf.f32 %v4150_v53  ;;  %v4152_v27 = vmul.f32 0.70710677, %v4063_v42  ;;  %v4115_v26 = vmul.f32 0.5, %v4051_v12 }
 0x625   : > { %v6333_v35 = vpop.eup %6332  ;;  %v4268_v16 = vpack.c.bf16 %v4240_v22, %v4238_v5  ;;  %6344 = verf.f32 %v4151_v29  ;;  %v4116_v5 = vmul.f32 0.5, %v4053_v2 }
 0x626   : > { %v6335_v28 = vpop.eup %6334  ;;  %v4066_v47 = vpop.f32.mrb[80].mxu1  ;;  %v4209_v59 = vadd.f32 1.0, %v6333_v35  ;;  %6346 = verf.f32 %v4152_v27 }
 0x627   : > { %v9742_v34 = vadd.f32 %v4066_v47, %v9383_v23  ;;  %v4068_v31 = vpop.f32.mrb[81].mxu1  ;;  %4347 = vmatprep.subr.bf16.mxu1 %v4268_v16  ;;  %v6337_v51 = vpop.eup %6336  ;;  %v4210_v3 = vadd.f32 1.0, %v6335_v28 }
 0x628   : > { %v9746_v55 = vadd.f32 %v4068_v31, %v9383_v23  ;;  %v4070_v45 = vpop.f32.mrb[82].mxu1  ;;  %4348 = vmatpush1.bf16.msra.mxu1 %v4267_v36  ;;  %v6339_v14 = vpop.eup %6338  ;;  %v4211_v0 = vadd.f32 1.0, %v6337_v51  ;;  %v4241_v35 = vmul.f32 %v4209_v59, %v4113_v15 }
 0x629   : > { %v4153_v62 = vmul.f32 0.70710677, %v9742_v34  ;;  %v4072_v53 = vpop.f32.mrb[83].mxu1  ;;  %v4212_v22 = vadd.f32 1.0, %v6339_v14  ;;  %v9752_v7 = vadd.f32 %v4070_v45, %v9385_v6  ;;  %v4242_v16 = vmul.f32 %v4210_v3, %v4114_v54 }
 0x62a   : > { %v4154_v29 = vmul.f32 0.70710677, %v9746_v55  ;;  %v4243_v27 = vmul.f32 %v4211_v0, %v4115_v26  ;;  %v9755_v36 = vadd.f32 %v4072_v53, %v9385_v6  ;;  %v4117_v3 = vmul.f32 0.5, %v9732_v63 }
 0x62b   : > { %6348 = verf.f32 %v4153_v62  ;;  %v4244_v18 = vmul.f32 %v4212_v22, %v4116_v5  ;;  %v4155_v12 = vmul.f32 0.70710677, %v9752_v7  ;;  %v4118_v5 = vmul.f32 0.5, %v9735_v44 }
 0x62c   : > { %6350 = verf.f32 %v4154_v29  ;;  %v4269_v47 = vpack.c.bf16 %v4243_v27, %v4241_v35  ;;  %v4156_v2 = vmul.f32 0.70710677, %v9755_v36  ;;  %v4119_v22 = vmul.f32 0.5, %v4061_v33 }
 0x62d   : > { %v6341_v28 = vpop.eup %6340  ;;  %6352 = verf.f32 %v4155_v12  ;;  %v4270_v45 = vpack.c.bf16 %v4244_v18, %v4242_v16  ;;  %v4120_v16 = vmul.f32 0.5, %v4063_v42 }
 0x62e   : > { %v6343_v31 = vpop.eup %6342  ;;  %v4076_v51 = vpop.f32.mrb[84].mxu1  ;;  %v4213_v14 = vadd.f32 1.0, %v6341_v28  ;;  %6354 = verf.f32 %v4156_v2 }
 0x62f   : > { %v9760_v59 = vadd.f32 %v4076_v51, %v9387_v60  ;;  %v4078_v15 = vpop.f32.mrb[85].mxu1  ;;  %v6345_v26 = vpop.eup %6344  ;;  %v4214_v54 = vadd.f32 1.0, %v6343_v31  ;;  %4349 = vmatprep.subr.bf16.mxu1 %v4270_v45 }
 0x630   : > { %v9764_v0 = vadd.f32 %v4078_v15, %v9387_v60  ;;  %v4080_v62 = vpop.f32.mrb[86].mxu1  ;;  %v6347_v53 = vpop.eup %6346  ;;  %v4215_v29 = vadd.f32 1.0, %v6345_v26  ;;  %4350 = vmatpush1.bf16.msra.mxu1 %v4269_v47  ;;  %v4245_v28 = vmul.f32 %v4213_v14, %v4117_v3 }
 0x631   : > { %v4157_v35 = vmul.f32 0.70710677, %v9760_v59  ;;  %v4082_v27 = vpop.f32.mrb[87].mxu1  ;;  %v4216_v18 = vadd.f32 1.0, %v6347_v53  ;;  %v9770_v63 = vadd.f32 %v4080_v62, %v9389_v19  ;;  %v4246_v44 = vmul.f32 %v4214_v54, %v4118_v5 }
 0x632   : > { %v4158_v12 = vmul.f32 0.70710677, %v9764_v0  ;;  %v4247_v2 = vmul.f32 %v4215_v29, %v4119_v22  ;;  %v9773_v31 = vadd.f32 %v4082_v27, %v9389_v19  ;;  %v4121_v54 = vmul.f32 0.5, %v9742_v34 }
 0x633   : > { %6356 = verf.f32 %v4157_v35  ;;  %v4248_v33 = vmul.f32 %v4216_v18, %v4120_v16  ;;  %v4159_v51 = vmul.f32 0.70710677, %v9770_v63  ;;  %v4122_v16 = vmul.f32 0.5, %v9746_v55 }
 0x634   : > { %6358 = verf.f32 %v4158_v12  ;;  %v4271_v47 = vpack.c.bf16 %v4247_v2, %v4245_v28  ;;  %v4160_v42 = vmul.f32 0.70710677, %v9773_v31  ;;  %v4123_v18 = vmul.f32 0.5, %v9752_v7 }
 0x635   : > { %v6349_v45 = vpop.eup %6348  ;;  %6360 = verf.f32 %v4159_v51  ;;  %v4272_v62 = vpack.c.bf16 %v4248_v33, %v4246_v44  ;;  %v4124_v44 = vmul.f32 0.5, %v9755_v36 }
 0x636   : > { %v6351_v15 = vpop.eup %6350  ;;  %v4086_v26 = vpop.f32.mrb[88].mxu1  ;;  %v4217_v53 = vadd.f32 1.0, %v6349_v45  ;;  %6362 = verf.f32 %v4160_v42 }
 0x637   : > { %v9778_v14 = vadd.f32 %v4086_v26, %v9391_v41  ;;  %v4088_v3 = vpop.f32.mrb[89].mxu1  ;;  %v6353_v22 = vpop.eup %6352  ;;  %v4218_v5 = vadd.f32 1.0, %v6351_v15  ;;  %4351 = vmatprep.subr.bf16.mxu1 %v4272_v62 }
 0x638   : > { %v9782_v29 = vadd.f32 %v4088_v3, %v9391_v41  ;;  %v4090_v35 = vpop.f32.mrb[90].mxu1  ;;  %v6355_v27 = vpop.eup %6354  ;;  %v4219_v12 = vadd.f32 1.0, %v6353_v22  ;;  %4352 = vmatpush1.bf16.msra.mxu1 %v4271_v47  ;;  %v4249_v45 = vmul.f32 %v4217_v53, %v4121_v54 }
 0x639   : > { %v4161_v28 = vmul.f32 0.70710677, %v9778_v14  ;;  %v4092_v2 = vpop.f32.mrb[91].mxu1  ;;  %v4220_v33 = vadd.f32 1.0, %v6355_v27  ;;  %v4091_v51 = vadd.f32 %v4090_v35, %v9393_v58  ;;  %v4250_v55 = vmul.f32 %v4218_v5, %v4122_v16 }
 0x63a   : > { %v4162_v34 = vmul.f32 0.70710677, %v9782_v29  ;;  %v4251_v42 = vmul.f32 %v4219_v12, %v4123_v18  ;;  %v4093_v15 = vadd.f32 %v4092_v2, %v9393_v58  ;;  %v4125_v18 = vmul.f32 0.5, %v9760_v59 }
 0x63b   : > { %6364 = verf.f32 %v4161_v28  ;;  %v4252_v26 = vmul.f32 %v4220_v33, %v4124_v44  ;;  %v4163_v7 = vmul.f32 0.70710677, %v4091_v51  ;;  %v4126_v2 = vmul.f32 0.5, %v9764_v0 }
 0x63c   : > { %6366 = verf.f32 %v4162_v34  ;;  %v4273_v3 = vpack.c.bf16 %v4251_v42, %v4249_v45  ;;  %v4164_v22 = vmul.f32 0.70710677, %v4093_v15  ;;  %v4127_v44 = vmul.f32 0.5, %v9770_v63 }
 0x63d   : > { %v6357_v62 = vpop.eup %6356  ;;  %6368 = verf.f32 %v4163_v7  ;;  %v4274_v27 = vpack.c.bf16 %v4252_v26, %v4250_v55  ;;  %v4128_v42 = vmul.f32 0.5, %v9773_v31 }
 0x63e   : > { %v6359_v47 = vpop.eup %6358  ;;  %v4096_v36 = vpop.f32.mrb[92].mxu1  ;;  %v4221_v41 = vadd.f32 1.0, %v6357_v62  ;;  %6370 = verf.f32 %v4164_v22 }
 0x63f   : > { %v4097_v35 = vadd.f32 %v4096_v36, %v9395_v37  ;;  %v4098_v53 = vpop.f32.mrb[93].mxu1  ;;  %v6361_v54 = vpop.eup %6360  ;;  %v4222_v12 = vadd.f32 1.0, %v6359_v47  ;;  %4353 = vmatprep.subr.bf16.mxu1 %v4274_v27 }
 0x640   : > { %v4099_v5 = vadd.f32 %v4098_v53, %v9395_v37  ;;  %v4100_v16 = vpop.f32.mrb[94].mxu1  ;;  %v6363_v28 = vpop.eup %6362  ;;  %v4223_v33 = vadd.f32 1.0, %v6361_v54  ;;  %4354 = vmatpush1.bf16.msra.mxu1 %v4273_v3  ;;  %v4253_v7 = vmul.f32 %v4221_v41, %v4125_v18  ;;  %v4129_v18 = vmul.f32 0.5, %v9778_v14 }
 0x641   : > { %v4165_v34 = vmul.f32 0.70710677, %v4097_v35  ;;  %v4102_v45 = vpop.f32.mrb[95].mxu1  ;;  %v4224_v55 = vadd.f32 1.0, %v6363_v28  ;;  %v4101_v59 = vadd.f32 %v4100_v16, %v9397_v10  ;;  %v4254_v47 = vmul.f32 %v4222_v12, %v4126_v2 }
 0x642   : > { %v4166_v26 = vmul.f32 0.70710677, %v4099_v5  ;;  %v4255_v62 = vmul.f32 %v4223_v33, %v4127_v44  ;;  %v4103_v22 = vadd.f32 %v4102_v45, %v9397_v10  ;;  %v4131_v16 = vmul.f32 0.5, %v4091_v51 }
 0x643   : > { %6372 = verf.f32 %v4165_v34  ;;  %v4256_v36 = vmul.f32 %v4224_v55, %v4128_v42  ;;  %v4167_v0 = vmul.f32 0.70710677, %v4101_v59  ;;  %v4130_v12 = vmul.f32 0.5, %v9782_v29 }
 0x644   : > { %6374 = verf.f32 %v4166_v26  ;;  %v4275_v27 = vpack.c.bf16 %v4255_v62, %v4253_v7  ;;  %v4168_v53 = vmul.f32 0.70710677, %v4103_v22  ;;  %v4132_v2 = vmul.f32 0.5, %v4093_v15 }
 0x645   : > { %v6365_v63 = vpop.eup %6364  ;;  %6376 = verf.f32 %v4167_v0  ;;  %v4276_v3 = vpack.c.bf16 %v4256_v36, %v4254_v47  ;;  %v4133_v51 = vmul.f32 0.5, %v4097_v35  ;;  %v4134_v29 = vmul.f32 0.5, %v4099_v5  ;;  %v6216_v35 = vld [vmem:[%s10804_s7] sm:$0xff]  }
 0x646   : > { %v6367_v54 = vpop.eup %6366  ;;  %v4225_v31 = vadd.f32 1.0, %v6365_v63  ;;  %6378 = verf.f32 %v4168_v53  ;;  %v4135_v53 = vmul.f32 0.5, %v4101_v59  ;;  %v4136_v15 = vmul.f32 0.5, %v4103_v22 }
 0x647   : > { %v6369_v28 = vpop.eup %6368  ;;  %v4226_v37 = vadd.f32 1.0, %v6367_v54  ;;  %4355 = vmatprep.subr.bf16.mxu1 %v4276_v3 }
 0x648   : > { %v6371_v41 = vpop.eup %6370  ;;  %v4227_v44 = vadd.f32 1.0, %v6369_v28  ;;  %4356 = vmatpush1.bf16.msra.mxu1 %v4275_v27  ;;  %v4257_v34 = vmul.f32 %v4225_v31, %v4129_v18 }
 0x649   : > { %v4228_v33 = vadd.f32 1.0, %v6371_v41  ;;  %v4258_v42 = vmul.f32 %v4226_v37, %v4130_v12 }
 0x64a   : > { %v4259_v45 = vmul.f32 %v4227_v44, %v4131_v16 }
 0x64b   : > { %v4260_v55 = vmul.f32 %v4228_v33, %v4132_v2 }
 0x64c   : > { %v4277_v7 = vpack.c.bf16 %v4259_v45, %v4257_v34  ;;  %v11292_v45 = vpack.c.bf16 %v9411_v57, %v9408_v61 }
 0x64d   : > { %v6373_v26 = vpop.eup %6372  ;;  %v4278_v47 = vpack.c.bf16 %v4260_v55, %v4258_v42 }
 0x64e   : > { %v6375_v62 = vpop.eup %6374  ;;  %v4229_v36 = vadd.f32 1.0, %v6373_v26 }
 0x64f   : > { %v6377_v0 = vpop.eup %6376  ;;  %v4230_v63 = vadd.f32 1.0, %v6375_v62  ;;  %4357 = vmatprep.subr.bf16.mxu1 %v4278_v47  ;;  %v11293_v62 = vpack.c.bf16 %v9414_v17, %v9423_v49  ;;  %v11295_v17 = vpack.c.bf16 %v9569_v46, %v9562_v56  ;;  %v11297_v46 = vpack.c.bf16 %v9655_v40, %v9648_v24 }
 0x650   : > { %v6379_v14 = vpop.eup %6378  ;;  %v4231_v27 = vadd.f32 1.0, %v6377_v0  ;;  %4358 = vmatpush1.bf16.msra.mxu1 %v4277_v7  ;;  %v4261_v3 = vmul.f32 %v4229_v36, %v4133_v51  ;;  %v11294_v0 = vpack.c.bf16 %v9533_v9, %v9524_v25  ;;  %v11296_v25 = vpack.c.bf16 %v9619_v21, %v9610_v4 }
 0x651   : > { %v4232_v54 = vadd.f32 1.0, %v6379_v14  ;;  %v4262_v37 = vmul.f32 %v4230_v63, %v4134_v29  ;;  %v6217_v14 = vld [vmem:[%s10804_s7 + $0x8] sm:$0xff]  }
 0x652   : > { %v4263_v31 = vmul.f32 %v4231_v27, %v4135_v53 }
 0x653   : > { %v4264_v28 = vmul.f32 %v4232_v54, %v4136_v15 }
 0x654   : > { %v4279_v18 = vpack.c.bf16 %v4263_v31, %v4261_v3 }
 0x655   : > { %v3395_v41 = vpop.xlane.xlu0 %3394  ;;  %v3398_v44 = vpop.xlane.xlu1 %3397  ;;  %v4280_v12 = vpack.c.bf16 %v4264_v28, %v4262_v37  ;;  %v11298_v28 = vld [vmem:[#allocation2_spill] sm:$0xff] }
 0x656   : > { %v3457_v16 = vmul.f32 0.00390625, %v3395_v41  ;;  %v3458_v2 = vmul.f32 0.00390625, %v3398_v44 }
 0x657   : > { %4359 = vmatprep.subr.bf16.mxu1 %v4280_v12 }
 0x658   : > { %v3490_v33 = vadd.f32 1e-05, %v3457_v16  ;;  %v3491_v34 = vadd.f32 1e-05, %v3458_v2  ;;  %4360 = vmatpush1.bf16.msra.mxu1 %v4279_v18  ;;  %v11300_v2 = vld [vmem:[#allocation15_spill] sm:$0xff] }
 0x659   : > { %v3401_v5 = vpop.xlane.xlu0 %3400  ;;  %4466 = vmatprep.subr.bf16.mxu1 %v11292_v45  ;;  %v11302_v45 = vld [vmem:[#allocation38_spill] sm:$0xff] }
 0x65a   : > { %6380 = vrsqrt.f32 %v3490_v33  ;;  %v3459_v59 = vmul.f32 0.00390625, %v3401_v5  ;;  %v3404_v22 = vpop.xlane.xlu1 %3403 }
 0x65b   : > { %6382 = vrsqrt.f32 %v3491_v34  ;;  %v3460_v42 = vmul.f32 0.00390625, %v3404_v22  ;;  %4378 = vmatmul.mubr.bf16.vlgmr.msra.gmra.mrb[96].mxu1 %v6216_v35 }
 0x65c   : > { %v3492_v55 = vadd.f32 1e-05, %v3459_v59  ;;  %4467 = vmatpush1.bf16.msra.mxu1 %v11293_v62  ;;  %4387 = vmatprep.mubr.bf16.mxu1 %v11215_v52  ;;  %v11301_v59 = vld [vmem:[#allocation18_spill] sm:$0xff] }
 0x65d   : > { %v3493_v26 = vadd.f32 1e-05, %v3460_v42  ;;  %v3407_v7 = vpop.xlane.xlu0 %3406  ;;  %4468 = vmatprep.subr.bf16.mxu1 %v11294_v0  ;;  %v11303_v42 = vld [vmem:[#allocation33_spill] sm:$0xff] }
 0x65e   : > { %6384 = vrsqrt.f32 %v3492_v55  ;;  %v3461_v47 = vmul.f32 0.00390625, %v3407_v7  ;;  %v3410_v36 = vpop.xlane.xlu1 %3409  ;;  %v11304_v55 = vpack.c.bf16 %v11302_v45, %v11303_v42  ;;  %v11305_v0 = vld [vmem:[#allocation5_spill] sm:$0xff] }
 0x65f   : > { %6386 = vrsqrt.f32 %v3493_v26  ;;  %v3462_v61 = vmul.f32 0.00390625, %v3410_v36 }
 0x660   : > { %v3494_v57 = vadd.f32 1e-05, %v3461_v47  ;;  %4469 = vmatpush1.bf16.msra.mxu1 %v11295_v17 }
 0x661   : > { %v3495_v63 = vadd.f32 1e-05, %v3462_v61  ;;  %v3413_v51 = vpop.xlane.xlu0 %3412  ;;  %4470 = vmatprep.subr.bf16.mxu1 %v11296_v25  ;;  %v11307_v25 = vld [vmem:[#allocation10_spill] sm:$0xff] }
 0x662   : > { %6388 = vrsqrt.f32 %v3494_v57  ;;  %v3463_v49 = vmul.f32 0.00390625, %v3413_v51  ;;  %v3416_v53 = vpop.xlane.xlu1 %3415  ;;  %v11306_v51 = vld [vmem:[#allocation9_spill] sm:$0xff] }
 0x663   : > { %6390 = vrsqrt.f32 %v3495_v63  ;;  %v3464_v9 = vmul.f32 0.00390625, %v3416_v53  ;;  %4388 = vmatmul.mubr.bf16.gmra.mrb[100].mxu1 %v6217_v14 }
 0x664   : > { %v6381_v27 = vpop.eup %6380  ;;  %v3496_v29 = vadd.f32 1e-05, %v3463_v49  ;;  %4471 = vmatpush1.bf16.msra.mxu1 %v11297_v46  ;;  %4397 = vmatprep.mubr.bf16.mxu1 %v11215_v52 }
 0x665   : > { %v6383_v15 = vpop.eup %6382  ;;  %v3570_v54 = vmul.f32 %v6381_v27, %v9417_v8  ;;  %v3497_v3 = vadd.f32 1e-05, %v3464_v9  ;;  %v3419_v31 = vpop.xlane.xlu0 %3418  ;;  %v3571_v37 = vmul.f32 %v6381_v27, %v9420_v50  ;;  %v11299_v8 = vpack.c.bf16 %v9683_v38, %v9677_v39  ;;  %v6218_v39 = vld [vmem:[%s10804_s7 + $0x10] sm:$0xff]  }
 0x666   : > { %v3572_v56 = vmul.f32 %v6383_v15, %v9429_v48  ;;  %6392 = vrsqrt.f32 %v3496_v29  ;;  %v3465_v4 = vmul.f32 0.00390625, %v3419_v31  ;;  %v3422_v21 = vpop.xlane.xlu1 %3421  ;;  %v3573_v41 = vmul.f32 %v6383_v15, %v11298_v28  ;;  %v4421_v15 = vld [vmem:[%s6695_s15 + $0x18] sm:$0xff] }
 0x667   : > { %6394 = vrsqrt.f32 %v3497_v3  ;;  %4472 = vmatprep.subr.bf16.mxu1 %v11299_v8  ;;  %v3466_v18 = vmul.f32 0.00390625, %v3422_v21  ;;  %v3654_v50 = vmul.f32 %v9172_v13, %v3571_v37  ;;  %v3653_v48 = vmul.f32 %v9175_v20, %v3570_v54  ;;  %v11308_v3 = vld [vmem:[#allocation8_spill] sm:$0xff] }
 0x668   : > { %v6385_v16 = vpop.eup %6384  ;;  %v3498_v44 = vadd.f32 1e-05, %v3465_v4  ;;  %v3656_v24 = vmul.f32 %v9172_v13, %v3573_v41  ;;  %v3655_v40 = vmul.f32 %v9175_v20, %v3572_v56  ;;  %4473 = vmatpush1.bf16.msra.mxu1 %v11304_v55 }
 0x669   : > { %v6387_v12 = vpop.eup %6386  ;;  %v3574_v33 = vmul.f32 %v6385_v16, %v11300_v2  ;;  %v3499_v34 = vadd.f32 1e-05, %v3466_v18  ;;  %v3425_v38 = vpop.xlane.xlu0 %3424  ;;  %v9843_v35 = vadd.f32 %v9180_v1, %v3654_v50  ;;  %v9846_v5 = vadd.f32 %v9183_v43, %v3653_v48  ;;  %v11309_v48 = vld [vmem:[#allocation7_spill] sm:$0xff]  ;;  %v6219_v2 = vld [vmem:[%s10804_s7 + $0x18] sm:$0xff]  }
 0x66a   : > { %v3576_v22 = vmul.f32 %v6387_v12, %v11301_v59  ;;  %6396 = vrsqrt.f32 %v3498_v44  ;;  %v3467_v26 = vmul.f32 0.00390625, %v3425_v38  ;;  %v3428_v7 = vpop.xlane.xlu1 %3427  ;;  %v9853_v62 = vadd.f32 %v9180_v1, %v3656_v24  ;;  %v11310_v24 = vld [vmem:[#allocation14_spill] sm:$0xff]  ;;  %v11312_v59 = vld [vmem:[#allocation12_spill] sm:$0xff] }
 0x66b   : > { %6398 = vrsqrt.f32 %v3499_v34  ;;  %v3468_v47 = vmul.f32 0.00390625, %v3428_v7  ;;  %v9856_v36 = vadd.f32 %v9183_v43, %v3655_v40  ;;  %v3575_v61 = vmul.f32 %v6385_v16, %v11305_v0  ;;  %4398 = vmatmul.mubr.bf16.gmra.mrb[104].mxu1 %v6218_v39  ;;  %v11311_v39 = vld [vmem:[#allocation13_spill] sm:$0xff] }
 0x66c   : > { %v6389_v57 = vpop.eup %6388  ;;  %v3500_v63 = vadd.f32 1e-05, %v3467_v26  ;;  %v3577_v17 = vmul.f32 %v6387_v12, %v11306_v51  ;;  %v3657_v49 = vmul.f32 %v9175_v20, %v3574_v33  ;;  %4407 = vmatprep.mubr.bf16.mxu1 %v11215_v52  ;;  %v3659_v28 = vmul.f32 %v9175_v20, %v3576_v22 }
 0x66d   : > { %v6391_v53 = vpop.eup %6390  ;;  %v3578_v9 = vmul.f32 %v6389_v57, %v11307_v25  ;;  %v3501_v27 = vadd.f32 1e-05, %v3468_v47  ;;  %v3431_v29 = vpop.xlane.xlu0 %3430  ;;  %v3658_v54 = vmul.f32 %v9172_v13, %v3575_v61  ;;  %v3579_v16 = vmul.f32 %v6389_v57, %v11309_v48 }
 0x66e   : > { %v3580_v31 = vmul.f32 %v6391_v53, %v11308_v3  ;;  %6400 = vrsqrt.f32 %v3500_v63  ;;  %v3469_v37 = vmul.f32 0.00390625, %v3431_v29  ;;  %v3434_v56 = vpop.xlane.xlu1 %3433  ;;  %v3660_v46 = vmul.f32 %v9172_v13, %v3577_v17  ;;  %v11314_v29 = vld [vmem:[#allocation11_spill] sm:$0xff]  ;;  %v11315_v3 = vld [vmem:[#allocation17_spill] sm:$0xff] }
 0x66f   : > { %6402 = vrsqrt.f32 %v3501_v27  ;;  %v3470_v4 = vmul.f32 0.00390625, %v3434_v56  ;;  %v9871_v21 = vadd.f32 %v9180_v1, %v3658_v54  ;;  %v9878_v50 = vadd.f32 %v9183_v43, %v3657_v49  ;;  %v11313_v49 = vld [vmem:[#allocation20_spill] sm:$0xff] }
 0x670   : > { %v6393_v41 = vpop.eup %6392  ;;  %v3502_v8 = vadd.f32 1e-05, %v3469_v37  ;;  %v9875_v18 = vadd.f32 %v9180_v1, %v3660_v46  ;;  %v9886_v34 = vadd.f32 %v9183_v43, %v3659_v28  ;;  %v3581_v38 = vmul.f32 %v6391_v53, %v11311_v39  ;;  %v11316_v46 = vld [vmem:[#allocation19_spill] sm:$0xff] }
 0x671   : > { %v6395_v44 = vpop.eup %6394  ;;  %v3582_v40 = vmul.f32 %v6393_v41, %v11310_v24  ;;  %v3503_v12 = vadd.f32 1e-05, %v3470_v4  ;;  %v3437_v33 = vpop.xlane.xlu0 %3436  ;;  %v3662_v47 = vmul.f32 %v9172_v13, %v3579_v16  ;;  %v3661_v63 = vmul.f32 %v9175_v20, %v3578_v9  ;;  %v11317_v24 = vld [vmem:[#allocation16_spill] sm:$0xff] }
 0x672   : > { %v3584_v22 = vmul.f32 %v6395_v44, %v11312_v59  ;;  %6404 = vrsqrt.f32 %v3502_v8  ;;  %v3471_v45 = vmul.f32 0.00390625, %v3437_v33  ;;  %v3440_v42 = vpop.xlane.xlu1 %3439  ;;  %v3664_v57 = vmul.f32 %v9172_v13, %v3581_v38  ;;  %v11318_v33 = vld [vmem:[#allocation21_spill] sm:$0xff]  ;;  %v4420_v8 = vld [vmem:[%s6695_s15 + $0x10] sm:$0xff] }
 0x673   : > { %6406 = vrsqrt.f32 %v3503_v12  ;;  %v3472_v26 = vmul.f32 0.00390625, %v3440_v42  ;;  %v3663_v51 = vmul.f32 %v9175_v20, %v3580_v31  ;;  %4408 = vmatmul.mubr.bf16.gmra.mrb[108].mxu1 %v6219_v2  ;;  %v9900_v27 = vadd.f32 %v9180_v1, %v3662_v47 }
 0x674   : > { %v6397_v0 = vpop.eup %6396  ;;  %v3504_v61 = vadd.f32 1e-05, %v3471_v45  ;;  %v3583_v54 = vmul.f32 %v6393_v41, %v11314_v29  ;;  %4498 = vmatprep.mubr.bf16.mxu1 %v11215_v52  ;;  %v9906_v56 = vadd.f32 %v9180_v1, %v3664_v57  ;;  %v9909_v9 = vadd.f32 %v9183_v43, %v3661_v63  ;;  %v11319_v45 = vld [vmem:[#allocation23_spill] sm:$0xff]  ;;  %v11321_v29 = vld [vmem:[#allocation22_spill] sm:$0xff] }
 0x675   : > { %v6399_v17 = vpop.eup %6398  ;;  %v3586_v53 = vmul.f32 %v6397_v0, %v11313_v49  ;;  %v3505_v25 = vadd.f32 1e-05, %v3472_v26  ;;  %v9912_v31 = vadd.f32 %v9183_v43, %v3663_v51  ;;  %v3585_v4 = vmul.f32 %v6395_v44, %v11316_v46 }
 0x676   : > { %v3588_v37 = vmul.f32 %v6399_v17, %v11315_v3  ;;  %6408 = vrsqrt.f32 %v3504_v61  ;;  %v3666_v28 = vmul.f32 %v9172_v13, %v3583_v54  ;;  %v3665_v48 = vmul.f32 %v9175_v20, %v3582_v40  ;;  %v11322_v3 = vld [vmem:[#allocation28_spill] sm:$0xff] }
 0x677   : > { %6410 = vrsqrt.f32 %v3505_v25  ;;  %v3667_v16 = vmul.f32 %v9175_v20, %v3584_v22  ;;  %v3587_v12 = vmul.f32 %v6397_v0, %v11317_v24  ;;  %v3668_v44 = vmul.f32 %v9172_v13, %v3585_v4  ;;  %v11320_v22 = vld [vmem:[#allocation24_spill] sm:$0xff]  ;;  %v11323_v4 = vld [vmem:[#allocation26_spill] sm:$0xff] }
 0x678   : > { %v6401_v41 = vpop.eup %6400  ;;  %v9926_v59 = vadd.f32 %v9180_v1, %v3666_v28  ;;  %v9930_v26 = vadd.f32 %v9183_v43, %v3665_v48  ;;  %v3589_v47 = vmul.f32 %v6399_v17, %v11320_v22  ;;  %v3669_v57 = vmul.f32 %v9175_v20, %v3586_v53  ;;  %v9951_v48 = vld [vmem:[%s10803_s6] sm:$0xff]  }
 0x679   : > { %v6403_v2 = vpop.eup %6402  ;;  %v3590_v39 = vmul.f32 %v6401_v41, %v11318_v33  ;;  %v9933_v40 = vadd.f32 %v9183_v43, %v3667_v16  ;;  %v9937_v0 = vadd.f32 %v9180_v1, %v3668_v44  ;;  %v3670_v61 = vmul.f32 %v9172_v13, %v3587_v12  ;;  %v11324_v16 = vld [vmem:[#allocation25_spill] sm:$0xff] }
 0x67a   : > { %v3592_v42 = vmul.f32 %v6403_v2, %v11319_v45  ;;  %v3671_v63 = vmul.f32 %v9175_v20, %v3588_v37  ;;  %v3672_v25 = vmul.f32 %v9172_v13, %v3589_v47  ;;  %v3591_v54 = vmul.f32 %v6401_v41, %v11321_v29  ;;  %v11325_v47 = vld [vmem:[#allocation27_spill] sm:$0xff] }
 0x67b   : > { %v3593_v46 = vmul.f32 %v6403_v2, %v11322_v3  ;;  %5913 = vmatmul.mubr.msk.bf16.vlgmr.msra.gmra.mrb[112].mxu1 %vm3967_vm0, %v9951_v48  ;;  %v9958_v37 = vadd.f32 %v9180_v1, %v3670_v61  ;;  %v9961_v41 = vadd.f32 %v9183_v43, %v3669_v57  ;;  %v3673_v45 = vmul.f32 %v9175_v20, %v3590_v39  ;;  %v11326_v3 = vld [vmem:[#allocation32_spill] sm:$0xff] }
 0x67c   : > { %v6405_v51 = vpop.eup %6404  ;;  %4508 = vmatprep.mubr.bf16.mxu1 %v11215_v52  ;;  %v9966_v12 = vadd.f32 %v9180_v1, %v3672_v25  ;;  %v9969_v2 = vadd.f32 %v9183_v43, %v3671_v63  ;;  %v3674_v33 = vmul.f32 %v9172_v13, %v3591_v54  ;;  %v3675_v22 = vmul.f32 %v9175_v20, %v3592_v42 }
 0x67d   : > { %v6407_v17 = vpop.eup %6406  ;;  %v3594_v28 = vmul.f32 %v6405_v51, %v11323_v4  ;;  %v3676_v44 = vmul.f32 %v9172_v13, %v3593_v46  ;;  %v3595_v61 = vmul.f32 %v6405_v51, %v11325_v47  ;;  %v11327_v46 = vld [vmem:[#allocation30_spill] sm:$0xff]  ;;  %v9989_v42 = vadd.f32 %v9183_v43, %v3673_v45  ;;  %v11330_v47 = vld [vmem:[#allocation36_spill] sm:$0xff] }
 0x67e   : > { %v3596_v24 = vmul.f32 %v6407_v17, %v11324_v16  ;;  %v9981_v63 = vadd.f32 %v9180_v1, %v3674_v33  ;;  %v3597_v54 = vmul.f32 %v6407_v17, %v11326_v3  ;;  %v9992_v51 = vadd.f32 %v9183_v43, %v3675_v22  ;;  %v10017_v3 = vld [vmem:[%s10803_s6 + $0x8] sm:$0xff]  }
 0x67f   : > { %v9986_v39 = vadd.f32 %v9180_v1, %v3676_v44  ;;  %11328 = vst [vmem:[#allocation39_spill] sm:$0xff] %v9989_v42  ;;  %v3678_v25 = vmul.f32 %v9172_v13, %v3595_v61  ;;  %v3677_v17 = vmul.f32 %v9175_v20, %v3594_v28  ;;  %v11335_v28 = vld [vmem:[#allocation35_spill] sm:$0xff]  ;;  %11336 = vst [vmem:[#allocation33_spill] sm:$0xff] %v10017_v3  ;;  %v10102_v44 = vpop.permute.xlu1 %4288 }
 0x680   : > { %v6409_v57 = vpop.eup %6408  ;;  %11329 = vst [vmem:[#allocation2_spill] sm:$0xff] %v9992_v51  ;;  %v3680_v33 = vmul.f32 %v9172_v13, %v3597_v54  ;;  %v3679_v45 = vmul.f32 %v9175_v20, %v3596_v24  ;;  %11349 = vst [vmem:[#allocation16_spill] sm:$0xff] %v10102_v44 }
 0x681   : > { %v6411_v4 = vpop.eup %6410  ;;  %v3598_v16 = vmul.f32 %v6409_v57, %v11327_v46  ;;  %v11331_v46 = vld [vmem:[#allocation29_spill] sm:$0xff]  ;;  %v10005_v22 = vadd.f32 %v9180_v1, %v3678_v25  ;;  %v10011_v61 = vadd.f32 %v9183_v43, %v3677_v17 }
 0x682   : > { %v3600_v29 = vmul.f32 %v6411_v4, %v11330_v47  ;;  %v3599_v49 = vmul.f32 %v6409_v57, %v11331_v46  ;;  %v10008_v47 = vadd.f32 %v9180_v1, %v3680_v33  ;;  %v3601_v54 = vmul.f32 %v6411_v4, %v11335_v28  ;;  %v4419_v4 = vld [vmem:[%s6695_s15 + $0x8] sm:$0xff] }
 0x683   : > { %11332 = vst [vmem:[#allocation15_spill] sm:$0xff] %v10005_v22  ;;  %11334 = vst [vmem:[#allocation38_spill] sm:$0xff] %v10011_v61  ;;  %5914 = vmatmul.mubr.msk.bf16.gmra.mrb[116].mxu1 %vm3967_vm0, %v10017_v3  ;;  %v10022_v24 = vadd.f32 %v9183_v43, %v3679_v45  ;;  %v3681_v25 = vmul.f32 %v9175_v20, %v3598_v16  ;;  %v10052_v16 = vld [vmem:[%s10803_s6 + $0x10] sm:$0xff]  }
 0x684   : > { %11333 = vst [vmem:[#allocation18_spill] sm:$0xff] %v10008_v47  ;;  %v3682_v57 = vmul.f32 %v9172_v13, %v3599_v49  ;;  %v3683_v33 = vmul.f32 %v9175_v20, %v3600_v29  ;;  %4518 = vmatprep.mubr.bf16.mxu1 %v11215_v52  ;;  %v3684_v17 = vmul.f32 %v9172_v13, %v3601_v54  ;;  %11342 = vst [vmem:[#allocation14_spill] sm:$0xff] %v10052_v16  ;;  %v10076_v54 = vld [vmem:[%s10803_s6 + $0x28] sm:$0xff]   ;;  %v4418_v29 = vld [vmem:[%s6695_s15] sm:$0xff] }
 0x685   : > { %11337 = vst [vmem:[#allocation5_spill] sm:$0xff] %v10022_v24  ;;  %v10037_v45 = vadd.f32 %v9183_v43, %v3681_v25  ;;  %11345 = vst [vmem:[#allocation20_spill] sm:$0xff] %v10076_v54  ;;  %v10092_v25 = vld [vmem:[%s10803_s6 + $0x38] sm:$0xff]  }
 0x686   : > { %v10034_v28 = vadd.f32 %v9180_v1, %v3682_v57  ;;  %v10040_v49 = vadd.f32 %v9183_v43, %v3683_v33  ;;  %v10043_v20 = vadd.f32 %v9180_v1, %v3684_v17  ;;  %v10060_v1 = vld [vmem:[%s10803_s6 + $0x18] sm:$0xff]   ;;  %v10068_v43 = vld [vmem:[%s10803_s6 + $0x20] sm:$0xff]   ;;  %v10084_v57 = vld [vmem:[%s10803_s6 + $0x30] sm:$0xff]   ;;  %11347 = vst [vmem:[#allocation17_spill] sm:$0xff] %v10092_v25  ;;  %v10097_v33 = vpop.permute.xlu0 %4283 }
 0x687   : > { %11339 = vst [vmem:[#allocation10_spill] sm:$0xff] %v10037_v45  ;;  %11343 = vst [vmem:[#allocation13_spill] sm:$0xff] %v10060_v1 }
 0x688   : > { %11338 = vst [vmem:[#allocation9_spill] sm:$0xff] %v10034_v28  ;;  %11340 = vst [vmem:[#allocation8_spill] sm:$0xff] %v10040_v49 }
 0x689   : > { %11341 = vst [vmem:[#allocation7_spill] sm:$0xff] %v10043_v20  ;;  %11344 = vst [vmem:[#allocation12_spill] sm:$0xff] %v10068_v43 }
 0x68a   : > { %11346 = vst [vmem:[#allocation11_spill] sm:$0xff] %v10084_v57  ;;  %11348 = vst [vmem:[#allocation19_spill] sm:$0xff] %v10097_v33 }
 0x68b   : > { %5915 = vmatmul.mubr.msk.bf16.gmra.mrb[120].mxu1 %vm3967_vm0, %v10052_v16 }
 0x68c   : > { %4528 = vmatprep.mubr.bf16.mxu1 %v11215_v52 }
 0x693   : > { %5916 = vmatmul.mubr.msk.bf16.gmra.mrb[124].mxu1 %vm3967_vm0, %v10060_v1  ;;  %v11356_v1 = vld [vmem:[#allocation34_spill] sm:$0xff] }
 0x694   : > { %4538 = vmatprep.mubr.bf16.mxu1 %v11215_v52 }
 0x69b   : > { %5917 = vmatmul.mubr.msk.bf16.gmra.mrb[128].mxu1 %vm3967_vm0, %v10068_v43 }
 0x69c   : > { %4548 = vmatprep.mubr.bf16.mxu1 %v11215_v52 }
 0x6a3   : > { %5918 = vmatmul.mubr.msk.bf16.gmra.mrb[132].mxu1 %vm3967_vm0, %v10076_v54 }
 0x6a4   : > { %4558 = vmatprep.mubr.bf16.mxu1 %v11215_v52 }
 0x6ab   : > { %5919 = vmatmul.mubr.msk.bf16.gmra.mrb[136].mxu1 %vm3967_vm0, %v10084_v57 }
 0x6ac   : > { %4568 = vmatprep.mubr.bf16.mxu1 %v11215_v52 }
 0x6b3   : > { %5920 = vmatmul.mubr.msk.bf16.gmra.mrb[140].mxu1 %vm3967_vm0, %v10092_v25 }
 0x6b4   : > { %4787 = vmatprep.mubr.bf16.mxu1 %v11215_v52 }
 0x72e   : > { %v4379_v17 = vpop.f32.mrb[96].mxu1 }
 0x72f   : > { %v4380_v13 = vadd.f32 %v4379_v17, %v10097_v33  ;;  %v4381_v46 = vpop.f32.mrb[97].mxu1 }
 0x730   : > { %v4382_v53 = vadd.f32 %v4381_v46, %v10097_v33  ;;  %v4383_v38 = vpop.f32.mrb[98].mxu1  ;;  %v10119_v46 = vpop.permute.xlu1 %4293 }
 0x731   : > { %v4434_v17 = vadd.f32 %v4418_v29, %v4380_v13  ;;  %v4384_v7 = vadd.f32 %v4383_v38, %v10102_v44  ;;  %v4385_v55 = vpop.f32.mrb[99].mxu1  ;;  %11350 = vst [vmem:[#allocation21_spill] sm:$0xff] %v10119_v46  ;;  %v4422_v13 = vld [vmem:[%s6695_s15 + $0x20] sm:$0xff] }
 0x732   : > { %v4435_v14 = vadd.f32 %v4419_v4, %v4382_v53  ;;  %v4386_v25 = vadd.f32 %v4385_v55, %v10102_v44  ;;  %v4423_v53 = vld [vmem:[%s6695_s15 + $0x28] sm:$0xff]  ;;  %v10125_v55 = vpop.permute.xlu0 %4298 }
 0x733   : > { %4450 = vst [vmem:[%s10109_s27] sm:$0xff] %v4434_v17  ;;  %v4436_v57 = vadd.f32 %v4420_v8, %v4384_v7  ;;  %11351 = vst [vmem:[#allocation23_spill] sm:$0xff] %v10125_v55  ;;  %v4424_v7 = vld [vmem:[%s6695_s15 + $0x30] sm:$0xff] }
 0x734   : > { %4451 = vst [vmem:[%s10109_s27 + $0x8] sm:$0xff] %v4435_v14  ;;  %v4437_v54 = vadd.f32 %v4421_v15, %v4386_v25 }
 0x735   : > { %4452 = vst [vmem:[%s10109_s27 + $0x10] sm:$0xff] %v4436_v57  ;;  %v4425_v57 = vld [vmem:[%s6695_s15 + $0x38] sm:$0xff] }
 0x736   : > { %4453 = vst [vmem:[%s10109_s27 + $0x18] sm:$0xff] %v4437_v54  ;;  %v4389_v29 = vpop.f32.mrb[100].mxu1 }
 0x737   : > { %v4390_v38 = vadd.f32 %v4389_v29, %v10119_v46  ;;  %v4391_v33 = vpop.f32.mrb[101].mxu1 }
 0x738   : > { %v4392_v14 = vadd.f32 %v4391_v33, %v10119_v46  ;;  %v4393_v15 = vpop.f32.mrb[102].mxu1  ;;  %v10135_v33 = vpop.permute.xlu1 %4303 }
 0x739   : > { %v4438_v8 = vadd.f32 %v4422_v13, %v4390_v38  ;;  %v4394_v4 = vadd.f32 %v4393_v15, %v10125_v55  ;;  %v4395_v54 = vpop.f32.mrb[103].mxu1  ;;  %11352 = vst [vmem:[#allocation24_spill] sm:$0xff] %v10135_v33  ;;  %v4426_v38 = vld [vmem:[%s6695_s15 + $0x40] sm:$0xff] }
 0x73a   : > { %v4439_v25 = vadd.f32 %v4423_v53, %v4392_v14  ;;  %v4396_v17 = vadd.f32 %v4395_v54, %v10125_v55  ;;  %v4427_v53 = vld [vmem:[%s6695_s15 + $0x48] sm:$0xff]  ;;  %v10141_v14 = vpop.permute.xlu0 %4308 }
 0x73b   : > { %4454 = vst [vmem:[%s10109_s27 + $0x20] sm:$0xff] %v4438_v8  ;;  %v4440_v29 = vadd.f32 %v4424_v7, %v4394_v4  ;;  %11353 = vst [vmem:[#allocation22_spill] sm:$0xff] %v10141_v14  ;;  %v4428_v4 = vld [vmem:[%s6695_s15 + $0x50] sm:$0xff] }
 0x73c   : > { %4455 = vst [vmem:[%s10109_s27 + $0x28] sm:$0xff] %v4439_v25  ;;  %v4441_v44 = vadd.f32 %v4425_v57, %v4396_v17  ;;  %v4429_v25 = vld [vmem:[%s6695_s15 + $0x58] sm:$0xff] }
 0x73d   : > { %4456 = vst [vmem:[%s10109_s27 + $0x30] sm:$0xff] %v4440_v29 }
 0x73e   : > { %4457 = vst [vmem:[%s10109_s27 + $0x38] sm:$0xff] %v4441_v44  ;;  %v4399_v13 = vpop.f32.mrb[104].mxu1 }
 0x73f   : > { %v4400_v15 = vadd.f32 %v4399_v13, %v10135_v33  ;;  %v4401_v46 = vpop.f32.mrb[105].mxu1 }
 0x740   : > { %v4402_v7 = vadd.f32 %v4401_v46, %v10135_v33  ;;  %v4403_v8 = vpop.f32.mrb[106].mxu1  ;;  %v10151_v46 = vpop.permute.xlu1 %4313 }
 0x741   : > { %v4442_v54 = vadd.f32 %v4426_v38, %v4400_v15  ;;  %v4404_v44 = vadd.f32 %v4403_v8, %v10141_v14  ;;  %v4405_v57 = vpop.f32.mrb[107].mxu1  ;;  %11354 = vst [vmem:[#allocation28_spill] sm:$0xff] %v10151_v46  ;;  %v4430_v15 = vld [vmem:[%s6695_s15 + $0x60] sm:$0xff] }
 0x742   : > { %v4443_v17 = vadd.f32 %v4427_v53, %v4402_v7  ;;  %v4406_v29 = vadd.f32 %v4405_v57, %v10141_v14  ;;  %v4431_v53 = vld [vmem:[%s6695_s15 + $0x68] sm:$0xff]  ;;  %v10157_v7 = vpop.permute.xlu0 %4318 }
 0x743   : > { %4458 = vst [vmem:[%s10109_s27 + $0x40] sm:$0xff] %v4442_v54  ;;  %v4444_v13 = vadd.f32 %v4428_v4, %v4404_v44  ;;  %11355 = vst [vmem:[#allocation26_spill] sm:$0xff] %v10157_v7  ;;  %v4432_v44 = vld [vmem:[%s6695_s15 + $0x70] sm:$0xff] }
 0x744   : > { %4459 = vst [vmem:[%s10109_s27 + $0x48] sm:$0xff] %v4443_v17  ;;  %v4445_v55 = vadd.f32 %v4429_v25, %v4406_v29  ;;  %v4433_v17 = vld [vmem:[%s6695_s15 + $0x78] sm:$0xff] }
 0x745   : > { %4460 = vst [vmem:[%s10109_s27 + $0x50] sm:$0xff] %v4444_v13 }
 0x746   : > { %4461 = vst [vmem:[%s10109_s27 + $0x58] sm:$0xff] %v4445_v55  ;;  %v4409_v38 = vpop.f32.mrb[108].mxu1 }
 0x747   : > { %v4410_v8 = vadd.f32 %v4409_v38, %v10151_v46  ;;  %v4411_v33 = vpop.f32.mrb[109].mxu1 }
 0x748   : > { %v4412_v4 = vadd.f32 %v4411_v33, %v10151_v46  ;;  %v4413_v54 = vpop.f32.mrb[110].mxu1 }
 0x749   : > { %v4446_v57 = vadd.f32 %v4430_v15, %v4410_v8  ;;  %v4414_v25 = vadd.f32 %v4413_v54, %v10157_v7  ;;  %v4415_v55 = vpop.f32.mrb[111].mxu1  ;;  %v11357_v54 = vld [vmem:[#allocation4_spill] sm:$0xff] }
 0x74a   : > { %v4447_v29 = vadd.f32 %v4431_v53, %v4412_v4  ;;  %v4416_v13 = vadd.f32 %v4415_v55, %v10157_v7 }
 0x74b   : > { %4462 = vst [vmem:[%s10109_s27 + $0x60] sm:$0xff] %v4446_v57  ;;  %v4448_v38 = vadd.f32 %v4432_v44, %v4414_v25  ;;  %v11358_v25 = vld [vmem:[#allocation3_spill] sm:$0xff] }
 0x74c   : > { %4463 = vst [vmem:[%s10109_s27 + $0x68] sm:$0xff] %v4447_v29  ;;  %v4449_v14 = vadd.f32 %v4433_v17, %v4416_v13 }
 0x74d   : > { %4464 = vst [vmem:[%s10109_s27 + $0x70] sm:$0xff] %v4448_v38  ;;  %v11359_v38 = vld [vmem:[#allocation6_spill] sm:$0xff] }
 0x74e   : > { %4465 = vst [vmem:[%s10109_s27 + $0x78] sm:$0xff] %v4449_v14  ;;  %v4500_v43 = vpop.f32.mrb[112].mxu1 }
 0x74f   : > { %v4501_v16 = vadd.f32 %v4500_v43, %v11356_v1  ;;  %v4502_v33 = vpop.f32.mrb[113].mxu1 }
 0x750   : > { %v4503_v46 = vadd.f32 %v4502_v33, %v11356_v1  ;;  %v4504_v15 = vpop.f32.mrb[114].mxu1 }
 0x751   : > { %v4611_v8 = vmul.f32 0.70710677, %v4501_v16  ;;  %v4505_v45 = vadd.f32 %v4504_v15, %v11357_v54  ;;  %v4506_v49 = vpop.f32.mrb[115].mxu1  ;;  %v4579_v61 = vmul.f32 0.5, %v4501_v16 }
 0x752   : > { %v4612_v53 = vmul.f32 0.70710677, %v4503_v46  ;;  %v4507_v4 = vadd.f32 %v4506_v49, %v11357_v54 }
 0x753   : > { %6412 = verf.f32 %v4611_v8  ;;  %v4613_v44 = vmul.f32 0.70710677, %v4505_v45  ;;  %v4581_v24 = vmul.f32 0.5, %v4505_v45 }
 0x754   : > { %6414 = verf.f32 %v4612_v53  ;;  %v4614_v57 = vmul.f32 0.70710677, %v4507_v4 }
 0x755   : > { %6416 = verf.f32 %v4613_v44 }
 0x756   : > { %6418 = verf.f32 %v4614_v57  ;;  %v4510_v14 = vpop.f32.mrb[116].mxu1 }
 0x757   : > { %v4511_v43 = vadd.f32 %v4510_v14, %v11358_v25  ;;  %v4512_v55 = vpop.f32.mrb[117].mxu1 }
 0x758   : > { %v4513_v17 = vadd.f32 %v4512_v55, %v11358_v25  ;;  %v4514_v29 = vpop.f32.mrb[118].mxu1  ;;  %v11360_v25 = vld [vmem:[#allocation31_spill] sm:$0xff] }
 0x759   : > { %v4615_v13 = vmul.f32 0.70710677, %v4511_v43  ;;  %v4515_v33 = vadd.f32 %v4514_v29, %v11359_v38  ;;  %v4516_v15 = vpop.f32.mrb[119].mxu1 }
 0x75a   : > { %v4616_v1 = vmul.f32 0.70710677, %v4513_v17  ;;  %v4517_v49 = vadd.f32 %v4516_v15, %v11359_v38  ;;  %v4580_v38 = vmul.f32 0.5, %v4503_v46 }
 0x75b   : > { %6420 = verf.f32 %v4615_v13  ;;  %v4617_v8 = vmul.f32 0.70710677, %v4515_v33 }
 0x75c   : > { %6422 = verf.f32 %v4616_v1  ;;  %v4618_v53 = vmul.f32 0.70710677, %v4517_v49 }
 0x75d   : > { %v6413_v44 = vpop.eup %6412  ;;  %6424 = verf.f32 %v4617_v8  ;;  %v4582_v8 = vmul.f32 0.5, %v4507_v4 }
 0x75e   : > { %v6415_v57 = vpop.eup %6414  ;;  %v4675_v54 = vadd.f32 1.0, %v6413_v44  ;;  %6426 = verf.f32 %v4618_v53  ;;  %v4520_v14 = vpop.f32.mrb[120].mxu1 }
 0x75f   : > { %v6417_v7 = vpop.eup %6416  ;;  %v4676_v55 = vadd.f32 1.0, %v6415_v57  ;;  %v10177_v28 = vadd.f32 %v4520_v14, %v11360_v25  ;;  %v4522_v29 = vpop.f32.mrb[121].mxu1 }
 0x760   : > { %v6419_v20 = vpop.eup %6418  ;;  %v4677_v15 = vadd.f32 1.0, %v6417_v7  ;;  %v10180_v13 = vadd.f32 %v4522_v29, %v11360_v25  ;;  %v4524_v1 = vpop.f32.mrb[122].mxu1  ;;  %v4707_v22 = vmul.f32 %v4675_v54, %v4579_v61 }
 0x761   : > { %v4678_v3 = vadd.f32 1.0, %v6419_v20  ;;  %v4619_v53 = vmul.f32 0.70710677, %v10177_v28  ;;  %v4526_v44 = vpop.f32.mrb[123].mxu1  ;;  %v4525_v47 = vadd.f32 %v4524_v1, %v9375_v32  ;;  %v4708_v42 = vmul.f32 %v4676_v55, %v4580_v38 }
 0x762   : > { %v4709_v57 = vmul.f32 %v4677_v15, %v4581_v24  ;;  %v4620_v14 = vmul.f32 0.70710677, %v10180_v13  ;;  %v4527_v45 = vadd.f32 %v4526_v44, %v9375_v32  ;;  %v4583_v55 = vmul.f32 0.5, %v4511_v43 }
 0x763   : > { %v4710_v16 = vmul.f32 %v4678_v3, %v4582_v8  ;;  %6428 = verf.f32 %v4619_v53  ;;  %v4621_v29 = vmul.f32 0.70710677, %v4525_v47  ;;  %v4584_v53 = vmul.f32 0.5, %v4513_v17 }
 0x764   : > { %v4739_v7 = vpack.c.bf16 %v4709_v57, %v4707_v22  ;;  %6430 = verf.f32 %v4620_v14  ;;  %v4622_v4 = vmul.f32 0.70710677, %v4527_v45  ;;  %v4585_v22 = vmul.f32 0.5, %v4515_v33 }
 0x765   : > { %v6421_v46 = vpop.eup %6420  ;;  %v4740_v20 = vpack.c.bf16 %v4710_v16, %v4708_v42  ;;  %6432 = verf.f32 %v4621_v29  ;;  %v4586_v44 = vmul.f32 0.5, %v4517_v49 }
 0x766   : > { %v6423_v25 = vpop.eup %6422  ;;  %v4679_v51 = vadd.f32 1.0, %v6421_v46  ;;  %v4530_v61 = vpop.f32.mrb[124].mxu1  ;;  %6434 = verf.f32 %v4622_v4 }
 0x767   : > { %v6425_v24 = vpop.eup %6424  ;;  %v4680_v54 = vadd.f32 1.0, %v6423_v25  ;;  %v10187_v15 = vadd.f32 %v4530_v61, %v9377_v11  ;;  %v4532_v3 = vpop.f32.mrb[125].mxu1  ;;  %4755 = vmatprep.subr.bf16.mxu1 %v4740_v20 }
 0x768   : > { %v6427_v38 = vpop.eup %6426  ;;  %v4681_v1 = vadd.f32 1.0, %v6425_v24  ;;  %v10190_v8 = vadd.f32 %v4532_v3, %v9377_v11  ;;  %v4534_v42 = vpop.f32.mrb[126].mxu1  ;;  %4756 = vmatpush1.bf16.msra.mxu1 %v4739_v7  ;;  %v4711_v16 = vmul.f32 %v4679_v51, %v4583_v55 }
 0x769   : > { %v4682_v57 = vadd.f32 1.0, %v6427_v38  ;;  %v4623_v25 = vmul.f32 0.70710677, %v10187_v15  ;;  %v4536_v14 = vpop.f32.mrb[127].mxu1  ;;  %v4535_v4 = vadd.f32 %v4534_v42, %v9379_v30  ;;  %v4712_v43 = vmul.f32 %v4680_v54, %v4584_v53 }
 0x76a   : > { %v4713_v29 = vmul.f32 %v4681_v1, %v4585_v22  ;;  %v4624_v46 = vmul.f32 0.70710677, %v10190_v8  ;;  %v4537_v20 = vadd.f32 %v4536_v14, %v9379_v30  ;;  %v4587_v1 = vmul.f32 0.5, %v10177_v28 }
 0x76b   : > { %v4714_v33 = vmul.f32 %v4682_v57, %v4586_v44  ;;  %6436 = verf.f32 %v4623_v25  ;;  %v4625_v7 = vmul.f32 0.70710677, %v4535_v4  ;;  %v4588_v25 = vmul.f32 0.5, %v10180_v13 }
 0x76c   : > { %v4741_v61 = vpack.c.bf16 %v4713_v29, %v4711_v16  ;;  %6438 = verf.f32 %v4624_v46  ;;  %v4626_v49 = vmul.f32 0.70710677, %v4537_v20  ;;  %v4589_v14 = vmul.f32 0.5, %v4525_v47 }
 0x76d   : > { %v6429_v17 = vpop.eup %6428  ;;  %v4742_v24 = vpack.c.bf16 %v4714_v33, %v4712_v43  ;;  %6440 = verf.f32 %v4625_v7  ;;  %v4590_v43 = vmul.f32 0.5, %v4527_v45 }
 0x76e   : > { %v6431_v3 = vpop.eup %6430  ;;  %v4540_v38 = vpop.f32.mrb[128].mxu1  ;;  %v4683_v51 = vadd.f32 1.0, %v6429_v17  ;;  %6442 = verf.f32 %v4626_v49 }
 0x76f   : > { %v10197_v55 = vadd.f32 %v4540_v38, %v9383_v23  ;;  %v4542_v22 = vpop.f32.mrb[129].mxu1  ;;  %4757 = vmatprep.subr.bf16.mxu1 %v4742_v24  ;;  %v6433_v54 = vpop.eup %6432  ;;  %v4684_v42 = vadd.f32 1.0, %v6431_v3 }
 0x770   : > { %v10201_v53 = vadd.f32 %v4542_v22, %v9383_v23  ;;  %v4544_v44 = vpop.f32.mrb[130].mxu1  ;;  %4758 = vmatpush1.bf16.msra.mxu1 %v4741_v61  ;;  %v6435_v57 = vpop.eup %6434  ;;  %v4685_v16 = vadd.f32 1.0, %v6433_v54  ;;  %v4715_v17 = vmul.f32 %v4683_v51, %v4587_v1 }
 0x771   : > { %v4627_v29 = vmul.f32 0.70710677, %v10197_v55  ;;  %v4546_v46 = vpop.f32.mrb[131].mxu1  ;;  %v4686_v33 = vadd.f32 1.0, %v6435_v57  ;;  %v10207_v28 = vadd.f32 %v4544_v44, %v9385_v6  ;;  %v4716_v24 = vmul.f32 %v4684_v42, %v4588_v25 }
 0x772   : > { %v4628_v7 = vmul.f32 0.70710677, %v10201_v53  ;;  %v4717_v49 = vmul.f32 %v4685_v16, %v4589_v14  ;;  %v10210_v61 = vadd.f32 %v4546_v46, %v9385_v6  ;;  %v4591_v42 = vmul.f32 0.5, %v10187_v15 }
 0x773   : > { %6444 = verf.f32 %v4627_v29  ;;  %v4718_v13 = vmul.f32 %v4686_v33, %v4590_v43  ;;  %v4629_v47 = vmul.f32 0.70710677, %v10207_v28  ;;  %v4592_v43 = vmul.f32 0.5, %v10190_v8 }
 0x774   : > { %6446 = verf.f32 %v4628_v7  ;;  %v4743_v38 = vpack.c.bf16 %v4717_v49, %v4715_v17  ;;  %v4630_v45 = vmul.f32 0.70710677, %v10210_v61  ;;  %v4593_v33 = vmul.f32 0.5, %v4535_v4 }
 0x775   : > { %v6437_v3 = vpop.eup %6436  ;;  %6448 = verf.f32 %v4629_v47  ;;  %v4744_v44 = vpack.c.bf16 %v4718_v13, %v4716_v24  ;;  %v4594_v24 = vmul.f32 0.5, %v4537_v20 }
 0x776   : > { %v6439_v22 = vpop.eup %6438  ;;  %v4550_v54 = vpop.f32.mrb[132].mxu1  ;;  %v4687_v57 = vadd.f32 1.0, %v6437_v3  ;;  %6450 = verf.f32 %v4630_v45 }
 0x777   : > { %v10215_v51 = vadd.f32 %v4550_v54, %v9387_v60  ;;  %v4552_v1 = vpop.f32.mrb[133].mxu1  ;;  %v6441_v14 = vpop.eup %6440  ;;  %v4688_v25 = vadd.f32 1.0, %v6439_v22  ;;  %4759 = vmatprep.subr.bf16.mxu1 %v4744_v44 }
 0x778   : > { %v10219_v16 = vadd.f32 %v4552_v1, %v9387_v60  ;;  %v4554_v29 = vpop.f32.mrb[134].mxu1  ;;  %v6443_v46 = vpop.eup %6442  ;;  %v4689_v7 = vadd.f32 1.0, %v6441_v14  ;;  %4760 = vmatpush1.bf16.msra.mxu1 %v4743_v38  ;;  %v4719_v3 = vmul.f32 %v4687_v57, %v4591_v42  ;;  %v11361_v57 = vld [vmem:[#allocation41_spill] sm:$0xff]  ;;  %v11362_v60 = vld [vmem:[#allocation42_spill] sm:$0xff] }
 0x779   : > { %v4631_v17 = vmul.f32 0.70710677, %v10215_v51  ;;  %v4556_v49 = vpop.f32.mrb[135].mxu1  ;;  %v4690_v13 = vadd.f32 1.0, %v6443_v46  ;;  %v10225_v15 = vadd.f32 %v4554_v29, %v9389_v19  ;;  %v4720_v8 = vmul.f32 %v4688_v25, %v4592_v43 }
 0x77a   : > { %v4632_v47 = vmul.f32 0.70710677, %v10219_v16  ;;  %v4721_v45 = vmul.f32 %v4689_v7, %v4593_v33  ;;  %v10228_v22 = vadd.f32 %v4556_v49, %v9389_v19  ;;  %v4595_v25 = vmul.f32 0.5, %v10197_v55 }
 0x77b   : > { %6452 = verf.f32 %v4631_v17  ;;  %v4722_v4 = vmul.f32 %v4690_v13, %v4594_v24  ;;  %v4633_v54 = vmul.f32 0.70710677, %v10225_v15  ;;  %v4596_v13 = vmul.f32 0.5, %v10201_v53 }
 0x77c   : > { %6454 = verf.f32 %v4632_v47  ;;  %v4745_v44 = vpack.c.bf16 %v4721_v45, %v4719_v3  ;;  %v4634_v20 = vmul.f32 0.70710677, %v10228_v22  ;;  %v4597_v47 = vmul.f32 0.5, %v10207_v28 }
 0x77d   : > { %v6445_v38 = vpop.eup %6444  ;;  %6456 = verf.f32 %v4633_v54  ;;  %v4746_v29 = vpack.c.bf16 %v4722_v4, %v4720_v8  ;;  %v4598_v4 = vmul.f32 0.5, %v10210_v61 }
 0x77e   : > { %v6447_v1 = vpop.eup %6446  ;;  %v4560_v14 = vpop.f32.mrb[136].mxu1  ;;  %v4691_v46 = vadd.f32 1.0, %v6445_v38  ;;  %6458 = verf.f32 %v4634_v20 }
 0x77f   : > { %v10233_v42 = vadd.f32 %v4560_v14, %v11361_v57  ;;  %v4562_v33 = vpop.f32.mrb[137].mxu1  ;;  %v6449_v7 = vpop.eup %6448  ;;  %v4692_v43 = vadd.f32 1.0, %v6447_v1  ;;  %4761 = vmatprep.subr.bf16.mxu1 %v4746_v29 }
 0x780   : > { %v10237_v17 = vadd.f32 %v4562_v33, %v11361_v57  ;;  %v4564_v49 = vpop.f32.mrb[138].mxu1  ;;  %v6451_v24 = vpop.eup %6450  ;;  %v4693_v3 = vadd.f32 1.0, %v6449_v7  ;;  %4762 = vmatpush1.bf16.msra.mxu1 %v4745_v44  ;;  %v4723_v20 = vmul.f32 %v4691_v46, %v4595_v25 }
 0x781   : > { %v4635_v45 = vmul.f32 0.70710677, %v10233_v42  ;;  %v4566_v8 = vpop.f32.mrb[139].mxu1  ;;  %v4694_v54 = vadd.f32 1.0, %v6451_v24  ;;  %v4565_v38 = vadd.f32 %v4564_v49, %v9393_v58  ;;  %v4724_v53 = vmul.f32 %v4692_v43, %v4596_v13 }
 0x782   : > { %v4636_v55 = vmul.f32 0.70710677, %v10237_v17  ;;  %v4725_v1 = vmul.f32 %v4693_v3, %v4597_v47  ;;  %v4567_v14 = vadd.f32 %v4566_v8, %v9393_v58  ;;  %v4599_v47 = vmul.f32 0.5, %v10215_v51 }
 0x783   : > { %6460 = verf.f32 %v4635_v45  ;;  %v4726_v29 = vmul.f32 %v4694_v54, %v4598_v4  ;;  %v4637_v28 = vmul.f32 0.70710677, %v4565_v38  ;;  %v4600_v8 = vmul.f32 0.5, %v10219_v16 }
 0x784   : > { %6462 = verf.f32 %v4636_v55  ;;  %v4747_v7 = vpack.c.bf16 %v4725_v1, %v4723_v20  ;;  %v4638_v44 = vmul.f32 0.70710677, %v4567_v14  ;;  %v4601_v4 = vmul.f32 0.5, %v10225_v15 }
 0x785   : > { %v6453_v33 = vpop.eup %6452  ;;  %6464 = verf.f32 %v4637_v28  ;;  %v4748_v24 = vpack.c.bf16 %v4726_v29, %v4724_v53  ;;  %v4602_v1 = vmul.f32 0.5, %v10228_v22 }
 0x786   : > { %v6455_v57 = vpop.eup %6454  ;;  %v4570_v61 = vpop.f32.mrb[140].mxu1  ;;  %v4695_v19 = vadd.f32 1.0, %v6453_v33  ;;  %6466 = verf.f32 %v4638_v44 }
 0x787   : > { %v4571_v49 = vadd.f32 %v4570_v61, %v11362_v60  ;;  %v4572_v46 = vpop.f32.mrb[141].mxu1  ;;  %v6457_v25 = vpop.eup %6456  ;;  %v4696_v3 = vadd.f32 1.0, %v6455_v57  ;;  %4763 = vmatprep.subr.bf16.mxu1 %v4748_v24 }
 0x788   : > { %v4573_v43 = vadd.f32 %v4572_v46, %v11362_v60  ;;  %v4574_v13 = vpop.f32.mrb[142].mxu1  ;;  %v6459_v45 = vpop.eup %6458  ;;  %v4697_v54 = vadd.f32 1.0, %v6457_v25  ;;  %4764 = vmatpush1.bf16.msra.mxu1 %v4747_v7  ;;  %v4727_v57 = vmul.f32 %v4695_v19, %v4599_v47  ;;  %v4603_v47 = vmul.f32 0.5, %v10233_v42 }
 0x789   : > { %v4639_v55 = vmul.f32 0.70710677, %v4571_v49  ;;  %v4576_v20 = vpop.f32.mrb[143].mxu1  ;;  %v4698_v53 = vadd.f32 1.0, %v6459_v45  ;;  %v4575_v51 = vadd.f32 %v4574_v13, %v9397_v10  ;;  %v4728_v44 = vmul.f32 %v4696_v3, %v4600_v8 }
 0x78a   : > { %v4640_v29 = vmul.f32 0.70710677, %v4573_v43  ;;  %v4729_v28 = vmul.f32 %v4697_v54, %v4601_v4  ;;  %v4577_v33 = vadd.f32 %v4576_v20, %v9397_v10  ;;  %v4605_v13 = vmul.f32 0.5, %v4565_v38 }
 0x78b   : > { %6468 = verf.f32 %v4639_v55  ;;  %v4730_v61 = vmul.f32 %v4698_v53, %v4602_v1  ;;  %v4641_v16 = vmul.f32 0.70710677, %v4575_v51  ;;  %v4604_v3 = vmul.f32 0.5, %v10237_v17 }
 0x78c   : > { %6470 = verf.f32 %v4640_v29  ;;  %v4749_v24 = vpack.c.bf16 %v4729_v28, %v4727_v57  ;;  %v4642_v46 = vmul.f32 0.70710677, %v4577_v33  ;;  %v4606_v8 = vmul.f32 0.5, %v4567_v14 }
 0x78d   : > { %v6461_v15 = vpop.eup %6460  ;;  %6472 = verf.f32 %v4641_v16  ;;  %v4750_v25 = vpack.c.bf16 %v4730_v61, %v4728_v44  ;;  %v4607_v38 = vmul.f32 0.5, %v4571_v49  ;;  %v4608_v17 = vmul.f32 0.5, %v4573_v43  ;;  %v10262_v49 = vld [vmem:[%s10804_s7] sm:$0xff]  }
 0x78e   : > { %v6463_v7 = vpop.eup %6462  ;;  %v4699_v22 = vadd.f32 1.0, %v6461_v15  ;;  %6474 = verf.f32 %v4642_v46  ;;  %v4609_v46 = vmul.f32 0.5, %v4575_v51  ;;  %v4610_v14 = vmul.f32 0.5, %v4577_v33  ;;  %v6613_v33 = vld [vmem:[%s10804_s7 + $0x8] sm:$0xff]  }
 0x78f   : > { %v6465_v45 = vpop.eup %6464  ;;  %v4700_v60 = vadd.f32 1.0, %v6463_v7  ;;  %4765 = vmatprep.subr.bf16.mxu1 %v4750_v25  ;;  %v11364_v43 = vpack.c.bf16 %v9856_v36, %v9846_v5  ;;  %v11365_v51 = vpack.c.bf16 %v9875_v18, %v9871_v21  ;;  %v11368_v5 = vpack.c.bf16 %v9912_v31, %v9909_v9  ;;  %v11374_v9 = vld [vmem:[#allocation2_spill] sm:$0xff]  ;;  %v11375_v31 = vld [vmem:[#allocation39_spill] sm:$0xff] }
 0x790   : > { %v6467_v19 = vpop.eup %6466  ;;  %v4701_v4 = vadd.f32 1.0, %v6465_v45  ;;  %4766 = vmatpush1.bf16.msra.mxu1 %v4749_v24  ;;  %v4731_v55 = vmul.f32 %v4699_v22, %v4603_v47  ;;  %v11369_v36 = vpack.c.bf16 %v9937_v0, %v9926_v59  ;;  %v11370_v21 = vpack.c.bf16 %v9933_v40, %v9930_v26  ;;  %v11377_v26 = vld [vmem:[#allocation18_spill] sm:$0xff]  ;;  %v11378_v40 = vld [vmem:[#allocation15_spill] sm:$0xff] }
 0x791   : > { %v4702_v54 = vadd.f32 1.0, %v6467_v19  ;;  %v4732_v1 = vmul.f32 %v4700_v60, %v4604_v3  ;;  %v11371_v18 = vpack.c.bf16 %v9966_v12, %v9958_v37  ;;  %v11376_v59 = vpack.c.bf16 %v11374_v9, %v11375_v31  ;;  %v11380_v37 = vld [vmem:[#allocation33_spill] sm:$0xff]  ;;  %v11387_v3 = vld [vmem:[#allocation8_spill] sm:$0xff] }
 0x792   : > { %v4733_v20 = vmul.f32 %v4701_v4, %v4605_v13  ;;  %v11363_v13 = vpack.c.bf16 %v9853_v62, %v9843_v35  ;;  %v11366_v35 = vpack.c.bf16 %v9886_v34, %v9878_v50  ;;  %v11367_v62 = vpack.c.bf16 %v9906_v56, %v9900_v27  ;;  %v6614_v50 = vld [vmem:[%s10804_s7 + $0x10] sm:$0xff]   ;;  %v6615_v34 = vld [vmem:[%s10804_s7 + $0x18] sm:$0xff]   ;;  %v11384_v4 = vld [vmem:[#allocation7_spill] sm:$0xff] }
 0x793   : > { %v4734_v53 = vmul.f32 %v4702_v54, %v4606_v8  ;;  %v11372_v27 = vpack.c.bf16 %v9969_v2, %v9961_v41  ;;  %v11373_v56 = vpack.c.bf16 %v9986_v39, %v9981_v63  ;;  %v11379_v0 = vpack.c.bf16 %v11377_v26, %v11378_v40  ;;  %v11381_v12 = vld [vmem:[#allocation5_spill] sm:$0xff]  ;;  %v11382_v41 = vld [vmem:[#allocation38_spill] sm:$0xff] }
 0x794   : > { %v4751_v57 = vpack.c.bf16 %v4733_v20, %v4731_v55  ;;  %v11383_v2 = vpack.c.bf16 %v11381_v12, %v11382_v41  ;;  %v11385_v63 = vld [vmem:[#allocation9_spill] sm:$0xff]  ;;  %v11388_v8 = vld [vmem:[#allocation10_spill] sm:$0xff]  ;;  %v4837_v41 = vld [vmem:[%s6695_s15 + $0xc8] sm:$0xff] }
 0x795   : > { %v6469_v29 = vpop.eup %6468  ;;  %v4752_v44 = vpack.c.bf16 %v4734_v53, %v4732_v1  ;;  %v11386_v39 = vpack.c.bf16 %v11384_v4, %v11385_v63  ;;  %v11389_v54 = vpack.c.bf16 %v11387_v3, %v11388_v8  ;;  %v11390_v55 = vld [vmem:[#allocation14_spill] sm:$0xff]  ;;  %v11391_v20 = vld [vmem:[#allocation13_spill] sm:$0xff]  ;;  %v11392_v1 = vld [vmem:[#allocation12_spill] sm:$0xff] }
 0x796   : > { %v6471_v28 = vpop.eup %6470  ;;  %v4703_v61 = vadd.f32 1.0, %v6469_v29  ;;  %v11393_v53 = vld [vmem:[#allocation20_spill] sm:$0xff]  ;;  %v11394_v29 = vld [vmem:[#allocation11_spill] sm:$0xff]  ;;  %v4836_v40 = vld [vmem:[%s6695_s15 + $0xc0] sm:$0xff] }
 0x797   : > { %v6473_v16 = vpop.eup %6472  ;;  %v4704_v15 = vadd.f32 1.0, %v6471_v28  ;;  %4767 = vmatprep.subr.bf16.mxu1 %v4752_v44  ;;  %v4828_v28 = vld [vmem:[%s6695_s15 + $0x80] sm:$0xff]  ;;  %v11396_v44 = vld [vmem:[#allocation19_spill] sm:$0xff]  ;;  %v4838_v63 = vld [vmem:[%s6695_s15 + $0xd0] sm:$0xff] }
 0x798   : > { %v6475_v42 = vpop.eup %6474  ;;  %v4705_v24 = vadd.f32 1.0, %v6473_v16  ;;  %4768 = vmatpush1.bf16.msra.mxu1 %v4751_v57  ;;  %v4735_v25 = vmul.f32 %v4703_v61, %v4607_v38  ;;  %v11395_v57 = vld [vmem:[#allocation17_spill] sm:$0xff]  ;;  %v11401_v3 = vld [vmem:[#allocation22_spill] sm:$0xff] }
 0x799   : > { %v4706_v7 = vadd.f32 1.0, %v6475_v42  ;;  %v4736_v60 = vmul.f32 %v4704_v15, %v4608_v17  ;;  %v4829_v15 = vld [vmem:[%s6695_s15 + $0x88] sm:$0xff]  ;;  %v11397_v17 = vld [vmem:[#allocation16_spill] sm:$0xff] }
 0x79a   : > { %v4737_v22 = vmul.f32 %v4705_v24, %v4609_v46  ;;  %v4830_v46 = vld [vmem:[%s6695_s15 + $0x90] sm:$0xff] }
 0x79b   : > { %v4738_v45 = vmul.f32 %v4706_v7, %v4610_v14 }
 0x79c   : > { %v4753_v19 = vpack.c.bf16 %v4737_v22, %v4735_v25  ;;  %v4831_v25 = vld [vmem:[%s6695_s15 + $0x98] sm:$0xff] }
 0x79d   : > { %v4754_v47 = vpack.c.bf16 %v4738_v45, %v4736_v60 }
 0x79f   : > { %4769 = vmatprep.subr.bf16.mxu1 %v4754_v47 }
 0x7a0   : > { %4770 = vmatpush1.bf16.msra.mxu1 %v4753_v19 }
 0x7a1   : > { %4876 = vmatprep.subr.bf16.mxu1 %v11363_v13  ;;  %v4832_v13 = vld [vmem:[%s6695_s15 + $0xa0] sm:$0xff] }
 0x7a3   : > { %4788 = vmatmul.mubr.bf16.vlgmr.msra.gmra.mrb[144].mxu1 %v10262_v49 }
 0x7a4   : > { %4877 = vmatpush1.bf16.msra.mxu1 %v11364_v43  ;;  %4797 = vmatprep.mubr.bf16.mxu1 %v11215_v52  ;;  %v11398_v43 = vld [vmem:[#allocation21_spill] sm:$0xff] }
 0x7a5   : > { %4878 = vmatprep.subr.bf16.mxu1 %v11365_v51 }
 0x7a8   : > { %4879 = vmatpush1.bf16.msra.mxu1 %v11366_v35 }
 0x7a9   : > { %4880 = vmatprep.subr.bf16.mxu1 %v11367_v62  ;;  %v4833_v62 = vld [vmem:[%s6695_s15 + $0xa8] sm:$0xff] }
 0x7ab   : > { %4798 = vmatmul.mubr.bf16.gmra.mrb[148].mxu1 %v6613_v33 }
 0x7ac   : > { %4881 = vmatpush1.bf16.msra.mxu1 %v11368_v5  ;;  %4807 = vmatprep.mubr.bf16.mxu1 %v11215_v52 }
 0x7ad   : > { %4882 = vmatprep.subr.bf16.mxu1 %v11369_v36  ;;  %v4834_v36 = vld [vmem:[%s6695_s15 + $0xb0] sm:$0xff] }
 0x7b0   : > { %4883 = vmatpush1.bf16.msra.mxu1 %v11370_v21 }
 0x7b1   : > { %5286 = vmatprep.subr.bf16.mxu1 %v11371_v18  ;;  %v11399_v18 = vld [vmem:[#allocation23_spill] sm:$0xff] }
 0x7b3   : > { %4808 = vmatmul.mubr.bf16.gmra.mrb[152].mxu1 %v6614_v50 }
 0x7b4   : > { %4817 = vmatprep.mubr.bf16.mxu1 %v11215_v52 }
 0x7bb   : > { %4818 = vmatmul.mubr.bf16.gmra.mrb[156].mxu1 %v6615_v34 }
 0x7bc   : > { %4908 = vmatprep.mubr.bf16.mxu1 %v11215_v52 }
 0x7c3   : > { %5921 = vmatmul.mubr.msk.bf16.vlgmr.msra.gmra.mrb[160].mxu1 %vm3967_vm0, %v9951_v48 }
 0x7c4   : > { %5287 = vmatpush1.bf16.msra.mxu1 %v11372_v27  ;;  %4918 = vmatprep.mubr.bf16.mxu1 %v11215_v52  ;;  %v4835_v27 = vld [vmem:[%s6695_s15 + $0xb8] sm:$0xff] }
 0x7c5   : > { %5288 = vmatprep.subr.bf16.mxu1 %v11373_v56 }
 0x7c8   : > { %5289 = vmatpush1.bf16.msra.mxu1 %v11376_v59 }
 0x7c9   : > { %5290 = vmatprep.subr.bf16.mxu1 %v11379_v0  ;;  %v11400_v0 = vld [vmem:[#allocation24_spill] sm:$0xff] }
 0x7cb   : > { %5922 = vmatmul.mubr.msk.bf16.gmra.mrb[164].mxu1 %vm3967_vm0, %v11380_v37 }
 0x7cc   : > { %5291 = vmatpush1.bf16.msra.mxu1 %v11383_v2  ;;  %4928 = vmatprep.mubr.bf16.mxu1 %v11215_v52 }
 0x7cd   : > { %5292 = vmatprep.subr.bf16.mxu1 %v11386_v39 }
 0x7d0   : > { %5293 = vmatpush1.bf16.msra.mxu1 %v11389_v54 }
 0x7d3   : > { %5923 = vmatmul.mubr.msk.bf16.gmra.mrb[168].mxu1 %vm3967_vm0, %v11390_v55 }
 0x7d4   : > { %4938 = vmatprep.mubr.bf16.mxu1 %v11215_v52 }
 0x7db   : > { %5924 = vmatmul.mubr.msk.bf16.gmra.mrb[172].mxu1 %vm3967_vm0, %v11391_v20 }
 0x7dc   : > { %4948 = vmatprep.mubr.bf16.mxu1 %v11215_v52 }
 0x7e3   : > { %5925 = vmatmul.mubr.msk.bf16.gmra.mrb[176].mxu1 %vm3967_vm0, %v11392_v1 }
 0x7e4   : > { %4958 = vmatprep.mubr.bf16.mxu1 %v11215_v52 }
 0x7eb   : > { %5926 = vmatmul.mubr.msk.bf16.gmra.mrb[180].mxu1 %vm3967_vm0, %v11393_v53 }
 0x7ec   : > { %4968 = vmatprep.mubr.bf16.mxu1 %v11215_v52 }
 0x7f3   : > { %5927 = vmatmul.mubr.msk.bf16.gmra.mrb[184].mxu1 %vm3967_vm0, %v11394_v29 }
 0x7f4   : > { %4978 = vmatprep.mubr.bf16.mxu1 %v11215_v52 }
 0x7fb   : > { %5928 = vmatmul.mubr.msk.bf16.gmra.mrb[188].mxu1 %vm3967_vm0, %v11395_v57 }
 0x7fc   : > { %5318 = vmatprep.mubr.bf16.mxu1 %v11215_v52 }
 0x803   : > { %5929 = vmatmul.mubr.msk.bf16.vlgmr.msra.gmra.mrb[192].mxu1 %vm3967_vm0, %v9951_v48 }
 0x804   : > { %5328 = vmatprep.mubr.bf16.mxu1 %v11215_v52 }
 0x80b   : > { %5930 = vmatmul.mubr.msk.bf16.gmra.mrb[196].mxu1 %vm3967_vm0, %v11380_v37 }
 0x80c   : > { %5338 = vmatprep.mubr.bf16.mxu1 %v11215_v52 }
 0x813   : > { %5931 = vmatmul.mubr.msk.bf16.gmra.mrb[200].mxu1 %vm3967_vm0, %v11390_v55  ;;  %v4839_v55 = vld [vmem:[%s6695_s15 + $0xd8] sm:$0xff] }
 0x814   : > { %5348 = vmatprep.mubr.bf16.mxu1 %v11215_v52 }
 0x81b   : > { %5932 = vmatmul.mubr.msk.bf16.gmra.mrb[204].mxu1 %vm3967_vm0, %v11391_v20 }
 0x81c   : > { %5358 = vmatprep.mubr.bf16.mxu1 %v11215_v52 }
 0x823   : > { %5933 = vmatmul.mubr.msk.bf16.gmra.mrb[208].mxu1 %vm3967_vm0, %v11392_v1 }
 0x824   : > { %5368 = vmatprep.mubr.bf16.mxu1 %v11215_v52 }
 0x82b   : > { %5934 = vmatmul.mubr.msk.bf16.gmra.mrb[212].mxu1 %vm3967_vm0, %v11393_v53 }
 0x82c   : > { %5378 = vmatprep.mubr.bf16.mxu1 %v11215_v52 }
 0x833   : > { %5935 = vmatmul.mubr.msk.bf16.gmra.mrb[216].mxu1 %vm3967_vm0, %v11394_v29 }
 0x834   : > { %5388 = vmatprep.mubr.bf16.mxu1 %v11215_v52 }
 0x83b   : > { %5936 = vmatmul.mubr.msk.bf16.gmra.mrb[220].mxu1 %vm3967_vm0, %v11395_v57 }
 0x876   : > { %v4789_v48 = vpop.f32.mrb[144].mxu1 }
 0x877   : > { %v4790_v61 = vadd.f32 %v4789_v48, %v11396_v44  ;;  %v4791_v16 = vpop.f32.mrb[145].mxu1  ;;  %v4840_v48 = vld [vmem:[%s6695_s15 + $0xe0] sm:$0xff] }
 0x878   : > { %v4792_v42 = vadd.f32 %v4791_v16, %v11396_v44  ;;  %v4793_v38 = vpop.f32.mrb[146].mxu1 }
 0x879   : > { %v4844_v24 = vadd.f32 %v4828_v28, %v4790_v61  ;;  %v4794_v14 = vadd.f32 %v4793_v38, %v11397_v17  ;;  %v4795_v7 = vpop.f32.mrb[147].mxu1  ;;  %v11402_v28 = vld [vmem:[#allocation28_spill] sm:$0xff] }
 0x87a   : > { %v4845_v22 = vadd.f32 %v4829_v15, %v4792_v42  ;;  %v4796_v60 = vadd.f32 %v4795_v7, %v11397_v17  ;;  %v4841_v15 = vld [vmem:[%s6695_s15 + $0xe8] sm:$0xff] }
 0x87b   : > { %4860 = vst [vmem:[%s10109_s27 + $0x80] sm:$0xff] %v4844_v24  ;;  %v4846_v45 = vadd.f32 %v4830_v46, %v4794_v14  ;;  %v4842_v46 = vld [vmem:[%s6695_s15 + $0xf0] sm:$0xff]  ;;  %v11403_v14 = vld [vmem:[#allocation26_spill] sm:$0xff] }
 0x87c   : > { %4861 = vst [vmem:[%s10109_s27 + $0x88] sm:$0xff] %v4845_v22  ;;  %v4847_v19 = vadd.f32 %v4831_v25, %v4796_v60  ;;  %v4843_v22 = vld [vmem:[%s6695_s15 + $0xf8] sm:$0xff] }
 0x87d   : > { %4862 = vst [vmem:[%s10109_s27 + $0x90] sm:$0xff] %v4846_v45 }
 0x87e   : > { %4863 = vst [vmem:[%s10109_s27 + $0x98] sm:$0xff] %v4847_v19  ;;  %v4799_v47 = vpop.f32.mrb[148].mxu1 }
 0x87f   : > { %v4800_v51 = vadd.f32 %v4799_v47, %v11398_v43  ;;  %v4801_v35 = vpop.f32.mrb[149].mxu1 }
 0x880   : > { %v4802_v33 = vadd.f32 %v4801_v35, %v11398_v43  ;;  %v4803_v5 = vpop.f32.mrb[150].mxu1 }
 0x881   : > { %v4848_v21 = vadd.f32 %v4832_v13, %v4800_v51  ;;  %v4804_v50 = vadd.f32 %v4803_v5, %v11399_v18  ;;  %v4805_v34 = vpop.f32.mrb[151].mxu1  ;;  %v11404_v51 = vld [vmem:[#allocation34_spill] sm:$0xff] }
 0x882   : > { %v4849_v56 = vadd.f32 %v4833_v62, %v4802_v33  ;;  %v4806_v9 = vadd.f32 %v4805_v34, %v11399_v18 }
 0x883   : > { %4864 = vst [vmem:[%s10109_s27 + $0xa0] sm:$0xff] %v4848_v21  ;;  %v4850_v31 = vadd.f32 %v4834_v36, %v4804_v50  ;;  %v11405_v21 = vld [vmem:[#allocation4_spill] sm:$0xff] }
 0x884   : > { %4865 = vst [vmem:[%s10109_s27 + $0xa8] sm:$0xff] %v4849_v56  ;;  %v4851_v59 = vadd.f32 %v4835_v27, %v4806_v9 }
 0x885   : > { %4866 = vst [vmem:[%s10109_s27 + $0xb0] sm:$0xff] %v4850_v31 }
 0x886   : > { %4867 = vst [vmem:[%s10109_s27 + $0xb8] sm:$0xff] %v4851_v59  ;;  %v4809_v26 = vpop.f32.mrb[152].mxu1 }
 0x887   : > { %v4810_v37 = vadd.f32 %v4809_v26, %v11400_v0  ;;  %v4811_v12 = vpop.f32.mrb[153].mxu1  ;;  %v11406_v26 = vld [vmem:[#allocation3_spill] sm:$0xff] }
 0x888   : > { %v4812_v2 = vadd.f32 %v4811_v12, %v11400_v0  ;;  %v4813_v4 = vpop.f32.mrb[154].mxu1 }
 0x889   : > { %v4852_v39 = vadd.f32 %v4836_v40, %v4810_v37  ;;  %v4814_v8 = vadd.f32 %v4813_v4, %v11401_v3  ;;  %v4815_v54 = vpop.f32.mrb[155].mxu1  ;;  %v11407_v4 = vld [vmem:[#allocation6_spill] sm:$0xff] }
 0x88a   : > { %v4853_v20 = vadd.f32 %v4837_v41, %v4812_v2  ;;  %v4816_v1 = vadd.f32 %v4815_v54, %v11401_v3 }
 0x88b   : > { %4868 = vst [vmem:[%s10109_s27 + $0xc0] sm:$0xff] %v4852_v39  ;;  %v4854_v53 = vadd.f32 %v4838_v63, %v4814_v8 }
 0x88c   : > { %4869 = vst [vmem:[%s10109_s27 + $0xc8] sm:$0xff] %v4853_v20  ;;  %v4855_v29 = vadd.f32 %v4839_v55, %v4816_v1 }
 0x88d   : > { %4870 = vst [vmem:[%s10109_s27 + $0xd0] sm:$0xff] %v4854_v53 }
 0x88e   : > { %4871 = vst [vmem:[%s10109_s27 + $0xd8] sm:$0xff] %v4855_v29  ;;  %v4819_v57 = vpop.f32.mrb[156].mxu1 }
 0x88f   : > { %v4820_v61 = vadd.f32 %v4819_v57, %v11402_v28  ;;  %v4821_v16 = vpop.f32.mrb[157].mxu1 }
 0x890   : > { %v4822_v42 = vadd.f32 %v4821_v16, %v11402_v28  ;;  %v4823_v38 = vpop.f32.mrb[158].mxu1  ;;  %v11408_v16 = vld [vmem:[#allocation31_spill] sm:$0xff] }
 0x891   : > { %v4856_v24 = vadd.f32 %v4840_v48, %v4820_v61  ;;  %v4824_v7 = vadd.f32 %v4823_v38, %v11403_v14  ;;  %v4825_v25 = vpop.f32.mrb[159].mxu1 }
 0x892   : > { %v4857_v60 = vadd.f32 %v4841_v15, %v4822_v42  ;;  %v4826_v45 = vadd.f32 %v4825_v25, %v11403_v14 }
 0x893   : > { %4872 = vst [vmem:[%s10109_s27 + $0xe0] sm:$0xff] %v4856_v24  ;;  %v4858_v19 = vadd.f32 %v4842_v46, %v4824_v7 }
 0x894   : > { %4873 = vst [vmem:[%s10109_s27 + $0xe8] sm:$0xff] %v4857_v60  ;;  %v4859_v47 = vadd.f32 %v4843_v22, %v4826_v45 }
 0x895   : > { %4874 = vst [vmem:[%s10109_s27 + $0xf0] sm:$0xff] %v4858_v19 }
 0x896   : > { %4875 = vst [vmem:[%s10109_s27 + $0xf8] sm:$0xff] %v4859_v47  ;;  %v4910_v13 = vpop.f32.mrb[160].mxu1 }
 0x897   : > { %v4911_v35 = vadd.f32 %v4910_v13, %v11404_v51  ;;  %v4912_v62 = vpop.f32.mrb[161].mxu1 }
 0x898   : > { %v4913_v33 = vadd.f32 %v4912_v62, %v11404_v51  ;;  %v4914_v5 = vpop.f32.mrb[162].mxu1 }
 0x899   : > { %v5021_v36 = vmul.f32 0.70710677, %v4911_v35  ;;  %v4915_v50 = vadd.f32 %v4914_v5, %v11405_v21  ;;  %v4916_v34 = vpop.f32.mrb[163].mxu1  ;;  %v4989_v46 = vmul.f32 0.5, %v4911_v35 }
 0x89a   : > { %v5022_v27 = vmul.f32 0.70710677, %v4913_v33  ;;  %v4917_v56 = vadd.f32 %v4916_v34, %v11405_v21  ;;  %v4990_v60 = vmul.f32 0.5, %v4913_v33 }
 0x89b   : > { %6476 = verf.f32 %v5021_v36  ;;  %v5023_v9 = vmul.f32 0.70710677, %v4915_v50  ;;  %v4991_v24 = vmul.f32 0.5, %v4915_v50 }
 0x89c   : > { %6478 = verf.f32 %v5022_v27  ;;  %v5024_v31 = vmul.f32 0.70710677, %v4917_v56  ;;  %v4992_v45 = vmul.f32 0.5, %v4917_v56 }
 0x89d   : > { %6480 = verf.f32 %v5023_v9 }
 0x89e   : > { %6482 = verf.f32 %v5024_v31  ;;  %v4920_v59 = vpop.f32.mrb[164].mxu1 }
 0x89f   : > { %v4921_v40 = vadd.f32 %v4920_v59, %v11406_v26  ;;  %v4922_v37 = vpop.f32.mrb[165].mxu1 }
 0x8a0   : > { %v4923_v12 = vadd.f32 %v4922_v37, %v11406_v26  ;;  %v4924_v41 = vpop.f32.mrb[166].mxu1 }
 0x8a1   : > { %v5025_v2 = vmul.f32 0.70710677, %v4921_v40  ;;  %v4925_v63 = vadd.f32 %v4924_v41, %v11407_v4  ;;  %v4926_v39 = vpop.f32.mrb[167].mxu1 }
 0x8a2   : > { %v5026_v8 = vmul.f32 0.70710677, %v4923_v12  ;;  %v4927_v54 = vadd.f32 %v4926_v39, %v11407_v4 }
 0x8a3   : > { %6484 = verf.f32 %v5025_v2  ;;  %v5027_v55 = vmul.f32 0.70710677, %v4925_v63 }
 0x8a4   : > { %6486 = verf.f32 %v5026_v8  ;;  %v5028_v20 = vmul.f32 0.70710677, %v4927_v54 }
 0x8a5   : > { %v6477_v1 = vpop.eup %6476  ;;  %6488 = verf.f32 %v5027_v55 }
 0x8a6   : > { %v6479_v53 = vpop.eup %6478  ;;  %v5085_v29 = vadd.f32 1.0, %v6477_v1  ;;  %6490 = verf.f32 %v5028_v20  ;;  %v4930_v57 = vpop.f32.mrb[168].mxu1 }
 0x8a7   : > { %v6481_v48 = vpop.eup %6480  ;;  %v5086_v61 = vadd.f32 1.0, %v6479_v53  ;;  %v10427_v15 = vadd.f32 %v4930_v57, %v11408_v16  ;;  %v4932_v42 = vpop.f32.mrb[169].mxu1  ;;  %v4993_v53 = vmul.f32 0.5, %v4921_v40 }
 0x8a8   : > { %v6483_v38 = vpop.eup %6482  ;;  %v5087_v7 = vadd.f32 1.0, %v6481_v48  ;;  %v10430_v25 = vadd.f32 %v4932_v42, %v11408_v16  ;;  %v4934_v22 = vpop.f32.mrb[170].mxu1  ;;  %v5117_v62 = vmul.f32 %v5085_v29, %v4989_v46  ;;  %v4995_v29 = vmul.f32 0.5, %v4925_v63 }
 0x8a9   : > { %v5088_v19 = vadd.f32 1.0, %v6483_v38  ;;  %v5029_v47 = vmul.f32 0.70710677, %v10427_v15  ;;  %v4936_v13 = vpop.f32.mrb[171].mxu1  ;;  %v4935_v34 = vadd.f32 %v4934_v22, %v9375_v32  ;;  %v5118_v27 = vmul.f32 %v5086_v61, %v4990_v60 }
 0x8aa   : > { %v5119_v5 = vmul.f32 %v5087_v7, %v4991_v24  ;;  %v5030_v36 = vmul.f32 0.70710677, %v10430_v25  ;;  %v4937_v50 = vadd.f32 %v4936_v13, %v9375_v32  ;;  %v4994_v42 = vmul.f32 0.5, %v4923_v12 }
 0x8ab   : > { %v5120_v35 = vmul.f32 %v5088_v19, %v4992_v45  ;;  %6492 = verf.f32 %v5029_v47  ;;  %v5031_v31 = vmul.f32 0.70710677, %v4935_v34  ;;  %v4996_v38 = vmul.f32 0.5, %v4927_v54 }
 0x8ac   : > { %v5149_v9 = vpack.c.bf16 %v5119_v5, %v5117_v62  ;;  %6494 = verf.f32 %v5030_v36  ;;  %v5032_v56 = vmul.f32 0.70710677, %v4937_v50 }
 0x8ad   : > { %v6485_v33 = vpop.eup %6484  ;;  %v5150_v59 = vpack.c.bf16 %v5120_v35, %v5118_v27  ;;  %6496 = verf.f32 %v5031_v31 }
 0x8ae   : > { %v6487_v37 = vpop.eup %6486  ;;  %v5089_v41 = vadd.f32 1.0, %v6485_v33  ;;  %v4940_v2 = vpop.f32.mrb[172].mxu1  ;;  %6498 = verf.f32 %v5032_v56  ;;  %v4997_v56 = vmul.f32 0.5, %v10427_v15 }
 0x8af   : > { %v6489_v39 = vpop.eup %6488  ;;  %v5090_v8 = vadd.f32 1.0, %v6487_v37  ;;  %v10437_v55 = vadd.f32 %v4940_v2, %v9377_v11  ;;  %v4942_v20 = vpop.f32.mrb[173].mxu1  ;;  %5165 = vmatprep.subr.bf16.mxu0 %v5150_v59 }
 0x8b0   : > { %v6491_v1 = vpop.eup %6490  ;;  %v5091_v57 = vadd.f32 1.0, %v6489_v39  ;;  %v10440_v48 = vadd.f32 %v4942_v20, %v9377_v11  ;;  %v4944_v61 = vpop.f32.mrb[174].mxu1  ;;  %5166 = vmatpush1.bf16.msra.mxu0 %v5149_v9  ;;  %v5121_v22 = vmul.f32 %v5089_v41, %v4993_v53  ;;  %v4998_v39 = vmul.f32 0.5, %v10430_v25 }
 0x8b1   : > { %v5092_v46 = vadd.f32 1.0, %v6491_v1  ;;  %v5033_v24 = vmul.f32 0.70710677, %v10437_v55  ;;  %v4946_v7 = vpop.f32.mrb[175].mxu1  ;;  %v4945_v19 = vadd.f32 %v4944_v61, %v9379_v30  ;;  %v5122_v40 = vmul.f32 %v5090_v8, %v4994_v42 }
 0x8b2   : > { %v5123_v60 = vmul.f32 %v5091_v57, %v4995_v29  ;;  %v5034_v45 = vmul.f32 0.70710677, %v10440_v48  ;;  %v4947_v47 = vadd.f32 %v4946_v7, %v9379_v30  ;;  %v4999_v8 = vmul.f32 0.5, %v4935_v34 }
 0x8b3   : > { %v5124_v63 = vmul.f32 %v5092_v46, %v4996_v38  ;;  %6500 = verf.f32 %v5033_v24  ;;  %v5035_v62 = vmul.f32 0.70710677, %v4945_v19  ;;  %v5000_v29 = vmul.f32 0.5, %v4937_v50 }
 0x8b4   : > { %v5151_v13 = vpack.c.bf16 %v5123_v60, %v5121_v22  ;;  %6502 = verf.f32 %v5034_v45  ;;  %v5036_v54 = vmul.f32 0.70710677, %v4947_v47 }
 0x8b5   : > { %v6493_v12 = vpop.eup %6492  ;;  %v5152_v5 = vpack.c.bf16 %v5124_v63, %v5122_v40  ;;  %6504 = verf.f32 %v5035_v62 }
 0x8b6   : > { %v6495_v36 = vpop.eup %6494  ;;  %v4950_v27 = vpop.f32.mrb[176].mxu1  ;;  %v5093_v35 = vadd.f32 1.0, %v6493_v12  ;;  %6506 = verf.f32 %v5036_v54 }
 0x8b7   : > { %v10447_v9 = vadd.f32 %v4950_v27, %v9383_v23  ;;  %v4952_v31 = vpop.f32.mrb[177].mxu1  ;;  %5167 = vmatprep.subr.bf16.mxu0 %v5152_v5  ;;  %v6497_v33 = vpop.eup %6496  ;;  %v5094_v59 = vadd.f32 1.0, %v6495_v36  ;;  %v5001_v5 = vmul.f32 0.5, %v10437_v55  ;;  %v11410_v55 = vld [vmem:[#allocation37_spill] sm:$0xff] }
 0x8b8   : > { %v10451_v37 = vadd.f32 %v4952_v31, %v9383_v23  ;;  %v4954_v41 = vpop.f32.mrb[178].mxu1  ;;  %5168 = vmatpush1.bf16.msra.mxu0 %v5151_v13  ;;  %v6499_v2 = vpop.eup %6498  ;;  %v5095_v20 = vadd.f32 1.0, %v6497_v33  ;;  %v5125_v42 = vmul.f32 %v5093_v35, %v4997_v56  ;;  %v11409_v13 = vld [vmem:[#allocation40_spill] sm:$0xff]  ;;  %v5002_v33 = vmul.f32 0.5, %v10440_v48 }
 0x8b9   : > { %v5037_v1 = vmul.f32 0.70710677, %v10447_v9  ;;  %v4956_v53 = vpop.f32.mrb[179].mxu1  ;;  %v5096_v57 = vadd.f32 1.0, %v6499_v2  ;;  %v10457_v15 = vadd.f32 %v4954_v41, %v9385_v6  ;;  %v5126_v24 = vmul.f32 %v5094_v59, %v4998_v39 }
 0x8ba   : > { %v5038_v61 = vmul.f32 0.70710677, %v10451_v37  ;;  %v5127_v38 = vmul.f32 %v5095_v20, %v4999_v8  ;;  %v10460_v46 = vadd.f32 %v4956_v53, %v9385_v6  ;;  %v5003_v56 = vmul.f32 0.5, %v4945_v19 }
 0x8bb   : > { %6508 = verf.f32 %v5037_v1  ;;  %v5128_v25 = vmul.f32 %v5096_v57, %v5000_v29  ;;  %v5039_v34 = vmul.f32 0.70710677, %v10457_v15  ;;  %v5004_v39 = vmul.f32 0.5, %v4947_v47 }
 0x8bc   : > { %6510 = verf.f32 %v5038_v61  ;;  %v5153_v22 = vpack.c.bf16 %v5127_v38, %v5125_v42  ;;  %v5040_v50 = vmul.f32 0.70710677, %v10460_v46 }
 0x8bd   : > { %v6501_v7 = vpop.eup %6500  ;;  %6512 = verf.f32 %v5039_v34  ;;  %v5154_v40 = vpack.c.bf16 %v5128_v25, %v5126_v24 }
 0x8be   : > { %v6503_v60 = vpop.eup %6502  ;;  %v4960_v45 = vpop.f32.mrb[180].mxu1  ;;  %v5097_v63 = vadd.f32 1.0, %v6501_v7  ;;  %6514 = verf.f32 %v5040_v50 }
 0x8bf   : > { %v10465_v62 = vadd.f32 %v4960_v45, %v11409_v13  ;;  %v4962_v12 = vpop.f32.mrb[181].mxu1  ;;  %v6505_v54 = vpop.eup %6504  ;;  %v5098_v36 = vadd.f32 1.0, %v6503_v60  ;;  %5169 = vmatprep.subr.bf16.mxu0 %v5154_v40  ;;  %v5005_v40 = vmul.f32 0.5, %v10447_v9 }
 0x8c0   : > { %v10469_v27 = vadd.f32 %v4962_v12, %v11409_v13  ;;  %v4964_v35 = vpop.f32.mrb[182].mxu1  ;;  %v6507_v31 = vpop.eup %6506  ;;  %v5099_v59 = vadd.f32 1.0, %v6505_v54  ;;  %5170 = vmatpush1.bf16.msra.mxu0 %v5153_v22  ;;  %v5129_v53 = vmul.f32 %v5097_v63, %v5001_v5  ;;  %v11411_v22 = vld [vmem:[#allocation41_spill] sm:$0xff] }
 0x8c1   : > { %v5041_v41 = vmul.f32 0.70710677, %v10465_v62  ;;  %v4966_v2 = vpop.f32.mrb[183].mxu1  ;;  %v5100_v8 = vadd.f32 1.0, %v6507_v31  ;;  %v10475_v1 = vadd.f32 %v4964_v35, %v11410_v55  ;;  %v5130_v48 = vmul.f32 %v5098_v36, %v5002_v33 }
 0x8c2   : > { %v5042_v20 = vmul.f32 0.70710677, %v10469_v27  ;;  %v5131_v29 = vmul.f32 %v5099_v59, %v5003_v56  ;;  %v10478_v57 = vadd.f32 %v4966_v2, %v11410_v55  ;;  %v5006_v36 = vmul.f32 0.5, %v10451_v37 }
 0x8c3   : > { %6516 = verf.f32 %v5041_v41  ;;  %v5132_v19 = vmul.f32 %v5100_v8, %v5004_v39  ;;  %v5043_v61 = vmul.f32 0.70710677, %v10475_v1  ;;  %v5007_v35 = vmul.f32 0.5, %v10457_v15 }
 0x8c4   : > { %6518 = verf.f32 %v5042_v20  ;;  %v5155_v38 = vpack.c.bf16 %v5131_v29, %v5129_v53  ;;  %v5044_v47 = vmul.f32 0.70710677, %v10478_v57  ;;  %v5008_v59 = vmul.f32 0.5, %v10460_v46 }
 0x8c5   : > { %v6509_v42 = vpop.eup %6508  ;;  %6520 = verf.f32 %v5043_v61  ;;  %v5156_v34 = vpack.c.bf16 %v5132_v19, %v5130_v48 }
 0x8c6   : > { %v6511_v24 = vpop.eup %6510  ;;  %v4970_v25 = vpop.f32.mrb[184].mxu1  ;;  %v5101_v7 = vadd.f32 1.0, %v6509_v42  ;;  %6522 = verf.f32 %v5044_v47  ;;  %v11412_v47 = vld [vmem:[#allocation42_spill] sm:$0xff] }
 0x8c7   : > { %v10483_v50 = vadd.f32 %v4970_v25, %v11411_v22  ;;  %v4972_v60 = vpop.f32.mrb[185].mxu1  ;;  %v6513_v45 = vpop.eup %6512  ;;  %v5102_v63 = vadd.f32 1.0, %v6511_v24  ;;  %5171 = vmatprep.subr.bf16.mxu0 %v5156_v34 }
 0x8c8   : > { %v10487_v12 = vadd.f32 %v4972_v60, %v11411_v22  ;;  %v4974_v54 = vpop.f32.mrb[186].mxu1  ;;  %v6515_v5 = vpop.eup %6514  ;;  %v5103_v31 = vadd.f32 1.0, %v6513_v45  ;;  %5172 = vmatpush1.bf16.msra.mxu0 %v5155_v38  ;;  %v5133_v39 = vmul.f32 %v5101_v7, %v5005_v40  ;;  %v5009_v7 = vmul.f32 0.5, %v10465_v62 }
 0x8c9   : > { %v5045_v33 = vmul.f32 0.70710677, %v10483_v50  ;;  %v4976_v56 = vpop.f32.mrb[187].mxu1  ;;  %v5104_v41 = vadd.f32 1.0, %v6515_v5  ;;  %v10495_v2 = vadd.f32 %v4974_v54, %v9393_v58  ;;  %v5134_v15 = vmul.f32 %v5102_v63, %v5006_v36 }
 0x8ca   : > { %v5046_v9 = vmul.f32 0.70710677, %v10487_v12  ;;  %v5135_v8 = vmul.f32 %v5103_v31, %v5007_v35  ;;  %v10498_v37 = vadd.f32 %v4976_v56, %v9393_v58  ;;  %v5010_v54 = vmul.f32 0.5, %v10469_v27 }
 0x8cb   : > { %6524 = verf.f32 %v5045_v33  ;;  %v5136_v20 = vmul.f32 %v5104_v41, %v5008_v59  ;;  %v5047_v53 = vmul.f32 0.70710677, %v10495_v2  ;;  %v5011_v5 = vmul.f32 0.5, %v10475_v1 }
 0x8cc   : > { %6526 = verf.f32 %v5046_v9  ;;  %v5157_v48 = vpack.c.bf16 %v5135_v8, %v5133_v39  ;;  %v5048_v46 = vmul.f32 0.70710677, %v10498_v37  ;;  %v5012_v33 = vmul.f32 0.5, %v10478_v57 }
 0x8cd   : > { %v6517_v29 = vpop.eup %6516  ;;  %6528 = verf.f32 %v5047_v53  ;;  %v5158_v42 = vpack.c.bf16 %v5136_v20, %v5134_v15 }
 0x8ce   : > { %v6519_v19 = vpop.eup %6518  ;;  %v4980_v61 = vpop.f32.mrb[188].mxu1  ;;  %v5105_v38 = vadd.f32 1.0, %v6517_v29  ;;  %6530 = verf.f32 %v5048_v46 }
 0x8cf   : > { %v10503_v24 = vadd.f32 %v4980_v61, %v11412_v47  ;;  %v4982_v25 = vpop.f32.mrb[189].mxu1  ;;  %v6521_v34 = vpop.eup %6520  ;;  %v5106_v60 = vadd.f32 1.0, %v6519_v19  ;;  %5173 = vmatprep.subr.bf16.mxu0 %v5158_v42 }
 0x8d0   : > { %v10507_v45 = vadd.f32 %v4982_v25, %v11412_v47  ;;  %v4984_v40 = vpop.f32.mrb[190].mxu1  ;;  %v6523_v63 = vpop.eup %6522  ;;  %v5107_v36 = vadd.f32 1.0, %v6521_v34  ;;  %5174 = vmatpush1.bf16.msra.mxu0 %v5157_v48  ;;  %v5137_v41 = vmul.f32 %v5105_v38, %v5009_v7  ;;  %v5013_v38 = vmul.f32 0.5, %v10483_v50 }
 0x8d1   : > { %v5049_v35 = vmul.f32 0.70710677, %v10503_v24  ;;  %v4986_v31 = vpop.f32.mrb[191].mxu1  ;;  %v5108_v56 = vadd.f32 1.0, %v6523_v63  ;;  %v10515_v59 = vadd.f32 %v4984_v40, %v9397_v10  ;;  %v5138_v1 = vmul.f32 %v5106_v60, %v5010_v54 }
 0x8d2   : > { %v5050_v62 = vmul.f32 0.70710677, %v10507_v45  ;;  %v5139_v9 = vmul.f32 %v5107_v36, %v5011_v5  ;;  %v10518_v27 = vadd.f32 %v4986_v31, %v9397_v10  ;;  %v5014_v40 = vmul.f32 0.5, %v10487_v12 }
 0x8d3   : > { %6532 = verf.f32 %v5049_v35  ;;  %v5140_v39 = vmul.f32 %v5108_v56, %v5012_v33  ;;  %v5051_v8 = vmul.f32 0.70710677, %v10515_v59  ;;  %v5015_v63 = vmul.f32 0.5, %v10495_v2 }
 0x8d4   : > { %6534 = verf.f32 %v5050_v62  ;;  %v5159_v20 = vpack.c.bf16 %v5139_v9, %v5137_v41  ;;  %v5052_v57 = vmul.f32 0.70710677, %v10518_v27  ;;  %v5016_v35 = vmul.f32 0.5, %v10498_v37 }
 0x8d5   : > { %v6525_v15 = vpop.eup %6524  ;;  %6536 = verf.f32 %v5051_v8  ;;  %v5160_v48 = vpack.c.bf16 %v5140_v39, %v5138_v1 }
 0x8d6   : > { %v6527_v53 = vpop.eup %6526  ;;  %v5320_v29 = vpop.f32.mrb[192].mxu1  ;;  %v5109_v46 = vadd.f32 1.0, %v6525_v15  ;;  %6538 = verf.f32 %v5052_v57 }
 0x8d7   : > { %v10523_v19 = vadd.f32 %v5320_v29, %v11404_v51  ;;  %v5322_v61 = vpop.f32.mrb[193].mxu1  ;;  %v6529_v42 = vpop.eup %6528  ;;  %v5110_v25 = vadd.f32 1.0, %v6527_v53  ;;  %5175 = vmatprep.subr.bf16.mxu0 %v5160_v48  ;;  %v5017_v29 = vmul.f32 0.5, %v10503_v24 }
 0x8d8   : > { %v10527_v34 = vadd.f32 %v5322_v61, %v11404_v51  ;;  %v5324_v7 = vpop.f32.mrb[194].mxu1  ;;  %v6531_v60 = vpop.eup %6530  ;;  %v5111_v54 = vadd.f32 1.0, %v6529_v42  ;;  %5176 = vmatpush1.bf16.msra.mxu0 %v5159_v20  ;;  %v5141_v51 = vmul.f32 %v5109_v46, %v5013_v38  ;;  %v5018_v38 = vmul.f32 0.5, %v10507_v45 }
 0x8d9   : > { %v5431_v5 = vmul.f32 0.70710677, %v10523_v19  ;;  %v5326_v36 = vpop.f32.mrb[195].mxu1  ;;  %v5112_v31 = vadd.f32 1.0, %v6531_v60  ;;  %v10535_v33 = vadd.f32 %v5324_v7, %v11405_v21  ;;  %v5142_v2 = vmul.f32 %v5110_v25, %v5014_v40 }
 0x8da   : > { %v5432_v50 = vmul.f32 0.70710677, %v10527_v34  ;;  %v5143_v56 = vmul.f32 %v5111_v54, %v5015_v63  ;;  %v10538_v12 = vadd.f32 %v5326_v36, %v11405_v21  ;;  %v5019_v25 = vmul.f32 0.5, %v10515_v59 }
 0x8db   : > { %6540 = verf.f32 %v5431_v5  ;;  %v5144_v62 = vmul.f32 %v5112_v31, %v5016_v35  ;;  %v5433_v41 = vmul.f32 0.70710677, %v10535_v33  ;;  %v5020_v63 = vmul.f32 0.5, %v10518_v27 }
 0x8dc   : > { %6542 = verf.f32 %v5432_v50  ;;  %v5161_v1 = vpack.c.bf16 %v5143_v56, %v5141_v51  ;;  %v5434_v37 = vmul.f32 0.70710677, %v10538_v12 }
 0x8dd   : > { %v6533_v9 = vpop.eup %6532  ;;  %6544 = verf.f32 %v5433_v41  ;;  %v5162_v15 = vpack.c.bf16 %v5144_v62, %v5142_v2 }
 0x8de   : > { %v6535_v39 = vpop.eup %6534  ;;  %v5330_v8 = vpop.f32.mrb[196].mxu1  ;;  %v5113_v20 = vadd.f32 1.0, %v6533_v9  ;;  %6546 = verf.f32 %v5434_v37  ;;  %v5399_v37 = vmul.f32 0.5, %v10523_v19 }
 0x8df   : > { %v10543_v57 = vadd.f32 %v5330_v8, %v11406_v26  ;;  %v5332_v21 = vpop.f32.mrb[197].mxu1  ;;  %v6537_v53 = vpop.eup %6536  ;;  %v5114_v48 = vadd.f32 1.0, %v6535_v39  ;;  %5177 = vmatprep.subr.bf16.mxu0 %v5162_v15 }
 0x8e0   : > { %v10547_v46 = vadd.f32 %v5332_v21, %v11406_v26  ;;  %v5334_v61 = vpop.f32.mrb[198].mxu1  ;;  %v6539_v42 = vpop.eup %6538  ;;  %v5115_v7 = vadd.f32 1.0, %v6537_v53  ;;  %5178 = vmatpush1.bf16.msra.mxu0 %v5161_v1  ;;  %v5145_v26 = vmul.f32 %v5113_v20, %v5017_v29  ;;  %v5400_v21 = vmul.f32 0.5, %v10527_v34 }
 0x8e1   : > { %v5435_v60 = vmul.f32 0.70710677, %v10543_v57  ;;  %v5336_v40 = vpop.f32.mrb[199].mxu1  ;;  %v5116_v54 = vadd.f32 1.0, %v6539_v42  ;;  %v10555_v5 = vadd.f32 %v5334_v61, %v11407_v4  ;;  %v5146_v59 = vmul.f32 %v5114_v48, %v5018_v38 }
 0x8e2   : > { %v5436_v24 = vmul.f32 0.70710677, %v10547_v46  ;;  %v5147_v36 = vmul.f32 %v5115_v7, %v5019_v25  ;;  %v10558_v45 = vadd.f32 %v5336_v40, %v11407_v4  ;;  %v5401_v53 = vmul.f32 0.5, %v10535_v33 }
 0x8e3   : > { %6548 = verf.f32 %v5435_v60  ;;  %v5148_v35 = vmul.f32 %v5116_v54, %v5020_v63  ;;  %v5437_v31 = vmul.f32 0.70710677, %v10555_v5  ;;  %v5402_v42 = vmul.f32 0.5, %v10538_v12 }
 0x8e4   : > { %6550 = verf.f32 %v5436_v24  ;;  %v5163_v51 = vpack.c.bf16 %v5147_v36, %v5145_v26  ;;  %v5438_v27 = vmul.f32 0.70710677, %v10558_v45 }
 0x8e5   : > { %v6541_v50 = vpop.eup %6540  ;;  %6552 = verf.f32 %v5437_v31  ;;  %v5164_v62 = vpack.c.bf16 %v5148_v35, %v5146_v59 }
 0x8e6   : > { %v6543_v56 = vpop.eup %6542  ;;  %v5340_v2 = vpop.f32.mrb[200].mxu1  ;;  %v5495_v41 = vadd.f32 1.0, %v6541_v50  ;;  %6554 = verf.f32 %v5438_v27  ;;  %v5403_v50 = vmul.f32 0.5, %v10543_v57 }
 0x8e7   : > { %v10563_v9 = vadd.f32 %v5340_v2, %v11408_v16  ;;  %v5342_v4 = vpop.f32.mrb[201].mxu1  ;;  %v6545_v1 = vpop.eup %6544  ;;  %v5496_v39 = vadd.f32 1.0, %v6543_v56  ;;  %5179 = vmatprep.subr.bf16.mxu0 %v5164_v62  ;;  %v5404_v2 = vmul.f32 0.5, %v10547_v46  ;;  %v5405_v62 = vmul.f32 0.5, %v10555_v5 }
 0x8e8   : > { %v10567_v8 = vadd.f32 %v5342_v4, %v11408_v16  ;;  %v5344_v15 = vpop.f32.mrb[202].mxu1  ;;  %v6547_v20 = vpop.eup %6546  ;;  %v5497_v29 = vadd.f32 1.0, %v6545_v1  ;;  %5180 = vmatpush1.bf16.msra.mxu0 %v5163_v51  ;;  %v5527_v16 = vmul.f32 %v5495_v41, %v5399_v37  ;;  %v5406_v37 = vmul.f32 0.5, %v10558_v45  ;;  %v10606_v45 = vld [vmem:[%s10804_s7 + $0x8] sm:$0xff]  }
 0x8e9   : > { %v5439_v48 = vmul.f32 0.70710677, %v10563_v9  ;;  %v5346_v61 = vpop.f32.mrb[203].mxu1  ;;  %v5498_v38 = vadd.f32 1.0, %v6547_v20  ;;  %v10575_v25 = vadd.f32 %v5344_v15, %v9375_v32  ;;  %v5528_v33 = vmul.f32 %v5496_v39, %v5400_v21 }
 0x8ea   : > { %v5440_v19 = vmul.f32 0.70710677, %v10567_v8  ;;  %v5529_v7 = vmul.f32 %v5497_v29, %v5401_v53  ;;  %v10578_v34 = vadd.f32 %v5346_v61, %v9375_v32 }
 0x8eb   : > { %6556 = verf.f32 %v5439_v48  ;;  %v5530_v60 = vmul.f32 %v5498_v38, %v5402_v42  ;;  %v5441_v40 = vmul.f32 0.70710677, %v10575_v25  ;;  %5198 = vmatmul.mubr.bf16.vlgmr.msra.gmra.mrb[128].mxu0 %v10262_v49 }
 0x8ec   : > { %6558 = verf.f32 %v5440_v19  ;;  %v5559_v63 = vpack.c.bf16 %v5529_v7, %v5527_v16  ;;  %v5442_v54 = vmul.f32 0.70710677, %v10578_v34  ;;  %5207 = vmatprep.mubr.bf16.mxu0 %v11215_v52 }
 0x8ed   : > { %v6549_v12 = vpop.eup %6548  ;;  %6560 = verf.f32 %v5441_v40  ;;  %v5560_v36 = vpack.c.bf16 %v5530_v60, %v5528_v33  ;;  %v5407_v60 = vmul.f32 0.5, %v10563_v9 }
 0x8ee   : > { %v6551_v24 = vpop.eup %6550  ;;  %v5350_v26 = vpop.f32.mrb[204].mxu1  ;;  %v5499_v59 = vadd.f32 1.0, %v6549_v12  ;;  %6562 = verf.f32 %v5442_v54 }
 0x8ef   : > { %v10585_v32 = vadd.f32 %v5350_v26, %v9377_v11  ;;  %v5352_v35 = vpop.f32.mrb[205].mxu1  ;;  %v6553_v31 = vpop.eup %6552  ;;  %v5500_v49 = vadd.f32 1.0, %v6551_v24  ;;  %5575 = vmatprep.subr.bf16.mxu0 %v5560_v36  ;;  %v5408_v24 = vmul.f32 0.5, %v10567_v8  ;;  %v5409_v26 = vmul.f32 0.5, %v10575_v25 }
 0x8f0   : > { %v10589_v51 = vadd.f32 %v5352_v35, %v9377_v11  ;;  %v5354_v27 = vpop.f32.mrb[206].mxu1  ;;  %v6555_v56 = vpop.eup %6554  ;;  %v5501_v41 = vadd.f32 1.0, %v6553_v31  ;;  %5576 = vmatpush1.bf16.msra.mxu0 %v5559_v63  ;;  %v5531_v15 = vmul.f32 %v5499_v59, %v5403_v50  ;;  %v5410_v31 = vmul.f32 0.5, %v10578_v34  ;;  %v10633_v34 = vld [vmem:[%s10804_s7 + $0x10] sm:$0xff]  }
 0x8f1   : > { %v5443_v4 = vmul.f32 0.70710677, %v10585_v32  ;;  %v5356_v1 = vpop.f32.mrb[207].mxu1  ;;  %v5502_v39 = vadd.f32 1.0, %v6555_v56  ;;  %v10597_v11 = vadd.f32 %v5354_v27, %v9379_v30  ;;  %v5532_v5 = vmul.f32 %v5500_v49, %v5404_v2 }
 0x8f2   : > { %v5444_v57 = vmul.f32 0.70710677, %v10589_v51  ;;  %v5533_v20 = vmul.f32 %v5501_v41, %v5405_v62  ;;  %v10600_v46 = vadd.f32 %v5356_v1, %v9379_v30 }
 0x8f3   : > { %6564 = verf.f32 %v5443_v4  ;;  %v5534_v21 = vmul.f32 %v5502_v39, %v5406_v37  ;;  %v5445_v53 = vmul.f32 0.70710677, %v10597_v11  ;;  %5208 = vmatmul.mubr.bf16.gmra.mrb[132].mxu0 %v10606_v45 }
 0x8f4   : > { %6566 = verf.f32 %v5444_v57  ;;  %v5561_v48 = vpack.c.bf16 %v5533_v20, %v5531_v15  ;;  %v5446_v61 = vmul.f32 0.70710677, %v10600_v46  ;;  %5217 = vmatprep.mubr.bf16.mxu0 %v11215_v52 }
 0x8f5   : > { %v6557_v29 = vpop.eup %6556  ;;  %6568 = verf.f32 %v5445_v53  ;;  %v5562_v38 = vpack.c.bf16 %v5534_v21, %v5532_v5  ;;  %v5411_v5 = vmul.f32 0.5, %v10585_v32 }
 0x8f6   : > { %v6559_v30 = vpop.eup %6558  ;;  %v5360_v42 = vpop.f32.mrb[208].mxu1  ;;  %v5503_v19 = vadd.f32 1.0, %v6557_v29  ;;  %6570 = verf.f32 %v5446_v61  ;;  %v5412_v61 = vmul.f32 0.5, %v10589_v51 }
 0x8f7   : > { %v10612_v16 = vadd.f32 %v5360_v42, %v9383_v23  ;;  %v5362_v7 = vpop.f32.mrb[209].mxu1  ;;  %v6561_v33 = vpop.eup %6560  ;;  %v5504_v40 = vadd.f32 1.0, %v6559_v30  ;;  %5577 = vmatprep.subr.bf16.mxu0 %v5562_v38  ;;  %v5413_v30 = vmul.f32 0.5, %v10597_v11 }
 0x8f8   : > { %v10616_v12 = vadd.f32 %v5362_v7, %v9383_v23  ;;  %v5364_v63 = vpop.f32.mrb[210].mxu1  ;;  %v6563_v54 = vpop.eup %6562  ;;  %v5505_v36 = vadd.f32 1.0, %v6561_v33  ;;  %5578 = vmatpush1.bf16.msra.mxu0 %v5561_v48  ;;  %v5535_v49 = vmul.f32 %v5503_v19, %v5407_v60  ;;  %v5414_v7 = vmul.f32 0.5, %v10600_v46  ;;  %v10660_v46 = vld [vmem:[%s10804_s7 + $0x18] sm:$0xff]  }
 0x8f9   : > { %v5447_v59 = vmul.f32 0.70710677, %v10612_v16  ;;  %v5366_v35 = vpop.f32.mrb[211].mxu1  ;;  %v5506_v50 = vadd.f32 1.0, %v6563_v54  ;;  %v10624_v23 = vadd.f32 %v5364_v63, %v9385_v6  ;;  %v5536_v25 = vmul.f32 %v5504_v40, %v5408_v24 }
 0x8fa   : > { %v5448_v9 = vmul.f32 0.70710677, %v10616_v12  ;;  %v5537_v27 = vmul.f32 %v5505_v36, %v5409_v26  ;;  %v10627_v8 = vadd.f32 %v5366_v35, %v9385_v6 }
 0x8fb   : > { %6572 = verf.f32 %v5447_v59  ;;  %v5538_v56 = vmul.f32 %v5506_v50, %v5410_v31  ;;  %v5449_v2 = vmul.f32 0.70710677, %v10624_v23  ;;  %5218 = vmatmul.mubr.bf16.gmra.mrb[136].mxu0 %v10633_v34 }
 0x8fc   : > { %6574 = verf.f32 %v5448_v9  ;;  %v5563_v41 = vpack.c.bf16 %v5537_v27, %v5535_v49  ;;  %v5450_v4 = vmul.f32 0.70710677, %v10627_v8  ;;  %5227 = vmatprep.mubr.bf16.mxu0 %v11215_v52  ;;  %v5415_v27 = vmul.f32 0.5, %v10612_v16 }
 0x8fd   : > { %v6565_v62 = vpop.eup %6564  ;;  %6576 = verf.f32 %v5449_v2  ;;  %v5564_v37 = vpack.c.bf16 %v5538_v56, %v5536_v25 }
 0x8fe   : > { %v6567_v6 = vpop.eup %6566  ;;  %v5370_v1 = vpop.f32.mrb[212].mxu1  ;;  %v5507_v39 = vadd.f32 1.0, %v6565_v62  ;;  %6578 = verf.f32 %v5450_v4  ;;  %v5417_v4 = vmul.f32 0.5, %v10624_v23 }
 0x8ff   : > { %v10639_v57 = vadd.f32 %v5370_v1, %v11409_v13  ;;  %v5372_v15 = vpop.f32.mrb[213].mxu1  ;;  %v6569_v20 = vpop.eup %6568  ;;  %v5508_v21 = vadd.f32 1.0, %v6567_v6  ;;  %5579 = vmatprep.subr.bf16.mxu0 %v5564_v37 }
 0x900   : > { %v10643_v53 = vadd.f32 %v5372_v15, %v11409_v13  ;;  %v5374_v29 = vpop.f32.mrb[214].mxu1  ;;  %v6571_v48 = vpop.eup %6570  ;;  %v5509_v42 = vadd.f32 1.0, %v6569_v20  ;;  %5580 = vmatpush1.bf16.msra.mxu0 %v5563_v41  ;;  %v5539_v60 = vmul.f32 %v5507_v39, %v5411_v5  ;;  %v5416_v41 = vmul.f32 0.5, %v10616_v12 }
 0x901   : > { %v5451_v38 = vmul.f32 0.70710677, %v10639_v57  ;;  %v5376_v19 = vpop.f32.mrb[215].mxu1  ;;  %v5510_v33 = vadd.f32 1.0, %v6571_v48  ;;  %v10651_v13 = vadd.f32 %v5374_v29, %v11410_v55  ;;  %v5540_v11 = vmul.f32 %v5508_v21, %v5412_v61 }
 0x902   : > { %v5452_v32 = vmul.f32 0.70710677, %v10643_v53  ;;  %v5541_v40 = vmul.f32 %v5509_v42, %v5413_v30  ;;  %v10654_v51 = vadd.f32 %v5376_v19, %v11410_v55  ;;  %v5418_v39 = vmul.f32 0.5, %v10627_v8 }
 0x903   : > { %6580 = verf.f32 %v5451_v38  ;;  %v5542_v63 = vmul.f32 %v5510_v33, %v5414_v7  ;;  %v5453_v54 = vmul.f32 0.70710677, %v10651_v13  ;;  %5228 = vmatmul.mubr.bf16.gmra.mrb[140].mxu0 %v10660_v46 }
 0x904   : > { %6582 = verf.f32 %v5452_v32  ;;  %v5565_v26 = vpack.c.bf16 %v5541_v40, %v5539_v60  ;;  %v5454_v36 = vmul.f32 0.70710677, %v10654_v51  ;;  %5607 = vmatprep.mubr.bf16.mxu0 %v11215_v52  ;;  %v5419_v60 = vmul.f32 0.5, %v10639_v57 }
 0x905   : > { %v6573_v24 = vpop.eup %6572  ;;  %6584 = verf.f32 %v5453_v54  ;;  %v5566_v35 = vpack.c.bf16 %v5542_v63, %v5540_v11  ;;  %v5420_v54 = vmul.f32 0.5, %v10643_v53 }
 0x906   : > { %v6575_v55 = vpop.eup %6574  ;;  %v5380_v59 = vpop.f32.mrb[216].mxu1  ;;  %v5511_v31 = vadd.f32 1.0, %v6573_v24  ;;  %6586 = verf.f32 %v5454_v36  ;;  %v5421_v24 = vmul.f32 0.5, %v10651_v13 }
 0x907   : > { %v10666_v50 = vadd.f32 %v5380_v59, %v11411_v22  ;;  %v5382_v9 = vpop.f32.mrb[217].mxu1  ;;  %v6577_v49 = vpop.eup %6576  ;;  %v5512_v25 = vadd.f32 1.0, %v6575_v55  ;;  %5581 = vmatprep.subr.bf16.mxu0 %v5566_v35  ;;  %v5422_v59 = vmul.f32 0.5, %v10654_v51 }
 0x908   : > { %v10670_v56 = vadd.f32 %v5382_v9, %v11411_v22  ;;  %v5384_v2 = vpop.f32.mrb[218].mxu1  ;;  %v6579_v62 = vpop.eup %6578  ;;  %v5513_v6 = vadd.f32 1.0, %v6577_v49  ;;  %5582 = vmatpush1.bf16.msra.mxu0 %v5565_v26  ;;  %v5543_v20 = vmul.f32 %v5511_v31, %v5415_v27 }
 0x909   : > { %v5455_v1 = vmul.f32 0.70710677, %v10666_v50  ;;  %v5386_v37 = vpop.f32.mrb[219].mxu1  ;;  %v5514_v15 = vadd.f32 1.0, %v6579_v62  ;;  %v5385_v22 = vadd.f32 %v5384_v2, %v9393_v58  ;;  %v5544_v12 = vmul.f32 %v5512_v25, %v5416_v41 }
 0x90a   : > { %v5456_v16 = vmul.f32 0.70710677, %v10670_v56  ;;  %v5545_v5 = vmul.f32 %v5513_v6, %v5417_v4  ;;  %v5387_v21 = vadd.f32 %v5386_v37, %v9393_v58 }
 0x90b   : > { %6588 = verf.f32 %v5455_v1  ;;  %v5546_v29 = vmul.f32 %v5514_v15, %v5418_v39  ;;  %v5457_v23 = vmul.f32 0.70710677, %v5385_v22  ;;  %v5423_v39 = vmul.f32 0.5, %v10666_v50 }
 0x90c   : > { %6590 = verf.f32 %v5456_v16  ;;  %v5567_v61 = vpack.c.bf16 %v5545_v5, %v5543_v20  ;;  %v5458_v30 = vmul.f32 0.70710677, %v5387_v21  ;;  %v5425_v15 = vmul.f32 0.5, %v5385_v22 }
 0x90d   : > { %v6581_v48 = vpop.eup %6580  ;;  %6592 = verf.f32 %v5457_v23  ;;  %v5568_v38 = vpack.c.bf16 %v5546_v29, %v5544_v12  ;;  %v5424_v16 = vmul.f32 0.5, %v10670_v56  ;;  %v5426_v20 = vmul.f32 0.5, %v5387_v21 }
 0x90e   : > { %v6583_v42 = vpop.eup %6582  ;;  %v5390_v8 = vpop.f32.mrb[220].mxu1  ;;  %v5515_v19 = vadd.f32 1.0, %v6581_v48  ;;  %6594 = verf.f32 %v5458_v30 }
 0x90f   : > { %v5391_v7 = vadd.f32 %v5390_v8, %v11412_v47  ;;  %v5392_v33 = vpop.f32.mrb[221].mxu1  ;;  %v6585_v32 = vpop.eup %6584  ;;  %v5516_v58 = vadd.f32 1.0, %v6583_v42  ;;  %5583 = vmatprep.subr.bf16.mxu0 %v5568_v38 }
 0x910   : > { %v5393_v40 = vadd.f32 %v5392_v33, %v11412_v47  ;;  %v5394_v11 = vpop.f32.mrb[222].mxu1  ;;  %v6587_v63 = vpop.eup %6586  ;;  %v5517_v26 = vadd.f32 1.0, %v6585_v32  ;;  %5584 = vmatpush1.bf16.msra.mxu0 %v5567_v61  ;;  %v5547_v9 = vmul.f32 %v5515_v19, %v5419_v60 }
 0x911   : > { %v5459_v36 = vmul.f32 0.70710677, %v5391_v7  ;;  %v5396_v55 = vpop.f32.mrb[223].mxu1  ;;  %v5518_v35 = vadd.f32 1.0, %v6587_v63  ;;  %v5395_v57 = vadd.f32 %v5394_v11, %v9397_v10  ;;  %v5548_v27 = vmul.f32 %v5516_v58, %v5420_v54 }
 0x912   : > { %v5460_v31 = vmul.f32 0.70710677, %v5393_v40  ;;  %v5549_v49 = vmul.f32 %v5517_v26, %v5421_v24  ;;  %v5397_v47 = vadd.f32 %v5396_v55, %v9397_v10  ;;  %v5427_v22 = vmul.f32 0.5, %v5391_v7  ;;  %v6619_v7 = vld [vmem:[%s10804_s7] sm:$0xff]  }
 0x913   : > { %6596 = verf.f32 %v5459_v36  ;;  %v5550_v25 = vmul.f32 %v5518_v35, %v5422_v59  ;;  %v5461_v53 = vmul.f32 0.70710677, %v5395_v57  ;;  %v5429_v32 = vmul.f32 0.5, %v5395_v57  ;;  %v5238_v55 = vld [vmem:[%s6695_s15 + $0x100] sm:$0xff] }
 0x914   : > { %6598 = verf.f32 %v5460_v31  ;;  %v5569_v2 = vpack.c.bf16 %v5549_v49, %v5547_v9  ;;  %v5462_v62 = vmul.f32 0.70710677, %v5397_v47  ;;  %v5428_v56 = vmul.f32 0.5, %v5393_v40  ;;  %v5239_v31 = vld [vmem:[%s6695_s15 + $0x108] sm:$0xff]  ;;  %v5240_v9 = vld [vmem:[%s6695_s15 + $0x110] sm:$0xff] }
 0x915   : > { %v6589_v13 = vpop.eup %6588  ;;  %6600 = verf.f32 %v5461_v53  ;;  %v5570_v4 = vpack.c.bf16 %v5550_v25, %v5548_v27  ;;  %v5430_v21 = vmul.f32 0.5, %v5397_v47 }
 0x916   : > { %v6591_v41 = vpop.eup %6590  ;;  %v5519_v51 = vadd.f32 1.0, %v6589_v13  ;;  %6602 = verf.f32 %v5462_v62 }
 0x917   : > { %v6593_v6 = vpop.eup %6592  ;;  %v5520_v1 = vadd.f32 1.0, %v6591_v41  ;;  %5585 = vmatprep.subr.bf16.mxu0 %v5570_v4  ;;  %v5243_v4 = vld [vmem:[%s6695_s15 + $0x128] sm:$0xff] }
 0x918   : > { %v6595_v37 = vpop.eup %6594  ;;  %v5521_v10 = vadd.f32 1.0, %v6593_v6  ;;  %5586 = vmatpush1.bf16.msra.mxu0 %v5569_v2  ;;  %v5551_v12 = vmul.f32 %v5519_v51, %v5423_v39  ;;  %v5242_v2 = vld [vmem:[%s6695_s15 + $0x120] sm:$0xff] }
 0x919   : > { %v5522_v5 = vadd.f32 1.0, %v6595_v37  ;;  %v5552_v23 = vmul.f32 %v5520_v1, %v5424_v16  ;;  %v5244_v1 = vld [vmem:[%s6695_s15 + $0x130] sm:$0xff] }
 0x91a   : > { %v5553_v29 = vmul.f32 %v5521_v10, %v5425_v15  ;;  %v5245_v10 = vld [vmem:[%s6695_s15 + $0x138] sm:$0xff] }
 0x91b   : > { %v5554_v48 = vmul.f32 %v5522_v5, %v5426_v20 }
 0x91c   : > { %v5571_v30 = vpack.c.bf16 %v5553_v29, %v5551_v12 }
 0x91d   : > { %v6597_v61 = vpop.eup %6596  ;;  %v5572_v8 = vpack.c.bf16 %v5554_v48, %v5552_v23  ;;  %v5246_v23 = vld [vmem:[%s6695_s15 + $0x140] sm:$0xff] }
 0x91e   : > { %v6599_v42 = vpop.eup %6598  ;;  %v5523_v38 = vadd.f32 1.0, %v6597_v61 }
 0x91f   : > { %v6601_v19 = vpop.eup %6600  ;;  %v5524_v33 = vadd.f32 1.0, %v6599_v42  ;;  %5587 = vmatprep.subr.bf16.mxu0 %v5572_v8 }
 0x920   : > { %v6603_v50 = vpop.eup %6602  ;;  %v5525_v60 = vadd.f32 1.0, %v6601_v19  ;;  %5588 = vmatpush1.bf16.msra.mxu0 %v5571_v30  ;;  %v5555_v11 = vmul.f32 %v5523_v38, %v5427_v22  ;;  %v5247_v30 = vld [vmem:[%s6695_s15 + $0x148] sm:$0xff]  ;;  %v5248_v38 = vld [vmem:[%s6695_s15 + $0x150] sm:$0xff]  ;;  %v5249_v22 = vld [vmem:[%s6695_s15 + $0x158] sm:$0xff] }
 0x921   : > { %v5526_v58 = vadd.f32 1.0, %v6603_v50  ;;  %v5556_v54 = vmul.f32 %v5524_v33, %v5428_v56 }
 0x922   : > { %v5557_v63 = vmul.f32 %v5525_v60, %v5429_v32 }
 0x923   : > { %v5558_v24 = vmul.f32 %v5526_v58, %v5430_v21 }
 0x924   : > { %v5573_v26 = vpack.c.bf16 %v5557_v63, %v5555_v11  ;;  %v5250_v11 = vld [vmem:[%s6695_s15 + $0x160] sm:$0xff] }
 0x925   : > { %v5574_v36 = vpack.c.bf16 %v5558_v24, %v5556_v54  ;;  %v5251_v24 = vld [vmem:[%s6695_s15 + $0x168] sm:$0xff] }
 0x927   : > { %5589 = vmatprep.subr.bf16.mxu0 %v5574_v36 }
 0x928   : > { %5590 = vmatpush1.bf16.msra.mxu0 %v5573_v26 }
 0x92b   : > { %5608 = vmatmul.mubr.bf16.vlgmr.msra.gmra.mrb[144].mxu0 %v6619_v7  ;;  %v5252_v7 = vld [vmem:[%s6695_s15 + $0x170] sm:$0xff] }
 0x92c   : > { %5617 = vmatprep.mubr.bf16.mxu0 %v11215_v52 }
 0x933   : > { %5618 = vmatmul.mubr.bf16.gmra.mrb[148].mxu0 %v10606_v45 }
 0x934   : > { %5627 = vmatprep.mubr.bf16.mxu0 %v11215_v52 }
 0x93b   : > { %5628 = vmatmul.mubr.bf16.gmra.mrb[152].mxu0 %v10633_v34 }
 0x93c   : > { %5637 = vmatprep.mubr.bf16.mxu0 %v11215_v52 }
 0x943   : > { %5638 = vmatmul.mubr.bf16.gmra.mrb[156].mxu0 %v10660_v46  ;;  %v5241_v46 = vld [vmem:[%s6695_s15 + $0x118] sm:$0xff] }
 0x9be   : > { %v5199_v40 = vpop.f32.mrb[128].mxu0 }
 0x9bf   : > { %v5200_v59 = vadd.f32 %v5199_v40, %v11396_v44  ;;  %v5201_v35 = vpop.f32.mrb[129].mxu0 }
 0x9c0   : > { %v5202_v45 = vadd.f32 %v5201_v35, %v11396_v44  ;;  %v5203_v57 = vpop.f32.mrb[130].mxu0  ;;  %v5253_v35 = vld [vmem:[%s6695_s15 + $0x178] sm:$0xff] }
 0x9c1   : > { %v5254_v34 = vadd.f32 %v5238_v55, %v5200_v59  ;;  %v5204_v52 = vadd.f32 %v5203_v57, %v11397_v17  ;;  %v5205_v49 = vpop.f32.mrb[131].mxu0 }
 0x9c2   : > { %v5255_v47 = vadd.f32 %v5239_v31, %v5202_v45  ;;  %v5206_v27 = vadd.f32 %v5205_v49, %v11397_v17 }
 0x9c3   : > { %5270 = vst [vmem:[%s10109_s27 + $0x100] sm:$0xff] %v5254_v34  ;;  %v5256_v25 = vadd.f32 %v5240_v9, %v5204_v52  ;;  %v5648_v52 = vld [vmem:[%s6695_s15 + $0x180] sm:$0xff] }
 0x9c4   : > { %5271 = vst [vmem:[%s10109_s27 + $0x108] sm:$0xff] %v5255_v47  ;;  %v5257_v53 = vadd.f32 %v5241_v46, %v5206_v27  ;;  %v5649_v47 = vld [vmem:[%s6695_s15 + $0x188] sm:$0xff] }
 0x9c5   : > { %5272 = vst [vmem:[%s10109_s27 + $0x110] sm:$0xff] %v5256_v25 }
 0x9c6   : > { %5273 = vst [vmem:[%s10109_s27 + $0x118] sm:$0xff] %v5257_v53  ;;  %v5209_v13 = vpop.f32.mrb[132].mxu0  ;;  %v5650_v53 = vld [vmem:[%s6695_s15 + $0x190] sm:$0xff] }
 0x9c7   : > { %v5210_v62 = vadd.f32 %v5209_v13, %v11398_v43  ;;  %v5211_v41 = vpop.f32.mrb[133].mxu0 }
 0x9c8   : > { %v5212_v51 = vadd.f32 %v5211_v41, %v11398_v43  ;;  %v5213_v6 = vpop.f32.mrb[134].mxu0  ;;  %v5651_v41 = vld [vmem:[%s6695_s15 + $0x198] sm:$0xff] }
 0x9c9   : > { %v5258_v37 = vadd.f32 %v5242_v2, %v5210_v62  ;;  %v5214_v39 = vadd.f32 %v5213_v6, %v11399_v18  ;;  %v5215_v15 = vpop.f32.mrb[135].mxu0 }
 0x9ca   : > { %v5259_v16 = vadd.f32 %v5243_v4, %v5212_v51  ;;  %v5216_v20 = vadd.f32 %v5215_v15, %v11399_v18 }
 0x9cb   : > { %5274 = vst [vmem:[%s10109_s27 + $0x120] sm:$0xff] %v5258_v37  ;;  %v5260_v5 = vadd.f32 %v5244_v1, %v5214_v39  ;;  %v5652_v37 = vld [vmem:[%s6695_s15 + $0x1a0] sm:$0xff] }
 0x9cc   : > { %5275 = vst [vmem:[%s10109_s27 + $0x128] sm:$0xff] %v5259_v16  ;;  %v5261_v12 = vadd.f32 %v5245_v10, %v5216_v20  ;;  %v5653_v10 = vld [vmem:[%s6695_s15 + $0x1a8] sm:$0xff]  ;;  %v5654_v20 = vld [vmem:[%s6695_s15 + $0x1b0] sm:$0xff] }
 0x9cd   : > { %5276 = vst [vmem:[%s10109_s27 + $0x130] sm:$0xff] %v5260_v5 }
 0x9ce   : > { %5277 = vst [vmem:[%s10109_s27 + $0x138] sm:$0xff] %v5261_v12  ;;  %v5219_v29 = vpop.f32.mrb[136].mxu0 }
 0x9cf   : > { %v5220_v48 = vadd.f32 %v5219_v29, %v11400_v0  ;;  %v5221_v61 = vpop.f32.mrb[137].mxu0 }
 0x9d0   : > { %v5222_v42 = vadd.f32 %v5221_v61, %v11400_v0  ;;  %v5223_v8 = vpop.f32.mrb[138].mxu0 }
 0x9d1   : > { %v5262_v19 = vadd.f32 %v5246_v23, %v5220_v48  ;;  %v5224_v33 = vadd.f32 %v5223_v8, %v11401_v3  ;;  %v5225_v50 = vpop.f32.mrb[139].mxu0  ;;  %v5655_v23 = vld [vmem:[%s6695_s15 + $0x1b8] sm:$0xff]  ;;  %v5656_v8 = vld [vmem:[%s6695_s15 + $0x1c0] sm:$0xff] }
 0x9d2   : > { %v5263_v32 = vadd.f32 %v5247_v30, %v5222_v42  ;;  %v5226_v60 = vadd.f32 %v5225_v50, %v11401_v3 }
 0x9d3   : > { %5278 = vst [vmem:[%s10109_s27 + $0x140] sm:$0xff] %v5262_v19  ;;  %v5264_v56 = vadd.f32 %v5248_v38, %v5224_v33  ;;  %v5657_v33 = vld [vmem:[%s6695_s15 + $0x1c8] sm:$0xff] }
 0x9d4   : > { %5279 = vst [vmem:[%s10109_s27 + $0x148] sm:$0xff] %v5263_v32  ;;  %v5265_v21 = vadd.f32 %v5249_v22, %v5226_v60  ;;  %v5658_v22 = vld [vmem:[%s6695_s15 + $0x1d0] sm:$0xff] }
 0x9d5   : > { %5280 = vst [vmem:[%s10109_s27 + $0x150] sm:$0xff] %v5264_v56 }
 0x9d6   : > { %5281 = vst [vmem:[%s10109_s27 + $0x158] sm:$0xff] %v5265_v21  ;;  %v5229_v58 = vpop.f32.mrb[140].mxu0  ;;  %v5659_v21 = vld [vmem:[%s6695_s15 + $0x1d8] sm:$0xff] }
 0x9d7   : > { %v5230_v63 = vadd.f32 %v5229_v58, %v11402_v28  ;;  %v5231_v54 = vpop.f32.mrb[141].mxu0 }
 0x9d8   : > { %v5232_v26 = vadd.f32 %v5231_v54, %v11402_v28  ;;  %v5233_v36 = vpop.f32.mrb[142].mxu0 }
 0x9d9   : > { %v5266_v40 = vadd.f32 %v5250_v11, %v5230_v63  ;;  %v5234_v55 = vadd.f32 %v5233_v36, %v11403_v14  ;;  %v5235_v59 = vpop.f32.mrb[143].mxu0 }
 0x9da   : > { %v5267_v31 = vadd.f32 %v5251_v24, %v5232_v26  ;;  %v5236_v45 = vadd.f32 %v5235_v59, %v11403_v14  ;;  %v5660_v24 = vld [vmem:[%s6695_s15 + $0x1e0] sm:$0xff] }
 0x9db   : > { %5282 = vst [vmem:[%s10109_s27 + $0x160] sm:$0xff] %v5266_v40  ;;  %v5268_v57 = vadd.f32 %v5252_v7, %v5234_v55  ;;  %v5661_v7 = vld [vmem:[%s6695_s15 + $0x1e8] sm:$0xff]  ;;  %v5662_v55 = vld [vmem:[%s6695_s15 + $0x1f0] sm:$0xff] }
 0x9dc   : > { %5283 = vst [vmem:[%s10109_s27 + $0x168] sm:$0xff] %v5267_v31  ;;  %v5269_v9 = vadd.f32 %v5253_v35, %v5236_v45  ;;  %v5663_v45 = vld [vmem:[%s6695_s15 + $0x1f8] sm:$0xff] }
 0x9dd   : > { %5284 = vst [vmem:[%s10109_s27 + $0x170] sm:$0xff] %v5268_v57 }
 0x9de   : > { %5285 = vst [vmem:[%s10109_s27 + $0x178] sm:$0xff] %v5269_v9 }
 0x9fe   : > { %v5609_v34 = vpop.f32.mrb[144].mxu0 }
 0x9ff   : > { %v5610_v49 = vadd.f32 %v5609_v34, %v11396_v44  ;;  %v5611_v46 = vpop.f32.mrb[145].mxu0 }
 0xa00   : > { %v5612_v27 = vadd.f32 %v5611_v46, %v11396_v44  ;;  %v5613_v25 = vpop.f32.mrb[146].mxu0 }
 0xa01   : > { %v5664_v13 = vadd.f32 %v5648_v52, %v5610_v49  ;;  %v5614_v2 = vadd.f32 %v5613_v25, %v11397_v17  ;;  %v5615_v62 = vpop.f32.mrb[147].mxu0 }
 0xa02   : > { %v5665_v4 = vadd.f32 %v5649_v47, %v5612_v27  ;;  %v5616_v51 = vadd.f32 %v5615_v62, %v11397_v17 }
 0xa03   : > { %5680 = vst [vmem:[%s10109_s27 + $0x180] sm:$0xff] %v5664_v13  ;;  %v5666_v6 = vadd.f32 %v5650_v53, %v5614_v2 }
 0xa04   : > { %5681 = vst [vmem:[%s10109_s27 + $0x188] sm:$0xff] %v5665_v4  ;;  %v5667_v1 = vadd.f32 %v5651_v41, %v5616_v51 }
 0xa05   : > { %5682 = vst [vmem:[%s10109_s27 + $0x190] sm:$0xff] %v5666_v6 }
 0xa06   : > { %5683 = vst [vmem:[%s10109_s27 + $0x198] sm:$0xff] %v5667_v1  ;;  %v5619_v44 = vpop.f32.mrb[148].mxu0 }
 0xa07   : > { %v5620_v39 = vadd.f32 %v5619_v44, %v11398_v43  ;;  %v5621_v15 = vpop.f32.mrb[149].mxu0 }
 0xa08   : > { %v5622_v16 = vadd.f32 %v5621_v15, %v11398_v43  ;;  %v5623_v17 = vpop.f32.mrb[150].mxu0 }
 0xa09   : > { %v5668_v5 = vadd.f32 %v5652_v37, %v5620_v39  ;;  %v5624_v12 = vadd.f32 %v5623_v17, %v11399_v18  ;;  %v5625_v29 = vpop.f32.mrb[151].mxu0 }
 0xa0a   : > { %v5669_v48 = vadd.f32 %v5653_v10, %v5622_v16  ;;  %v5626_v61 = vadd.f32 %v5625_v29, %v11399_v18 }
 0xa0b   : > { %5684 = vst [vmem:[%s10109_s27 + $0x1a0] sm:$0xff] %v5668_v5  ;;  %v5670_v30 = vadd.f32 %v5654_v20, %v5624_v12 }
 0xa0c   : > { %5685 = vst [vmem:[%s10109_s27 + $0x1a8] sm:$0xff] %v5669_v48  ;;  %v5671_v42 = vadd.f32 %v5655_v23, %v5626_v61 }
 0xa0d   : > { %5686 = vst [vmem:[%s10109_s27 + $0x1b0] sm:$0xff] %v5670_v30 }
 0xa0e   : > { %5687 = vst [vmem:[%s10109_s27 + $0x1b8] sm:$0xff] %v5671_v42  ;;  %v5629_v43 = vpop.f32.mrb[152].mxu0 }
 0xa0f   : > { %v5630_v38 = vadd.f32 %v5629_v43, %v11400_v0  ;;  %v5631_v19 = vpop.f32.mrb[153].mxu0 }
 0xa10   : > { %v5632_v50 = vadd.f32 %v5631_v19, %v11400_v0  ;;  %v5633_v18 = vpop.f32.mrb[154].mxu0 }
 0xa11   : > { %v5672_v32 = vadd.f32 %v5656_v8, %v5630_v38  ;;  %v5634_v60 = vadd.f32 %v5633_v18, %v11401_v3  ;;  %v5635_v56 = vpop.f32.mrb[155].mxu0 }
 0xa12   : > { %v5673_v58 = vadd.f32 %v5657_v33, %v5632_v50  ;;  %v5636_v11 = vadd.f32 %v5635_v56, %v11401_v3 }
 0xa13   : > { %5688 = vst [vmem:[%s10109_s27 + $0x1c0] sm:$0xff] %v5672_v32  ;;  %v5674_v63 = vadd.f32 %v5658_v22, %v5634_v60 }
 0xa14   : > { %5689 = vst [vmem:[%s10109_s27 + $0x1c8] sm:$0xff] %v5673_v58  ;;  %v5675_v54 = vadd.f32 %v5659_v21, %v5636_v11 }
 0xa15   : > { %5690 = vst [vmem:[%s10109_s27 + $0x1d0] sm:$0xff] %v5674_v63 }
 0xa16   : > { %5691 = vst [vmem:[%s10109_s27 + $0x1d8] sm:$0xff] %v5675_v54  ;;  %v5639_v0 = vpop.f32.mrb[156].mxu0 }
 0xa17   : > { %v5640_v26 = vadd.f32 %v5639_v0, %v11402_v28  ;;  %v5641_v36 = vpop.f32.mrb[157].mxu0 }
 0xa18   : > { %v5642_v40 = vadd.f32 %v5641_v36, %v11402_v28  ;;  %v5643_v3 = vpop.f32.mrb[158].mxu0 }
 0xa19   : > { %v5676_v59 = vadd.f32 %v5660_v24, %v5640_v26  ;;  %v5644_v35 = vadd.f32 %v5643_v3, %v11403_v14  ;;  %v5645_v31 = vpop.f32.mrb[159].mxu0 }
 0xa1a   : > { %v5677_v57 = vadd.f32 %v5661_v7, %v5642_v40  ;;  %v5646_v9 = vadd.f32 %v5645_v31, %v11403_v14 }
 0xa1b   : > { %5692 = vst [vmem:[%s10109_s27 + $0x1e0] sm:$0xff] %v5676_v59  ;;  %v5678_v34 = vadd.f32 %v5662_v55, %v5644_v35 }
 0xa1c   : > { %5693 = vst [vmem:[%s10109_s27 + $0x1e8] sm:$0xff] %v5677_v57  ;;  %v5679_v52 = vadd.f32 %v5663_v45, %v5646_v9 }
 0xa1d   : > { %5694 = vst [vmem:[%s10109_s27 + $0x1f0] sm:$0xff] %v5678_v34 }
 0xa1e   : > { %5695 = vst [vmem:[%s10109_s27 + $0x1f8] sm:$0xff] %v5679_v52 }
 0xa1f PF: > { %s19_s30 = sadd.s32 1, %s6626_s30  }
 0xa20   : > { %p16_p4 = scmp.ge.s32.totalorder %s19_s30, 4  }
 0xa22   :  { %18 = sbr.rel (!%p16_p4) target bundleno = 1 (0x1), region = 86 }

</bundles_post_ra>
